<compile_context>
chip_gen: v6e
topology: v6e:2x2x1
jax: 0.10.0
libtpu: 0.0.40
codegen_flags: <defaults>
</compile_context>

<pallas_src>
import functools
import math

import jax
import jax.numpy as jnp
import numpy as np
from jax.experimental import pallas as pl
from jax.experimental.pallas import tpu as pltpu


# -----------------------------------------------------------------------------
# Sizing helpers
# -----------------------------------------------------------------------------
def _vmem_limit_bytes():
    """Per-generation scoped-VMEM budget (review: don't hardcode 64 MiB)."""
    try:
        info = pltpu.get_tpu_info()
        cap = getattr(info, "vmem_capacity_bytes", None) or getattr(info, "vmem_bytes", None)
        if cap:
            # ~85% of physical, leaving headroom for Mosaic internal scratch:
            # ~108 MiB on v5e/v6e (128 MiB), ~54 MiB on v7x (64 MiB).
            return int(min(cap - 8 * 1024 * 1024, int(cap * 0.85)))
    except Exception:
        pass
    return 48 * 1024 * 1024  # safe on every generation (v7x = 64 MiB physical)


def _choose_batch_block(B, T, target_rows=256, max_bblk=8):
    """Smallest divisor of B (capped) giving >= target_rows matmul rows."""
    best = 1
    for c in range(1, min(B, max_bblk) + 1):
        if B % c == 0:
            best = c
            if c * T >= target_rows:
                break
    return best


# -----------------------------------------------------------------------------
# Fused whole-decoder kernel: grid = (batch blocks, layers)
# -----------------------------------------------------------------------------
def fused_decoder_kernel(x_ref, pe_ref, tri_ref, mem_ref, tpadb_ref, spadb_ref,
                         sw_ref, sb_ref, cw_ref, cb_ref,
                         w1_ref, b1_ref, w2_ref, b2_ref,
                         lng_ref, lnb_ref, out_ref,
                         *, n_head, embed_scale, compute_dtype, approx_recip):
    l = pl.program_id(1)                       # layer index (innermost, "arbitrary")
    bblk, T, D = out_ref.shape
    S = mem_ref.shape[1]
    H = n_head
    hd = D // H
    N = bblk * T
    inv_sqrt_hd = 1.0 / math.sqrt(hd)
    cdt = compute_dtype

    # Layer 0 of each batch block: fused embed-scale + positional encoding into
    # the resident carry. out_ref is the layer-to-layer activation carry (its
    # block index is constant across l, so it stays in VMEM until b changes).
    @pl.when(l == 0)
    def _init():
        out_ref[...] = x_ref[...] * embed_scale + pe_ref[...][None]

    x = out_ref[...].reshape(N, D)             # (N, D) f32 carry
    mem = mem_ref[...].reshape(bblk * S, D)    # compute dtype (cast on host)
    tri = tri_ref[...]                         # (T, T) additive causal bias (host-built)
    tpadb = tpadb_ref[...]                     # (bblk, 1, T) additive pad bias
    spadb = spadb_ref[...]                     # (bblk, 1, S)
    lng = lng_ref[0]                           # (3, D) f32
    lnb = lnb_ref[0]

    def layer_norm(v, g, b):                   # f32 math (v5e has no bf16 VPU/EUP)
        mu = jnp.mean(v, axis=-1, keepdims=True)
        var = jnp.mean((v - mu) ** 2, axis=-1, keepdims=True)
        return (v - mu) * jax.lax.rsqrt(var + 1e-5) * g[None, :] + b[None, :]

    def attention(q_rows, kv_rows, Lk, w_ref_, b_ref_, pad_bias, causal):
        # q_rows: (N, D) f32; kv_rows: (bblk*Lk, D). Projections are row-batched
        # over the whole (bblk*T) block -> large-M MXU matmuls.
        w = w_ref_[0]                          # (4, D, D) compute dtype  (q/k/v/out)
        b = b_ref_[0]                          # (4, D) f32
        q = jnp.dot(q_rows.astype(cdt), w[0], preferred_element_type=jnp.float32) + b[0][None]
        k = jnp.dot(kv_rows.astype(cdt), w[1], preferred_element_type=jnp.float32) + b[1][None]
        v = jnp.dot(kv_rows.astype(cdt), w[2], preferred_element_type=jnp.float32) + b[2][None]
        qh = q.reshape(bblk, T, H, hd).astype(cdt)
        kh = k.reshape(bblk, Lk, H, hd).astype(cdt)
        vh = v.reshape(bblk, Lk, H, hd).astype(cdt)
        # Output projection folded per head: no (Lq,H,hd)->(Lq,D) relayout.
        w_out_h = w[3].reshape(H, hd, D)
        outs = []
        # TODO(synk): merge (bblk, H) into one multi-batch einsum once Mosaic's
        # multi-batch dot_general support is confirmed, and add flash/q-tiling +
        # KV-loop online softmax for production T (scores are (H,T,Lk) f32).
        for e in range(bblk):
            sc = jnp.einsum("qhd,khd->hqk", qh[e], kh[e],
                            preferred_element_type=jnp.float32)       # (H, T, Lk) f32
            bias = pad_bias[e]                                        # (1, Lk)
            if causal:
                bias = tri + bias                                     # (T, Lk=T)
            # Additive -1e9 bias BEFORE the 1/sqrt(hd) scaling (see header note).
            # Fully padded query rows yield a uniform softmax, same as reference.
            sc = (sc + bias[None]) * inv_sqrt_hd
            sc = sc - jnp.max(sc, axis=-1, keepdims=True)             # f32 softmax
            p = jnp.exp(sc)
            inv = pl.reciprocal(jnp.sum(p, axis=-1, keepdims=True), approx=approx_recip)
            p = p * inv                                               # EUP recip + VPU mul
            ctx = jnp.einsum("hqk,khd->hqd", p.astype(cdt), vh[e],
                             preferred_element_type=jnp.float32)      # (H, T, hd)
            o_h = jnp.einsum("hqd,hde->hqe", ctx.astype(cdt), w_out_h,
                             preferred_element_type=jnp.float32)      # (H, T, D)
            outs.append(jnp.sum(o_h, axis=0))                         # (T, D)
        o = outs[0] if bblk == 1 else jnp.stack(outs, axis=0).reshape(N, D)
        return o + b[3][None]

    # sublayer 1: pre-LN masked self-attention + residual
    x_ln = layer_norm(x, lng[0], lnb[0])
    x = x + attention(x_ln, x_ln, T, sw_ref, sb_ref, tpadb, causal=True)
    # sublayer 2: pre-LN cross-attention over encoder memory + residual
    x_ln = layer_norm(x, lng[1], lnb[1])
    x = x + attention(x_ln, mem, S, cw_ref, cb_ref, spadb, causal=False)
    # sublayer 3: pre-LN position-wise FFN + residual
    # TODO(synk): K-tile the 4*D hidden dim for production D on v7x (VMEM budget).
    x_ln = layer_norm(x, lng[2], lnb[2])
    h = jnp.dot(x_ln.astype(cdt), w1_ref[0], preferred_element_type=jnp.float32) + b1_ref[0]
    h = jnp.maximum(h, 0.0)
    ff = jnp.dot(h.astype(cdt), w2_ref[0], preferred_element_type=jnp.float32) + b2_ref[0]
    x = x + ff

    out_ref[...] = x.reshape(bblk, T, D)       # carry for next layer / final output


# -----------------------------------------------------------------------------
# Full Decoder forward (ONE pallas_call)
# -----------------------------------------------------------------------------
def decoder_forward(prev_tgt_tokens, encoder_out, src_mask, tgt_mask,
                    emb_table, pe, layer_params, d_model, n_head,
                    compute_dtype=jnp.float32, approx_recip=None):
    B, T = prev_tgt_tokens.shape
    S = encoder_out.shape[1]
    D = d_model
    assert D % n_head == 0
    if approx_recip is None:
        # EUP approx reciprocal on the bf16 production path; exact on the f32
        # path so the tight numerics check against the reference holds.
        approx_recip = compute_dtype != jnp.float32

    # Embedding lookup is a data-dependent gather; done in plain JAX glue.
    # TODO(synk): move the gather into Pallas via scalar-prefetch row indices.
    tgt_embed = jnp.take(emb_table, prev_tgt_tokens, axis=0).astype(jnp.float32)
    pe_slice = pe[:T].astype(jnp.float32)      # tiny, fetched once -> kept f32
    embed_scale = float(d_model) ** 0.5

    if not layer_params:                       # degenerate case: no layers
        return tgt_embed * embed_scale + pe_slice[None]

    L = len(layer_params)

    def stack(idx, dtype=None):
        a = jnp.stack([p[idx] for p in layer_params], axis=0)
        return a.astype(dtype if dtype is not None else jnp.float32)

    # Matmul weights streamed in compute_dtype (bf16 halves HBM->VMEM traffic);
    # biases / LayerNorm params stay f32.
    # TODO(synk): optional int8 (v5e/v6e) / fp8 (v7x) weight quantization with
    # per-output-channel scales to halve weight bytes again.
    swL, sbL = stack(0, compute_dtype), stack(1)
    cwL, cbL = stack(2, compute_dtype), stack(3)
    w1L, b1L = stack(4, compute_dtype), stack(5)
    w2L, b2L = stack(6, compute_dtype), stack(7)
    lngL, lnbL = stack(8), stack(9)

    memory = encoder_out.astype(compute_dtype)  # only ever a matmul operand

    # Grid-invariant additive masks precomputed on the host.
    tri = jnp.where(jnp.triu(jnp.ones((T, T), dtype=bool), k=1),
                    -1.0e9, 0.0).astype(jnp.float32)                       # (T, T)
    tpadb = jnp.where(tgt_mask, -1.0e9, 0.0).astype(jnp.float32)[:, None, :]  # (B,1,T)
    spadb = jnp.where(src_mask, -1.0e9, 0.0).astype(jnp.float32)[:, None, :]  # (B,1,S)

    bblk = _choose_batch_block(B, T)
    nb = B // bblk

    def bmap(b, l):                             # per-batch-block, layer-invariant
        return (b, 0, 0)

    def cmap(b, l):                             # constant -> fetched once
        return (0, 0)

    def wspec(arr):                             # per-layer weight block
        nd = arr.ndim
        return pl.BlockSpec((1,) + arr.shape[1:],
                            lambda b, l, _nd=nd: (l,) + (0,) * (_nd - 1))

    in_specs = [
        pl.BlockSpec((bblk, T, D), bmap),       # token embeddings
        pl.BlockSpec((T, D), cmap),             # positional encoding
        pl.BlockSpec((T, T), cmap),             # causal -1e9 triangle
        pl.BlockSpec((bblk, S, D), bmap),       # encoder memory (compute dtype)
        pl.BlockSpec((bblk, 1, T), bmap),       # tgt pad bias
        pl.BlockSpec((bblk, 1, S), bmap),       # src pad bias
        wspec(swL), wspec(sbL), wspec(cwL), wspec(cbL),
        wspec(w1L), wspec(b1L), wspec(w2L), wspec(b2L),
        wspec(lngL), wspec(lnbL),
    ]

    kernel = functools.partial(
        fused_decoder_kernel, n_head=n_head, embed_scale=embed_scale,
        compute_dtype=compute_dtype, approx_recip=approx_recip)

    # TODO(synk): try pltpu.CORE_PARALLEL on the batch axis for v7x (2 TCs/chip).
    return pl.pallas_call(
        kernel,
        out_shape=jax.ShapeDtypeStruct((B, T, D), jnp.float32),
        grid=(nb, L),
        in_specs=in_specs,
        out_specs=pl.BlockSpec((bblk, T, D), bmap),
        compiler_params=pltpu.CompilerParams(
            dimension_semantics=("parallel", "arbitrary"),
            vmem_limit_bytes=_vmem_limit_bytes(),
        ),
    )(tgt_embed, pe_slice, tri, memory, tpadb, spadb,
      swL, sbL, cwL, cbL, w1L, b1L, w2L, b2L, lngL, lnbL)


# -----------------------------------------------------------------------------
# Pure-JAX reference (mirrors the PyTorch math) for verification
# -----------------------------------------------------------------------------
def ref_forward(prev_tgt_tokens, encoder_out, src_mask, tgt_mask,
                emb_table, pe, layer_params, d_model, n_head):
    B, T = prev_tgt_tokens.shape
    x = jnp.take(emb_table, prev_tgt_tokens, axis=0) * (d_model ** 0.5) + pe[:T][None]

    subsequent = jnp.triu(jnp.ones((T, T), dtype=bool), k=1)
    self_mask = tgt_mask[:, None, :] | subsequent[None]            # (B, T, T)
    cross_mask = src_mask[:, None, :]                              # (B, 1, S)

    def ln(v, g, b):
        mu = v.mean(-1, keepdims=True)
        var = ((v - mu) ** 2).mean(-1, keepdims=True)
        return (v - mu) / jnp.sqrt(var + 1e-5) * g + b

    def mha(q_in, kv_in, w, b, mask):
        Bq, Tq, D = q_in.shape
        Skv = kv_in.shape[1]
        hd = D // n_head
        Q = (q_in @ w[0] + b[0]).reshape(Bq, Tq, n_head, hd).transpose(0, 2, 1, 3)
        K = (kv_in @ w[1] + b[1]).reshape(Bq, Skv, n_head, hd).transpose(0, 2, 1, 3)
        V = (kv_in @ w[2] + b[2]).reshape(Bq, Skv, n_head, hd).transpose(0, 2, 1, 3)
        sc = jnp.einsum('bhtd,bhsd->bhts', Q, K)
        sc = jnp.where(mask[:, None], -1.0e9, sc)
        attn = jax.nn.softmax(sc / math.sqrt(hd), axis=-1)
        o = jnp.einsum('bhts,bhsd->bhtd', attn, V).transpose(0, 2, 1, 3).reshape(Bq, Tq, D)
        return o @ w[3] + b[3]

    for (sw, sb, cw, cb, w1, b1, w2, b2, lng, lnb) in layer_params:
        x_ln = ln(x, lng[0], lnb[0]);  x = x + mha(x_ln, x_ln, sw, sb, self_mask)
        x_ln = ln(x, lng[1], lnb[1]);  x = x + mha(x_ln, encoder_out, cw, cb, cross_mask)
        x_ln = ln(x, lng[2], lnb[2])
        x = x + jax.nn.relu(x_ln @ w1 + b1) @ w2 + b2
    return x


# -----------------------------------------------------------------------------
# Parameter init (deterministic, synthetic)
# -----------------------------------------------------------------------------
def init_layer_params(key, D):
    ks = jax.random.split(key, 8)
    sw = jax.random.normal(ks[0], (4, D, D), jnp.float32) * 0.1
    sb = jax.random.normal(ks[1], (4, D), jnp.float32) * 0.1
    cw = jax.random.normal(ks[2], (4, D, D), jnp.float32) * 0.1
    cb = jax.random.normal(ks[3], (4, D), jnp.float32) * 0.1
    w1 = jax.random.normal(ks[4], (D, 4 * D), jnp.float32) * 0.1
    b1 = jax.random.normal(ks[5], (1, 4 * D), jnp.float32) * 0.1
    w2 = jax.random.normal(ks[6], (4 * D, D), jnp.float32) * 0.1
    b2 = jax.random.normal(ks[7], (1, D), jnp.float32) * 0.1
    lng = jnp.ones((3, D), jnp.float32)
    lnb = jnp.zeros((3, D), jnp.float32)
    return (sw, sb, cw, cb, w1, b1, w2, b2, lng, lnb)


def make_pos_encode(max_seq_len, d_model):
    pos = jnp.arange(max_seq_len, dtype=jnp.float32)[:, None]
    i = jnp.arange(d_model)[None, :]
    angle = pos / (10000.0 ** (2.0 * (i // 2).astype(jnp.float32) / d_model))
    return jnp.where(i % 2 == 0, jnp.sin(angle), jnp.cos(angle)).astype(jnp.float32)


if __name__ == "__main__":
    # small shapes consistent with the module (D a multiple of 128 -> lane-dense)
    B, T, S = 2, 8, 8
    D_MODEL, N_HEAD, N_LAYERS = 128, 4, 2
    N_TGT_WORDS, TGT_PDX = 50, 0
    MAX_SEQ_LEN = 16

    key = jax.random.PRNGKey(0)
    k_emb, k_tok, k_mem, *k_layers = jax.random.split(key, 3 + N_LAYERS)

    # embedding table (padding row zeroed, as nn.Embedding(padding_idx=...) does)
    emb_table = jax.random.normal(k_emb, (N_TGT_WORDS, D_MODEL), jnp.float32) * 0.1
    emb_table = emb_table.at[TGT_PDX].set(0.0)

    pe = make_pos_encode(MAX_SEQ_LEN, D_MODEL)
    layer_params = [init_layer_params(k, D_MODEL) for k in k_layers]

    # target tokens with trailing padding on batch element 1
    prev_tgt_tokens = jax.random.randint(k_tok, (B, T), 1, N_TGT_WORDS, dtype=jnp.int32)
    prev_tgt_tokens = prev_tgt_tokens.at[1, 6:].set(TGT_PDX)
    tgt_mask = prev_tgt_tokens == TGT_PDX            # True = padding

    encoder_out = jax.random.normal(k_mem, (B, S, D_MODEL), jnp.float32) * 0.5
    src_mask = jnp.zeros((B, S), dtype=bool).at[0, 7].set(True)  # True = padding

    ref = ref_forward(prev_tgt_tokens, encoder_out, src_mask, tgt_mask,
                      emb_table, pe, layer_params, D_MODEL, N_HEAD)

    # f32 matmul path (exact reciprocal): tight check against the reference.
    out_f32 = decoder_forward(prev_tgt_tokens, encoder_out, src_mask, tgt_mask,
                              emb_table, pe, layer_params, D_MODEL, N_HEAD,
                              compute_dtype=jnp.float32)
    out_f32 = jax.block_until_ready(out_f32)
    np.testing.assert_allclose(np.asarray(out_f32), np.asarray(ref),
                               rtol=1e-4, atol=1e-4)

    # bf16 matmul path (f32 accumulation, f32 LN/softmax, approx EUP reciprocal):
    # loose sanity check.
    out_bf16 = decoder_forward(prev_tgt_tokens, encoder_out, src_mask, tgt_mask,
                               emb_table, pe, layer_params, D_MODEL, N_HEAD,
                               compute_dtype=jnp.bfloat16)
    out_bf16 = jax.block_until_ready(out_bf16)
    np.testing.assert_allclose(np.asarray(out_bf16), np.asarray(ref),
                               rtol=1e-1, atol=1e-1)

    print("KERNEL_OK")
</pallas_src>

<mosaic_0001>
module attributes {stable_mosaic.version = 11 : i64} {
  func.func @fused_decoder_kernel(%arg0: i32, %arg1: i32, %arg2: memref<2x8x128xf32, #tpu.memory_space<vmem>>, %arg3: memref<8x128xf32, #tpu.memory_space<vmem>>, %arg4: memref<8x8xf32, #tpu.memory_space<vmem>>, %arg5: memref<2x8x128xf32, #tpu.memory_space<vmem>>, %arg6: memref<2x1x8xf32, #tpu.memory_space<vmem>>, %arg7: memref<2x1x8xf32, #tpu.memory_space<vmem>>, %arg8: memref<1x4x128x128xf32, #tpu.memory_space<vmem>>, %arg9: memref<1x4x128xf32, #tpu.memory_space<vmem>>, %arg10: memref<1x4x128x128xf32, #tpu.memory_space<vmem>>, %arg11: memref<1x4x128xf32, #tpu.memory_space<vmem>>, %arg12: memref<1x128x512xf32, #tpu.memory_space<vmem>>, %arg13: memref<1x1x512xf32, #tpu.memory_space<vmem>>, %arg14: memref<1x512x128xf32, #tpu.memory_space<vmem>>, %arg15: memref<1x1x128xf32, #tpu.memory_space<vmem>>, %arg16: memref<1x3x128xf32, #tpu.memory_space<vmem>>, %arg17: memref<1x3x128xf32, #tpu.memory_space<vmem>>, %arg18: memref<2x8x128xf32, #tpu.memory_space<vmem>>) attributes {dimension_semantics = [#tpu.dimension_semantics<parallel>, #tpu.dimension_semantics<arbitrary>], iteration_bounds = array<i64: 1, 2>, scalar_prefetch = 0 : i64, scratch_operands = 0 : i64, tpu.core_type = #tpu.core_type<tc>, window_params = [{transform_indices = @transform_0, window_bounds = array<i64: 2, 8, 128>}, {pipeline_mode = #tpu.pipeline_mode<synchronous>, transform_indices = @transform_1, window_bounds = array<i64: 8, 128>}, {pipeline_mode = #tpu.pipeline_mode<synchronous>, transform_indices = @transform_2, window_bounds = array<i64: 8, 8>}, {transform_indices = @transform_3, window_bounds = array<i64: 2, 8, 128>}, {transform_indices = @transform_4, window_bounds = array<i64: 2, 1, 8>}, {transform_indices = @transform_5, window_bounds = array<i64: 2, 1, 8>}, {transform_indices = @transform_6, window_bounds = array<i64: 1, 4, 128, 128>}, {transform_indices = @transform_7, window_bounds = array<i64: 1, 4, 128>}, {transform_indices = @transform_8, window_bounds = array<i64: 1, 4, 128, 128>}, {transform_indices = @transform_9, window_bounds = array<i64: 1, 4, 128>}, {transform_indices = @transform_10, window_bounds = array<i64: 1, 128, 512>}, {transform_indices = @transform_11, window_bounds = array<i64: 1, 1, 512>}, {transform_indices = @transform_12, window_bounds = array<i64: 1, 512, 128>}, {transform_indices = @transform_13, window_bounds = array<i64: 1, 1, 128>}, {transform_indices = @transform_14, window_bounds = array<i64: 1, 3, 128>}, {transform_indices = @transform_15, window_bounds = array<i64: 1, 3, 128>}, {transform_indices = @transform_16, window_bounds = array<i64: 2, 8, 128>}]} {
    %c0_i32 = arith.constant 0 : i32
    %0 = arith.cmpi eq, %arg1, %c0_i32 : i32
    %1 = arith.extui %0 : i1 to i32
    %c0_i32_0 = arith.constant 0 : i32
    %2 = arith.cmpi ne, %1, %c0_i32_0 : i32
    scf.if %2 {
      %c0_100 = arith.constant 0 : index
      %c0_101 = arith.constant 0 : index
      %c0_102 = arith.constant 0 : index
      %317 = vector.load %arg2[%c0_100, %c0_101, %c0_102] : memref<2x8x128xf32, #tpu.memory_space<vmem>>, vector<2x8x128xf32>
      %cst_103 = arith.constant 11.3137083 : f32
      %318 = vector.broadcast %cst_103 : f32 to vector<2x8x128xf32>
      %319 = arith.mulf %317, %318 : vector<2x8x128xf32>
      %c0_104 = arith.constant 0 : index
      %c0_105 = arith.constant 0 : index
      %320 = vector.load %arg3[%c0_104, %c0_105] : memref<8x128xf32, #tpu.memory_space<vmem>>, vector<8x128xf32>
      %321 = vector.shape_cast %320 : vector<8x128xf32> to vector<1x8x128xf32>
      %322 = vector.broadcast %321 : vector<1x8x128xf32> to vector<2x8x128xf32>
      %323 = arith.addf %319, %322 : vector<2x8x128xf32>
      %c0_106 = arith.constant 0 : index
      %c0_107 = arith.constant 0 : index
      %c0_108 = arith.constant 0 : index
      %324 = vector.load %arg18[%c0_106, %c0_107, %c0_108] : memref<2x8x128xf32, #tpu.memory_space<vmem>>, vector<2x8x128xf32>
      tpu.vector_store %arg18[%c0_106, %c0_107, %c0_108], %323 {strides = array<i32>} : memref<2x8x128xf32, #tpu.memory_space<vmem>>, vector<2x8x128xf32>,
    } else {
    }
    %c0 = arith.constant 0 : index
    %c0_1 = arith.constant 0 : index
    %c0_2 = arith.constant 0 : index
    %3 = vector.load %arg18[%c0, %c0_1, %c0_2] : memref<2x8x128xf32, #tpu.memory_space<vmem>>, vector<2x8x128xf32>
    %4 = vector.shape_cast %3 : vector<2x8x128xf32> to vector<16x128xf32>
    %c0_3 = arith.constant 0 : index
    %c0_4 = arith.constant 0 : index
    %c0_5 = arith.constant 0 : index
    %5 = vector.load %arg5[%c0_3, %c0_4, %c0_5] : memref<2x8x128xf32, #tpu.memory_space<vmem>>, vector<2x8x128xf32>
    %6 = vector.shape_cast %5 : vector<2x8x128xf32> to vector<16x128xf32>
    %c0_6 = arith.constant 0 : index
    %c0_7 = arith.constant 0 : index
    %7 = vector.load %arg4[%c0_6, %c0_7] : memref<8x8xf32, #tpu.memory_space<vmem>>, vector<8x8xf32>
    %c0_8 = arith.constant 0 : index
    %c0_9 = arith.constant 0 : index
    %c0_10 = arith.constant 0 : index
    %8 = vector.load %arg6[%c0_8, %c0_9, %c0_10] : memref<2x1x8xf32, #tpu.memory_space<vmem>>, vector<2x1x8xf32>
    %c0_11 = arith.constant 0 : index
    %c0_12 = arith.constant 0 : index
    %c0_13 = arith.constant 0 : index
    %9 = vector.load %arg7[%c0_11, %c0_12, %c0_13] : memref<2x1x8xf32, #tpu.memory_space<vmem>>, vector<2x1x8xf32>
    %c0_14 = arith.constant 0 : index
    %c0_15 = arith.constant 0 : index
    %c0_16 = arith.constant 0 : index
    %10 = vector.load %arg16[%c0_14, %c0_15, %c0_16] : memref<1x3x128xf32, #tpu.memory_space<vmem>>, vector<1x3x128xf32>
    %11 = vector.shape_cast %10 : vector<1x3x128xf32> to vector<3x128xf32>
    %c0_17 = arith.constant 0 : index
    %c0_18 = arith.constant 0 : index
    %c0_19 = arith.constant 0 : index
    %12 = vector.load %arg17[%c0_17, %c0_18, %c0_19] : memref<1x3x128xf32, #tpu.memory_space<vmem>>, vector<1x3x128xf32>
    %13 = vector.shape_cast %12 : vector<1x3x128xf32> to vector<3x128xf32>
    %14 = vector.extract_strided_slice %11 {offsets = [0, 0], sizes = [1, 128], strides = [1, 1]} : vector<3x128xf32> to vector<1x128xf32>
    %15 = vector.shape_cast %14 : vector<1x128xf32> to vector<128xf32>
    %16 = vector.extract_strided_slice %13 {offsets = [0, 0], sizes = [1, 128], strides = [1, 1]} : vector<3x128xf32> to vector<1x128xf32>
    %17 = vector.shape_cast %16 : vector<1x128xf32> to vector<128xf32>
    %cst = arith.constant dense<0.000000e+00> : vector<16xf32>
    %18 = vector.multi_reduction <add>, %4, %cst [1] : vector<16x128xf32> to vector<16xf32>
    %19 = vector.shape_cast %18 : vector<16xf32> to vector<16x1xf32>
    %cst_20 = arith.constant 1.280000e+02 : f32
    %20 = vector.broadcast %cst_20 : f32 to vector<16x1xf32>
    %21 = arith.divf %19, %20 : vector<16x1xf32>
    %22 = vector.broadcast %21 : vector<16x1xf32> to vector<16x128xf32>
    %23 = arith.subf %4, %22 : vector<16x128xf32>
    %24 = arith.mulf %23, %23 : vector<16x128xf32>
    %cst_21 = arith.constant dense<0.000000e+00> : vector<16xf32>
    %25 = vector.multi_reduction <add>, %24, %cst_21 [1] : vector<16x128xf32> to vector<16xf32>
    %26 = vector.shape_cast %25 : vector<16xf32> to vector<16x1xf32>
    %cst_22 = arith.constant 1.280000e+02 : f32
    %27 = vector.broadcast %cst_22 : f32 to vector<16x1xf32>
    %28 = arith.divf %26, %27 : vector<16x1xf32>
    %29 = vector.broadcast %21 : vector<16x1xf32> to vector<16x128xf32>
    %30 = arith.subf %4, %29 : vector<16x128xf32>
    %cst_23 = arith.constant 9.99999974E-6 : f32
    %31 = vector.broadcast %cst_23 : f32 to vector<16x1xf32>
    %32 = arith.addf %28, %31 : vector<16x1xf32>
    %33 = math.rsqrt %32 : vector<16x1xf32>
    %34 = vector.broadcast %33 : vector<16x1xf32> to vector<16x128xf32>
    %35 = arith.mulf %30, %34 : vector<16x128xf32>
    %36 = vector.shape_cast %15 : vector<128xf32> to vector<1x128xf32>
    %37 = vector.broadcast %36 : vector<1x128xf32> to vector<16x128xf32>
    %38 = arith.mulf %35, %37 : vector<16x128xf32>
    %39 = vector.shape_cast %17 : vector<128xf32> to vector<1x128xf32>
    %40 = vector.broadcast %39 : vector<1x128xf32> to vector<16x128xf32>
    %41 = arith.addf %38, %40 : vector<16x128xf32>
    %c0_24 = arith.constant 0 : index
    %c0_25 = arith.constant 0 : index
    %c0_26 = arith.constant 0 : index
    %c0_27 = arith.constant 0 : index
    %42 = vector.load %arg8[%c0_24, %c0_25, %c0_26, %c0_27] : memref<1x4x128x128xf32, #tpu.memory_space<vmem>>, vector<1x4x128x128xf32>
    %43 = vector.shape_cast %42 : vector<1x4x128x128xf32> to vector<4x128x128xf32>
    %c0_28 = arith.constant 0 : index
    %c0_29 = arith.constant 0 : index
    %c0_30 = arith.constant 0 : index
    %44 = vector.load %arg9[%c0_28, %c0_29, %c0_30] : memref<1x4x128xf32, #tpu.memory_space<vmem>>, vector<1x4x128xf32>
    %45 = vector.shape_cast %44 : vector<1x4x128xf32> to vector<4x128xf32>
    %46 = vector.extract_strided_slice %43 {offsets = [0, 0, 0], sizes = [1, 128, 128], strides = [1, 1, 1]} : vector<4x128x128xf32> to vector<1x128x128xf32>
    %47 = vector.shape_cast %46 : vector<1x128x128xf32> to vector<128x128xf32>
    %cst_31 = arith.constant dense<0.000000e+00> : vector<16x128xf32>
    %48 = tpu.matmul %41, %47, %cst_31 {dimension_numbers = #tpu.dot_dimension_numbers<[1], [0], [0], [1], [0, 0, 1, 1], [], []>} : vector<16x128xf32>, vector<128x128xf32>, vector<16x128xf32> -> vector<16x128xf32>
    %49 = vector.extract_strided_slice %45 {offsets = [0, 0], sizes = [1, 128], strides = [1, 1]} : vector<4x128xf32> to vector<1x128xf32>
    %50 = vector.shape_cast %49 : vector<1x128xf32> to vector<128xf32>
    %51 = vector.shape_cast %50 : vector<128xf32> to vector<1x128xf32>
    %52 = vector.broadcast %51 : vector<1x128xf32> to vector<16x128xf32>
    %53 = arith.addf %48, %52 : vector<16x128xf32>
    %54 = vector.extract_strided_slice %43 {offsets = [1, 0, 0], sizes = [1, 128, 128], strides = [1, 1, 1]} : vector<4x128x128xf32> to vector<1x128x128xf32>
    %55 = vector.shape_cast %54 : vector<1x128x128xf32> to vector<128x128xf32>
    %cst_32 = arith.constant dense<0.000000e+00> : vector<16x128xf32>
    %56 = tpu.matmul %41, %55, %cst_32 {dimension_numbers = #tpu.dot_dimension_numbers<[1], [0], [0], [1], [0, 0, 1, 1], [], []>} : vector<16x128xf32>, vector<128x128xf32>, vector<16x128xf32> -> vector<16x128xf32>
    %57 = vector.extract_strided_slice %45 {offsets = [1, 0], sizes = [1, 128], strides = [1, 1]} : vector<4x128xf32> to vector<1x128xf32>
    %58 = vector.shape_cast %57 : vector<1x128xf32> to vector<128xf32>
    %59 = vector.shape_cast %58 : vector<128xf32> to vector<1x128xf32>
    %60 = vector.broadcast %59 : vector<1x128xf32> to vector<16x128xf32>
    %61 = arith.addf %56, %60 : vector<16x128xf32>
    %62 = vector.extract_strided_slice %43 {offsets = [2, 0, 0], sizes = [1, 128, 128], strides = [1, 1, 1]} : vector<4x128x128xf32> to vector<1x128x128xf32>
    %63 = vector.shape_cast %62 : vector<1x128x128xf32> to vector<128x128xf32>
    %cst_33 = arith.constant dense<0.000000e+00> : vector<16x128xf32>
    %64 = tpu.matmul %41, %63, %cst_33 {dimension_numbers = #tpu.dot_dimension_numbers<[1], [0], [0], [1], [0, 0, 1, 1], [], []>} : vector<16x128xf32>, vector<128x128xf32>, vector<16x128xf32> -> vector<16x128xf32>
    %65 = vector.extract_strided_slice %45 {offsets = [2, 0], sizes = [1, 128], strides = [1, 1]} : vector<4x128xf32> to vector<1x128xf32>
    %66 = vector.shape_cast %65 : vector<1x128xf32> to vector<128xf32>
    %67 = vector.shape_cast %66 : vector<128xf32> to vector<1x128xf32>
    %68 = vector.broadcast %67 : vector<1x128xf32> to vector<16x128xf32>
    %69 = arith.addf %64, %68 : vector<16x128xf32>
    %70 = vector.shape_cast %53 : vector<16x128xf32> to vector<2x8x4x32xf32>
    %71 = vector.shape_cast %61 : vector<16x128xf32> to vector<2x8x4x32xf32>
    %72 = vector.shape_cast %69 : vector<16x128xf32> to vector<2x8x4x32xf32>
    %73 = vector.extract_strided_slice %43 {offsets = [3, 0, 0], sizes = [1, 128, 128], strides = [1, 1, 1]} : vector<4x128x128xf32> to vector<1x128x128xf32>
    %74 = vector.shape_cast %73 : vector<1x128x128xf32> to vector<128x128xf32>
    %75 = vector.shape_cast %74 : vector<128x128xf32> to vector<4x32x128xf32>
    %76 = vector.extract_strided_slice %70 {offsets = [0, 0, 0, 0], sizes = [1, 8, 4, 32], strides = [1, 1, 1, 1]} : vector<2x8x4x32xf32> to vector<1x8x4x32xf32>
    %77 = vector.shape_cast %76 : vector<1x8x4x32xf32> to vector<8x4x32xf32>
    %78 = vector.extract_strided_slice %71 {offsets = [0, 0, 0, 0], sizes = [1, 8, 4, 32], strides = [1, 1, 1, 1]} : vector<2x8x4x32xf32> to vector<1x8x4x32xf32>
    %79 = vector.shape_cast %78 : vector<1x8x4x32xf32> to vector<8x4x32xf32>
    "tpu.trace_start"() <{level = 10 : i32, message = "qhd,khd->hqk"}> : () -> ()
    %cst_34 = arith.constant dense<0.000000e+00> : vector<4x8x8xf32>
    %80 = tpu.matmul %77, %79, %cst_34 {dimension_numbers = #tpu.dot_dimension_numbers<[2], [2], [0], [0], [0, 1, 0, 0, 1, 0], [1], [1]>} : vector<8x4x32xf32>, vector<8x4x32xf32>, vector<4x8x8xf32> -> vector<4x8x8xf32>
    "tpu.trace_stop"() : () -> ()
    %81 = vector.extract_strided_slice %8 {offsets = [0, 0, 0], sizes = [1, 1, 8], strides = [1, 1, 1]} : vector<2x1x8xf32> to vector<1x1x8xf32>
    %82 = vector.shape_cast %81 : vector<1x1x8xf32> to vector<1x8xf32>
    %83 = vector.broadcast %82 : vector<1x8xf32> to vector<8x8xf32>
    %84 = arith.addf %7, %83 : vector<8x8xf32>
    %85 = vector.shape_cast %84 : vector<8x8xf32> to vector<1x8x8xf32>
    %86 = vector.broadcast %85 : vector<1x8x8xf32> to vector<4x8x8xf32>
    %87 = arith.addf %80, %86 : vector<4x8x8xf32>
    %cst_35 = arith.constant 0.176776692 : f32
    %88 = vector.broadcast %cst_35 : f32 to vector<4x8x8xf32>
    %89 = arith.mulf %87, %88 : vector<4x8x8xf32>
    %cst_36 = arith.constant dense<0xFF800000> : vector<4x8xf32>
    %90 = vector.multi_reduction <maximumf>, %89, %cst_36 [2] : vector<4x8x8xf32> to vector<4x8xf32>
    %91 = vector.shape_cast %90 : vector<4x8xf32> to vector<4x8x1xf32>
    %92 = vector.broadcast %91 : vector<4x8x1xf32> to vector<4x8x8xf32>
    %93 = arith.subf %89, %92 : vector<4x8x8xf32>
    %94 = math.exp %93 : vector<4x8x8xf32>
    %cst_37 = arith.constant dense<0.000000e+00> : vector<4x8xf32>
    %95 = vector.multi_reduction <add>, %94, %cst_37 [2] : vector<4x8x8xf32> to vector<4x8xf32>
    %96 = vector.shape_cast %95 : vector<4x8xf32> to vector<4x8x1xf32>
    %97 = tpu.reciprocal %96 : vector<4x8x1xf32> -> vector<4x8x1xf32>
    %98 = vector.broadcast %97 : vector<4x8x1xf32> to vector<4x8x8xf32>
    %99 = arith.mulf %94, %98 : vector<4x8x8xf32>
    %100 = vector.extract_strided_slice %72 {offsets = [0, 0, 0, 0], sizes = [1, 8, 4, 32], strides = [1, 1, 1, 1]} : vector<2x8x4x32xf32> to vector<1x8x4x32xf32>
    %101 = vector.shape_cast %100 : vector<1x8x4x32xf32> to vector<8x4x32xf32>
    "tpu.trace_start"() <{level = 10 : i32, message = "hqk,khd->hqd"}> : () -> ()
    %cst_38 = arith.constant dense<0.000000e+00> : vector<4x8x32xf32>
    %102 = tpu.matmul %99, %101, %cst_38 {dimension_numbers = #tpu.dot_dimension_numbers<[2], [0], [1], [2], [0, 0, 0, 1, 1, 2], [0], [1]>} : vector<4x8x8xf32>, vector<8x4x32xf32>, vector<4x8x32xf32> -> vector<4x8x32xf32>
    "tpu.trace_stop"() : () -> ()
    "tpu.trace_start"() <{level = 10 : i32, message = "hqd,hde->hqe"}> : () -> ()
    %cst_39 = arith.constant dense<0.000000e+00> : vector<4x8x128xf32>
    %103 = tpu.matmul %102, %75, %cst_39 {dimension_numbers = #tpu.dot_dimension_numbers<[2], [1], [1], [2], [0, 0, 0, 1, 1, 2], [0], [0]>} : vector<4x8x32xf32>, vector<4x32x128xf32>, vector<4x8x128xf32> -> vector<4x8x128xf32>
    "tpu.trace_stop"() : () -> ()
    %cst_40 = arith.constant dense<0.000000e+00> : vector<8x128xf32>
    %104 = vector.multi_reduction <add>, %103, %cst_40 [0] : vector<4x8x128xf32> to vector<8x128xf32>
    %105 = vector.extract_strided_slice %70 {offsets = [1, 0, 0, 0], sizes = [1, 8, 4, 32], strides = [1, 1, 1, 1]} : vector<2x8x4x32xf32> to vector<1x8x4x32xf32>
    %106 = vector.shape_cast %105 : vector<1x8x4x32xf32> to vector<8x4x32xf32>
    %107 = vector.extract_strided_slice %71 {offsets = [1, 0, 0, 0], sizes = [1, 8, 4, 32], strides = [1, 1, 1, 1]} : vector<2x8x4x32xf32> to vector<1x8x4x32xf32>
    %108 = vector.shape_cast %107 : vector<1x8x4x32xf32> to vector<8x4x32xf32>
    "tpu.trace_start"() <{level = 10 : i32, message = "qhd,khd->hqk"}> : () -> ()
    %cst_41 = arith.constant dense<0.000000e+00> : vector<4x8x8xf32>
    %109 = tpu.matmul %106, %108, %cst_41 {dimension_numbers = #tpu.dot_dimension_numbers<[2], [2], [0], [0], [0, 1, 0, 0, 1, 0], [1], [1]>} : vector<8x4x32xf32>, vector<8x4x32xf32>, vector<4x8x8xf32> -> vector<4x8x8xf32>
    "tpu.trace_stop"() : () -> ()
    %110 = vector.extract_strided_slice %8 {offsets = [1, 0, 0], sizes = [1, 1, 8], strides = [1, 1, 1]} : vector<2x1x8xf32> to vector<1x1x8xf32>
    %111 = vector.shape_cast %110 : vector<1x1x8xf32> to vector<1x8xf32>
    %112 = vector.broadcast %111 : vector<1x8xf32> to vector<8x8xf32>
    %113 = arith.addf %7, %112 : vector<8x8xf32>
    %114 = vector.shape_cast %113 : vector<8x8xf32> to vector<1x8x8xf32>
    %115 = vector.broadcast %114 : vector<1x8x8xf32> to vector<4x8x8xf32>
    %116 = arith.addf %109, %115 : vector<4x8x8xf32>
    %cst_42 = arith.constant 0.176776692 : f32
    %117 = vector.broadcast %cst_42 : f32 to vector<4x8x8xf32>
    %118 = arith.mulf %116, %117 : vector<4x8x8xf32>
    %cst_43 = arith.constant dense<0xFF800000> : vector<4x8xf32>
    %119 = vector.multi_reduction <maximumf>, %118, %cst_43 [2] : vector<4x8x8xf32> to vector<4x8xf32>
    %120 = vector.shape_cast %119 : vector<4x8xf32> to vector<4x8x1xf32>
    %121 = vector.broadcast %120 : vector<4x8x1xf32> to vector<4x8x8xf32>
    %122 = arith.subf %118, %121 : vector<4x8x8xf32>
    %123 = math.exp %122 : vector<4x8x8xf32>
    %cst_44 = arith.constant dense<0.000000e+00> : vector<4x8xf32>
    %124 = vector.multi_reduction <add>, %123, %cst_44 [2] : vector<4x8x8xf32> to vector<4x8xf32>
    %125 = vector.shape_cast %124 : vector<4x8xf32> to vector<4x8x1xf32>
    %126 = tpu.reciprocal %125 : vector<4x8x1xf32> -> vector<4x8x1xf32>
    %127 = vector.broadcast %126 : vector<4x8x1xf32> to vector<4x8x8xf32>
    %128 = arith.mulf %123, %127 : vector<4x8x8xf32>
    %129 = vector.extract_strided_slice %72 {offsets = [1, 0, 0, 0], sizes = [1, 8, 4, 32], strides = [1, 1, 1, 1]} : vector<2x8x4x32xf32> to vector<1x8x4x32xf32>
    %130 = vector.shape_cast %129 : vector<1x8x4x32xf32> to vector<8x4x32xf32>
    "tpu.trace_start"() <{level = 10 : i32, message = "hqk,khd->hqd"}> : () -> ()
    %cst_45 = arith.constant dense<0.000000e+00> : vector<4x8x32xf32>
    %131 = tpu.matmul %128, %130, %cst_45 {dimension_numbers = #tpu.dot_dimension_numbers<[2], [0], [1], [2], [0, 0, 0, 1, 1, 2], [0], [1]>} : vector<4x8x8xf32>, vector<8x4x32xf32>, vector<4x8x32xf32> -> vector<4x8x32xf32>
    "tpu.trace_stop"() : () -> ()
    "tpu.trace_start"() <{level = 10 : i32, message = "hqd,hde->hqe"}> : () -> ()
    %cst_46 = arith.constant dense<0.000000e+00> : vector<4x8x128xf32>
    %132 = tpu.matmul %131, %75, %cst_46 {dimension_numbers = #tpu.dot_dimension_numbers<[2], [1], [1], [2], [0, 0, 0, 1, 1, 2], [0], [0]>} : vector<4x8x32xf32>, vector<4x32x128xf32>, vector<4x8x128xf32> -> vector<4x8x128xf32>
    "tpu.trace_stop"() : () -> ()
    %cst_47 = arith.constant dense<0.000000e+00> : vector<8x128xf32>
    %133 = vector.multi_reduction <add>, %132, %cst_47 [0] : vector<4x8x128xf32> to vector<8x128xf32>
    %134 = vector.shape_cast %104 : vector<8x128xf32> to vector<1x8x128xf32>
    %135 = vector.shape_cast %133 : vector<8x128xf32> to vector<1x8x128xf32>
    %136 = tpu.concatenate %134, %135 in 0 : vector<1x8x128xf32>, vector<1x8x128xf32> -> vector<2x8x128xf32>
    %137 = vector.shape_cast %136 : vector<2x8x128xf32> to vector<16x128xf32>
    %138 = vector.extract_strided_slice %45 {offsets = [3, 0], sizes = [1, 128], strides = [1, 1]} : vector<4x128xf32> to vector<1x128xf32>
    %139 = vector.shape_cast %138 : vector<1x128xf32> to vector<128xf32>
    %140 = vector.shape_cast %139 : vector<128xf32> to vector<1x128xf32>
    %141 = vector.broadcast %140 : vector<1x128xf32> to vector<16x128xf32>
    %142 = arith.addf %137, %141 : vector<16x128xf32>
    %143 = arith.addf %4, %142 : vector<16x128xf32>
    %144 = vector.extract_strided_slice %11 {offsets = [1, 0], sizes = [1, 128], strides = [1, 1]} : vector<3x128xf32> to vector<1x128xf32>
    %145 = vector.shape_cast %144 : vector<1x128xf32> to vector<128xf32>
    %146 = vector.extract_strided_slice %13 {offsets = [1, 0], sizes = [1, 128], strides = [1, 1]} : vector<3x128xf32> to vector<1x128xf32>
    %147 = vector.shape_cast %146 : vector<1x128xf32> to vector<128xf32>
    %cst_48 = arith.constant dense<0.000000e+00> : vector<16xf32>
    %148 = vector.multi_reduction <add>, %143, %cst_48 [1] : vector<16x128xf32> to vector<16xf32>
    %149 = vector.shape_cast %148 : vector<16xf32> to vector<16x1xf32>
    %cst_49 = arith.constant 1.280000e+02 : f32
    %150 = vector.broadcast %cst_49 : f32 to vector<16x1xf32>
    %151 = arith.divf %149, %150 : vector<16x1xf32>
    %152 = vector.broadcast %151 : vector<16x1xf32> to vector<16x128xf32>
    %153 = arith.subf %143, %152 : vector<16x128xf32>
    %154 = arith.mulf %153, %153 : vector<16x128xf32>
    %cst_50 = arith.constant dense<0.000000e+00> : vector<16xf32>
    %155 = vector.multi_reduction <add>, %154, %cst_50 [1] : vector<16x128xf32> to vector<16xf32>
    %156 = vector.shape_cast %155 : vector<16xf32> to vector<16x1xf32>
    %cst_51 = arith.constant 1.280000e+02 : f32
    %157 = vector.broadcast %cst_51 : f32 to vector<16x1xf32>
    %158 = arith.divf %156, %157 : vector<16x1xf32>
    %159 = vector.broadcast %151 : vector<16x1xf32> to vector<16x128xf32>
    %160 = arith.subf %143, %159 : vector<16x128xf32>
    %cst_52 = arith.constant 9.99999974E-6 : f32
    %161 = vector.broadcast %cst_52 : f32 to vector<16x1xf32>
    %162 = arith.addf %158, %161 : vector<16x1xf32>
    %163 = math.rsqrt %162 : vector<16x1xf32>
    %164 = vector.broadcast %163 : vector<16x1xf32> to vector<16x128xf32>
    %165 = arith.mulf %160, %164 : vector<16x128xf32>
    %166 = vector.shape_cast %145 : vector<128xf32> to vector<1x128xf32>
    %167 = vector.broadcast %166 : vector<1x128xf32> to vector<16x128xf32>
    %168 = arith.mulf %165, %167 : vector<16x128xf32>
    %169 = vector.shape_cast %147 : vector<128xf32> to vector<1x128xf32>
    %170 = vector.broadcast %169 : vector<1x128xf32> to vector<16x128xf32>
    %171 = arith.addf %168, %170 : vector<16x128xf32>
    %c0_53 = arith.constant 0 : index
    %c0_54 = arith.constant 0 : index
    %c0_55 = arith.constant 0 : index
    %c0_56 = arith.constant 0 : index
    %172 = vector.load %arg10[%c0_53, %c0_54, %c0_55, %c0_56] : memref<1x4x128x128xf32, #tpu.memory_space<vmem>>, vector<1x4x128x128xf32>
    %173 = vector.shape_cast %172 : vector<1x4x128x128xf32> to vector<4x128x128xf32>
    %c0_57 = arith.constant 0 : index
    %c0_58 = arith.constant 0 : index
    %c0_59 = arith.constant 0 : index
    %174 = vector.load %arg11[%c0_57, %c0_58, %c0_59] : memref<1x4x128xf32, #tpu.memory_space<vmem>>, vector<1x4x128xf32>
    %175 = vector.shape_cast %174 : vector<1x4x128xf32> to vector<4x128xf32>
    %176 = vector.extract_strided_slice %173 {offsets = [0, 0, 0], sizes = [1, 128, 128], strides = [1, 1, 1]} : vector<4x128x128xf32> to vector<1x128x128xf32>
    %177 = vector.shape_cast %176 : vector<1x128x128xf32> to vector<128x128xf32>
    %cst_60 = arith.constant dense<0.000000e+00> : vector<16x128xf32>
    %178 = tpu.matmul %171, %177, %cst_60 {dimension_numbers = #tpu.dot_dimension_numbers<[1], [0], [0], [1], [0, 0, 1, 1], [], []>} : vector<16x128xf32>, vector<128x128xf32>, vector<16x128xf32> -> vector<16x128xf32>
    %179 = vector.extract_strided_slice %175 {offsets = [0, 0], sizes = [1, 128], strides = [1, 1]} : vector<4x128xf32> to vector<1x128xf32>
    %180 = vector.shape_cast %179 : vector<1x128xf32> to vector<128xf32>
    %181 = vector.shape_cast %180 : vector<128xf32> to vector<1x128xf32>
    %182 = vector.broadcast %181 : vector<1x128xf32> to vector<16x128xf32>
    %183 = arith.addf %178, %182 : vector<16x128xf32>
    %184 = vector.extract_strided_slice %173 {offsets = [1, 0, 0], sizes = [1, 128, 128], strides = [1, 1, 1]} : vector<4x128x128xf32> to vector<1x128x128xf32>
    %185 = vector.shape_cast %184 : vector<1x128x128xf32> to vector<128x128xf32>
    %cst_61 = arith.constant dense<0.000000e+00> : vector<16x128xf32>
    %186 = tpu.matmul %6, %185, %cst_61 {dimension_numbers = #tpu.dot_dimension_numbers<[1], [0], [0], [1], [0, 0, 1, 1], [], []>} : vector<16x128xf32>, vector<128x128xf32>, vector<16x128xf32> -> vector<16x128xf32>
    %187 = vector.extract_strided_slice %175 {offsets = [1, 0], sizes = [1, 128], strides = [1, 1]} : vector<4x128xf32> to vector<1x128xf32>
    %188 = vector.shape_cast %187 : vector<1x128xf32> to vector<128xf32>
    %189 = vector.shape_cast %188 : vector<128xf32> to vector<1x128xf32>
    %190 = vector.broadcast %189 : vector<1x128xf32> to vector<16x128xf32>
    %191 = arith.addf %186, %190 : vector<16x128xf32>
    %192 = vector.extract_strided_slice %173 {offsets = [2, 0, 0], sizes = [1, 128, 128], strides = [1, 1, 1]} : vector<4x128x128xf32> to vector<1x128x128xf32>
    %193 = vector.shape_cast %192 : vector<1x128x128xf32> to vector<128x128xf32>
    %cst_62 = arith.constant dense<0.000000e+00> : vector<16x128xf32>
    %194 = tpu.matmul %6, %193, %cst_62 {dimension_numbers = #tpu.dot_dimension_numbers<[1], [0], [0], [1], [0, 0, 1, 1], [], []>} : vector<16x128xf32>, vector<128x128xf32>, vector<16x128xf32> -> vector<16x128xf32>
    %195 = vector.extract_strided_slice %175 {offsets = [2, 0], sizes = [1, 128], strides = [1, 1]} : vector<4x128xf32> to vector<1x128xf32>
    %196 = vector.shape_cast %195 : vector<1x128xf32> to vector<128xf32>
    %197 = vector.shape_cast %196 : vector<128xf32> to vector<1x128xf32>
    %198 = vector.broadcast %197 : vector<1x128xf32> to vector<16x128xf32>
    %199 = arith.addf %194, %198 : vector<16x128xf32>
    %200 = vector.shape_cast %183 : vector<16x128xf32> to vector<2x8x4x32xf32>
    %201 = vector.shape_cast %191 : vector<16x128xf32> to vector<2x8x4x32xf32>
    %202 = vector.shape_cast %199 : vector<16x128xf32> to vector<2x8x4x32xf32>
    %203 = vector.extract_strided_slice %173 {offsets = [3, 0, 0], sizes = [1, 128, 128], strides = [1, 1, 1]} : vector<4x128x128xf32> to vector<1x128x128xf32>
    %204 = vector.shape_cast %203 : vector<1x128x128xf32> to vector<128x128xf32>
    %205 = vector.shape_cast %204 : vector<128x128xf32> to vector<4x32x128xf32>
    %206 = vector.extract_strided_slice %200 {offsets = [0, 0, 0, 0], sizes = [1, 8, 4, 32], strides = [1, 1, 1, 1]} : vector<2x8x4x32xf32> to vector<1x8x4x32xf32>
    %207 = vector.shape_cast %206 : vector<1x8x4x32xf32> to vector<8x4x32xf32>
    %208 = vector.extract_strided_slice %201 {offsets = [0, 0, 0, 0], sizes = [1, 8, 4, 32], strides = [1, 1, 1, 1]} : vector<2x8x4x32xf32> to vector<1x8x4x32xf32>
    %209 = vector.shape_cast %208 : vector<1x8x4x32xf32> to vector<8x4x32xf32>
    "tpu.trace_start"() <{level = 10 : i32, message = "qhd,khd->hqk"}> : () -> ()
    %cst_63 = arith.constant dense<0.000000e+00> : vector<4x8x8xf32>
    %210 = tpu.matmul %207, %209, %cst_63 {dimension_numbers = #tpu.dot_dimension_numbers<[2], [2], [0], [0], [0, 1, 0, 0, 1, 0], [1], [1]>} : vector<8x4x32xf32>, vector<8x4x32xf32>, vector<4x8x8xf32> -> vector<4x8x8xf32>
    "tpu.trace_stop"() : () -> ()
    %211 = vector.extract_strided_slice %9 {offsets = [0, 0, 0], sizes = [1, 1, 8], strides = [1, 1, 1]} : vector<2x1x8xf32> to vector<1x1x8xf32>
    %212 = vector.shape_cast %211 : vector<1x1x8xf32> to vector<1x8xf32>
    %213 = vector.shape_cast %212 : vector<1x8xf32> to vector<1x1x8xf32>
    %214 = vector.broadcast %213 : vector<1x1x8xf32> to vector<4x8x8xf32>
    %215 = arith.addf %210, %214 : vector<4x8x8xf32>
    %cst_64 = arith.constant 0.176776692 : f32
    %216 = vector.broadcast %cst_64 : f32 to vector<4x8x8xf32>
    %217 = arith.mulf %215, %216 : vector<4x8x8xf32>
    %cst_65 = arith.constant dense<0xFF800000> : vector<4x8xf32>
    %218 = vector.multi_reduction <maximumf>, %217, %cst_65 [2] : vector<4x8x8xf32> to vector<4x8xf32>
    %219 = vector.shape_cast %218 : vector<4x8xf32> to vector<4x8x1xf32>
    %220 = vector.broadcast %219 : vector<4x8x1xf32> to vector<4x8x8xf32>
    %221 = arith.subf %217, %220 : vector<4x8x8xf32>
    %222 = math.exp %221 : vector<4x8x8xf32>
    %cst_66 = arith.constant dense<0.000000e+00> : vector<4x8xf32>
    %223 = vector.multi_reduction <add>, %222, %cst_66 [2] : vector<4x8x8xf32> to vector<4x8xf32>
    %224 = vector.shape_cast %223 : vector<4x8xf32> to vector<4x8x1xf32>
    %225 = tpu.reciprocal %224 : vector<4x8x1xf32> -> vector<4x8x1xf32>
    %226 = vector.broadcast %225 : vector<4x8x1xf32> to vector<4x8x8xf32>
    %227 = arith.mulf %222, %226 : vector<4x8x8xf32>
    %228 = vector.extract_strided_slice %202 {offsets = [0, 0, 0, 0], sizes = [1, 8, 4, 32], strides = [1, 1, 1, 1]} : vector<2x8x4x32xf32> to vector<1x8x4x32xf32>
    %229 = vector.shape_cast %228 : vector<1x8x4x32xf32> to vector<8x4x32xf32>
    "tpu.trace_start"() <{level = 10 : i32, message = "hqk,khd->hqd"}> : () -> ()
    %cst_67 = arith.constant dense<0.000000e+00> : vector<4x8x32xf32>
    %230 = tpu.matmul %227, %229, %cst_67 {dimension_numbers = #tpu.dot_dimension_numbers<[2], [0], [1], [2], [0, 0, 0, 1, 1, 2], [0], [1]>} : vector<4x8x8xf32>, vector<8x4x32xf32>, vector<4x8x32xf32> -> vector<4x8x32xf32>
    "tpu.trace_stop"() : () -> ()
    "tpu.trace_start"() <{level = 10 : i32, message = "hqd,hde->hqe"}> : () -> ()
    %cst_68 = arith.constant dense<0.000000e+00> : vector<4x8x128xf32>
    %231 = tpu.matmul %230, %205, %cst_68 {dimension_numbers = #tpu.dot_dimension_numbers<[2], [1], [1], [2], [0, 0, 0, 1, 1, 2], [0], [0]>} : vector<4x8x32xf32>, vector<4x32x128xf32>, vector<4x8x128xf32> -> vector<4x8x128xf32>
    "tpu.trace_stop"() : () -> ()
    %cst_69 = arith.constant dense<0.000000e+00> : vector<8x128xf32>
    %232 = vector.multi_reduction <add>, %231, %cst_69 [0] : vector<4x8x128xf32> to vector<8x128xf32>
    %233 = vector.extract_strided_slice %200 {offsets = [1, 0, 0, 0], sizes = [1, 8, 4, 32], strides = [1, 1, 1, 1]} : vector<2x8x4x32xf32> to vector<1x8x4x32xf32>
    %234 = vector.shape_cast %233 : vector<1x8x4x32xf32> to vector<8x4x32xf32>
    %235 = vector.extract_strided_slice %201 {offsets = [1, 0, 0, 0], sizes = [1, 8, 4, 32], strides = [1, 1, 1, 1]} : vector<2x8x4x32xf32> to vector<1x8x4x32xf32>
    %236 = vector.shape_cast %235 : vector<1x8x4x32xf32> to vector<8x4x32xf32>
    "tpu.trace_start"() <{level = 10 : i32, message = "qhd,khd->hqk"}> : () -> ()
    %cst_70 = arith.constant dense<0.000000e+00> : vector<4x8x8xf32>
    %237 = tpu.matmul %234, %236, %cst_70 {dimension_numbers = #tpu.dot_dimension_numbers<[2], [2], [0], [0], [0, 1, 0, 0, 1, 0], [1], [1]>} : vector<8x4x32xf32>, vector<8x4x32xf32>, vector<4x8x8xf32> -> vector<4x8x8xf32>
    "tpu.trace_stop"() : () -> ()
    %238 = vector.extract_strided_slice %9 {offsets = [1, 0, 0], sizes = [1, 1, 8], strides = [1, 1, 1]} : vector<2x1x8xf32> to vector<1x1x8xf32>
    %239 = vector.shape_cast %238 : vector<1x1x8xf32> to vector<1x8xf32>
    %240 = vector.shape_cast %239 : vector<1x8xf32> to vector<1x1x8xf32>
    %241 = vector.broadcast %240 : vector<1x1x8xf32> to vector<4x8x8xf32>
    %242 = arith.addf %237, %241 : vector<4x8x8xf32>
    %cst_71 = arith.constant 0.176776692 : f32
    %243 = vector.broadcast %cst_71 : f32 to vector<4x8x8xf32>
    %244 = arith.mulf %242, %243 : vector<4x8x8xf32>
    %cst_72 = arith.constant dense<0xFF800000> : vector<4x8xf32>
    %245 = vector.multi_reduction <maximumf>, %244, %cst_72 [2] : vector<4x8x8xf32> to vector<4x8xf32>
    %246 = vector.shape_cast %245 : vector<4x8xf32> to vector<4x8x1xf32>
    %247 = vector.broadcast %246 : vector<4x8x1xf32> to vector<4x8x8xf32>
    %248 = arith.subf %244, %247 : vector<4x8x8xf32>
    %249 = math.exp %248 : vector<4x8x8xf32>
    %cst_73 = arith.constant dense<0.000000e+00> : vector<4x8xf32>
    %250 = vector.multi_reduction <add>, %249, %cst_73 [2] : vector<4x8x8xf32> to vector<4x8xf32>
    %251 = vector.shape_cast %250 : vector<4x8xf32> to vector<4x8x1xf32>
    %252 = tpu.reciprocal %251 : vector<4x8x1xf32> -> vector<4x8x1xf32>
    %253 = vector.broadcast %252 : vector<4x8x1xf32> to vector<4x8x8xf32>
    %254 = arith.mulf %249, %253 : vector<4x8x8xf32>
    %255 = vector.extract_strided_slice %202 {offsets = [1, 0, 0, 0], sizes = [1, 8, 4, 32], strides = [1, 1, 1, 1]} : vector<2x8x4x32xf32> to vector<1x8x4x32xf32>
    %256 = vector.shape_cast %255 : vector<1x8x4x32xf32> to vector<8x4x32xf32>
    "tpu.trace_start"() <{level = 10 : i32, message = "hqk,khd->hqd"}> : () -> ()
    %cst_74 = arith.constant dense<0.000000e+00> : vector<4x8x32xf32>
    %257 = tpu.matmul %254, %256, %cst_74 {dimension_numbers = #tpu.dot_dimension_numbers<[2], [0], [1], [2], [0, 0, 0, 1, 1, 2], [0], [1]>} : vector<4x8x8xf32>, vector<8x4x32xf32>, vector<4x8x32xf32> -> vector<4x8x32xf32>
    "tpu.trace_stop"() : () -> ()
    "tpu.trace_start"() <{level = 10 : i32, message = "hqd,hde->hqe"}> : () -> ()
    %cst_75 = arith.constant dense<0.000000e+00> : vector<4x8x128xf32>
    %258 = tpu.matmul %257, %205, %cst_75 {dimension_numbers = #tpu.dot_dimension_numbers<[2], [1], [1], [2], [0, 0, 0, 1, 1, 2], [0], [0]>} : vector<4x8x32xf32>, vector<4x32x128xf32>, vector<4x8x128xf32> -> vector<4x8x128xf32>
    "tpu.trace_stop"() : () -> ()
    %cst_76 = arith.constant dense<0.000000e+00> : vector<8x128xf32>
    %259 = vector.multi_reduction <add>, %258, %cst_76 [0] : vector<4x8x128xf32> to vector<8x128xf32>
    %260 = vector.shape_cast %232 : vector<8x128xf32> to vector<1x8x128xf32>
    %261 = vector.shape_cast %259 : vector<8x128xf32> to vector<1x8x128xf32>
    %262 = tpu.concatenate %260, %261 in 0 : vector<1x8x128xf32>, vector<1x8x128xf32> -> vector<2x8x128xf32>
    %263 = vector.shape_cast %262 : vector<2x8x128xf32> to vector<16x128xf32>
    %264 = vector.extract_strided_slice %175 {offsets = [3, 0], sizes = [1, 128], strides = [1, 1]} : vector<4x128xf32> to vector<1x128xf32>
    %265 = vector.shape_cast %264 : vector<1x128xf32> to vector<128xf32>
    %266 = vector.shape_cast %265 : vector<128xf32> to vector<1x128xf32>
    %267 = vector.broadcast %266 : vector<1x128xf32> to vector<16x128xf32>
    %268 = arith.addf %263, %267 : vector<16x128xf32>
    %269 = arith.addf %143, %268 : vector<16x128xf32>
    %270 = vector.extract_strided_slice %11 {offsets = [2, 0], sizes = [1, 128], strides = [1, 1]} : vector<3x128xf32> to vector<1x128xf32>
    %271 = vector.shape_cast %270 : vector<1x128xf32> to vector<128xf32>
    %272 = vector.extract_strided_slice %13 {offsets = [2, 0], sizes = [1, 128], strides = [1, 1]} : vector<3x128xf32> to vector<1x128xf32>
    %273 = vector.shape_cast %272 : vector<1x128xf32> to vector<128xf32>
    %cst_77 = arith.constant dense<0.000000e+00> : vector<16xf32>
    %274 = vector.multi_reduction <add>, %269, %cst_77 [1] : vector<16x128xf32> to vector<16xf32>
    %275 = vector.shape_cast %274 : vector<16xf32> to vector<16x1xf32>
    %cst_78 = arith.constant 1.280000e+02 : f32
    %276 = vector.broadcast %cst_78 : f32 to vector<16x1xf32>
    %277 = arith.divf %275, %276 : vector<16x1xf32>
    %278 = vector.broadcast %277 : vector<16x1xf32> to vector<16x128xf32>
    %279 = arith.subf %269, %278 : vector<16x128xf32>
    %280 = arith.mulf %279, %279 : vector<16x128xf32>
    %cst_79 = arith.constant dense<0.000000e+00> : vector<16xf32>
    %281 = vector.multi_reduction <add>, %280, %cst_79 [1] : vector<16x128xf32> to vector<16xf32>
    %282 = vector.shape_cast %281 : vector<16xf32> to vector<16x1xf32>
    %cst_80 = arith.constant 1.280000e+02 : f32
    %283 = vector.broadcast %cst_80 : f32 to vector<16x1xf32>
    %284 = arith.divf %282, %283 : vector<16x1xf32>
    %285 = vector.broadcast %277 : vector<16x1xf32> to vector<16x128xf32>
    %286 = arith.subf %269, %285 : vector<16x128xf32>
    %cst_81 = arith.constant 9.99999974E-6 : f32
    %287 = vector.broadcast %cst_81 : f32 to vector<16x1xf32>
    %288 = arith.addf %284, %287 : vector<16x1xf32>
    %289 = math.rsqrt %288 : vector<16x1xf32>
    %290 = vector.broadcast %289 : vector<16x1xf32> to vector<16x128xf32>
    %291 = arith.mulf %286, %290 : vector<16x128xf32>
    %292 = vector.shape_cast %271 : vector<128xf32> to vector<1x128xf32>
    %293 = vector.broadcast %292 : vector<1x128xf32> to vector<16x128xf32>
    %294 = arith.mulf %291, %293 : vector<16x128xf32>
    %295 = vector.shape_cast %273 : vector<128xf32> to vector<1x128xf32>
    %296 = vector.broadcast %295 : vector<1x128xf32> to vector<16x128xf32>
    %297 = arith.addf %294, %296 : vector<16x128xf32>
    %c0_82 = arith.constant 0 : index
    %c0_83 = arith.constant 0 : index
    %c0_84 = arith.constant 0 : index
    %298 = vector.load %arg12[%c0_82, %c0_83, %c0_84] : memref<1x128x512xf32, #tpu.memory_space<vmem>>, vector<1x128x512xf32>
    %299 = vector.shape_cast %298 : vector<1x128x512xf32> to vector<128x512xf32>
    %cst_85 = arith.constant dense<0.000000e+00> : vector<16x512xf32>
    %300 = tpu.matmul %297, %299, %cst_85 {dimension_numbers = #tpu.dot_dimension_numbers<[1], [0], [0], [1], [0, 0, 1, 1], [], []>} : vector<16x128xf32>, vector<128x512xf32>, vector<16x512xf32> -> vector<16x512xf32>
    %c0_86 = arith.constant 0 : index
    %c0_87 = arith.constant 0 : index
    %c0_88 = arith.constant 0 : index
    %301 = vector.load %arg13[%c0_86, %c0_87, %c0_88] : memref<1x1x512xf32, #tpu.memory_space<vmem>>, vector<1x1x512xf32>
    %302 = vector.shape_cast %301 : vector<1x1x512xf32> to vector<1x512xf32>
    %303 = vector.broadcast %302 : vector<1x512xf32> to vector<16x512xf32>
    %304 = arith.addf %300, %303 : vector<16x512xf32>
    %cst_89 = arith.constant 0.000000e+00 : f32
    %305 = vector.broadcast %cst_89 : f32 to vector<16x512xf32>
    %306 = arith.maximumf %304, %305 : vector<16x512xf32>
    %c0_90 = arith.constant 0 : index
    %c0_91 = arith.constant 0 : index
    %c0_92 = arith.constant 0 : index
    %307 = vector.load %arg14[%c0_90, %c0_91, %c0_92] : memref<1x512x128xf32, #tpu.memory_space<vmem>>, vector<1x512x128xf32>
    %308 = vector.shape_cast %307 : vector<1x512x128xf32> to vector<512x128xf32>
    %cst_93 = arith.constant dense<0.000000e+00> : vector<16x128xf32>
    %309 = tpu.matmul %306, %308, %cst_93 {dimension_numbers = #tpu.dot_dimension_numbers<[1], [0], [0], [1], [0, 0, 1, 1], [], []>} : vector<16x512xf32>, vector<512x128xf32>, vector<16x128xf32> -> vector<16x128xf32>
    %c0_94 = arith.constant 0 : index
    %c0_95 = arith.constant 0 : index
    %c0_96 = arith.constant 0 : index
    %310 = vector.load %arg15[%c0_94, %c0_95, %c0_96] : memref<1x1x128xf32, #tpu.memory_space<vmem>>, vector<1x1x128xf32>
    %311 = vector.shape_cast %310 : vector<1x1x128xf32> to vector<1x128xf32>
    %312 = vector.broadcast %311 : vector<1x128xf32> to vector<16x128xf32>
    %313 = arith.addf %309, %312 : vector<16x128xf32>
    %314 = arith.addf %269, %313 : vector<16x128xf32>
    %315 = vector.shape_cast %314 : vector<16x128xf32> to vector<2x8x128xf32>
    %c0_97 = arith.constant 0 : index
    %c0_98 = arith.constant 0 : index
    %c0_99 = arith.constant 0 : index
    %316 = vector.load %arg18[%c0_97, %c0_98, %c0_99] : memref<2x8x128xf32, #tpu.memory_space<vmem>>, vector<2x8x128xf32>
    tpu.vector_store %arg18[%c0_97, %c0_98, %c0_99], %315 {strides = array<i32>} : memref<2x8x128xf32, #tpu.memory_space<vmem>>, vector<2x8x128xf32>,
    return
  }
  func.func @transform_0(%arg0: i32, %arg1: i32) -> (i32, i32, i32) {
    %c0_i32 = arith.constant 0 : i32
    %c0_i32_0 = arith.constant 0 : i32
    %c0_i32_1 = arith.constant 0 : i32
    return %arg0, %c0_i32, %c0_i32_0 : i32, i32, i32
  }
  func.func @transform_1(%arg0: i32, %arg1: i32) -> (i32, i32) {
    %c0_i32 = arith.constant 0 : i32
    %c0_i32_0 = arith.constant 0 : i32
    %c0_i32_1 = arith.constant 0 : i32
    return %c0_i32, %c0_i32_0 : i32, i32
  }
  func.func @transform_2(%arg0: i32, %arg1: i32) -> (i32, i32) {
    %c0_i32 = arith.constant 0 : i32
    %c0_i32_0 = arith.constant 0 : i32
    %c0_i32_1 = arith.constant 0 : i32
    return %c0_i32, %c0_i32_0 : i32, i32
  }
  func.func @transform_3(%arg0: i32, %arg1: i32) -> (i32, i32, i32) {
    %c0_i32 = arith.constant 0 : i32
    %c0_i32_0 = arith.constant 0 : i32
    %c0_i32_1 = arith.constant 0 : i32
    return %arg0, %c0_i32, %c0_i32_0 : i32, i32, i32
  }
  func.func @transform_4(%arg0: i32, %arg1: i32) -> (i32, i32, i32) {
    %c0_i32 = arith.constant 0 : i32
    %c0_i32_0 = arith.constant 0 : i32
    %c0_i32_1 = arith.constant 0 : i32
    return %arg0, %c0_i32, %c0_i32_0 : i32, i32, i32
  }
  func.func @transform_5(%arg0: i32, %arg1: i32) -> (i32, i32, i32) {
    %c0_i32 = arith.constant 0 : i32
    %c0_i32_0 = arith.constant 0 : i32
    %c0_i32_1 = arith.constant 0 : i32
    return %arg0, %c0_i32, %c0_i32_0 : i32, i32, i32
  }
  func.func @transform_6(%arg0: i32, %arg1: i32) -> (i32, i32, i32, i32) {
    %c0_i32 = arith.constant 0 : i32
    %c0_i32_0 = arith.constant 0 : i32
    %c0_i32_1 = arith.constant 0 : i32
    %c0_i32_2 = arith.constant 0 : i32
    return %arg1, %c0_i32, %c0_i32_0, %c0_i32_1 : i32, i32, i32, i32
  }
  func.func @transform_7(%arg0: i32, %arg1: i32) -> (i32, i32, i32) {
    %c0_i32 = arith.constant 0 : i32
    %c0_i32_0 = arith.constant 0 : i32
    %c0_i32_1 = arith.constant 0 : i32
    return %arg1, %c0_i32, %c0_i32_0 : i32, i32, i32
  }
  func.func @transform_8(%arg0: i32, %arg1: i32) -> (i32, i32, i32, i32) {
    %c0_i32 = arith.constant 0 : i32
    %c0_i32_0 = arith.constant 0 : i32
    %c0_i32_1 = arith.constant 0 : i32
    %c0_i32_2 = arith.constant 0 : i32
    return %arg1, %c0_i32, %c0_i32_0, %c0_i32_1 : i32, i32, i32, i32
  }
  func.func @transform_9(%arg0: i32, %arg1: i32) -> (i32, i32, i32) {
    %c0_i32 = arith.constant 0 : i32
    %c0_i32_0 = arith.constant 0 : i32
    %c0_i32_1 = arith.constant 0 : i32
    return %arg1, %c0_i32, %c0_i32_0 : i32, i32, i32
  }
  func.func @transform_10(%arg0: i32, %arg1: i32) -> (i32, i32, i32) {
    %c0_i32 = arith.constant 0 : i32
    %c0_i32_0 = arith.constant 0 : i32
    %c0_i32_1 = arith.constant 0 : i32
    return %arg1, %c0_i32, %c0_i32_0 : i32, i32, i32
  }
  func.func @transform_11(%arg0: i32, %arg1: i32) -> (i32, i32, i32) {
    %c0_i32 = arith.constant 0 : i32
    %c0_i32_0 = arith.constant 0 : i32
    %c0_i32_1 = arith.constant 0 : i32
    return %arg1, %c0_i32, %c0_i32_0 : i32, i32, i32
  }
  func.func @transform_12(%arg0: i32, %arg1: i32) -> (i32, i32, i32) {
    %c0_i32 = arith.constant 0 : i32
    %c0_i32_0 = arith.constant 0 : i32
    %c0_i32_1 = arith.constant 0 : i32
    return %arg1, %c0_i32, %c0_i32_0 : i32, i32, i32
  }
  func.func @transform_13(%arg0: i32, %arg1: i32) -> (i32, i32, i32) {
    %c0_i32 = arith.constant 0 : i32
    %c0_i32_0 = arith.constant 0 : i32
    %c0_i32_1 = arith.constant 0 : i32
    return %arg1, %c0_i32, %c0_i32_0 : i32, i32, i32
  }
  func.func @transform_14(%arg0: i32, %arg1: i32) -> (i32, i32, i32) {
    %c0_i32 = arith.constant 0 : i32
    %c0_i32_0 = arith.constant 0 : i32
    %c0_i32_1 = arith.constant 0 : i32
    return %arg1, %c0_i32, %c0_i32_0 : i32, i32, i32
  }
  func.func @transform_15(%arg0: i32, %arg1: i32) -> (i32, i32, i32) {
    %c0_i32 = arith.constant 0 : i32
    %c0_i32_0 = arith.constant 0 : i32
    %c0_i32_1 = arith.constant 0 : i32
    return %arg1, %c0_i32, %c0_i32_0 : i32, i32, i32
  }
  func.func @transform_16(%arg0: i32, %arg1: i32) -> (i32, i32, i32) {
    %c0_i32 = arith.constant 0 : i32
    %c0_i32_0 = arith.constant 0 : i32
    %c0_i32_1 = arith.constant 0 : i32
    return %arg0, %c0_i32, %c0_i32_0 : i32, i32, i32
  }
}

</mosaic_0001>

<bundles_post_ra>
// kernel: tpu_custom_call.1
= control target key start
LH: loop header
LB: loop body
LE: loop exit
PB: predicated region body
PF: predicated region fallthrough
CT: control target
= control target key end

     0   :  { %s20645_s0 = inlined_call_operand.vmem [shape: f32[2,8,128], index: 0, kind: input, shape index: {}]   ;;  %s20646_s1 = inlined_call_operand.hbm [shape: f32[8,128], index: 1, kind: input, shape index: {}]   ;;  %s20647_s2 = inlined_call_operand.hbm [shape: f32[8,8], index: 2, kind: input, shape index: {}]   ;;  %s20648_s3 = inlined_call_operand.vmem [shape: f32[2,8,128], index: 3, kind: input, shape index: {}]   ;;  %s20649_s4 = inlined_call_operand.hbm [shape: f32[2,1,8], index: 4, kind: input, shape index: {}]   ;;  %s20650_s5 = inlined_call_operand.hbm [shape: f32[2,1,8], index: 5, kind: input, shape index: {}]   ;;  %s20651_s6 = inlined_call_operand.hbm [shape: f32[2,4,128,128], index: 6, kind: input, shape index: {}]   ;;  %s20652_s7 = inlined_call_operand.vmem [shape: f32[2,4,128], index: 7, kind: input, shape index: {}]   ;;  %s20653_s8 = inlined_call_operand.hbm [shape: f32[2,4,128,128], index: 8, kind: input, shape index: {}]   ;;  %s20654_s9 = inlined_call_operand.hbm [shape: f32[2,4,128], index: 9, kind: input, shape index: {}]   ;;  %s20655_s10 = inlined_call_operand.hbm [shape: f32[2,128,512], index: 10, kind: input, shape index: {}]   ;;  %s20656_s11 = inlined_call_operand.vmem [shape: f32[2,1,512], index: 11, kind: input, shape index: {}]   ;;  %s20657_s12 = inlined_call_operand.hbm [shape: f32[2,512,128], index: 12, kind: input, shape index: {}]   ;;  %s20658_s13 = inlined_call_operand.hbm [shape: f32[2,1,128], index: 13, kind: input, shape index: {}]   ;;  %s20659_s14 = inlined_call_operand.vmem [shape: f32[2,3,128], index: 14, kind: input, shape index: {}]   ;;  %s20660_s15 = inlined_call_operand.vmem [shape: f32[2,3,128], index: 15, kind: input, shape index: {}]   ;;  %s20661_s16 = inlined_call_operand.hbm [shape: f32[2,8,128], index: 16, kind: output, shape index: {}]  }
   0x1   :  { %20676 = sst [smem:[#allocation30_spill]] %s20645_s0 }
   0x2   :  { %20677 = sst [smem:[#allocation31_spill]] %s20646_s1 }
   0x3   :  { %20678 = sst [smem:[#allocation32_spill]] %s20648_s3 }
   0x4   :  { %20679 = sst [smem:[#allocation33_spill]] %s20651_s6 }
   0x5   :  { %20680 = sst [smem:[#allocation34_spill]] %s20652_s7 }
   0x6   :  { %20681 = sst [smem:[#allocation35_spill]] %s20653_s8 }
   0x7   :  { %20682 = sst [smem:[#allocation36_spill]] %s20656_s11 }
   0x8   :  { %20683 = sst [smem:[#allocation37_spill]] %s20659_s14 }
   0x9   :  { %20684 = sst [smem:[#allocation38_spill]] %s20660_s15 }
   0xa   :  { %20685 = sst [smem:[#allocation39_spill]] %s20661_s16 }
   0xb   :  { %21 = vsyncpa [#allocation3], 0 }
   0xc   :  { %22 = vsyncpa [#allocation6], 0 }
   0xd   :  { %23 = vsyncpa [#allocation9], 0 }
   0xe   :  { %24 = vsyncpa [#allocation4], 0  ;;  %s17884_s21 = smov 0   ;;  %s17886_s22 = smov 0  }
   0xf   :  { %s17888_s23 = smov 0   ;;  %s17890_s24 = smov 0  }
  0x10   :  { %s17892_s25 = smov 0   ;;  %s17894_s26 = smov 0  }
  0x11 LB: > { %20686 = sst [smem:[#allocation22_spill]] %s17755_s22  ;;  %s17913_s27 = sadd.s32 4294967295, %s17771_s26   ;;  %s17771_s26 = sphi %s17894_s26, %s30_s26   ;;  %s17767_s25 = sphi %s17892_s25, %s20740_s25   ;;  %s17763_s24 = sphi %s17890_s24, %s20739_s24   ;;  %s17759_s23 = sphi %s17888_s23, %s20737_s23   ;;  %s17755_s22 = sphi %s17886_s22, %s20736_s22   ;;  %s17751_s21 = sphi %s17884_s21, %s20735_s21  }
  0x12   : > { %20687 = sst [smem:[#allocation23_spill]] %s17759_s23  ;;  %p202_p0 = scmp.ne.s32.totalorder %s17759_s23, %s17755_s22 }
  0x13   : > { %20688 = sst [smem:[#allocation24_spill]] %s17763_s24  ;;  %p203_p1 = scmp.eq.s32.totalorder %s17771_s26, 0 }
  0x14   : > { %20689 = sst [smem:[#allocation25_spill]] %s17771_s26  ;;  %p208_p2 = scmp.ne.s32.totalorder %s17755_s22, %s17751_s21 }
  0x15   : > { %20690 = sst [smem:[#allocation26_spill]] %s17913_s27  ;;  %p209_p3 = scmp.eq.s32.totalorder %s17913_s27, 0 }
  0x16   : > { %p17921_p4 = por %p203_p1, %p202_p0  ;;  %p16015_p5 = scmp.ge.s32.totalorder %s17771_s26, 1 }
  0x17   : > { %p17928_p6 = por %p209_p3, %p208_p2  ;;  %p479_p7 = scmp.lt.s32.totalorder %s17771_s26, 3 }
  0x18   : > { %s17773_s17 = smov [#allocation2]   ;;  %s39_s20 = sadd.s32 1, %s17767_s25 }
  0x19   : > { %s20692_s30 = scalar_select %p17928_p6, 1, 0 }
  0x1a   : > { %p17933_p8 = pnand %p16015_p5, %p479_p7  ;;  %s501_s18 = sshll.u32 %s17773_s17, 4  ;;  %s502_s18 = int_to_ptr.vmem [resolvable:$true] %s501_s18 }
  0x1b   : > { %20693 = sst [smem:[#allocation27_spill]] %s20692_s30  ;;  %p40_p12 = scmp.ge.s32.totalorder %s39_s20, 2 }
  0x1c   : > { %p17180_p9 = pneg %p17933_p8  ;;  %s564_s21 = sand.u32 1, %s17771_s26  }
  0x1d   : > { %s17420_s28 = scalar_lea.vmem %s502_s18, 128  ;;  %p17428_p5 = scmp.lt.s32.totalorder %s502_s18, %s502_s18 }
  0x1e   : > { %p17942_p11 = pnand %p17180_p9, %p209_p3  ;;  %p17421_p0 = scmp.ne.s32.totalorder %s502_s18, %s17420_s28 }
  0x1f   : > { %p17429_p7 = scmp.lt.s32.totalorder %s17420_s28, %s17420_s28 }
  0x20   : > { %p17411_p13 = pneg %p17942_p11 }
  0x21   : > { %p17430_p10 = por %p17429_p7, %p17428_p5 }
  0x22   : > { %p17423_p1 = pnand %p17421_p0, %p17411_p13 }
  0x24   : > { %p17424_p2 = pneg %p17423_p1 }
  0x26   : > { %p17431_p9 = pnand %p17430_p10, %p17424_p2 }
  0x28   : > { %17434 = shalt.err (!%p17431_p9)
}
  0x29   : > { %s20696_s1 = sld [smem:[#allocation31_spill]]  ;;  %s20742_s20 = smov (%p40_p12, %s39_s20), 0 }
  0x2a   : > { %20697 = sst [smem:[#allocation28_spill]] %s20742_s20  ;;  %s17961_s28 = sand.u32 1, %s17759_s23  }
  0x2b   : > { %s17964_s3 = sshll.u32 %s17767_s25, 13  ;;  %s192_s15 = ssub.s32 %s17767_s25, %s20742_s20 }
  0x2c   : > { %s17969_s14 = sshll.u32 %s17961_s28, 9  ;;  %p193_p10 = scmp.eq.s32.totalorder %s192_s15, 0 }
  0x2d   : > { %s20698_s6 = sld [smem:[#allocation33_spill]]  ;;  %s568_s7 = scalar_lea.vmem [#allocation10], %s17969_s14 }
  0x2e   : > { %p20701_p12 = scmp.lt.s32.totalorder %s17771_s26, 2  ;;  %s17989_s20 = scalar_lea.sflag [#allocation3], %s564_s21 }
  0x2f   : > { %17183 = dma.hbm_to_vmem [thread:$0]  (!%p17942_p11), %s20696_s1, 128, %s502_s18, [#allocation3]  }
  0x30   : > { %s575_s18 = sshll.u32 %s568_s7, 4  ;;  %s20699_s1 = sadd.s32 1, %s17759_s23  ;;  %s576_s18 = int_to_ptr.vmem [resolvable:$true] %s575_s18 }
  0x31   : > { %s17979_s24 = scalar_select %p193_p10, %s17759_s23, %s20699_s1  }
  0x32   : > { %p17985_p0 = pnand %p20701_p12, %p17921_p4  ;;  %s17448_s7 = scalar_lea.vmem %s576_s18, 8192 }
  0x33   : > { %s574_s11 = scalar_lea.hbm %s20698_s6, %s17964_s3  ;;  %20700 = sst [smem:[#allocation29_spill]] %s17979_s24 }
  0x34   : > { %p17993_p1 = pneg %p17985_p0  ;;  %p17449_p2 = scmp.ne.s32.totalorder %s576_s18, %s17448_s7 }
  0x35   : > { %s17774_s1 = smov [#allocation10]  }
  0x36   : > { %p17451_p5 = pnand %p17449_p2, %p17993_p1  ;;  %s17453_s29 = sshll.u32 %s17774_s1, 4  ;;  %s17454_s29 = int_to_ptr.vmem [resolvable:$false] %s17453_s29 }
  0x37   : > { %s17455_s16 = scalar_lea.vmem %s17454_s29, 16384  ;;  %p17456_p4 = scmp.lt.s32.totalorder %s576_s18, %s17454_s29 }
  0x38   : > { %p17452_p7 = pneg %p17451_p5  ;;  %p17457_p9 = scmp.lt.s32.totalorder %s17455_s16, %s17448_s7 }
  0x3a   : > { %p17458_p10 = por %p17457_p9, %p17456_p4 }
  0x3c   : > { %p17459_p12 = pnand %p17458_p10, %p17452_p7 }
  0x3e   : > { %17462 = shalt.err (!%p17459_p12)
}
  0x3f   : > { %s17775_s21 = smov 128   ;;  %s17776_s17 = smov 8  }
  0x40   : > { %17196 = dma.hbm_to_vmem [thread:$0]  (!%p17985_p0), %s574_s11, 8192, %s576_s18, %s17989_s20, %s17775_s21, %s17775_s21, %s17776_s17  }
  0x41   : > { %s20704_s8 = sld [smem:[#allocation35_spill]]  ;;  %s596_s29 = scalar_lea.vmem [#allocation11], %s17969_s14 }
  0x42   : > { %s603_s16 = sshll.u32 %s596_s29, 4  ;;  %s16029_s24 = sshll.u32 %s17961_s28, 2  ;;  %s604_s16 = int_to_ptr.vmem [resolvable:$true] %s603_s16 }
  0x43   : > { %s17476_s23 = scalar_lea.vmem %s604_s16, 8192  ;;  %s17777_s26 = smov [#allocation11]  }
  0x44   : > { %p17477_p2 = scmp.ne.s32.totalorder %s604_s16, %s17476_s23  ;;  %s17481_s22 = sshll.u32 %s17777_s26, 4  ;;  %s17482_s22 = int_to_ptr.vmem [resolvable:$false] %s17481_s22 }
  0x45   : > { %s17483_s27 = scalar_lea.vmem %s17482_s22, 16384  ;;  %p17484_p4 = scmp.lt.s32.totalorder %s604_s16, %s17482_s22 }
  0x46   : > { %p17479_p5 = pnand %p17477_p2, %p17993_p1  ;;  %p17485_p9 = scmp.lt.s32.totalorder %s17483_s27, %s17476_s23 }
  0x47   : > { %s602_s7 = scalar_lea.hbm %s20704_s8, %s17964_s3 }
  0x48   : > { %p17480_p7 = pneg %p17479_p5  ;;  %p17486_p10 = por %p17485_p9, %p17484_p4 }
  0x4a   : > { %p17487_p12 = pnand %p17486_p10, %p17480_p7 }
  0x4c   : > { %17490 = shalt.err (!%p17487_p12)
}
  0x4d   : > { %17199 = dma.hbm_to_vmem [thread:$0]  (!%p17985_p0), %s602_s7, 8192, %s604_s16, %s17989_s20, %s17775_s21, %s17775_s21, %s17776_s17  }
  0x4e   : > { %s16030_s6 = sshll.u32 %s17767_s25, 6  ;;  %s617_s1 = scalar_lea.vmem [#allocation12], %s16029_s24 }
  0x4f   : > { %s622_s26 = scalar_lea.hbm %s20654_s9, %s16030_s6  ;;  %s624_s22 = sshll.u32 %s617_s1, 4  ;;  %s625_s22 = int_to_ptr.vmem [resolvable:$true] %s624_s22 }
  0x50   : > { %s17504_s23 = scalar_lea.vmem %s625_s22, 64  ;;  %s17778_s27 = smov [#allocation12]  }
  0x51   : > { %p17505_p2 = scmp.ne.s32.totalorder %s625_s22, %s17504_s23  ;;  %s17509_s29 = sshll.u32 %s17778_s27, 4  ;;  %s17510_s29 = int_to_ptr.vmem [resolvable:$false] %s17509_s29 }
  0x52   : > { %s17511_s8 = scalar_lea.vmem %s17510_s29, 128  ;;  %p17512_p4 = scmp.lt.s32.totalorder %s625_s22, %s17510_s29 }
  0x53   : > { %p17507_p5 = pnand %p17505_p2, %p17993_p1  ;;  %p17513_p9 = scmp.lt.s32.totalorder %s17511_s8, %s17504_s23 }
  0x55   : > { %p17508_p7 = pneg %p17507_p5  ;;  %p17514_p10 = por %p17513_p9, %p17512_p4 }
  0x57   : > { %p17515_p12 = pnand %p17514_p10, %p17508_p7 }
  0x59   : > { %17518 = shalt.err (!%p17515_p12)
}
  0x5a   : > { %17202 = dma.hbm_to_vmem [thread:$0]  (!%p17985_p0), %s622_s26, 64, %s625_s22, %s17989_s20  }
  0x5b   : > { %s641_s16 = scalar_lea.hbm %s20655_s10, %s17964_s3  ;;  %s635_s6 = scalar_lea.vmem [#allocation13], %s17969_s14 }
  0x5c   : > { %s642_s11 = sshll.u32 %s635_s6, 4  ;;  %s17779_s8 = smov [#allocation13]   ;;  %s643_s11 = int_to_ptr.vmem [resolvable:$true] %s642_s11 }
  0x5d   : > { %s17532_s18 = scalar_lea.vmem %s643_s11, 8192  ;;  %s17537_s1 = sshll.u32 %s17779_s8, 4  ;;  %s17538_s1 = int_to_ptr.vmem [resolvable:$false] %s17537_s1 }
  0x5e   : > { %p17533_p2 = scmp.ne.s32.totalorder %s643_s11, %s17532_s18  ;;  %s17539_s23 = scalar_lea.vmem %s17538_s1, 16384 }
  0x5f   : > { %p17540_p4 = scmp.lt.s32.totalorder %s643_s11, %s17538_s1  ;;  %p17541_p9 = scmp.lt.s32.totalorder %s17539_s23, %s17532_s18 }
  0x60   : > { %p17535_p5 = pnand %p17533_p2, %p17993_p1 }
  0x61   : > { %p17542_p10 = por %p17541_p9, %p17540_p4 }
  0x62   : > { %p17536_p7 = pneg %p17535_p5 }
  0x64   : > { %p17543_p12 = pnand %p17542_p10, %p17536_p7 }
  0x66   : > { %17546 = shalt.err (!%p17543_p12)
}
  0x67   : > { %s17780_s26 = smov 512   ;;  %s17781_s22 = smov 32  }
  0x68   : > { %17205 = dma.hbm_to_vmem [thread:$0]  (!%p17985_p0), %s641_s16, 8192, %s643_s11, %s17989_s20, %s17780_s26, %s17780_s26, %s17781_s22  }
  0x69   : > { %s17782_s27 = smov [#allocation5]   ;;  %s669_s6 = scalar_lea.hbm %s20657_s12, %s17964_s3 }
  0x6a   : > { %s512_s29 = sshll.u32 %s17782_s27, 4  ;;  %s513_s29 = int_to_ptr.vmem [resolvable:$true] %s512_s29 }
  0x6b   : > { %s17558_s8 = scalar_lea.vmem %s513_s29, 128  ;;  %p17566_p4 = scmp.lt.s32.totalorder %s513_s29, %s513_s29 }
  0x6c   : > { %p17559_p2 = scmp.ne.s32.totalorder %s513_s29, %s17558_s8  ;;  %p17567_p9 = scmp.lt.s32.totalorder %s17558_s8, %s17558_s8 }
  0x6e   : > { %p17561_p5 = pnand %p17559_p2, %p17411_p13  ;;  %p17568_p10 = por %p17567_p9, %p17566_p4 }
  0x70   : > { %p17562_p7 = pneg %p17561_p5 }
  0x72   : > { %p17569_p12 = pnand %p17568_p10, %p17562_p7 }
  0x74   : > { %17572 = shalt.err (!%p17569_p12)
}
  0x75   : > { %17186 = dma.hbm_to_vmem [thread:$0]  (!%p17942_p11), %s20647_s2, 128, %s513_s29, [#allocation6]  }
  0x76   : > { %s663_s18 = scalar_lea.vmem [#allocation14], %s17969_s14  ;;  %s17783_s23 = smov [#allocation7]  }
  0x77   : > { %s670_s1 = sshll.u32 %s663_s18, 4  ;;  %s534_s26 = sshll.u32 %s17783_s23, 4  ;;  %s671_s1 = int_to_ptr.vmem [resolvable:$true] %s670_s1  ;;  %s535_s26 = int_to_ptr.vmem [resolvable:$true] %s534_s26 }
  0x78   : > { %s17586_s22 = scalar_lea.vmem %s671_s1, 8192  ;;  %s17784_s27 = smov [#allocation14]  }
  0x79   : > { %p17587_p2 = scmp.ne.s32.totalorder %s671_s1, %s17586_s22  ;;  %s17591_s24 = sshll.u32 %s17784_s27, 4  ;;  %s17592_s24 = int_to_ptr.vmem [resolvable:$false] %s17591_s24 }
  0x7a   : > { %s17593_s7 = scalar_lea.vmem %s17592_s24, 16384  ;;  %p17594_p7 = scmp.lt.s32.totalorder %s671_s1, %s17592_s24 }
  0x7b   : > { %p17589_p5 = pnand %p17587_p2, %p17993_p1  ;;  %p17595_p9 = scmp.lt.s32.totalorder %s17593_s7, %s17586_s22 }
  0x7d   : > { %p17590_p4 = pneg %p17589_p5  ;;  %p17596_p10 = por %p17595_p9, %p17594_p7 }
  0x7f   : > { %p17597_p12 = pnand %p17596_p10, %p17590_p4 }
  0x81   : > { %17600 = shalt.err (!%p17597_p12)
}
  0x82   : > { %17208 = dma.hbm_to_vmem [thread:$0]  (!%p17985_p0), %s669_s6, 8192, %s671_s1, %s17989_s20, %s17775_s21, %s17775_s21, %s17776_s17  }
  0x83   : > { %s17612_s8 = scalar_lea.vmem %s535_s26, 32  ;;  %p17620_p7 = scmp.lt.s32.totalorder %s535_s26, %s535_s26 }
  0x84   : > { %p17613_p2 = scmp.ne.s32.totalorder %s535_s26, %s17612_s8  ;;  %p17621_p9 = scmp.lt.s32.totalorder %s17612_s8, %s17612_s8 }
  0x86   : > { %p17615_p5 = pnand %p17613_p2, %p17411_p13  ;;  %p17622_p10 = por %p17621_p9, %p17620_p7 }
  0x88   : > { %p17616_p4 = pneg %p17615_p5 }
  0x8a   : > { %p17623_p12 = pnand %p17622_p10, %p17616_p4 }
  0x8c   : > { %17626 = shalt.err (!%p17623_p12)
}
  0x8d   : > { %s17785_s16 = smov 16   ;;  %s17786_s11 = smov 1  }
  0x8e   : > { %17189 = dma.hbm_to_vmem [thread:$0]  (!%p17942_p11), %s20649_s4, 32, %s535_s26, [#allocation6], %s17785_s16, %s17785_s16, %s17786_s11  }
  0x8f   : > { %s17787_s17 = smov [#allocation8]   ;;  %s16037_s18 = sshll.u32 %s17767_s25, 4 }
  0x90   : > { %s550_s6 = sshll.u32 %s17787_s17, 4  ;;  %s551_s6 = int_to_ptr.vmem [resolvable:$true] %s550_s6 }
  0x91   : > { %s17638_s1 = scalar_lea.vmem %s551_s6, 32  ;;  %p17646_p7 = scmp.lt.s32.totalorder %s551_s6, %s551_s6 }
  0x92   : > { %p17639_p2 = scmp.ne.s32.totalorder %s551_s6, %s17638_s1  ;;  %p17647_p9 = scmp.lt.s32.totalorder %s17638_s1, %s17638_s1 }
  0x94   : > { %p17641_p5 = pnand %p17639_p2, %p17411_p13  ;;  %p17648_p10 = por %p17647_p9, %p17646_p7 }
  0x96   : > { %p17642_p4 = pneg %p17641_p5 }
  0x98   : > { %p17649_p12 = pnand %p17648_p10, %p17642_p4 }
  0x9a   : > { %17652 = shalt.err (!%p17649_p12)
}
  0x9b   : > { %17192 = dma.hbm_to_vmem [thread:$0]  (!%p17942_p11), %s20650_s5, 32, %s551_s6, [#allocation9], %s17785_s16, %s17785_s16, %s17786_s11  }
  0x9c   : > { %s688_s24 = scalar_lea.hbm %s20658_s13, %s16037_s18  ;;  %s683_s7 = scalar_lea.vmem [#allocation15], %s17961_s28 }
  0x9d   : > { %s690_s14 = sshll.u32 %s683_s7, 4  ;;  %s17788_s8 = smov [#allocation15]   ;;  %s691_s14 = int_to_ptr.vmem [resolvable:$true] %s690_s14 }
  0x9e   : > { %s17666_s29 = scalar_lea.vmem %s691_s14, 16  ;;  %s17671_s19 = sshll.u32 %s17788_s8, 4  ;;  %s17672_s19 = int_to_ptr.vmem [resolvable:$false] %s17671_s19 }
  0x9f   : > { %p17667_p13 = scmp.ne.s32.totalorder %s691_s14, %s17666_s29  ;;  %s17673_s3 = scalar_lea.vmem %s17672_s19, 32 }
  0xa0   : > { %p17674_p4 = scmp.lt.s32.totalorder %s691_s14, %s17672_s19  ;;  %p17675_p7 = scmp.lt.s32.totalorder %s17673_s3, %s17666_s29 }
  0xa1   : > { %p17669_p2 = pnand %p17667_p13, %p17993_p1 }
  0xa2   : > { %p17676_p9 = por %p17675_p7, %p17674_p4 }
  0xa3   : > { %p17670_p5 = pneg %p17669_p2 }
  0xa5   : > { %p17677_p11 = pnand %p17676_p9, %p17670_p5 }
  0xa7   : > { %17680 = shalt.err (!%p17677_p11)
}
  0xa8   : > { %17211 = dma.hbm_to_vmem [thread:$0]  (!%p17985_p0), %s688_s24, 16, %s691_s14, %s17989_s20  }
  0xa9   : > { %713 = sbr.rel (%p17933_p8) target bundleno = 6561 (0x19a1), region = 84  ;;  %s20705_s28 = sld [smem:[#allocation26_spill]] (!%p17933_p8) }
  0xae   : > { %17730 = dma.done.wait (%p209_p3), [#allocation3], 128  }
  0xaf   : > { %17732 = vsyncadd (%p209_p3), [#allocation3], 4294967168 }
  0xb0   : > { %17734 = dma.done.wait (%p209_p3), [#allocation6], 160  }
  0xb1   : > { %17736 = vsyncadd (%p209_p3), [#allocation6], 4294967136 }
  0xb2   : > { %17738 = dma.done.wait (%p209_p3), [#allocation9], 32  }
  0xb3   : > { %17740 = vsyncadd (%p209_p3), [#allocation9], 4294967264  ;;  %s20706_s30 = sld [smem:[#allocation22_spill]]  ;;  %s731_s20 = sand.u32 1, %s20705_s28  }
  0xb4   : > { %s732_s11 = scalar_lea.sflag [#allocation3], %s731_s20 }
  0xb9   : > { %s18106_s15 = sand.u32 1, %s20706_s30  }
  0xba   : > { %s16043_s16 = sshll.u32 %s18106_s15, 9 }
  0xbb   : > { %s18109_s21 = scalar_lea.vmem [#allocation10], %s16043_s16 }
  0xbc   : > { %17742 = dma.done.wait (%p17928_p6), %s732_s11, 32848  }
  0xbd   : > { %17744 = vsyncadd (%p17928_p6), %s732_s11, 4294934448  ;;  %s20708_s17 = sld [smem:[#allocation24_spill]]  ;;  %s16045_s6 = sshll.u32 %s18106_s15, 2 }
  0xbe   : > { %s20709_s26 = sld [smem:[#allocation34_spill]]  ;;  %s18144_s23 = scalar_lea.vmem [#allocation12], %s16045_s6 }
  0xbf   : > { %s20710_s14 = sld [smem:[#allocation36_spill]]  ;;  %s18146_s22 = scalar_lea.vmem [#allocation13], %s16043_s16 }
  0xc0   : > { %s20711_s3 = sld [smem:[#allocation37_spill]]  ;;  %s779_s24 = scalar_lea.vmem [#allocation15], %s18106_s15 }
  0xc1   : > { %s20712_s20 = sld [smem:[#allocation38_spill]] }
  0xc3   : > { %p887_p3 = scmp.lt.s32.totalorder %s20708_s17, 1  ;;  %p16052_p6 = scmp.ne.s32.totalorder %s20708_s17, 0 }
  0xc4   : > { %s20713_s8 = sld [smem:[#allocation30_spill]] (!%p16052_p6) }
  0xc5   : > { %s888_s18 = scalar_select %p887_p3, %s20708_s17, 1 }
  0xc6   : > { %907 = sbr.rel (%p16052_p6) target bundleno = 209 (0xd1), region = 128 }
  0xc7   : > { %s18118_s1 = sshll.u32 %s888_s18, 2  ;;  %s18142_s18 = scalar_lea.vmem [#allocation11], %s16043_s16 }
  0xc8   : > { %s18124_s27 = scalar_lea.vmem %s20709_s26, %s18118_s1  ;;  %s894_s29 = scalar_lea.vmem %s20710_s14, %s18118_s1 }
  0xc9   : > { %s18134_s28 = scalar_lea.vmem %s20711_s3, %s18118_s1  ;;  %s18140_s11 = scalar_lea.vmem %s20712_s20, %s18118_s1 }
  0xca   : > { %s18148_s26 = scalar_lea.vmem [#allocation14], %s16043_s16 }
  0xcb   : > { %v908_v0 = vld [vmem:[%s20713_s8] sm:$0xff]  ;;  %v909_v2 = vld [vmem:[%s20713_s8 + $0x8] sm:$0xff] }
  0xcc   : > { %v912_v1 = vld [vmem:[#allocation2] sm:$0xff]  ;;  %v910_v3 = vmul.f32 11.313708, %v908_v0  ;;  %v911_v4 = vmul.f32 11.313708, %v909_v2 }
  0xce   : > { %v913_v5 = vadd.f32 %v912_v1, %v910_v3  ;;  %v914_v6 = vadd.f32 %v912_v1, %v911_v4 }
  0xd0   : > { %915 = vst [vmem:[#allocation16] sm:$0xff] %v913_v5  ;;  %916 = vst [vmem:[#allocation16 + $0x8] sm:$0xff] %v914_v6 }
  0xd1 PF: > { %v978_v9 = vld [vmem:[%s18109_s21 + $0x78] sm:$0xff]  ;;  %v977_v11 = vld [vmem:[%s18109_s21 + $0x70] sm:$0xff]  ;;  %v976_v13 = vld [vmem:[%s18109_s21 + $0x68] sm:$0xff]  ;;  %v951_v55 = vlaneseq  ;;  %s17789_s16 = smov 64   ;;  %s17790_s17 = smov 96   ;;  %vm17795_vm0 = vmmov 0  }
  0xd2   : > { %v994_v10 = vld [vmem:[%s18109_s21 + $0xf8] sm:$0xff]  ;;  %16506 = vmatprep.subr.mxu0 %v978_v9  ;;  %v993_v12 = vld [vmem:[%s18109_s21 + $0xf0] sm:$0xff]  ;;  %v992_v22 = vld [vmem:[%s18109_s21 + $0xe8] sm:$0xff]  ;;  %s17792_s6 = smov 32   ;;  %vm3904_vm1 = vcmask 261120   ;;  %vm4201_vm2 = vcmask 64512  }
  0xd3   : > { %16541 = vmatprep.subr.mxu1 %v994_v10  ;;  %16507 = vmatpush3.msra.mxu0 %v978_v9  ;;  %v975_v23 = vld [vmem:[%s18109_s21 + $0x60] sm:$0xff]  ;;  %v974_v25 = vld [vmem:[%s18109_s21 + $0x58] sm:$0xff]  ;;  %v973_v27 = vld [vmem:[%s18109_s21 + $0x50] sm:$0xff]  ;;  %v18199_v57 = vshrl.u32 %v951_v55, 7  ;;  %s20720_s30 = sld [smem:[#allocation32_spill]]  ;;  %s17796_s15 = smov [#allocation16]  }
  0xd4   : > { %16542 = vmatpush3.msra.mxu1 %v994_v10  ;;  %16508 = vmatprep.subr.mxu0 %v977_v11  ;;  %v991_v24 = vld [vmem:[%s18109_s21 + $0xe0] sm:$0xff]  ;;  %v990_v26 = vld [vmem:[%s18109_s21 + $0xd8] sm:$0xff]  ;;  %v989_v28 = vld [vmem:[%s18109_s21 + $0xd0] sm:$0xff]  ;;  %s20732_s1 = sld [smem:[#allocation26_spill]] }
  0xd5   : > { %16543 = vmatprep.subr.mxu1 %v993_v12  ;;  %16509 = vmatpush3.msra.mxu0 %v977_v11  ;;  %v972_v29 = vld [vmem:[%s18109_s21 + $0x48] sm:$0xff]  ;;  %v971_v31 = vld [vmem:[%s18109_s21 + $0x40] sm:$0xff]  ;;  %v970_v33 = vld [vmem:[%s18109_s21 + $0x38] sm:$0xff]  ;;  %v18202_v58 = vsub.s32 0, %v18199_v57 }
  0xd6   : > { %16544 = vmatpush3.msra.mxu1 %v993_v12  ;;  %16510 = vmatprep.subr.mxu0 %v976_v13  ;;  %v988_v30 = vld [vmem:[%s18109_s21 + $0xc8] sm:$0xff]  ;;  %v987_v32 = vld [vmem:[%s18109_s21 + $0xc0] sm:$0xff]  ;;  %v986_v34 = vld [vmem:[%s18109_s21 + $0xb8] sm:$0xff] }
  0xd7   : > { %v917_v7 = vld [vmem:[#allocation16] sm:$0xff]  ;;  %v918_v8 = vld [vmem:[#allocation16 + $0x8] sm:$0xff]  ;;  %16511 = vmatpush3.msra.mxu0 %v976_v13  ;;  %16545 = vmatprep.subr.mxu1 %v992_v22  ;;  %v967_v39 = vld [vmem:[%s18109_s21 + $0x20] sm:$0xff] }
  0xd8   : > { %928 = vadd.xlane.f32.xlu0 %v917_v7  ;;  %16512 = vmatprep.subr.mxu0 %v975_v23  ;;  %v969_v35 = vld [vmem:[%s18109_s21 + $0x30] sm:$0xff]  ;;  %v968_v37 = vld [vmem:[%s18109_s21 + $0x28] sm:$0xff]  ;;  %v983_v40 = vld [vmem:[%s18109_s21 + $0xa0] sm:$0xff] }
  0xd9   : > { %16546 = vmatpush3.msra.mxu1 %v992_v22  ;;  %16513 = vmatpush3.msra.mxu0 %v975_v23  ;;  %v985_v36 = vld [vmem:[%s18109_s21 + $0xb0] sm:$0xff]  ;;  %v984_v38 = vld [vmem:[%s18109_s21 + $0xa8] sm:$0xff]  ;;  %v966_v41 = vld [vmem:[%s18109_s21 + $0x18] sm:$0xff]  ;;  %v18226_v22 = vsub.s32 1, %v18199_v57 }
  0xda   : > { %16547 = vmatprep.subr.mxu1 %v991_v24  ;;  %16514 = vmatprep.subr.mxu0 %v974_v25  ;;  %v982_v42 = vld [vmem:[%s18109_s21 + $0x98] sm:$0xff]  ;;  %v965_v43 = vld [vmem:[%s18109_s21 + $0x10] sm:$0xff]  ;;  %v964_v45 = vld [vmem:[%s18109_s21 + $0x8] sm:$0xff]  ;;  %p17221_p8 = scmp.eq.s32.totalorder %s20732_s1, 1 }
  0xdb   : > { %16548 = vmatpush3.msra.mxu1 %v991_v24  ;;  %16515 = vmatpush3.msra.mxu0 %v974_v25  ;;  %v981_v44 = vld [vmem:[%s18109_s21 + $0x90] sm:$0xff]  ;;  %v980_v46 = vld [vmem:[%s18109_s21 + $0x88] sm:$0xff]  ;;  %v963_v47 = vld [vmem:[%s18109_s21] sm:$0xff] }
  0xdc   : > { %930 = vadd.xlane.f32.xlu0 %v918_v8  ;;  %16549 = vmatprep.subr.mxu1 %v990_v26  ;;  %v979_v48 = vld [vmem:[%s18109_s21 + $0x80] sm:$0xff]  ;;  %v1010_v49 = vld [vmem:[%s18109_s21 + $0x178] sm:$0xff]  ;;  %v926_v59 = vld [vmem:[%s18134_s28] sm:$0x7] }
  0xdd   : > { %16516 = vmatprep.subr.mxu0 %v973_v27  ;;  %16550 = vmatpush3.msra.mxu1 %v990_v26  ;;  %v927_v60 = vld [vmem:[%s18140_s11] sm:$0x7]  ;;  %v954_v61 = vrot.slane %v926_v59, %v18202_v58  ;;  %v1007_v9 = vld [vmem:[%s18109_s21 + $0x160] sm:$0xff]  ;;  %v1006_v10 = vld [vmem:[%s18109_s21 + $0x158] sm:$0xff] }
  0xde   : > { %16517 = vmatpush3.msra.mxu0 %v973_v27  ;;  %16551 = vmatprep.subr.mxu1 %v989_v28  ;;  %v960_v0 = vrot.slane %v927_v60, %v18202_v58  ;;  %v1005_v11 = vld [vmem:[%s18109_s21 + $0x150] sm:$0xff]  ;;  %v1004_v12 = vld [vmem:[%s18109_s21 + $0x148] sm:$0xff]  ;;  %v1003_v13 = vld [vmem:[%s18109_s21 + $0x140] sm:$0xff] }
  0xdf   : > { %16518 = vmatprep.subr.mxu0 %v972_v29  ;;  %16552 = vmatpush3.msra.mxu1 %v989_v28  ;;  %v1027_v23 = vld [vmem:[%s18124_s27] sm:$0xf] }
  0xe0   : > { %16519 = vmatpush3.msra.mxu0 %v972_v29  ;;  %16553 = vmatprep.subr.mxu1 %v988_v30  ;;  %v1031_v24 = vrot.slane %v1027_v23, %v18202_v58  ;;  %v1110_v25 = vrot.slane %v1027_v23, %v18226_v22 }
  0xe1   : > { %16520 = vmatprep.subr.mxu0 %v971_v31  ;;  %16554 = vmatpush3.msra.mxu1 %v988_v30 }
  0xe2   : > { %16521 = vmatpush3.msra.mxu0 %v971_v31  ;;  %16555 = vmatprep.subr.mxu1 %v987_v32 }
  0xe3   : > { %16522 = vmatprep.subr.mxu0 %v970_v33  ;;  %16556 = vmatpush3.msra.mxu1 %v987_v32 }
  0xe4   : > { %16523 = vmatpush3.msra.mxu0 %v970_v33  ;;  %16557 = vmatprep.subr.mxu1 %v986_v34  ;;  %v20674_v33 = vmov 0.0  }
  0xe5   : > { %16524 = vmatprep.subr.mxu0 %v969_v35  ;;  %16558 = vmatpush3.msra.mxu1 %v986_v34 }
  0xe6   : > { %16525 = vmatpush3.msra.mxu0 %v969_v35  ;;  %16559 = vmatprep.subr.mxu1 %v985_v36  ;;  %v18249_v35 = vsub.s32 2, %v18199_v57 }
  0xe7   : > { %16526 = vmatprep.subr.mxu0 %v968_v37  ;;  %16560 = vmatpush3.msra.mxu1 %v985_v36 }
  0xe8   : > { %16527 = vmatpush3.msra.mxu0 %v968_v37  ;;  %16561 = vmatprep.subr.mxu1 %v984_v38  ;;  %v18252_v36 = vrot.slane %v1027_v23, %v18249_v35 }
  0xe9   : > { %16528 = vmatprep.subr.mxu0 %v967_v39  ;;  %16562 = vmatpush3.msra.mxu1 %v984_v38 }
  0xea   : > { %16529 = vmatpush3.msra.mxu0 %v967_v39  ;;  %16563 = vmatprep.subr.mxu1 %v983_v40  ;;  %v17793_v39 = vmov 1983009808  }
  0xeb   : > { %16530 = vmatprep.subr.mxu0 %v966_v41  ;;  %16564 = vmatpush3.msra.mxu1 %v983_v40  ;;  %v1288_v40 = vunpack.c.l.s4 %v17793_v39 }
  0xec   : > { %16531 = vmatpush3.msra.mxu0 %v966_v41  ;;  %16565 = vmatprep.subr.mxu1 %v982_v42 }
  0xed   : > { %16532 = vmatprep.subr.mxu0 %v965_v43  ;;  %16566 = vmatpush3.msra.mxu1 %v982_v42  ;;  %v1289_v41 = vunpack.c.0.s8 %v1288_v40  ;;  %v17794_v42 = vmov 1934713408  }
  0xee   : > { %16533 = vmatpush3.msra.mxu0 %v965_v43  ;;  %16567 = vmatprep.subr.mxu1 %v981_v44  ;;  %v1320_v43 = vunpack.c.l.s4 %v17794_v42 }
  0xef   : > { %16534 = vmatprep.subr.mxu0 %v964_v45  ;;  %16568 = vmatpush3.msra.mxu1 %v981_v44 }
  0xf0   : > { %16535 = vmatpush3.msra.mxu0 %v964_v45  ;;  %16569 = vmatprep.subr.mxu1 %v980_v46  ;;  %v18258_v45 = vsub.s32 %v1289_v41, %v18199_v57 }
  0xf1   : > { %16536 = vmatprep.subr.mxu0 %v963_v47  ;;  %16570 = vmatpush3.msra.mxu1 %v980_v46  ;;  %v1321_v46 = vunpack.c.0.s8 %v1320_v43 }
  0xf2   : > { %16537 = vmatpush3.msra.mxu0 %v963_v47  ;;  %16571 = vmatprep.subr.mxu1 %v979_v48 }
  0xf3   : > { %16572 = vmatpush3.msra.mxu1 %v979_v48  ;;  %16576 = vmatprep.subr.mxu0 %v1010_v49 }
  0xf4   : > { %16611 = vmatprep.subr.mxu1 %v20674_v33 }
 0x161   : > { %v929_v14 = vpop.xlane.xlu0 %928 }
 0x162   : > { %v933_v15 = vmul.f32 0.0078125, %v929_v14  ;;  %v1002_v14 = vld [vmem:[%s18109_s21 + $0x138] sm:$0xff] }
 0x164   : > { %v18163_v16 = vsub.f32 %v917_v7, %v933_v15  ;;  %v1009_v7 = vld [vmem:[%s18109_s21 + $0x170] sm:$0xff] }
 0x165   : > { %v931_v17 = vpop.xlane.xlu0 %930  ;;  %v1001_v15 = vld [vmem:[%s18109_s21 + $0x130] sm:$0xff] }
 0x166   : > { %v934_v18 = vmul.f32 0.0078125, %v931_v17  ;;  %v937_v19 = vmul.f32 %v18163_v16, %v18163_v16  ;;  %v999_v17 = vld [vmem:[%s18109_s21 + $0x120] sm:$0xff] }
 0x168   : > { %v18167_v20 = vsub.f32 %v918_v8, %v934_v18  ;;  %939 = vadd.xlane.f32.xlu1 %v937_v19  ;;  %v1008_v8 = vld [vmem:[%s18109_s21 + $0x168] sm:$0xff]  ;;  %v998_v18 = vld [vmem:[%s18109_s21 + $0x118] sm:$0xff]  ;;  %v997_v19 = vld [vmem:[%s18109_s21 + $0x110] sm:$0xff] }
 0x16a   : > { %v938_v21 = vmul.f32 %v18167_v20, %v18167_v20 }
 0x16c   : > { %941 = vadd.xlane.f32.xlu1 %v938_v21  ;;  %v995_v21 = vld [vmem:[%s18109_s21 + $0x100] sm:$0xff] }
 0x1f1   : > { %v940_v50 = vpop.xlane.xlu1 %939 }
 0x1f2   : > { %v943_v51 = vmul.f32 0.0078125, %v940_v50 }
 0x1f4   : > { %v945_v52 = vadd.f32 1e-05, %v943_v51  ;;  %v18261_v51 = vsub.s32 %v1321_v46, %v18199_v57 }
 0x1f5   : > { %v942_v53 = vpop.xlane.xlu1 %941 }
 0x1f6   : > { %17291 = vrsqrt.f32 %v945_v52  ;;  %v944_v54 = vmul.f32 0.0078125, %v942_v53 }
 0x1f8   : > { %v946_v56 = vadd.f32 1e-05, %v944_v54 }
 0x1fa   : > { %17293 = vrsqrt.f32 %v946_v56 }
 0x203   : > { %v17292_v62 = vpop.eup %17291 }
 0x204   : > { %v949_v63 = vmul.f32 %v17292_v62, %v18163_v16  ;;  %v1000_v16 = vld [vmem:[%s18109_s21 + $0x128] sm:$0xff] }
 0x206   : > { %v955_v1 = vmul.f32 %v954_v61, %v949_v63 }
 0x207   : > { %v17294_v2 = vpop.eup %17293 }
 0x208   : > { %v961_v3 = vadd.f32 %v960_v0, %v955_v1  ;;  %v950_v4 = vmul.f32 %v17294_v2, %v18167_v20  ;;  %v996_v20 = vld [vmem:[%s18109_s21 + $0x108] sm:$0xff] }
 0x20a   : > { %16538 = vmatprep.mubr.f32.mxu0 %v961_v3  ;;  %16573 = vmatprep.mubr.f32.mxu1 %v961_v3  ;;  %v956_v5 = vmul.f32 %v954_v61, %v950_v4 }
 0x20c   : > { %v962_v6 = vadd.f32 %v960_v0, %v956_v5 }
 0x20e   : > { %16539 = vmatmul.mubr.f32.vlgmr.msra.gmra.mxu0 %v962_v6  ;;  %16574 = vmatmul.mubr.f32.vlgmr.msra.gmra.mxu1 %v962_v6 }
 0x20f   : > { %16577 = vmatpush3.msra.mxu0 %v1010_v49  ;;  %16608 = vmatprep.mubr.f32.mxu0 %v961_v3 }
 0x210   : > { %16578 = vmatprep.subr.mxu0 %v1009_v7 }
 0x211   : > { %16579 = vmatpush3.msra.mxu0 %v1009_v7 }
 0x212   : > { %16580 = vmatprep.subr.mxu0 %v1008_v8 }
 0x213   : > { %16581 = vmatpush3.msra.mxu0 %v1008_v8 }
 0x214   : > { %16582 = vmatprep.subr.mxu0 %v1007_v9 }
 0x215   : > { %16583 = vmatpush3.msra.mxu0 %v1007_v9 }
 0x216   : > { %16584 = vmatprep.subr.mxu0 %v1006_v10 }
 0x217   : > { %16585 = vmatpush3.msra.mxu0 %v1006_v10 }
 0x218   : > { %16586 = vmatprep.subr.mxu0 %v1005_v11 }
 0x219   : > { %16587 = vmatpush3.msra.mxu0 %v1005_v11 }
 0x21a   : > { %16588 = vmatprep.subr.mxu0 %v1004_v12 }
 0x21b   : > { %16589 = vmatpush3.msra.mxu0 %v1004_v12 }
 0x21c   : > { %16590 = vmatprep.subr.mxu0 %v1003_v13 }
 0x21d   : > { %16591 = vmatpush3.msra.mxu0 %v1003_v13 }
 0x21e   : > { %16592 = vmatprep.subr.mxu0 %v1002_v14 }
 0x21f   : > { %16593 = vmatpush3.msra.mxu0 %v1002_v14 }
 0x220   : > { %16594 = vmatprep.subr.mxu0 %v1001_v15 }
 0x221   : > { %16595 = vmatpush3.msra.mxu0 %v1001_v15 }
 0x222   : > { %16596 = vmatprep.subr.mxu0 %v1000_v16 }
 0x223   : > { %16597 = vmatpush3.msra.mxu0 %v1000_v16 }
 0x224   : > { %16598 = vmatprep.subr.mxu0 %v999_v17 }
 0x225   : > { %16599 = vmatpush3.msra.mxu0 %v999_v17 }
 0x226   : > { %16600 = vmatprep.subr.mxu0 %v998_v18 }
 0x227   : > { %16601 = vmatpush3.msra.mxu0 %v998_v18 }
 0x228   : > { %16602 = vmatprep.subr.mxu0 %v997_v19 }
 0x229   : > { %16603 = vmatpush3.msra.mxu0 %v997_v19 }
 0x22a   : > { %16604 = vmatprep.subr.mxu0 %v996_v20 }
 0x22b   : > { %16605 = vmatpush3.msra.mxu0 %v996_v20 }
 0x22c   : > { %16606 = vmatprep.subr.mxu0 %v995_v21 }
 0x22d   : > { %16607 = vmatpush3.msra.mxu0 %v995_v21 }
 0x22e   : > { %16609 = vmatmul.mubr.f32.vlgmr.msra.gmra.mxu0 %v962_v6  ;;  %16655 = vmatprep.subr.mxu0 %v20674_v33 }
 0x2ce   : > { %v16540_v26 = vpop.f32.mrf.mxu0  ;;  %v16575_v27 = vpop.f32.mrf.mxu1 }
 0x2cf   : > { %v18231_v28 = vadd.f32 %v16540_v26, %v1031_v24  ;;  %v18233_v29 = vadd.f32 %v16575_v27, %v1110_v25 }
 0x2d0   : > { %v1177_v30 = vpop.f32.mrf.mxu1  ;;  %v1098_v32 = vpop.f32.mrf.mxu0 }
 0x2d1   : > { %v1178_v31 = vadd.f32 %v1177_v30, %v1110_v25  ;;  %v18239_v34 = vadd.f32 %v1098_v32, %v1031_v24 }
 0x2d3   : > { %1429 = vrot.lane.b32.xlu1 %v1178_v31, %s17789_s16  ;;  %1423 = vrot.lane.b32.xlu0 %v1178_v31, %s17790_s17 }
 0x2d7   : > { %1435 = vrot.lane.b32.xlu1 %v1178_v31, %s17792_s6  ;;  %1267 = vrot.lane.b32.xlu0 %v18239_v34, %s17790_s17 }
 0x2db   : > { %1273 = vrot.lane.b32.xlu1 %v18239_v34, %s17789_s16 }
 0x2df   : > { %1279 = vrot.lane.b32.xlu1 %v18239_v34, %s17792_s6 }
 0x2ee   : > { %v16610_v37 = vpop.f32.mrf.mxu0 }
 0x2ef   : > { %v18255_v38 = vadd.f32 %v16610_v37, %v18252_v36 }
 0x345   : > { %v1430_v44 = vpop.permute.xlu1 %1429  ;;  %v1424_v48 = vpop.permute.xlu0 %1423 }
 0x346   : > { %v1441_v47 = vcombine.low %v1178_v31, %v1430_v44  ;;  %v1442_v61 = vcombine.high %v1178_v31, %v1430_v44 }
 0x348   : > { %v1449_v52 = vrot.slane %v1441_v47, %v18258_v45  ;;  %v1456_v63 = vrot.slane %v1442_v61, %v18258_v45 }
 0x349   : > { %v1436_v49 = vpop.permute.xlu1 %1435  ;;  %v18277_v9 = vpop.permute.xlu0 %1267 }
 0x34a   : > { %v1457_v50 = vcombine.low %v1424_v48, %v1436_v49  ;;  %v1458_v60 = vcombine.high %v1424_v48, %v1436_v49 }
 0x34c   : > { %v1465_v53 = vrot.slane %v1457_v50, %v18258_v45  ;;  %v1472_v62 = vrot.slane %v1458_v60, %v18258_v45 }
 0x34d   : > { %v18275_v8 = vpop.permute.xlu1 %1273 }
 0x34e   : > { %v1473_v54 = vcombine.low %v1449_v52, %v1465_v53  ;;  %v1474_v55 = vcombine.high %v1449_v52, %v1465_v53  ;;  %v1489_v0 = vcombine.low %v1456_v63, %v1472_v62  ;;  %v1490_v3 = vcombine.high %v1456_v63, %v1472_v62 }
 0x350   : > { %v1481_v56 = vrot.slane %v1473_v54, %v18261_v51  ;;  %v1488_v59 = vrot.slane %v1474_v55, %v18261_v51  ;;  %v1497_v2 = vrot.slane %v1489_v0, %v18261_v51  ;;  %v1504_v5 = vrot.slane %v1490_v3, %v18261_v51 }
 0x351   : > { %v18279_v10 = vpop.permute.xlu1 %1279 }
 0x352   : > { %1808 = vxpose.xlu1.b32.start.end [1/1] (short) (narrow) %v1481_v56, 32  ;;  %1872 = vxpose.xlu0.b32.start.end [1/1] (short) (narrow) %v1488_v59, 32  ;;  %v1506_v1 = vcombine.high %v1488_v59, %v20674_v33  ;;  %v1507_v4 = vcombine.high %v1497_v2, %v20674_v33  ;;  %v1508_v6 = vcombine.high %v1504_v5, %v20674_v33 }
 0x353   : > { %v1505_v7 = vcombine.high %v1481_v56, %v20674_v33 }
 0x35f   : > { %1904 = vxpose.xlu1.b32.start.end [1/1] (short) (narrow) %v1506_v1, 32  ;;  %1936 = vxpose.xlu0.b32.start.end [1/1] (short) (narrow) %v1497_v2, 32 }
 0x36c   : > { %1968 = vxpose.xlu1.b32.start.end [1/1] (short) (narrow) %v1507_v4, 32  ;;  %2000 = vxpose.xlu0.b32.start.end [1/1] (short) (narrow) %v1504_v5, 32 }
 0x379   : > { %2032 = vxpose.xlu1.b32.start.end [1/1] (short) (narrow) %v1508_v6, 32  ;;  %1840 = vxpose.xlu0.b32.start.end [1/1] (short) (narrow) %v1505_v7, 32 }
 0x3ce   : > { %v18281_v11 = vpop.trf.xlu1  ;;  %v18283_v12 = vpop.trf.xlu0 }
 0x3cf   : > { %v2064_v43 = vcombine.low %v18281_v11, %v18283_v12 }
 0x3d1   : > { %v2072_v53 = vrot.slane %v2064_v43, %v18258_v45 }
 0x3d2   : > { %v18285_v13 = vpop.trf.xlu1  ;;  %v18287_v14 = vpop.trf.xlu0 }
 0x3d3   : > { %v2200_v59 = vcombine.low %v18285_v13, %v18287_v14 }
 0x3d6   : > { %v18289_v15 = vpop.trf.xlu1  ;;  %v18291_v16 = vpop.trf.xlu0 }
 0x3da   : > { %v18293_v17 = vpop.trf.xlu1  ;;  %v18295_v18 = vpop.trf.xlu0 }
 0x3de   : > { %v18297_v19 = vpop.trf.xlu1  ;;  %v18299_v20 = vpop.trf.xlu0 }
 0x3e2   : > { %v1921_v21 = vpop.trf.xlu1  ;;  %v18301_v23 = vpop.trf.xlu0 }
 0x3e6   : > { %v18303_v24 = vpop.trf.xlu1  ;;  %v18305_v25 = vpop.trf.xlu0 }
 0x3ea   : > { %v18307_v26 = vpop.trf.xlu1  ;;  %v18309_v27 = vpop.trf.xlu0 }
 0x3ee   : > { %v18311_v30 = vpop.trf.xlu1  ;;  %v18313_v31 = vpop.trf.xlu0 }
 0x3ef   : > { %v2096_v44 = vcombine.low %v18299_v20, %v18313_v31 }
 0x3f1   : > { %v2104_v54 = vrot.slane %v2096_v44, %v18258_v45 }
 0x3f2   : > { %v1985_v32 = vpop.trf.xlu1  ;;  %v2017_v37 = vpop.trf.xlu0 }
 0x3f3   : > { %v2232_v60 = vcombine.low %v18301_v23, %v2017_v37 }
 0x3f5   : > { %v2240_v33 = vrot.slane %v2232_v60, %v18258_v45 }
 0x3f6   : > { %v18315_v39 = vpop.trf.xlu1  ;;  %v18317_v40 = vpop.trf.xlu0 }
 0x3fa   : > { %v18319_v41 = vpop.trf.xlu1  ;;  %v18321_v42 = vpop.trf.xlu0 }
 0x3fe   : > { %v18327_v46 = vpop.trf.xlu1  ;;  %v18329_v47 = vpop.trf.xlu0 }
 0x3ff   : > { %v2112_v48 = vcombine.low %v18311_v30, %v18327_v46  ;;  %v2080_v49 = vcombine.low %v18329_v47, %v18297_v19 }
 0x401   : > { %v2120_v50 = vrot.slane %v2112_v48, %v18258_v45  ;;  %v2088_v52 = vrot.slane %v2080_v49, %v18258_v45  ;;  %v2208_v49 = vrot.slane %v2200_v59, %v18258_v45 }
 0x402   : > { %v2049_v55 = vpop.trf.xlu1  ;;  %v1857_v56 = vpop.trf.xlu0 }
 0x403   : > { %v2248_v61 = vcombine.low %v1985_v32, %v2049_v55  ;;  %v2216_v62 = vcombine.low %v1857_v56, %v1921_v21  ;;  %v2128_v63 = vcombine.low %v2072_v53, %v2088_v52  ;;  %v2160_v0 = vcombine.low %v2104_v54, %v2120_v50 }
 0x404   : > { %v2129_v1 = vcombine.high %v2072_v53, %v2088_v52  ;;  %v2161_v2 = vcombine.high %v2104_v54, %v2120_v50  ;;  %v2249_v7 = vcombine.high %v1985_v32, %v2049_v55  ;;  %v2217_v43 = vcombine.high %v1857_v56, %v1921_v21 }
 0x405   : > { %v2256_v3 = vrot.slane %v2248_v61, %v18258_v45  ;;  %v2224_v4 = vrot.slane %v2216_v62, %v18258_v45  ;;  %v2136_v5 = vrot.slane %v2128_v63, %v18261_v51  ;;  %v2168_v6 = vrot.slane %v2160_v0, %v18261_v51 }
 0x406   : > { %v2143_v44 = vrot.slane %v2129_v1, %v18261_v51  ;;  %v2175_v48 = vrot.slane %v2161_v2, %v18261_v51  ;;  %v2201_v53 = vcombine.high %v18285_v13, %v18287_v14  ;;  %v18352_v54 = vpop.trf.xlu0  ;;  %v2233_v61 = vcombine.high %v18301_v23, %v2017_v37  ;;  %v18355_v62 = vpop.trf.xlu1 }
 0x407   : > { %v2193_v52 = vcombine.high %v2136_v5, %v2168_v6  ;;  %v2192_v50 = vcombine.low %v2136_v5, %v2168_v6  ;;  %v2264_v21 = vcombine.low %v2208_v49, %v2224_v4  ;;  %v2296_v32 = vcombine.low %v2240_v33, %v2256_v3 }
 0x408   : > { %v2263_v55 = vrot.slane %v2249_v7, %v18258_v45  ;;  %v2231_v56 = vrot.slane %v2217_v43, %v18258_v45  ;;  %v2195_v59 = vcombine.high %v2143_v44, %v2175_v48  ;;  %v2265_v60 = vcombine.high %v2208_v49, %v2224_v4 }
 0x409   : > { %2640 = vxpose.xlu0.b32.start.end [1/1] (short) (narrow) %v2193_v52, 8  ;;  %2608 = vxpose.xlu1.b32.start.end [1/1] (short) (narrow) %v2192_v50, 8  ;;  %v2194_v63 = vcombine.low %v2143_v44, %v2175_v48  ;;  %v2272_v0 = vrot.slane %v2264_v21, %v18261_v51  ;;  %v2304_v13 = vrot.slane %v2296_v32, %v18261_v51 }
 0x40a   : > { %v2297_v14 = vcombine.high %v2240_v33, %v2256_v3  ;;  %v2215_v23 = vrot.slane %v2201_v53, %v18258_v45  ;;  %v2336_v37 = vcombine.low %v18289_v15, %v18291_v16  ;;  %v2247_v1 = vrot.slane %v2233_v61, %v18258_v45  ;;  %v18371_v6 = vpop.trf.xlu0  ;;  %v18374_v7 = vpop.trf.xlu1 }
 0x40b   : > { %v2384_v2 = vcombine.low %v18315_v39, %v18355_v62  ;;  %v2352_v5 = vcombine.low %v18352_v54, %v18303_v24  ;;  %v2368_v4 = vcombine.low %v18305_v25, %v18317_v40  ;;  %v2329_v33 = vcombine.high %v2272_v0, %v2304_v13 }
 0x40c   : > { %v2279_v3 = vrot.slane %v2265_v60, %v18261_v51  ;;  %v2328_v43 = vcombine.low %v2272_v0, %v2304_v13  ;;  %v2311_v44 = vrot.slane %v2297_v14, %v18261_v51  ;;  %v2280_v48 = vcombine.low %v2215_v23, %v2231_v56 }
 0x40d   : > { %2704 = vxpose.xlu0.b32.start.end [1/1] (short) (narrow) %v2195_v59, 8  ;;  %2672 = vxpose.xlu1.b32.start.end [1/1] (short) (narrow) %v2194_v63, 8  ;;  %v2312_v49 = vcombine.low %v2247_v1, %v2263_v55  ;;  %v2344_v52 = vrot.slane %v2336_v37, %v18258_v45  ;;  %v2473_v50 = vcombine.high %v18293_v17, %v18295_v18 }
 0x40e   : > { %v2392_v53 = vrot.slane %v2384_v2, %v18258_v45  ;;  %v2360_v61 = vrot.slane %v2352_v5, %v18258_v45  ;;  %v2489_v21 = vcombine.high %v18371_v6, %v18307_v26  ;;  %v2376_v32 = vrot.slane %v2368_v4, %v18258_v45 }
 0x40f   : > { %v2521_v59 = vcombine.high %v18319_v41, %v18374_v7  ;;  %v2281_v60 = vcombine.high %v2215_v23, %v2231_v56  ;;  %v2313_v63 = vcombine.high %v2247_v1, %v2263_v55  ;;  %v2331_v0 = vcombine.high %v2279_v3, %v2311_v44 }
 0x410   : > { %v2330_v13 = vcombine.low %v2279_v3, %v2311_v44  ;;  %v2288_v14 = vrot.slane %v2280_v48, %v18261_v51  ;;  %v2320_v37 = vrot.slane %v2312_v49, %v18261_v51  ;;  %v2505_v2 = vcombine.high %v18309_v27, %v18321_v42 }
 0x411   : > { %2896 = vxpose.xlu0.b32.start.end [1/1] (short) (narrow) %v2329_v33, 8  ;;  %2864 = vxpose.xlu1.b32.start.end [1/1] (short) (narrow) %v2328_v43, 8  ;;  %v2503_v5 = vrot.slane %v2489_v21, %v18258_v45  ;;  %v2400_v33 = vcombine.low %v2344_v52, %v2360_v61  ;;  %v2432_v4 = vcombine.low %v2376_v32, %v2392_v53 }
 0x412   : > { %v2487_v43 = vrot.slane %v2473_v50, %v18258_v45  ;;  %v2385_v55 = vcombine.high %v18315_v39, %v18355_v62  ;;  %v2353_v56 = vcombine.high %v18352_v54, %v18303_v24  ;;  %v2535_v23 = vrot.slane %v2521_v59, %v18258_v45 }
 0x413   : > { %v2333_v1 = vcombine.high %v2288_v14, %v2320_v37  ;;  %v2332_v3 = vcombine.low %v2288_v14, %v2320_v37  ;;  %v2295_v44 = vrot.slane %v2281_v60, %v18261_v51  ;;  %v2327_v48 = vrot.slane %v2313_v63, %v18261_v51 }
 0x414   : > { %v2337_v49 = vcombine.high %v18289_v15, %v18291_v16  ;;  %v2369_v50 = vcombine.high %v18305_v25, %v18317_v40  ;;  %v2519_v21 = vrot.slane %v2505_v2, %v18258_v45  ;;  %v2408_v24 = vrot.slane %v2400_v33, %v18261_v51 }
 0x415   : > { %2960 = vxpose.xlu0.b32.start.end [1/1] (short) (narrow) %v2331_v0, 8  ;;  %2928 = vxpose.xlu1.b32.start.end [1/1] (short) (narrow) %v2330_v13, 8  ;;  %v2440_v39 = vrot.slane %v2432_v4, %v18261_v51  ;;  %v2553_v54 = vcombine.high %v2487_v43, %v2503_v5  ;;  %v2399_v62 = vrot.slane %v2385_v55, %v18258_v45 }
 0x416   : > { %v2367_v59 = vrot.slane %v2353_v56, %v18258_v45  ;;  %v2401_v60 = vcombine.high %v2344_v52, %v2360_v61  ;;  %v2585_v63 = vcombine.high %v2519_v21, %v2535_v23  ;;  %v2335_v0 = vcombine.high %v2295_v44, %v2327_v48 }
 0x417   : > { %v2334_v15 = vcombine.low %v2295_v44, %v2327_v48  ;;  %v2433_v16 = vcombine.high %v2376_v32, %v2392_v53  ;;  %v18410_v25 = vrot.slane %v2553_v54, %v18261_v51  ;;  %v2351_v40 = vrot.slane %v2337_v49, %v18258_v45 }
 0x418   : > { %v2383_v13 = vrot.slane %v2369_v50, %v18258_v45  ;;  %v2520_v14 = vcombine.low %v18319_v41, %v18374_v7  ;;  %v18417_v37 = vrot.slane %v2585_v63, %v18261_v51  ;;  %v2488_v52 = vcombine.low %v18371_v6, %v18307_v26 }
 0x419   : > { %3024 = vxpose.xlu0.b32.start.end [1/1] (short) (narrow) %v2333_v1, 8  ;;  %2992 = vxpose.xlu1.b32.start.end [1/1] (short) (narrow) %v2332_v3, 8  ;;  %v2465_v61 = vcombine.high %v2408_v24, %v2440_v39  ;;  %v2464_v53 = vcombine.low %v2408_v24, %v2440_v39  ;;  %v2416_v32 = vcombine.low %v2351_v40, %v2367_v59 }
 0x41a   : > { %v2448_v2 = vcombine.low %v2383_v13, %v2399_v62  ;;  %v2606_v33 = vcombine.low %v18410_v25, %v18417_v37  ;;  %v2552_v4 = vcombine.low %v2487_v43, %v2503_v5  ;;  %v2415_v55 = vrot.slane %v2401_v60, %v18261_v51 }
 0x41b   : > { %v2447_v41 = vrot.slane %v2433_v16, %v18261_v51  ;;  %v2584_v7 = vcombine.low %v2519_v21, %v2535_v23  ;;  %v2607_v56 = vcombine.high %v18410_v25, %v18417_v37  ;;  %v2472_v26 = vcombine.low %v18293_v17, %v18295_v18 }
 0x41c   : > { %v2504_v6 = vcombine.low %v18309_v27, %v18321_v42  ;;  %v18432_v1 = vrot.slane %v2552_v4, %v18261_v51  ;;  %v2528_v3 = vrot.slane %v2520_v14, %v18258_v45  ;;  %v2496_v5 = vrot.slane %v2488_v52, %v18258_v45 }
 0x41d   : > { %3088 = vxpose.xlu0.b32.start.end [1/1] (short) (narrow) %v2335_v0, 8  ;;  %3056 = vxpose.xlu1.b32.start.end [1/1] (short) (narrow) %v2334_v15, 8  ;;  %v2592_v43 = vrot.slane %v2584_v7, %v18261_v51  ;;  %v2424_v23 = vrot.slane %v2416_v32, %v18261_v51  ;;  %v2456_v44 = vrot.slane %v2448_v2, %v18261_v51 }
 0x41e   : > { %v2417_v48 = vcombine.high %v2351_v40, %v2367_v59  ;;  %v2449_v17 = vcombine.high %v2383_v13, %v2399_v62  ;;  %v2467_v18 = vcombine.high %v2415_v55, %v2447_v41  ;;  %v2466_v49 = vcombine.low %v2415_v55, %v2447_v41 }
 0x41f   : > { %v2604_v27 = vcombine.low %v18432_v1, %v2592_v43  ;;  %v2605_v42 = vcombine.high %v18432_v1, %v2592_v43  ;;  %v2480_v50 = vrot.slane %v2472_v26, %v18258_v45  ;;  %v2512_v21 = vrot.slane %v2504_v6, %v18258_v45 }
 0x420   : > { %v2113_v24 = vcombine.high %v18311_v30, %v18327_v46  ;;  %v2081_v39 = vcombine.high %v18329_v47, %v18297_v19  ;;  %v2469_v59 = vcombine.high %v2424_v23, %v2456_v44  ;;  %v2468_v60 = vcombine.low %v2424_v23, %v2456_v44 }
 0x421   : > { %3152 = vxpose.xlu0.b32.start.end [1/1] (short) (narrow) %v2465_v61, 8  ;;  %3120 = vxpose.xlu1.b32.start.end [1/1] (short) (narrow) %v2464_v53, 8  ;;  %v2536_v54 = vcombine.low %v2480_v50, %v2496_v5  ;;  %v2568_v62 = vcombine.low %v2512_v21, %v2528_v3  ;;  %v2431_v63 = vrot.slane %v2417_v48, %v18261_v51  ;;  %v20714_v44 = vmov 0.0  }
 0x422   : > { %v2463_v0 = vrot.slane %v2449_v17, %v18261_v51  ;;  %v2065_v15 = vcombine.high %v18281_v11, %v18283_v12  ;;  %v2097_v16 = vcombine.high %v18299_v20, %v18313_v31  ;;  %v2127_v30 = vrot.slane %v2113_v24, %v18258_v45  ;;  %16619 = vmatprep.mubr.msk.f32.mxu1 %vm17795_vm0, %v20714_v44 }
 0x423   : > { %v2095_v19 = vrot.slane %v2081_v39, %v18258_v45  ;;  %v2544_v46 = vrot.slane %v2536_v54, %v18261_v51  ;;  %v2576_v47 = vrot.slane %v2568_v62, %v18261_v51  ;;  %v2537_v14 = vcombine.high %v2480_v50, %v2496_v5  ;;  %16657 = vmatprep.mubr.msk.f32.mxu0 %vm17795_vm0, %v20714_v44 }
 0x424   : > { %v2471_v40 = vcombine.high %v2431_v63, %v2463_v0  ;;  %v2470_v13 = vcombine.low %v2431_v63, %v2463_v0  ;;  %v2569_v52 = vcombine.high %v2512_v21, %v2528_v3  ;;  %v2079_v61 = vrot.slane %v2065_v15, %v18258_v45 }
 0x425   : > { %3216 = vxpose.xlu0.b32.start.end [1/1] (short) (narrow) %v2467_v18, 8  ;;  %3184 = vxpose.xlu1.b32.start.end [1/1] (short) (narrow) %v2466_v49, 8  ;;  %v2111_v11 = vrot.slane %v2097_v16, %v18258_v45  ;;  %v2601_v12 = vcombine.high %v2544_v46, %v2576_v47  ;;  %v2600_v20 = vcombine.low %v2544_v46, %v2576_v47 }
 0x426   : > { %v2551_v31 = vrot.slane %v2537_v14, %v18261_v51  ;;  %v2583_v53 = vrot.slane %v2569_v52, %v18261_v51  ;;  %v2144_v32 = vcombine.low %v2079_v61, %v2095_v19  ;;  %v2145_v4 = vcombine.high %v2079_v61, %v2095_v19 }
 0x427   : > { %v2176_v2 = vcombine.low %v2111_v11, %v2127_v30  ;;  %v2177_v26 = vcombine.high %v2111_v11, %v2127_v30  ;;  %v1301_v16 = vcombine.low %v18277_v9, %v18279_v10  ;;  %v1285_v30 = vcombine.low %v18239_v34, %v18275_v8 }
 0x428   : > { %v2602_v55 = vcombine.low %v2551_v31, %v2583_v53  ;;  %v2152_v41 = vrot.slane %v2144_v32, %v18261_v51  ;;  %v2603_v1 = vcombine.high %v2551_v31, %v2583_v53  ;;  %v2159_v3 = vrot.slane %v2145_v4, %v18261_v51 }
 0x429   : > { %3280 = vxpose.xlu0.b32.start.end [1/1] (short) (narrow) %v2469_v59, 8  ;;  %3248 = vxpose.xlu1.b32.start.end [1/1] (short) (narrow) %v2468_v60, 8  ;;  %v2184_v7 = vrot.slane %v2176_v2, %v18261_v51  ;;  %v2191_v5 = vrot.slane %v2177_v26, %v18261_v51  ;;  %v1302_v19 = vcombine.high %v18277_v9, %v18279_v10 }
 0x42a   : > { %v1293_v14 = vrot.slane %v1285_v30, %v18258_v45 }
 0x42b   : > { %v2196_v6 = vcombine.low %v2152_v41, %v2184_v7  ;;  %v2198_v43 = vcombine.low %v2159_v3, %v2191_v5  ;;  %v2197_v23 = vcombine.high %v2152_v41, %v2184_v7  ;;  %v1316_v52 = vrot.slane %v1302_v19, %v18258_v45 }
 0x42d   : > { %3344 = vxpose.xlu0.b32.start.end [1/1] (short) (narrow) %v2471_v40, 8  ;;  %3312 = vxpose.xlu1.b32.start.end [1/1] (short) (narrow) %v2470_v13, 8  ;;  %v1286_v40 = vcombine.high %v18239_v34, %v18275_v8  ;;  %v1309_v13 = vrot.slane %v1301_v16, %v18258_v45 }
 0x42f   : > { %v1318_v31 = vcombine.high %v1293_v14, %v1309_v13 }
 0x431   : > { %3408 = vxpose.xlu1.b32.start.end [1/1] (short) (narrow) %v2601_v12, 8  ;;  %3376 = vxpose.xlu0.b32.start.end [1/1] (short) (narrow) %v2600_v20, 8  ;;  %v1300_v12 = vrot.slane %v1286_v40, %v18258_v45  ;;  %v1317_v20 = vcombine.low %v1293_v14, %v1309_v13  ;;  %v1332_v2 = vrot.slane %v1318_v31, %v18261_v51 }
 0x433   : > { %v1333_v53 = vcombine.low %v1300_v12, %v1316_v52  ;;  %v1334_v32 = vcombine.high %v1300_v12, %v1316_v52  ;;  %v1325_v10 = vrot.slane %v1317_v20, %v18261_v51 }
 0x435   : > { %3568 = vxpose.xlu1.b32.start.end [1/1] (short) (narrow) %v2606_v33, 8  ;;  %3440 = vxpose.xlu0.b32.start.end [1/1] (short) (narrow) %v2602_v55, 8  ;;  %v2199_v33 = vcombine.high %v2159_v3, %v2191_v5  ;;  %v1341_v41 = vrot.slane %v1333_v53, %v18261_v51  ;;  %v1348_v7 = vrot.slane %v1334_v32, %v18261_v51 }
 0x439   : > { %2736 = vxpose.xlu1.b32.start.end [1/1] (short) (narrow) %v2196_v6, 8  ;;  %3472 = vxpose.xlu0.b32.start.end [1/1] (short) (narrow) %v2603_v1, 8 }
 0x43d   : > { %2800 = vxpose.xlu1.b32.start.end [1/1] (short) (narrow) %v2198_v43, 8  ;;  %3504 = vxpose.xlu0.b32.start.end [1/1] (short) (narrow) %v2604_v27, 8 }
 0x441   : > { %3536 = vxpose.xlu0.b32.start.end [1/1] (short) (narrow) %v2605_v42, 8 }
 0x445   : > { %3600 = vxpose.xlu0.b32.start.end [1/1] (short) (narrow) %v2607_v56, 8 }
 0x449   : > { %2768 = vxpose.xlu0.b32.start.end [1/1] (short) (narrow) %v2197_v23, 8  ;;  %v1740_v23 = vcombine.low %v1325_v10, %v1332_v2 }
 0x44d   : > { %2832 = vxpose.xlu0.b32.start.end [1/1] (short) (narrow) %v2199_v33, 8  ;;  %v16054_v33 = vcombine.high %v1325_v10, %v1332_v2 }
 0x485   : > { %v18475_v48 = vpop.trf.xlu1  ;;  %v18477_v17 = vpop.trf.xlu0 }
 0x489   : > { %v18479_v18 = vpop.trf.xlu1  ;;  %v18481_v49 = vpop.trf.xlu0 }
 0x48d   : > { %v18483_v25 = vpop.trf.xlu1  ;;  %v18485_v37 = vpop.trf.xlu0 }
 0x491   : > { %v18487_v56 = vpop.trf.xlu1  ;;  %v18489_v27 = vpop.trf.xlu0 }
 0x492   : > { %v3700_v16 = vcombine.low %v18483_v25, %v18487_v56 }
 0x494   : > { %v18540_v19 = vrot.slane %v3700_v16, %v18258_v45 }
 0x495   : > { %v3008_v42 = vpop.trf.xlu1  ;;  %v3040_v50 = vpop.trf.xlu0 }
 0x499   : > { %v3072_v21 = vpop.trf.xlu1  ;;  %v3104_v24 = vpop.trf.xlu0 }
 0x49a   : > { %v3716_v26 = vcombine.low %v3008_v42, %v3072_v21  ;;  %v3724_v6 = vcombine.low %v3040_v50, %v3104_v24  ;;  %v1756_v21 = vcombine.low %v1341_v41, %v1348_v7  ;;  %v16055_v24 = vcombine.high %v1341_v41, %v1348_v7 }
 0x49c   : > { %v18524_v25 = vrot.slane %v3724_v6, %v18258_v45  ;;  %v18558_v52 = vrot.slane %v1756_v21, %v18258_v45  ;;  %v18565_v20 = vrot.slane %v16055_v24, %v18258_v45 }
 0x49d   : > { %v3168_v39 = vpop.trf.xlu0  ;;  %v3136_v54 = vpop.trf.xlu1 }
 0x49e   : > { %v1788_v6 = vcombine.low %v18558_v52, %v18565_v20 }
 0x4a1   : > { %v3232_v62 = vpop.trf.xlu0  ;;  %v3200_v59 = vpop.trf.xlu1 }
 0x4a2   : > { %v3768_v3 = vcombine.low %v3136_v54, %v3200_v59  ;;  %v3776_v5 = vcombine.low %v3168_v39, %v3232_v62  ;;  %v18521_v39 = vrot.slane %v3716_v26, %v18258_v45  ;;  %v3632_v59 = vcombine.low %v18475_v48, %v18479_v18 }
 0x4a3   : > { %v18552_v48 = vrot.slane %v1740_v23, %v18258_v45 }
 0x4a4   : > { %v18527_v56 = vrot.slane %v3768_v3, %v18258_v45  ;;  %v18568_v31 = vrot.slane %v3632_v59, %v18258_v45 }
 0x4a5   : > { %v3296_v60 = vpop.trf.xlu0  ;;  %v3264_v0 = vpop.trf.xlu1 }
 0x4a9   : > { %v3360_v63 = vpop.trf.xlu0  ;;  %v3328_v46 = vpop.trf.xlu1 }
 0x4aa   : > { %v3784_v8 = vcombine.low %v3264_v0, %v3328_v46  ;;  %v3792_v4 = vcombine.low %v3296_v60, %v3360_v63  ;;  %v3708_v0 = vcombine.low %v18485_v37, %v18489_v27  ;;  %v18530_v27 = vrot.slane %v3776_v5, %v18258_v45 }
 0x4ac   : > { %v18512_v63 = vrot.slane %v3784_v8, %v18258_v45  ;;  %v18515_v30 = vrot.slane %v3792_v4, %v18258_v45  ;;  %v18543_v46 = vrot.slane %v3708_v0, %v18258_v45 }
 0x4ad   : > { %v3392_v15 = vpop.trf.xlu0  ;;  %v3424_v61 = vpop.trf.xlu1 }
 0x4ae   : > { %v3732_v32 = vcombine.low %v18540_v19, %v18543_v46 }
 0x4b0   : > { %v3740_v3 = vrot.slane %v3732_v32, %v18261_v51 }
 0x4b1   : > { %v3456_v47 = vpop.trf.xlu0  ;;  %v3584_v34 = vpop.trf.xlu1 }
 0x4b2   : > { %v3836_v43 = vcombine.low %v3392_v15, %v3456_v47  ;;  %v3640_v15 = vcombine.low %v18477_v17, %v18481_v49  ;;  %v3816_v47 = vcombine.low %v18512_v63, %v18515_v30  ;;  %v18555_v17 = vrot.slane %v16054_v33, %v18258_v45 }
 0x4b4   : > { %v18533_v54 = vrot.slane %v3836_v43, %v18258_v45  ;;  %v18571_v53 = vrot.slane %v3640_v15, %v18258_v45  ;;  %v1772_v26 = vcombine.low %v18552_v48, %v18555_v17  ;;  %v3817_v15 = vcombine.high %v18512_v63, %v18515_v30 }
 0x4b5   : > { %v3488_v11 = vpop.trf.xlu0  ;;  %v2752_v60 = vpop.trf.xlu1  ;;  %v3733_v30 = vcombine.high %v18540_v19, %v18543_v46 }
 0x4b6   : > { %v3844_v55 = vcombine.low %v3424_v61, %v3488_v11  ;;  %v3748_v61 = vcombine.low %v18521_v39, %v18524_v25  ;;  %v3800_v11 = vcombine.low %v18527_v56, %v18530_v27  ;;  %v1780_v0 = vrot.slane %v1772_v26, %v18261_v51 }
 0x4b8   : > { %v18518_v42 = vrot.slane %v3844_v55, %v18258_v45  ;;  %v3756_v4 = vrot.slane %v3748_v61, %v18261_v51  ;;  %v3808_v55 = vrot.slane %v3800_v11, %v18261_v51 }
 0x4b9   : > { %v3520_v9 = vpop.trf.xlu0  ;;  %v2816_v18 = vpop.trf.xlu1 }
 0x4ba   : > { %v3852_v50 = vcombine.low %v3520_v9, %v3584_v34  ;;  %v3868_v40 = vcombine.low %v18533_v54, %v18518_v42  ;;  %v3824_v9 = vrot.slane %v3816_v47, %v18261_v51  ;;  %v3648_v34 = vcombine.low %v2752_v60, %v2816_v18 }
 0x4bb   : > { %v3764_v16 = vcombine.low %v3740_v3, %v3756_v4  ;;  %v1796_v60 = vrot.slane %v1788_v6, %v18261_v51  ;;  %v3869_v47 = vcombine.high %v18533_v54, %v18518_v42  ;;  %v3765_v63 = vcombine.high %v3740_v3, %v3756_v4 }
 0x4bc   : > { %v3859_v13 = vrot.slane %v3852_v50, %v18258_v45  ;;  %v3876_v10 = vrot.slane %v3868_v40, %v18261_v51  ;;  %v3655_v5 = vrot.slane %v3648_v34, %v18258_v45  ;;  %v3832_v23 = vcombine.low %v3808_v55, %v3824_v9 }
 0x4bd   : > { %v3552_v1 = vpop.trf.xlu0  ;;  %v3833_v40 = vcombine.high %v3808_v55, %v3824_v9  ;;  %v3831_v42 = vrot.slane %v3817_v15, %v18261_v51  ;;  %v3883_v54 = vrot.slane %v3869_v47, %v18261_v51  ;;  %v921_v55 = vld [vmem:[#allocation5] sm:$0xff] }
 0x4c1   : > { %v3616_v37 = vpop.trf.xlu0 }
 0x4c2   : > { %v3860_v62 = vcombine.low %v3552_v1, %v3616_v37  ;;  %v3664_v1 = vcombine.low %v18568_v31, %v18571_v53  ;;  %v1804_v37 = vcombine.low %v1780_v0, %v1796_v60 }
 0x4c4   : > { %v3867_v14 = vrot.slane %v3860_v62, %v18258_v45  ;;  %v3672_v50 = vrot.slane %v3664_v1, %v18261_v51 }
 0x4c5   : > { %v2784_v49 = vpop.trf.xlu0 }
 0x4c6   : > { %v3884_v12 = vcombine.low %v3859_v13, %v3867_v14  ;;  %v3885_v62 = vcombine.high %v3859_v13, %v3867_v14  ;;  %v3749_v13 = vcombine.high %v18521_v39, %v18524_v25  ;;  %v3801_v14 = vcombine.high %v18527_v56, %v18530_v27 }
 0x4c7   : > { %v1773_v39 = vcombine.high %v18552_v48, %v18555_v17  ;;  %v1789_v25 = vcombine.high %v18558_v52, %v18565_v20  ;;  %v1805_v56 = vcombine.high %v1780_v0, %v1796_v60  ;;  %v3665_v27 = vcombine.high %v18568_v31, %v18571_v53 }
 0x4c8   : > { %v3892_v2 = vrot.slane %v3884_v12, %v18261_v51  ;;  %v3899_v18 = vrot.slane %v3885_v62, %v18261_v51  ;;  %v3763_v19 = vrot.slane %v3749_v13, %v18261_v51  ;;  %v3815_v46 = vrot.slane %v3801_v14, %v18261_v51  ;;  %v1256_v13 = vpop.f32.mrf.mxu0 }
 0x4c9   : > { %v2848_v8 = vpop.trf.xlu0  ;;  %v3747_v48 = vrot.slane %v3733_v30, %v18261_v51  ;;  %v1787_v12 = vrot.slane %v1773_v39, %v18261_v51  ;;  %v1803_v20 = vrot.slane %v1789_v25, %v18261_v51  ;;  %v3679_v31 = vrot.slane %v3665_v27, %v18261_v51 }
 0x4ca   : > { %v3656_v41 = vcombine.low %v2784_v49, %v2848_v8  ;;  %v3900_v7 = vcombine.low %v3876_v10, %v3892_v2  ;;  %v3901_v59 = vcombine.high %v3876_v10, %v3892_v2  ;;  %v3902_v11 = vcombine.low %v3883_v54, %v3899_v18 }
 0x4cb   : > { %v3834_v52 = vcombine.low %v3815_v46, %v3831_v42  ;;  %v3766_v53 = vcombine.low %v3747_v48, %v3763_v19  ;;  %v1806_v9 = vcombine.low %v1787_v12, %v1803_v20  ;;  %v3903_v10 = vcombine.high %v3883_v54, %v3899_v18 }
 0x4cc   : > { %v3663_v43 = vrot.slane %v3656_v41, %v18258_v45  ;;  %16612 = vmatpush3.msra.mxu1 %v3900_v7  ;;  %v3835_v2 = vcombine.high %v3815_v46, %v3831_v42  ;;  %v3767_v34 = vcombine.high %v3747_v48, %v3763_v19  ;;  %v1807_v4 = vcombine.high %v1787_v12, %v1803_v20  ;;  %v16053_v41 = vld [vmem:[#allocation7] ss:$0 sm:$0xff] }
 0x4cd   : > { %16613 = vmatprep.subr.mxu1 %v20714_v44  ;;  %v1739_v7 = vadd.f32 %v16053_v41, %v921_v55  ;;  %v1257_v14 = vadd.f32 %v1256_v13, %v18252_v36 }
 0x4ce   : > { %v3680_v33 = vcombine.low %v3655_v5, %v3663_v43  ;;  %16614 = vmatpush3.msra.mxu1 %v3832_v23  ;;  %v3681_v49 = vcombine.high %v3655_v5, %v3663_v43 }
 0x4cf   : > { %16615 = vmatprep.subr.mxu1 %v20714_v44 }
 0x4d0   : > { %v3688_v21 = vrot.slane %v3680_v33, %v18261_v51  ;;  %16616 = vmatpush3.msra.mxu1 %v3764_v16  ;;  %v3695_v17 = vrot.slane %v3681_v49, %v18261_v51 }
 0x4d1   : > { %16617 = vmatprep.subr.mxu1 %v20714_v44 }
 0x4d2   : > { %v3696_v24 = vcombine.low %v3672_v50, %v3688_v21  ;;  %v3697_v61 = vcombine.high %v3672_v50, %v3688_v21  ;;  %v3698_v32 = vcombine.low %v3679_v31, %v3695_v17  ;;  %v3699_v8 = vcombine.high %v3679_v31, %v3695_v17 }
 0x4d4   : > { %16618 = vmatpush3.msra.mxu1 %v3696_v24 }
 0x4d5   : > { %16620 = vmatmul.mubr.msk.f32.vlgmr.msra.gmra.mxu1 %vm3904_vm1, %v1804_v37  ;;  %16622 = vmatprep.subr.mxu1 %v20714_v44 }
 0x4d6   : > { %16623 = vmatpush3.msra.mxu1 %v3901_v59  ;;  %16630 = vmatprep.mubr.msk.f32.mxu1 %vm17795_vm0, %v20714_v44 }
 0x4d7   : > { %16624 = vmatprep.subr.mxu1 %v20714_v44 }
 0x4d8   : > { %16625 = vmatpush3.msra.mxu1 %v3833_v40 }
 0x4d9   : > { %16626 = vmatprep.subr.mxu1 %v20714_v44 }
 0x4da   : > { %16627 = vmatpush3.msra.mxu1 %v3765_v63 }
 0x4db   : > { %16628 = vmatprep.subr.mxu1 %v20714_v44 }
 0x4dc   : > { %16629 = vmatpush3.msra.mxu1 %v3697_v61 }
 0x4dd   : > { %16631 = vmatmul.mubr.msk.f32.vlgmr.msra.gmra.mxu1 %vm3904_vm1, %v1805_v56  ;;  %16633 = vmatprep.subr.mxu1 %v20714_v44 }
 0x4de   : > { %16634 = vmatpush3.msra.mxu1 %v3902_v11  ;;  %16641 = vmatprep.mubr.msk.f32.mxu1 %vm17795_vm0, %v20714_v44 }
 0x4df   : > { %16635 = vmatprep.subr.mxu1 %v20714_v44 }
 0x4e0   : > { %16636 = vmatpush3.msra.mxu1 %v3834_v52 }
 0x4e1   : > { %16637 = vmatprep.subr.mxu1 %v20714_v44 }
 0x4e2   : > { %16638 = vmatpush3.msra.mxu1 %v3766_v53 }
 0x4e3   : > { %16639 = vmatprep.subr.mxu1 %v20714_v44 }
 0x4e4   : > { %16640 = vmatpush3.msra.mxu1 %v3698_v32 }
 0x4e5   : > { %16642 = vmatmul.mubr.msk.f32.vlgmr.msra.gmra.mxu1 %vm3904_vm1, %v1806_v9  ;;  %16644 = vmatprep.subr.mxu1 %v20714_v44 }
 0x4e6   : > { %16645 = vmatpush3.msra.mxu1 %v3903_v10  ;;  %16652 = vmatprep.mubr.msk.f32.mxu1 %vm17795_vm0, %v20714_v44 }
 0x4e7   : > { %16646 = vmatprep.subr.mxu1 %v20714_v44 }
 0x4e8   : > { %16647 = vmatpush3.msra.mxu1 %v3835_v2 }
 0x4e9   : > { %16648 = vmatprep.subr.mxu1 %v20714_v44 }
 0x4ea   : > { %16649 = vmatpush3.msra.mxu1 %v3767_v34 }
 0x4eb   : > { %16650 = vmatprep.subr.mxu1 %v20714_v44 }
 0x4ec   : > { %16651 = vmatpush3.msra.mxu1 %v3699_v8 }
 0x4ed   : > { %16653 = vmatmul.mubr.msk.f32.vlgmr.msra.gmra.mxu1 %vm3904_vm1, %v1807_v4  ;;  %16660 = vmatprep.subr.mxu1 %v20714_v44 }
 0x4ee   : > { %16662 = vmatprep.mubr.msk.f32.mxu1 %vm17795_vm0, %v20714_v44 }
 0x595   : > { %v3974_v26 = vpop.f32.mrf.mxu1 }
 0x596   : > { %v3975_v6 = vadd.f32 %v3974_v26, %v1739_v7 }
 0x597   : > { %v16621_v1 = vpop.f32.mrf.mxu1 }
 0x598   : > { %v4197_v3 = vmul.f32 0.17677669, %v3975_v6 }
 0x59a   : > { %v4202_v5 = vsel %vm4201_vm2, %v4197_v3, -inf }
 0x59b   : > { %4203 = vmax.xlane.f32.xlu1 %v4202_v5 }
 0x59d   : > { %v4047_v43 = vpop.f32.mrf.mxu1 }
 0x59e   : > { %v4048_v23 = vadd.f32 %v4047_v43, %v1739_v7 }
 0x59f   : > { %v16632_v33 = vpop.f32.mrf.mxu1 }
 0x5a0   : > { %v4198_v16 = vmul.f32 0.17677669, %v4048_v23 }
 0x5a2   : > { %v4205_v0 = vsel %vm4201_vm2, %v4198_v16, -inf }
 0x5a3   : > { %4206 = vmax.xlane.f32.xlu0 %v4205_v0 }
 0x5a5   : > { %v4120_v60 = vpop.f32.mrf.mxu1 }
 0x5a6   : > { %v4121_v50 = vadd.f32 %v4120_v60, %v1739_v7 }
 0x5a7   : > { %v16643_v21 = vpop.f32.mrf.mxu1 }
 0x5a8   : > { %v4199_v24 = vmul.f32 0.17677669, %v4121_v50 }
 0x5aa   : > { %v4208_v37 = vsel %vm4201_vm2, %v4199_v24, -inf }
 0x5ab   : > { %4209 = vmax.xlane.f32.xlu1 %v4208_v37 }
 0x5ad   : > { %v4193_v62 = vpop.f32.mrf.mxu1 }
 0x5ae   : > { %v4194_v59 = vadd.f32 %v4193_v62, %v1739_v7 }
 0x5af   : > { %v16654_v15 = vpop.f32.mrf.mxu1 }
 0x5b0   : > { %v4200_v47 = vmul.f32 0.17677669, %v4194_v59 }
 0x5b2   : > { %v4211_v40 = vsel %vm4201_vm2, %v4200_v47, -inf }
 0x5b3   : > { %4212 = vmax.xlane.f32.xlu1 %v4211_v40 }
 0x5c4   : > { %1579 = vrot.lane.b32.xlu1 %v1257_v14, %s17790_s17 }
 0x624   : > { %v4204_v18 = vpop.xlane.xlu1 %4203 }
 0x625   : > { %v4214_v63 = vsub.f32 %v4197_v3, %v4204_v18 }
 0x627   : > { %v4218_v30 = vmul.f32 1.442695, %v4214_v63 }
 0x629   : > { %17295 = vpow2.f32 %v4218_v30 }
 0x62c   : > { %v4207_v42 = vpop.xlane.xlu0 %4206 }
 0x62d   : > { %v4215_v54 = vsub.f32 %v4198_v16, %v4207_v42 }
 0x62f   : > { %v4220_v49 = vmul.f32 1.442695, %v4215_v54 }
 0x631   : > { %17297 = vpow2.f32 %v4220_v49 }
 0x634   : > { %v4210_v61 = vpop.xlane.xlu1 %4209 }
 0x635   : > { %v4216_v39 = vsub.f32 %v4199_v24, %v4210_v61 }
 0x636   : > { %v18653_v25 = vpop.eup %17295 }
 0x637   : > { %v4222_v56 = vmul.f32 1.442695, %v4216_v39  ;;  %v4226_v27 = vsel %vm4201_vm2, %v18653_v25, 0.0 }
 0x638   : > { %4227 = vadd.xlane.f32.xlu0 %v4226_v27 }
 0x639   : > { %17299 = vpow2.f32 %v4222_v56 }
 0x63c   : > { %v4213_v48 = vpop.xlane.xlu1 %4212 }
 0x63d   : > { %v4217_v17 = vsub.f32 %v4200_v47, %v4213_v48 }
 0x63e   : > { %v18657_v36 = vpop.eup %17297 }
 0x63f   : > { %v4229_v19 = vsel %vm4201_vm2, %v18657_v36, 0.0  ;;  %v4224_v52 = vmul.f32 1.442695, %v4217_v17 }
 0x640   : > { %4230 = vadd.xlane.f32.xlu1 %v4229_v19  ;;  %v1580_v31 = vpop.permute.xlu1 %1579 }
 0x641   : > { %17301 = vpow2.f32 %v4224_v52 }
 0x646   : > { %v18661_v46 = vpop.eup %17299 }
 0x647   : > { %v4232_v11 = vsel %vm4201_vm2, %v18661_v46, 0.0 }
 0x648   : > { %4233 = vadd.xlane.f32.xlu0 %v4232_v11 }
 0x64e   : > { %v18675_v12 = vpop.eup %17301 }
 0x64f   : > { %v4235_v20 = vsel %vm4201_vm2, %v18675_v12, 0.0 }
 0x651   : > { %1591 = vrot.lane.b32.xlu1 %v1257_v14, %s17792_s6 }
 0x65e   : > { %1585 = vrot.lane.b32.xlu0 %v1257_v14, %s17789_s16 }
 0x662   : > { %1425 = vrot.lane.b32.xlu0 %v18233_v29, %s17790_s17 }
 0x666   : > { %1431 = vrot.lane.b32.xlu0 %v18233_v29, %s17789_s16 }
 0x66a   : > { %1437 = vrot.lane.b32.xlu0 %v18233_v29, %s17792_s6 }
 0x66e   : > { %1275 = vrot.lane.b32.xlu0 %v18231_v28, %s17789_s16 }
 0x675   : > { %4236 = vadd.xlane.f32.xlu1 %v4235_v20 }
 0x686   : > { %1269 = vrot.lane.b32.xlu1 %v18231_v28, %s17790_s17 }
 0x68a   : > { %1281 = vrot.lane.b32.xlu1 %v18231_v28, %s17792_s6 }
 0x6c1   : > { %v4228_v32 = vpop.xlane.xlu0 %4227 }
 0x6c2   : > { %17303 = vrcp.f32 %v4228_v32 }
 0x6c9   : > { %v4231_v53 = vpop.xlane.xlu1 %4230 }
 0x6ca   : > { %17305 = vrcp.f32 %v4231_v53 }
 0x6cd   : > { %v1592_v9 = vpop.permute.xlu1 %1591 }
 0x6ce   : > { %v1613_v2 = vcombine.low %v1580_v31, %v1592_v9  ;;  %v1614_v34 = vcombine.high %v1580_v31, %v1592_v9 }
 0x6cf   : > { %v17304_v42 = vpop.eup %17303 }
 0x6d0   : > { %v1621_v41 = vrot.slane %v1613_v2, %v18258_v45  ;;  %v1628_v7 = vrot.slane %v1614_v34, %v18258_v45  ;;  %v4242_v31 = vmul.f32 %v17304_v42, %v18653_v25 }
 0x6d1   : > { %v4234_v10 = vpop.xlane.xlu0 %4233 }
 0x6d2   : > { %17307 = vrcp.f32 %v4234_v10 }
 0x6d5   : > { %v1586_v8 = vpop.permute.xlu0 %1585 }
 0x6d6   : > { %v1597_v4 = vcombine.low %v1257_v14, %v1586_v8  ;;  %v1598_v55 = vcombine.high %v1257_v14, %v1586_v8 }
 0x6d7   : > { %v17306_v61 = vpop.eup %17305 }
 0x6d8   : > { %v1605_v26 = vrot.slane %v1597_v4, %v18258_v45  ;;  %v1612_v6 = vrot.slane %v1598_v55, %v18258_v45  ;;  %v4243_v53 = vmul.f32 %v17306_v61, %v18657_v36 }
 0x6d9   : > { %v1426_v1 = vpop.permute.xlu0 %1425 }
 0x6da   : > { %v1629_v3 = vcombine.low %v1605_v26, %v1621_v41  ;;  %v1630_v5 = vcombine.high %v1605_v26, %v1621_v41  ;;  %v1645_v43 = vcombine.low %v1612_v6, %v1628_v7  ;;  %v1646_v23 = vcombine.high %v1612_v6, %v1628_v7 }
 0x6dc   : > { %v1637_v33 = vrot.slane %v1629_v3, %v18261_v51  ;;  %v1644_v16 = vrot.slane %v1630_v5, %v18261_v51  ;;  %v1653_v0 = vrot.slane %v1645_v43, %v18261_v51  ;;  %v1660_v60 = vrot.slane %v1646_v23, %v18261_v51 }
 0x6dd   : > { %v1432_v50 = vpop.permute.xlu0 %1431 }
 0x6de   : > { %v4246_v21 = vcombine.low %v1637_v33, %v1644_v16  ;;  %v16060_v24 = vcombine.high %v1637_v33, %v1644_v16  ;;  %v4262_v37 = vcombine.low %v1653_v0, %v1660_v60  ;;  %v16061_v62 = vcombine.high %v1653_v0, %v1660_v60  ;;  %v1014_v33 = vld [vmem:[%s18109_s21 + $0x198] sm:$0xff]  ;;  %v1017_v0 = vld [vmem:[%s18109_s21 + $0x1b0] sm:$0xff]  ;;  %v1012_v60 = vld [vmem:[%s18109_s21 + $0x188] sm:$0xff] }
 0x6df   : > { %v1509_v59 = vcombine.low %v18233_v29, %v1432_v50  ;;  %v17308_v9 = vpop.eup %17307  ;;  %v1510_v8 = vcombine.high %v18233_v29, %v1432_v50  ;;  %v1018_v16 = vld [vmem:[%s18109_s21 + $0x1b8] sm:$0xff]  ;;  %v1016_v50 = vld [vmem:[%s18109_s21 + $0x1a8] sm:$0xff] }
 0x6e0   : > { %v4253_v15 = vrot.slane %v4246_v21, %v18258_v45  ;;  %v4261_v47 = vrot.slane %v16060_v24, %v18258_v45  ;;  %v4269_v40 = vrot.slane %v4262_v37, %v18258_v45  ;;  %v4277_v13 = vrot.slane %v16061_v62, %v18258_v45  ;;  %v1011_v21 = vld [vmem:[%s18109_s21 + $0x180] sm:$0xff] }
 0x6e1   : > { %v1438_v14 = vpop.permute.xlu0 %1437  ;;  %v1517_v39 = vrot.slane %v1509_v59, %v18258_v45  ;;  %v4244_v36 = vmul.f32 %v17308_v9, %v18661_v46  ;;  %v1524_v46 = vrot.slane %v1510_v8, %v18258_v45  ;;  %v1015_v37 = vld [vmem:[%s18109_s21 + $0x1a0] sm:$0xff] }
 0x6e2   : > { %v1525_v18 = vcombine.low %v1426_v1, %v1438_v14  ;;  %v4278_v63 = vcombine.low %v4253_v15, %v4261_v47  ;;  %v4294_v30 = vcombine.low %v4269_v40, %v4277_v13  ;;  %v4279_v54 = vcombine.high %v4253_v15, %v4261_v47 }
 0x6e3   : > { %v4295_v49 = vcombine.high %v4269_v40, %v4277_v13  ;;  %v1526_v25 = vcombine.high %v1426_v1, %v1438_v14 }
 0x6e4   : > { %v1533_v56 = vrot.slane %v1525_v18, %v18258_v45  ;;  %v4286_v27 = vrot.slane %v4278_v63, %v18261_v51  ;;  %v4302_v19 = vrot.slane %v4294_v30, %v18261_v51  ;;  %v4293_v48 = vrot.slane %v4279_v54, %v18261_v51 }
 0x6e5   : > { %v4309_v17 = vrot.slane %v4295_v49, %v18261_v51  ;;  %v1540_v4 = vrot.slane %v1526_v25, %v18258_v45  ;;  %v18749_v62 = vpop.permute.xlu0 %1275 }
 0x6e6   : > { %v1541_v11 = vcombine.low %v1517_v39, %v1533_v56  ;;  %v4310_v52 = vcombine.low %v4286_v27, %v4302_v19  ;;  %v4311_v20 = vcombine.high %v4286_v27, %v4302_v19  ;;  %v1542_v29 = vcombine.high %v1517_v39, %v1533_v56 }
 0x6e7   : > { %v4312_v10 = vcombine.low %v4293_v48, %v4309_v17  ;;  %v4313_v34 = vcombine.high %v4293_v48, %v4309_v17  ;;  %v1558_v55 = vcombine.high %v1524_v46, %v1540_v4  ;;  %v1557_v3 = vcombine.low %v1524_v46, %v1540_v4 }
 0x6e8   : > { %v1549_v32 = vrot.slane %v1541_v11, %v18261_v51  ;;  %16656 = vmatpush3.msra.mxu0 %v4310_v52  ;;  %16661 = vmatpush3.msra.mxu1 %v4311_v20  ;;  %v1556_v41 = vrot.slane %v1542_v29, %v18261_v51 }
 0x6e9   : > { %16658 = vmatmul.mubr.msk.f32.vlgmr.msra.gmra.mxu0 %vm4201_vm2, %v4242_v31  ;;  %16663 = vmatmul.mubr.msk.f32.vlgmr.msra.gmra.mxu1 %vm4201_vm2, %v4243_v53  ;;  %v1572_v7 = vrot.slane %v1558_v55, %v18261_v51  ;;  %v1565_v43 = vrot.slane %v1557_v3, %v18261_v51 }
 0x6ea   : > { %v1573_v2 = vcombine.high %v1549_v32, %v20714_v44  ;;  %16665 = vmatprep.subr.mxu0 %v20714_v44  ;;  %16670 = vmatprep.subr.mxu1 %v20714_v44  ;;  %v1574_v6 = vcombine.high %v1556_v41, %v20714_v44 }
 0x6eb   : > { %4976 = vxpose.xlu0.b32.start.end [1/1] (short) (narrow) %v1549_v32, 32  ;;  %16666 = vmatpush3.msra.mxu0 %v4312_v10  ;;  %v1575_v23 = vcombine.high %v1565_v43, %v20714_v44  ;;  %v1576_v24 = vcombine.high %v1572_v7, %v20714_v44 }
 0x6ec   : > { %16671 = vmatpush3.msra.mxu1 %v4313_v34  ;;  %5008 = vxpose.xlu1.b32.start.end [1/1] (short) (narrow) %v1573_v2, 32 }
 0x6ed   : > { %16667 = vmatprep.mubr.msk.f32.mxu0 %vm17795_vm0, %v20714_v44  ;;  %16672 = vmatprep.mubr.msk.f32.mxu1 %vm17795_vm0, %v20714_v44 }
 0x6ee   : > { %16668 = vmatmul.mubr.msk.f32.vlgmr.msra.gmra.mxu0 %vm4201_vm2, %v4244_v36  ;;  %16675 = vmatprep.subr.mxu0 %v20714_v44 }
 0x6ef   : > { %16686 = vmatprep.subr.mxu1 %v20714_v44  ;;  %16683 = vmatprep.mubr.msk.f32.mxu0 %vm17795_vm0, %v20714_v44 }
 0x6f0   : > { %16676 = vmatpush3.msra.mxu0 %v1014_v33 }
 0x6f1   : > { %16677 = vmatprep.subr.mxu0 %v20714_v44 }
 0x6f8   : > { %5040 = vxpose.xlu0.b32.start.end [1/1] (short) (narrow) %v1556_v41, 32 }
 0x6f9   : > { %5168 = vxpose.xlu1.b32.start.end [1/1] (short) (narrow) %v1572_v7, 32 }
 0x6fe   : > { %v4237_v26 = vpop.xlane.xlu1 %4236 }
 0x6ff   : > { %17309 = vrcp.f32 %v4237_v26 }
 0x702   : > { %v18755_v13 = vpop.permute.xlu1 %1269 }
 0x705   : > { %5072 = vxpose.xlu0.b32.start.end [1/1] (short) (narrow) %v1574_v6, 32 }
 0x706   : > { %v18759_v42 = vpop.permute.xlu1 %1281 }
 0x70c   : > { %v17310_v1 = vpop.eup %17309 }
 0x70d   : > { %v4245_v5 = vmul.f32 %v17310_v1, %v18675_v12  ;;  %v1013_v12 = vld [vmem:[%s18109_s21 + $0x190] sm:$0xff] }
 0x70e   : > { %16678 = vmatpush3.msra.mxu0 %v1013_v12 }
 0x70f   : > { %16673 = vmatmul.mubr.msk.f32.vlgmr.msra.gmra.mxu1 %vm4201_vm2, %v4245_v5  ;;  %16679 = vmatprep.subr.mxu0 %v20714_v44 }
 0x710   : > { %16694 = vmatprep.mubr.msk.f32.mxu1 %vm17795_vm0, %v20714_v44  ;;  %16687 = vmatpush3.msra.mxu1 %v1018_v16 }
 0x711   : > { %16688 = vmatprep.subr.mxu1 %v20714_v44  ;;  %16680 = vmatpush3.msra.mxu0 %v1012_v60  ;;  %v1022_v60 = vld [vmem:[%s18109_s21 + $0x1d8] sm:$0xff] }
 0x712   : > { %5104 = vxpose.xlu0.b32.start.end [1/1] (short) (narrow) %v1565_v43, 32  ;;  %16689 = vmatpush3.msra.mxu1 %v1017_v0 }
 0x713   : > { %16690 = vmatprep.subr.mxu1 %v20714_v44  ;;  %16681 = vmatprep.subr.mxu0 %v20714_v44 }
 0x714   : > { %16691 = vmatpush3.msra.mxu1 %v1016_v50  ;;  %16682 = vmatpush3.msra.mxu0 %v1011_v21 }
 0x715   : > { %16692 = vmatprep.subr.mxu1 %v20714_v44  ;;  %16697 = vmatprep.subr.mxu0 %v20714_v44 }
 0x716   : > { %16693 = vmatpush3.msra.mxu1 %v1015_v37  ;;  %v1021_v37 = vld [vmem:[%s18109_s21 + $0x1d0] sm:$0xff] }
 0x717   : > { %16708 = vmatprep.subr.mxu1 %v20714_v44 }
 0x71f   : > { %5136 = vxpose.xlu0.b32.start.end [1/1] (short) (narrow) %v1575_v23, 32 }
 0x72c   : > { %5200 = vxpose.xlu0.b32.start.end [1/1] (short) (narrow) %v1576_v24, 32  ;;  %v1026_v24 = vld [vmem:[%s18109_s21 + $0x1f8] sm:$0xff] }
 0x767   : > { %v4992_v59 = vpop.trf.xlu0 }
 0x768   : > { %v5024_v39 = vpop.trf.xlu1 }
 0x76b   : > { %v18751_v15 = vpop.trf.xlu0 }
 0x76c   : > { %v18767_v48 = vpop.trf.xlu1 }
 0x76f   : > { %v4994_v47 = vpop.trf.xlu0 }
 0x770   : > { %v5026_v36 = vpop.trf.xlu1 }
 0x773   : > { %v18753_v40 = vpop.trf.xlu0 }
 0x774   : > { %v18819_v12 = vpop.trf.xlu1 }
 0x777   : > { %v5056_v14 = vpop.trf.xlu0 }
 0x778   : > { %v5232_v18 = vcombine.low %v4992_v59, %v5056_v14  ;;  %v5233_v63 = vcombine.high %v4992_v59, %v5056_v14  ;;  %v1025_v14 = vld [vmem:[%s18109_s21 + $0x1f0] sm:$0xff] }
 0x77a   : > { %v18770_v20 = vrot.slane %v5232_v18, %v18258_v45  ;;  %v18773_v31 = vrot.slane %v5233_v63, %v18258_v45  ;;  %v1020_v63 = vld [vmem:[%s18109_s21 + $0x1c8] sm:$0xff] }
 0x77b   : > { %v18757_v30 = vpop.trf.xlu0 }
 0x77f   : > { %v5058_v54 = vpop.trf.xlu0 }
 0x780   : > { %v5504_v49 = vcombine.low %v4994_v47, %v5058_v54  ;;  %v5505_v61 = vcombine.high %v4994_v47, %v5058_v54  ;;  %v5184_v54 = vpop.trf.xlu1 }
 0x782   : > { %v18792_v29 = vrot.slane %v5504_v49, %v18258_v45  ;;  %v18795_v55 = vrot.slane %v5505_v61, %v18258_v45  ;;  %v1024_v49 = vld [vmem:[%s18109_s21 + $0x1e8] sm:$0xff] }
 0x783   : > { %v18761_v56 = vpop.trf.xlu0 }
 0x784   : > { %v5640_v27 = vcombine.low %v18753_v40, %v18761_v56  ;;  %v5641_v19 = vcombine.high %v18753_v40, %v18761_v56 }
 0x787   : > { %v5088_v11 = vpop.trf.xlu0 }
 0x788   : > { %v5248_v17 = vcombine.low %v5024_v39, %v5088_v11  ;;  %v5249_v52 = vcombine.high %v5024_v39, %v5088_v11  ;;  %v1019_v39 = vld [vmem:[%s18109_s21 + $0x1c0] sm:$0xff] }
 0x78a   : > { %v18776_v53 = vrot.slane %v5248_v17, %v18258_v45  ;;  %v18779_v32 = vrot.slane %v5249_v52, %v18258_v45  ;;  %v1023_v17 = vld [vmem:[%s18109_s21 + $0x1e0] sm:$0xff] }
 0x78b   : > { %v18781_v9 = vpop.trf.xlu0 }
 0x78c   : > { %v5296_v10 = vcombine.low %v18770_v20, %v18776_v53  ;;  %v5297_v2 = vcombine.high %v18770_v20, %v18776_v53  ;;  %v5312_v34 = vcombine.low %v18773_v31, %v18779_v32  ;;  %v5313_v25 = vcombine.high %v18773_v31, %v18779_v32 }
 0x78f   : > { %v5090_v8 = vpop.trf.xlu0 }
 0x790   : > { %v5520_v4 = vcombine.low %v5026_v36, %v5090_v8  ;;  %v5521_v46 = vcombine.high %v5026_v36, %v5090_v8  ;;  %v18844_v36 = vpop.trf.xlu1 }
 0x792   : > { %v18798_v41 = vrot.slane %v5520_v4, %v18258_v45  ;;  %v18801_v7 = vrot.slane %v5521_v46, %v18258_v45 }
 0x793   : > { %v18803_v26 = vpop.trf.xlu0 }
 0x794   : > { %v5568_v6 = vcombine.low %v18792_v29, %v18798_v41  ;;  %v5569_v1 = vcombine.high %v18792_v29, %v18798_v41  ;;  %v5584_v3 = vcombine.low %v18795_v55, %v18801_v7 }
 0x796   : > { %v5592_v29 = vrot.slane %v5584_v3, %v18261_v51  ;;  %v20715_v3 = vcombine.high %v18795_v55, %v18801_v7 }
 0x797   : > { %v5120_v43 = vpop.trf.xlu0 }
 0x798   : > { %v5264_v4 = vcombine.low %v5120_v43, %v5184_v54  ;;  %v5265_v46 = vcombine.high %v5120_v43, %v5184_v54  ;;  %v18864_v43 = vrot.slane %v5296_v10, %v18261_v51  ;;  %v5656_v54 = vcombine.low %v18819_v12, %v18803_v26 }
 0x79b   : > { %v18813_v23 = vpop.trf.xlu0 }
 0x79f   : > { %v18815_v33 = vpop.trf.xlu0 }
 0x7a3   : > { %v18817_v16 = vpop.trf.xlu0 }
 0x7a7   : > { %v5152_v0 = vpop.trf.xlu0 }
 0x7a9   : > { %v4383_v50 = vpop.f32.mrf.mxu0  ;;  %v4456_v21 = vpop.f32.mrf.mxu1 }
 0x7aa   : > { %16684 = vmatmul.mubr.msk.f32.vlgmr.msra.gmra.mxu0 %vm3904_vm1, %v4383_v50  ;;  %16695 = vmatmul.mubr.msk.f32.vlgmr.msra.gmra.mxu1 %vm3904_vm1, %v4456_v21 }
 0x7ab   : > { %v18826_v59 = vpop.trf.xlu0  ;;  %16698 = vmatpush3.msra.mxu0 %v1022_v60  ;;  %v16659_v47 = vpop.f32.mrf.mxu0  ;;  %16705 = vmatprep.mubr.msk.f32.mxu0 %vm17795_vm0, %v20714_v44 }
 0x7ac   : > { %v16664_v18 = vpop.f32.mrf.mxu1  ;;  %16699 = vmatprep.subr.mxu0 %v20714_v44  ;;  %16709 = vmatpush3.msra.mxu1 %v1026_v24  ;;  %v18852_v24 = vpop.trf.xlu1  ;;  %v5279_v47 = vrot.slane %v5265_v46, %v18258_v45 }
 0x7ad   : > { %16700 = vmatpush3.msra.mxu0 %v1021_v37  ;;  %16710 = vmatprep.subr.mxu1 %v20714_v44  ;;  %v5272_v37 = vrot.slane %v5264_v4, %v18258_v45 }
 0x7ae   : > { %v4529_v61 = vpop.f32.mrf.mxu0  ;;  %16701 = vmatprep.subr.mxu0 %v20714_v44  ;;  %16711 = vmatpush3.msra.mxu1 %v1025_v14 }
 0x7af   : > { %v18837_v11 = vpop.trf.xlu0  ;;  %16702 = vmatpush3.msra.mxu0 %v1020_v63  ;;  %16712 = vmatprep.subr.mxu1 %v20714_v44 }
 0x7b0   : > { %v16669_v52 = vpop.f32.mrf.mxu0  ;;  %16703 = vmatprep.subr.mxu0 %v20714_v44  ;;  %16713 = vmatpush3.msra.mxu1 %v1024_v49  ;;  %v5187_v10 = vpop.trf.xlu1 }
 0x7b1   : > { %16704 = vmatpush3.msra.mxu0 %v1019_v39  ;;  %16714 = vmatprep.subr.mxu1 %v20714_v44 }
 0x7b2   : > { %16706 = vmatmul.mubr.msk.f32.vlgmr.msra.gmra.mxu0 %vm3904_vm1, %v4529_v61  ;;  %16715 = vmatpush3.msra.mxu1 %v1023_v17 }
 0x7b3   : > { %v5155_v8 = vpop.trf.xlu0  ;;  %16716 = vmatprep.mubr.msk.f32.mxu1 %vm17795_vm0, %v20714_v44  ;;  %16719 = vmatprep.subr.mxu0 %v20714_v44 }
 0x7b4   : > { %16730 = vmatprep.subr.mxu1 %v20714_v44  ;;  %16727 = vmatprep.mubr.msk.f32.mxu0 %vm17795_vm0, %v20714_v44 }
 0x7b7   : > { %v5216_v60 = vpop.trf.xlu0 }
 0x7b8   : > { %v5280_v50 = vcombine.low %v5152_v0, %v5216_v60  ;;  %v5281_v21 = vcombine.high %v5152_v0, %v5216_v60  ;;  %v18870_v0 = vrot.slane %v5297_v2, %v18261_v51  ;;  %v18893_v2 = vrot.slane %v5312_v34, %v18261_v51 }
 0x7b9   : > { %v5657_v60 = vcombine.high %v18819_v12, %v18803_v26  ;;  %v5648_v34 = vrot.slane %v5640_v27, %v18258_v45 }
 0x7ba   : > { %v5288_v14 = vrot.slane %v5280_v50, %v18258_v45  ;;  %v5295_v18 = vrot.slane %v5281_v21, %v18258_v45  ;;  %v5664_v50 = vrot.slane %v5656_v54, %v18258_v45  ;;  %v5672_v21 = vcombine.low %v18817_v16, %v5187_v10 }
 0x7bb   : > { %v18858_v63 = vpop.trf.xlu0  ;;  %v5671_v12 = vrot.slane %v5657_v60, %v18258_v45 }
 0x7bc   : > { %v5328_v49 = vcombine.low %v5272_v37, %v5288_v14  ;;  %v5329_v61 = vcombine.high %v5272_v37, %v5288_v14  ;;  %v5344_v39 = vcombine.low %v5279_v47, %v5295_v18  ;;  %v5704_v54 = vcombine.low %v5648_v34, %v5664_v50 }
 0x7bd   : > { %v5680_v53 = vrot.slane %v5672_v21, %v18258_v45  ;;  %v5345_v20 = vcombine.high %v5279_v47, %v5295_v18  ;;  %v5705_v5 = vcombine.high %v5648_v34, %v5664_v50  ;;  %v5536_v47 = vcombine.low %v18815_v33, %v18852_v24 }
 0x7be   : > { %v18875_v17 = vrot.slane %v5328_v49, %v18261_v51  ;;  %v18878_v52 = vrot.slane %v5329_v61, %v18261_v51  ;;  %v18881_v4 = vrot.slane %v5344_v39, %v18261_v51  ;;  %v5673_v49 = vcombine.high %v18817_v16, %v5187_v10 }
 0x7bf   : > { %v18883_v46 = vpop.trf.xlu0  ;;  %v5655_v10 = vrot.slane %v5641_v19, %v18258_v45  ;;  %v5712_v18 = vrot.slane %v5704_v54, %v18261_v51  ;;  %v18931_v19 = vrot.slane %v5313_v25, %v18261_v51  ;;  %v5544_v54 = vrot.slane %v5536_v47, %v18258_v45 }
 0x7c0   : > { %v5687_v37 = vrot.slane %v5673_v49, %v18258_v45  ;;  %v5552_v27 = vcombine.low %v18837_v11, %v18883_v46  ;;  %v5363_v32 = vcombine.high %v18870_v0, %v18878_v52  ;;  %v5365_v25 = vcombine.high %v18893_v2, %v18881_v4 }
 0x7c1   : > { %v5720_v21 = vcombine.low %v5655_v10, %v5671_v12 }
 0x7c2   : > { %v5560_v40 = vrot.slane %v5552_v27, %v18258_v45  ;;  %v5719_v27 = vrot.slane %v5705_v5, %v18261_v51 }
 0x7c3   : > { %v5219_v61 = vpop.trf.xlu0 }
 0x7c4   : > { %v5688_v39 = vcombine.low %v5155_v8, %v5219_v61  ;;  %v5689_v26 = vcombine.high %v5155_v8, %v5219_v61  ;;  %v5601_v47 = vcombine.high %v5544_v54, %v5560_v40 }
 0x7c6   : > { %v5696_v14 = vrot.slane %v5688_v39, %v18258_v45  ;;  %v5703_v16 = vrot.slane %v5689_v26, %v18258_v45  ;;  %v18924_v39 = vrot.slane %v5345_v20, %v18261_v51  ;;  %v5721_v26 = vcombine.high %v5655_v10, %v5671_v12 }
 0x7c7   : > { %v5728_v20 = vrot.slane %v5720_v21, %v18261_v51  ;;  %v5553_v12 = vcombine.high %v18837_v11, %v18883_v46  ;;  %v5537_v21 = vcombine.high %v18815_v33, %v18852_v24  ;;  %v5576_v33 = vrot.slane %v5568_v6, %v18261_v51 }
 0x7c8   : > { %v5736_v8 = vcombine.low %v5680_v53, %v5696_v14  ;;  %v5737_v60 = vcombine.high %v5680_v53, %v5696_v14  ;;  %v5752_v61 = vcombine.low %v5687_v37, %v5703_v16  ;;  %v5753_v56 = vcombine.high %v5687_v37, %v5703_v16 }
 0x7c9   : > { %v5366_v31 = vcombine.low %v18931_v19, %v18924_v39  ;;  %v5367_v5 = vcombine.high %v18931_v19, %v18924_v39  ;;  %v5600_v16 = vcombine.low %v5544_v54, %v5560_v40  ;;  %v5735_v11 = vrot.slane %v5721_v26, %v18261_v51 }
 0x7ca   : > { %v5744_v49 = vrot.slane %v5736_v8, %v18261_v51  ;;  %v5760_v14 = vrot.slane %v5752_v61, %v18261_v51  ;;  %v5751_v34 = vrot.slane %v5737_v60, %v18261_v51  ;;  %v5767_v61 = vrot.slane %v5753_v56, %v18261_v51 }
 0x7cb   : > { %v5567_v46 = vrot.slane %v5553_v12, %v18258_v45  ;;  %v5416_v24 = vcombine.low %v18826_v59, %v18858_v63  ;;  %v5615_v40 = vrot.slane %v5601_v47, %v18261_v51  ;;  %v5400_v54 = vcombine.low %v18813_v23, %v18844_v36 }
 0x7cc   : > { %v5769_v53 = vcombine.high %v5712_v18, %v5744_v49  ;;  %v5768_v50 = vcombine.low %v5712_v18, %v5744_v49  ;;  %v5772_v10 = vcombine.low %v5728_v20, %v5760_v14  ;;  %v5770_v8 = vcombine.low %v5719_v27, %v5751_v34 }
 0x7cd   : > { %v5774_v18 = vcombine.low %v5735_v11, %v5767_v61  ;;  %v5771_v49 = vcombine.high %v5719_v27, %v5751_v34  ;;  %v5384_v34 = vcombine.low %v18767_v48, %v18781_v9  ;;  %v5583_v6 = vrot.slane %v5569_v1, %v18261_v51 }
 0x7ce   : > { %6576 = vxpose.xlu0.b32.start.end [1/1] (short) (narrow) %v5769_v53, 8  ;;  %6544 = vxpose.xlu1.b32.start.end [1/1] (short) (narrow) %v5768_v50, 8  ;;  %v5608_v53 = vrot.slane %v5600_v16, %v18261_v51  ;;  %v5551_v50 = vrot.slane %v5537_v21, %v18258_v45  ;;  %v5368_v27 = vcombine.low %v18751_v15, %v18757_v30 }
 0x7cf   : > { %v4602_v37 = vpop.f32.mrf.mxu1  ;;  %v5634_v12 = vcombine.low %v5583_v6, %v5615_v40  ;;  %v5775_v16 = vcombine.high %v5735_v11, %v5767_v61  ;;  %v5417_v1 = vcombine.high %v18826_v59, %v18858_v63  ;;  %v5385_v47 = vcombine.high %v18767_v48, %v18781_v9 }
 0x7d0   : > { %16717 = vmatmul.mubr.msk.f32.vlgmr.msra.gmra.mxu1 %vm3904_vm1, %v4602_v37  ;;  %v5616_v56 = vcombine.low %v5551_v50, %v5567_v46  ;;  %v5632_v26 = vcombine.low %v5576_v33, %v5608_v53  ;;  %v5773_v37 = vcombine.high %v5728_v20, %v5760_v14  ;;  %v5424_v14 = vrot.slane %v5416_v24, %v18258_v45 }
 0x7d1   : > { %v16674_v60 = vpop.f32.mrf.mxu1  ;;  %16738 = vmatprep.mubr.msk.f32.mxu1 %vm17795_vm0, %v20714_v44  ;;  %v5617_v20 = vcombine.high %v5551_v50, %v5567_v46  ;;  %v5376_v41 = vrot.slane %v5368_v27, %v18258_v45  ;;  %v5633_v11 = vcombine.high %v5576_v33, %v5608_v53  ;;  %v5599_v50 = vrot.slane %v20715_v3, %v18261_v51 }
 0x7d2   : > { %6672 = vxpose.xlu0.b32.start.end [1/1] (short) (narrow) %v5772_v10, 8  ;;  %6608 = vxpose.xlu1.b32.start.end [1/1] (short) (narrow) %v5770_v8, 8  ;;  %v5624_v10 = vrot.slane %v5616_v56, %v18261_v51  ;;  %v5392_v8 = vrot.slane %v5384_v34, %v18258_v45  ;;  %v5408_v60 = vrot.slane %v5400_v54, %v18258_v45 }
 0x7d3   : > { %v5631_v46 = vrot.slane %v5617_v20, %v18261_v51  ;;  %v5369_v59 = vcombine.high %v18751_v15, %v18757_v30  ;;  %v5431_v63 = vrot.slane %v5417_v1, %v18258_v45  ;;  %v5635_v24 = vcombine.high %v5583_v6, %v5615_v40 }
 0x7d4   : > { %v5464_v21 = vcombine.low %v5408_v60, %v5424_v14  ;;  %v5636_v61 = vcombine.low %v5592_v29, %v5624_v10  ;;  %v5465_v53 = vcombine.high %v5408_v60, %v5424_v14  ;;  %v5399_v9 = vrot.slane %v5385_v47, %v18258_v45 }
 0x7d5   : > { %v5638_v33 = vcombine.low %v5599_v50, %v5631_v46  ;;  %v5383_v7 = vrot.slane %v5369_v59, %v18258_v45  ;;  %v5637_v30 = vcombine.high %v5592_v29, %v5624_v10  ;;  %v5639_v6 = vcombine.high %v5599_v50, %v5631_v46 }
 0x7d6   : > { %6736 = vxpose.xlu0.b32.start.end [1/1] (short) (narrow) %v5774_v18, 8  ;;  %6640 = vxpose.xlu1.b32.start.end [1/1] (short) (narrow) %v5771_v49, 8  ;;  %v5432_v18 = vcombine.low %v5376_v41, %v5392_v8  ;;  %v5401_v49 = vcombine.high %v18813_v23, %v18844_v36  ;;  %v5472_v48 = vrot.slane %v5464_v21, %v18261_v51 }
 0x7d7   : > { %v5433_v23 = vcombine.high %v5376_v41, %v5392_v8  ;;  %v5449_v14 = vcombine.high %v5383_v7, %v5399_v9  ;;  %v20716_v1 = vcombine.low %v18864_v43, %v18875_v17  ;;  %v20719_v46 = vcombine.high %v18864_v43, %v18875_v17 }
 0x7d8   : > { %v5415_v36 = vrot.slane %v5401_v49, %v18258_v45  ;;  %v5440_v55 = vrot.slane %v5432_v18, %v18261_v51 }
 0x7d9   : > { %v5447_v40 = vrot.slane %v5433_v23, %v18261_v51  ;;  %v5463_v8 = vrot.slane %v5449_v14, %v18261_v51 }
 0x7da   : > { %6288 = vxpose.xlu0.b32.start.end [1/1] (short) (narrow) %v5632_v26, 8  ;;  %6704 = vxpose.xlu1.b32.start.end [1/1] (short) (narrow) %v5773_v37, 8  ;;  %v5480_v56 = vcombine.low %v5415_v36, %v5431_v63  ;;  %v5496_v15 = vcombine.low %v5440_v55, %v5472_v48  ;;  %v5479_v26 = vrot.slane %v5465_v53, %v18261_v51 }
 0x7db   : > { %v5448_v37 = vcombine.low %v5383_v7, %v5399_v9  ;;  %v5481_v34 = vcombine.high %v5415_v36, %v5431_v63 }
 0x7dc   : > { %v5498_v54 = vcombine.low %v5447_v40, %v5479_v26  ;;  %v5488_v27 = vrot.slane %v5480_v56, %v18261_v51  ;;  %v5499_v29 = vcombine.high %v5447_v40, %v5479_v26 }
 0x7dd   : > { %v5456_v20 = vrot.slane %v5448_v37, %v18261_v51  ;;  %v5495_v10 = vrot.slane %v5481_v34, %v18261_v51 }
 0x7de   : > { %6352 = vxpose.xlu0.b32.start.end [1/1] (short) (narrow) %v5634_v12, 8  ;;  %6768 = vxpose.xlu1.b32.start.end [1/1] (short) (narrow) %v5775_v16, 8  ;;  %v5497_v16 = vcombine.high %v5440_v55, %v5472_v48 }
 0x7df   : > { %v5500_v12 = vcombine.low %v5456_v20, %v5488_v27  ;;  %v5502_v60 = vcombine.low %v5463_v8, %v5495_v10  ;;  %v5501_v41 = vcombine.high %v5456_v20, %v5488_v27  ;;  %v5503_v21 = vcombine.high %v5463_v8, %v5495_v10 }
 0x7e2   : > { %6416 = vxpose.xlu0.b32.start.end [1/1] (short) (narrow) %v5636_v61, 8  ;;  %6320 = vxpose.xlu1.b32.start.end [1/1] (short) (narrow) %v5633_v11, 8  ;;  %v20717_v61 = vcombine.low %v18870_v0, %v18878_v52  ;;  %v20718_v11 = vcombine.low %v18893_v2, %v18881_v4 }
 0x7e6   : > { %6480 = vxpose.xlu0.b32.start.end [1/1] (short) (narrow) %v5638_v33, 8  ;;  %6384 = vxpose.xlu1.b32.start.end [1/1] (short) (narrow) %v5635_v24, 8 }
 0x7ea   : > { %6032 = vxpose.xlu0.b32.start.end [1/1] (short) (narrow) %v5496_v15, 8  ;;  %6448 = vxpose.xlu1.b32.start.end [1/1] (short) (narrow) %v5637_v30, 8 }
 0x7ee   : > { %6096 = vxpose.xlu0.b32.start.end [1/1] (short) (narrow) %v5498_v54, 8  ;;  %6512 = vxpose.xlu1.b32.start.end [1/1] (short) (narrow) %v5639_v6, 8 }
 0x7f2   : > { %6160 = vxpose.xlu0.b32.start.end [1/1] (short) (narrow) %v5500_v12, 8  ;;  %6064 = vxpose.xlu1.b32.start.end [1/1] (short) (narrow) %v5497_v16, 8 }
 0x7f6   : > { %6224 = vxpose.xlu0.b32.start.end [1/1] (short) (narrow) %v5502_v60, 8  ;;  %6128 = vxpose.xlu1.b32.start.end [1/1] (short) (narrow) %v5499_v29, 8 }
 0x7fa   : > { %5776 = vxpose.xlu0.b32.start.end [1/1] (short) (narrow) %v20716_v1, 8  ;;  %6192 = vxpose.xlu1.b32.start.end [1/1] (short) (narrow) %v5501_v41, 8 }
 0x7fe   : > { %5840 = vxpose.xlu0.b32.start.end [1/1] (short) (narrow) %v20717_v61, 8  ;;  %6256 = vxpose.xlu1.b32.start.end [1/1] (short) (narrow) %v5503_v21, 8 }
 0x802   : > { %5904 = vxpose.xlu0.b32.start.end [1/1] (short) (narrow) %v20718_v11, 8  ;;  %5808 = vxpose.xlu1.b32.start.end [1/1] (short) (narrow) %v20719_v46, 8 }
 0x806   : > { %5968 = vxpose.xlu0.b32.start.end [1/1] (short) (narrow) %v5366_v31, 8  ;;  %5872 = vxpose.xlu1.b32.start.end [1/1] (short) (narrow) %v5363_v32, 8 }
 0x80a   : > { %5936 = vxpose.xlu1.b32.start.end [1/1] (short) (narrow) %v5365_v25, 8 }
 0x80e   : > { %6000 = vxpose.xlu1.b32.start.end [1/1] (short) (narrow) %v5367_v5, 8 }
 0x84a   : > { %v6560_v47 = vpop.trf.xlu1  ;;  %v6592_v18 = vpop.trf.xlu0 }
 0x84e   : > { %v6624_v43 = vpop.trf.xlu1  ;;  %v6688_v17 = vpop.trf.xlu0 }
 0x84f   : > { %v7004_v63 = vcombine.low %v6560_v47, %v6624_v43 }
 0x851   : > { %v19037_v32 = vrot.slane %v7004_v63, %v18258_v45  ;;  %v1353_v63 = vcombine.low %v18231_v28, %v18749_v62 }
 0x852   : > { %v6656_v49 = vpop.trf.xlu1  ;;  %v6752_v3 = vpop.trf.xlu0 }
 0x853   : > { %v7012_v50 = vcombine.low %v6592_v18, %v6656_v49  ;;  %v7020_v52 = vcombine.low %v6688_v17, %v6752_v3 }
 0x855   : > { %v19034_v0 = vrot.slane %v7012_v50, %v18258_v45  ;;  %v19042_v25 = vrot.slane %v7020_v52, %v18258_v45  ;;  %v1369_v50 = vcombine.low %v18755_v13, %v18759_v42  ;;  %v1354_v52 = vcombine.high %v18231_v28, %v18749_v62 }
 0x856   : > { %v6720_v31 = vpop.trf.xlu1  ;;  %v6304_v59 = vpop.trf.xlu0 }
 0x857   : > { %v7036_v19 = vcombine.low %v19037_v32, %v19034_v0 }
 0x859   : > { %v7044_v48 = vrot.slane %v7036_v19, %v18261_v51  ;;  %v1377_v19 = vrot.slane %v1369_v50, %v18258_v45 }
 0x85a   : > { %v6784_v4 = vpop.trf.xlu1  ;;  %v6368_v2 = vpop.trf.xlu0 }
 0x85b   : > { %v7028_v39 = vcombine.low %v6720_v31, %v6784_v4  ;;  %v6936_v26 = vcombine.low %v6304_v59, %v6368_v2  ;;  %v1370_v31 = vcombine.high %v18755_v13, %v18759_v42 }
 0x85d   : > { %v19045_v5 = vrot.slane %v7028_v39, %v18258_v45  ;;  %v19057_v20 = vrot.slane %v6936_v26, %v18258_v45  ;;  %v1384_v13 = vrot.slane %v1370_v31, %v18258_v45 }
 0x85e   : > { %v6336_v53 = vpop.trf.xlu1  ;;  %v6432_v33 = vpop.trf.xlu0 }
 0x85f   : > { %v7052_v24 = vcombine.low %v19042_v25, %v19045_v5 }
 0x861   : > { %v7060_v9 = vrot.slane %v7052_v24, %v18261_v51  ;;  %v1368_v24 = vrot.slane %v1354_v52, %v18258_v45 }
 0x862   : > { %v6400_v23 = vpop.trf.xlu1  ;;  %v6496_v36 = vpop.trf.xlu0 }
 0x863   : > { %v7068_v55 = vcombine.low %v7044_v48, %v7060_v9  ;;  %v7069_v7 = vcombine.high %v7044_v48, %v7060_v9  ;;  %v6944_v56 = vcombine.low %v6336_v53, %v6400_v23  ;;  %v6952_v40 = vcombine.low %v6432_v33, %v6496_v36 }
 0x864   : > { %v1361_v33 = vrot.slane %v1353_v63, %v18258_v45 }
 0x865   : > { %16720 = vmatpush3.msra.mxu0 %v7068_v55  ;;  %16731 = vmatpush3.msra.mxu1 %v7069_v7  ;;  %v19054_v37 = vrot.slane %v6944_v56, %v18258_v45  ;;  %v19062_v60 = vrot.slane %v6952_v40, %v18258_v45  ;;  %v1401_v55 = vcombine.low %v1368_v24, %v1384_v13 }
 0x866   : > { %v6464_v15 = vpop.trf.xlu1  ;;  %v6048_v30 = vpop.trf.xlu0  ;;  %16721 = vmatprep.subr.mxu0 %v20714_v44  ;;  %16732 = vmatprep.subr.mxu1 %v20714_v44  ;;  %v1385_v23 = vcombine.low %v1361_v33, %v1377_v19  ;;  %v1386_v36 = vcombine.high %v1361_v33, %v1377_v19  ;;  %v1402_v7 = vcombine.high %v1368_v24, %v1384_v13 }
 0x867   : > { %v6968_v8 = vcombine.low %v19057_v20, %v19054_v37 }
 0x869   : > { %v6976_v61 = vrot.slane %v6968_v8, %v18261_v51 }
 0x86a   : > { %v4675_v34 = vpop.f32.mrf.mxu0  ;;  %v4748_v54 = vpop.f32.mrf.mxu1 }
 0x86b   : > { %v6528_v6 = vpop.trf.xlu1  ;;  %v4898_v27 = vadd.f32 %v4748_v54, %v4675_v34  ;;  %v6112_v14 = vpop.trf.xlu0  ;;  %v1393_v34 = vrot.slane %v1385_v23, %v18261_v51  ;;  %v1400_v54 = vrot.slane %v1386_v36, %v18261_v51 }
 0x86c   : > { %v6960_v12 = vcombine.low %v6464_v15, %v6528_v6  ;;  %v16685_v16 = vpop.f32.mrf.mxu0  ;;  %v16696_v10 = vpop.f32.mrf.mxu1  ;;  %v6868_v39 = vcombine.low %v6048_v30, %v6112_v14  ;;  %v1409_v6 = vrot.slane %v1401_v55, %v18261_v51 }
 0x86e   : > { %v19065_v29 = vrot.slane %v6960_v12, %v18258_v45  ;;  %v19091_v48 = vrot.slane %v6868_v39, %v18258_v45 }
 0x86f   : > { %v6080_v41 = vpop.trf.xlu1  ;;  %v6176_v1 = vpop.trf.xlu0 }
 0x870   : > { %v6984_v21 = vcombine.low %v19062_v60, %v19065_v29 }
 0x872   : > { %v6992_v11 = vrot.slane %v6984_v21, %v18261_v51  ;;  %v4821_v46 = vpop.f32.mrf.mxu0  ;;  %v16071_v21 = vcombine.high %v1393_v34, %v1400_v54 }
 0x873   : > { %v19071_v47 = vadd.f32 %v4898_v27, %v4821_v46  ;;  %v6144_v18 = vpop.trf.xlu1  ;;  %v6240_v43 = vpop.trf.xlu0  ;;  %v1416_v27 = vrot.slane %v1402_v7, %v18261_v51  ;;  %v6969_v7 = vcombine.high %v19057_v20, %v19054_v37 }
 0x874   : > { %v16707_v17 = vpop.f32.mrf.mxu0  ;;  %v7000_v49 = vcombine.low %v6976_v61, %v6992_v11  ;;  %v7001_v3 = vcombine.high %v6976_v61, %v6992_v11  ;;  %v6876_v59 = vcombine.low %v6080_v41, %v6144_v18  ;;  %v6884_v53 = vcombine.low %v6176_v1, %v6240_v43 }
 0x875   : > { %v4908_v1 = vcombine.low %v1393_v34, %v1400_v54  ;;  %v4924_v61 = vcombine.low %v1409_v6, %v1416_v27  ;;  %v16072_v11 = vcombine.high %v1409_v6, %v1416_v27 }
 0x876   : > { %16722 = vmatpush3.msra.mxu0 %v7000_v49  ;;  %16733 = vmatpush3.msra.mxu1 %v7001_v3  ;;  %v19086_v42 = vrot.slane %v6876_v59, %v18258_v45  ;;  %v19096_v15 = vrot.slane %v6884_v53, %v18258_v45  ;;  %v4923_v3 = vrot.slane %v16071_v21, %v18258_v45 }
 0x877   : > { %v6208_v4 = vpop.trf.xlu1  ;;  %v5792_v2 = vpop.trf.xlu0  ;;  %16723 = vmatprep.subr.mxu0 %v20714_v44  ;;  %16734 = vmatprep.subr.mxu1 %v20714_v44  ;;  %v4915_v49 = vrot.slane %v4908_v1, %v18258_v45  ;;  %v4931_v50 = vrot.slane %v4924_v61, %v18258_v45  ;;  %v4939_v31 = vrot.slane %v16072_v11, %v18258_v45 }
 0x878   : > { %v6900_v56 = vcombine.low %v19091_v48, %v19086_v42  ;;  %v6901_v54 = vcombine.high %v19091_v48, %v19086_v42 }
 0x879   : > { %v4940_v19 = vcombine.low %v4915_v49, %v4923_v3  ;;  %v4956_v13 = vcombine.low %v4931_v50, %v4939_v31  ;;  %v4957_v27 = vcombine.high %v4931_v50, %v4939_v31 }
 0x87a   : > { %v6908_v12 = vrot.slane %v6900_v56, %v18261_v51  ;;  %v6915_v48 = vrot.slane %v6901_v54, %v18261_v51 }
 0x87b   : > { %v6272_v28 = vpop.trf.xlu1  ;;  %v5856_v62 = vpop.trf.xlu0  ;;  %v4948_v55 = vrot.slane %v4940_v19, %v18261_v51  ;;  %v4971_v1 = vrot.slane %v4957_v27, %v18261_v51 }
 0x87c   : > { %v6892_v9 = vcombine.low %v6208_v4, %v6272_v28  ;;  %v6800_v17 = vcombine.low %v5792_v2, %v5856_v62  ;;  %v7053_v2 = vcombine.high %v19042_v25, %v19045_v5  ;;  %v7037_v28 = vcombine.high %v19037_v32, %v19034_v0 }
 0x87d   : > { %v6985_v62 = vcombine.high %v19062_v60, %v19065_v29  ;;  %v4964_v25 = vrot.slane %v4956_v13, %v18261_v51  ;;  %v4941_v60 = vcombine.high %v4915_v49, %v4923_v3  ;;  %v16070_v49 = vld [vmem:[#allocation7 + $0x1] ss:$0 sm:$0xff]  ;;  %v17367_v3 = vld [vmem:[#allocation5] sm:$0xff] }
 0x87e   : > { %v19099_v30 = vrot.slane %v6892_v9, %v18258_v45  ;;  %v6807_v4 = vrot.slane %v6800_v17, %v18258_v45  ;;  %v7067_v5 = vrot.slane %v7053_v2, %v18261_v51  ;;  %v4907_v50 = vadd.f32 %v17367_v3, %v16070_v49 }
 0x87f   : > { %v5824_v26 = vpop.trf.xlu1  ;;  %v5920_v14 = vpop.trf.xlu0  ;;  %v4972_v37 = vcombine.low %v4948_v55, %v4964_v25  ;;  %v4973_v20 = vcombine.high %v4948_v55, %v4964_v25 }
 0x880   : > { %v6916_v40 = vcombine.low %v19096_v15, %v19099_v30  ;;  %v6917_v29 = vcombine.high %v19096_v15, %v19099_v30 }
 0x882   : > { %v6924_v16 = vrot.slane %v6916_v40, %v18261_v51  ;;  %v6931_v15 = vrot.slane %v6917_v29, %v18261_v51 }
 0x883   : > { %v5888_v10 = vpop.trf.xlu1  ;;  %v5984_v18 = vpop.trf.xlu0 }
 0x884   : > { %v6932_v8 = vcombine.low %v6908_v12, %v6924_v16  ;;  %v6933_v41 = vcombine.high %v6908_v12, %v6924_v16  ;;  %v6808_v46 = vcombine.low %v5824_v26, %v5888_v10  ;;  %v6816_v63 = vcombine.low %v5920_v14, %v5984_v18 }
 0x885   : > { %v6999_v26 = vrot.slane %v6985_v62, %v18261_v51  ;;  %v6983_v14 = vrot.slane %v6969_v7, %v18261_v51  ;;  %v6934_v61 = vcombine.low %v6915_v48, %v6931_v15  ;;  %v6935_v11 = vcombine.high %v6915_v48, %v6931_v15  ;;  %v17368_v48 = vld [vmem:[%s18124_s27] sm:$0xf] }
 0x886   : > { %16724 = vmatpush3.msra.mxu0 %v6932_v8  ;;  %16735 = vmatpush3.msra.mxu1 %v6933_v41  ;;  %v6815_v59 = vrot.slane %v6808_v46, %v18258_v45  ;;  %v6823_v33 = vrot.slane %v6816_v63, %v18258_v45  ;;  %v4955_v41 = vrot.slane %v4941_v60, %v18261_v51 }
 0x887   : > { %v5952_v43 = vpop.trf.xlu1  ;;  %16725 = vmatprep.subr.mxu0 %v20714_v44  ;;  %16736 = vmatprep.subr.mxu1 %v20714_v44  ;;  %v7002_v42 = vcombine.low %v6983_v14, %v6999_v26  ;;  %v7003_v8 = vcombine.high %v6983_v14, %v6999_v26 }
 0x888   : > { %v6832_v53 = vcombine.low %v6807_v4, %v6815_v59  ;;  %v6833_v30 = vcombine.high %v6807_v4, %v6815_v59  ;;  %v4975_v17 = vcombine.high %v4955_v41, %v4971_v1 }
 0x88a   : > { %v6840_v56 = vrot.slane %v6832_v53, %v18261_v51  ;;  %v6847_v21 = vrot.slane %v6833_v30, %v18261_v51 }
 0x88b   : > { %v6016_v52 = vpop.trf.xlu1 }
 0x88c   : > { %v6824_v39 = vcombine.low %v5952_v43, %v6016_v52  ;;  %v4974_v43 = vcombine.low %v4955_v41, %v4971_v1  ;;  %v17369_v1 = vld [vmem:[#allocation16] sm:$0xff] }
 0x88e   : > { %v6831_v24 = vrot.slane %v6824_v39, %v18258_v45 }
 0x890   : > { %v6848_v9 = vcombine.low %v6823_v33, %v6831_v24  ;;  %v4894_v23 = vpop.f32.mrf.mxu1  ;;  %v6849_v6 = vcombine.high %v6823_v33, %v6831_v24 }
 0x891   : > { %v19126_v36 = vadd.f32 %v19071_v47, %v4894_v23  ;;  %v7051_v47 = vrot.slane %v7037_v28, %v18261_v51 }
 0x892   : > { %v6856_v0 = vrot.slane %v6848_v9, %v18261_v51  ;;  %v16718_v32 = vpop.f32.mrf.mxu1  ;;  %v6863_v10 = vrot.slane %v6849_v6, %v18261_v51 }
 0x893   : > { %v7070_v12 = vcombine.low %v7051_v47, %v7067_v5  ;;  %v7071_v16 = vcombine.high %v7051_v47, %v7067_v5 }
 0x894   : > { %v6864_v40 = vcombine.low %v6840_v56, %v6856_v0  ;;  %v6865_v34 = vcombine.high %v6840_v56, %v6856_v0  ;;  %v6866_v46 = vcombine.low %v6847_v21, %v6863_v10  ;;  %v6867_v18 = vcombine.high %v6847_v21, %v6863_v10 }
 0x896   : > { %16726 = vmatpush3.msra.mxu0 %v6864_v40  ;;  %16737 = vmatpush3.msra.mxu1 %v6865_v34 }
 0x897   : > { %16728 = vmatmul.mubr.msk.f32.vlgmr.msra.gmra.mxu0 %vm3904_vm1, %v4972_v37  ;;  %16739 = vmatmul.mubr.msk.f32.vlgmr.msra.gmra.mxu1 %vm3904_vm1, %v4973_v20 }
 0x898   : > { %16741 = vmatprep.subr.mxu0 %v20714_v44  ;;  %16752 = vmatprep.subr.mxu1 %v20714_v44 }
 0x899   : > { %16742 = vmatpush3.msra.mxu0 %v7070_v12  ;;  %16753 = vmatpush3.msra.mxu1 %v7071_v16  ;;  %v19193_v16 = vsub.s32 3, %v18199_v57 }
 0x89a   : > { %16743 = vmatprep.subr.mxu0 %v20714_v44  ;;  %16754 = vmatprep.subr.mxu1 %v20714_v44 }
 0x89b   : > { %16744 = vmatpush3.msra.mxu0 %v7002_v42  ;;  %16755 = vmatpush3.msra.mxu1 %v7003_v8  ;;  %v19199_v10 = vrot.slane %v17368_v48, %v19193_v16  ;;  %v17372_v48 = vld [vmem:[%s18109_s21 + $0x188] sm:$0xff] }
 0x89c   : > { %16745 = vmatprep.subr.mxu0 %v20714_v44  ;;  %16756 = vmatprep.subr.mxu1 %v20714_v44 }
 0x89d   : > { %16746 = vmatpush3.msra.mxu0 %v6934_v61  ;;  %16757 = vmatpush3.msra.mxu1 %v6935_v11  ;;  %v8071_v41 = vadd.f32 %v19199_v10, %v19126_v36 }
 0x89e   : > { %16747 = vmatprep.subr.mxu0 %v20714_v44  ;;  %16758 = vmatprep.subr.mxu1 %v20714_v44 }
 0x89f   : > { %16748 = vmatpush3.msra.mxu0 %v6866_v46  ;;  %16749 = vmatprep.mubr.msk.f32.mxu0 %vm17795_vm0, %v20714_v44  ;;  %v19205_v21 = vadd.f32 %v17369_v1, %v8071_v41 }
 0x8a0   : > { %16759 = vmatpush3.msra.mxu1 %v6867_v18  ;;  %16760 = vmatprep.mubr.msk.f32.mxu1 %vm17795_vm0, %v20714_v44 }
 0x8a1   : > { %16750 = vmatmul.mubr.msk.f32.vlgmr.msra.gmra.mxu0 %vm3904_vm1, %v4974_v43  ;;  %16761 = vmatmul.mubr.msk.f32.vlgmr.msra.gmra.mxu1 %vm3904_vm1, %v4975_v17 }
 0x8a2   : > { %16763 = vmatprep.subr.mxu0 %v20714_v44  ;;  %16768 = vmatprep.subr.mxu1 %v20714_v44 }
 0x8a3   : > { %16765 = vmatprep.mubr.msk.f32.mxu0 %vm17795_vm0, %v20714_v44  ;;  %16770 = vmatprep.mubr.msk.f32.mxu1 %vm17795_vm0, %v20714_v44 }
 0x957   : > { %v7141_v31 = vpop.f32.mrf.mxu0  ;;  %v7214_v59 = vpop.f32.mrf.mxu1 }
 0x958   : > { %v7142_v63 = vadd.f32 %v7141_v31, %v4907_v50  ;;  %v7215_v52 = vadd.f32 %v7214_v59, %v4907_v50 }
 0x959   : > { %v16729_v4 = vpop.f32.mrf.mxu0  ;;  %v16740_v39 = vpop.f32.mrf.mxu1 }
 0x95a   : > { %v7364_v19 = vmul.f32 0.17677669, %v7142_v63  ;;  %v7365_v13 = vmul.f32 0.17677669, %v7215_v52 }
 0x95c   : > { %v7368_v2 = vsel %vm4201_vm2, %v7364_v19, -inf  ;;  %v7371_v53 = vsel %vm4201_vm2, %v7365_v13, -inf }
 0x95d   : > { %7369 = vmax.xlane.f32.xlu0 %v7368_v2  ;;  %7372 = vmax.xlane.f32.xlu1 %v7371_v53 }
 0x961   : > { %v7287_v33 = vpop.f32.mrf.mxu0  ;;  %v7360_v24 = vpop.f32.mrf.mxu1 }
 0x962   : > { %v7288_v28 = vadd.f32 %v7287_v33, %v4907_v50  ;;  %v7361_v62 = vadd.f32 %v7360_v24, %v4907_v50 }
 0x963   : > { %v16751_v9 = vpop.f32.mrf.mxu0  ;;  %v16762_v23 = vpop.f32.mrf.mxu1 }
 0x964   : > { %v7366_v55 = vmul.f32 0.17677669, %v7288_v28  ;;  %v7367_v25 = vmul.f32 0.17677669, %v7361_v62 }
 0x966   : > { %v7374_v5 = vsel %vm4201_vm2, %v7366_v55, -inf  ;;  %v7377_v7 = vsel %vm4201_vm2, %v7367_v25, -inf }
 0x967   : > { %7375 = vmax.xlane.f32.xlu1 %v7374_v5 }
 0x96b   : > { %7378 = vmax.xlane.f32.xlu1 %v7377_v7 }
 0x97c   : > { %1581 = vrot.lane.b32.xlu1 %v18255_v38, %s17790_s17 }
 0x9e6   : > { %v7370_v56 = vpop.xlane.xlu0 %7369  ;;  %v7373_v0 = vpop.xlane.xlu1 %7372 }
 0x9e7   : > { %v7380_v32 = vsub.f32 %v7364_v19, %v7370_v56  ;;  %v7381_v60 = vsub.f32 %v7365_v13, %v7373_v0 }
 0x9e9   : > { %v7384_v29 = vmul.f32 1.442695, %v7380_v32  ;;  %v7386_v47 = vmul.f32 1.442695, %v7381_v60 }
 0x9eb   : > { %17311 = vpow2.f32 %v7384_v29 }
 0x9ec   : > { %17313 = vpow2.f32 %v7386_v47 }
 0x9f0   : > { %v7376_v26 = vpop.xlane.xlu1 %7375 }
 0x9f1   : > { %v7382_v40 = vsub.f32 %v7366_v55, %v7376_v26 }
 0x9f3   : > { %v7388_v34 = vmul.f32 1.442695, %v7382_v40 }
 0x9f4   : > { %v7379_v12 = vpop.xlane.xlu1 %7378 }
 0x9f5   : > { %17315 = vpow2.f32 %v7388_v34  ;;  %v7383_v15 = vsub.f32 %v7367_v25, %v7379_v12 }
 0x9f7   : > { %v7390_v30 = vmul.f32 1.442695, %v7383_v15 }
 0x9f8   : > { %v19176_v54 = vpop.eup %17311  ;;  %v1582_v57 = vpop.permute.xlu1 %1581 }
 0x9f9   : > { %v19178_v6 = vpop.eup %17313  ;;  %v7392_v37 = vsel %vm4201_vm2, %v19176_v54, 0.0  ;;  %17317 = vpow2.f32 %v7390_v30 }
 0x9fa   : > { %7393 = vadd.xlane.f32.xlu0 %v7392_v37  ;;  %v7395_v20 = vsel %vm4201_vm2, %v19178_v6, 0.0 }
 0x9fb   : > { %7396 = vadd.xlane.f32.xlu1 %v7395_v20 }
 0xa02   : > { %v19184_v27 = vpop.eup %17315 }
 0xa03   : > { %v7398_v14 = vsel %vm4201_vm2, %v19184_v27, 0.0 }
 0xa04   : > { %7399 = vadd.xlane.f32.xlu0 %v7398_v14 }
 0xa06   : > { %v19195_v42 = vpop.eup %17317 }
 0xa07   : > { %v7401_v8 = vsel %vm4201_vm2, %v19195_v42, 0.0 }
 0xa0c   : > { %1593 = vrot.lane.b32.xlu1 %v18255_v38, %s17792_s6 }
 0xa1a   : > { %1587 = vrot.lane.b32.xlu0 %v18255_v38, %s17789_s16 }
 0xa30   : > { %7402 = vadd.xlane.f32.xlu1 %v7401_v8  ;;  %v17373_v8 = vld [vmem:[%s18109_s21 + $0x180] sm:$0xff] }
 0xa39   : > { %8075 = vadd.xlane.f32.xlu0 %v19205_v21 }
 0xa83   : > { %v7394_v11 = vpop.xlane.xlu0 %7393 }
 0xa84   : > { %v7397_v61 = vpop.xlane.xlu1 %7396  ;;  %17319 = vrcp.f32 %v7394_v11 }
 0xa85   : > { %17321 = vrcp.f32 %v7397_v61 }
 0xa88   : > { %v1594_v46 = vpop.permute.xlu1 %1593 }
 0xa89   : > { %v1681_v43 = vcombine.low %v1582_v57, %v1594_v46  ;;  %v1682_v17 = vcombine.high %v1582_v57, %v1594_v46 }
 0xa8b   : > { %v1689_v36 = vrot.slane %v1681_v43, %v18258_v45  ;;  %v1696_v31 = vrot.slane %v1682_v17, %v18258_v45  ;;  %v17374_v43 = vld [vmem:[%s18109_s21 + $0x1b8] sm:$0xff]  ;;  %v17375_v17 = vld [vmem:[%s18109_s21 + $0x1b0] sm:$0xff] }
 0xa8d   : > { %v7400_v18 = vpop.xlane.xlu0 %7399 }
 0xa8e   : > { %17323 = vrcp.f32 %v7400_v18 }
 0xa91   : > { %v1588_v49 = vpop.permute.xlu0 %1587  ;;  %v17320_v32 = vpop.eup %17319 }
 0xa92   : > { %v1665_v3 = vcombine.low %v18255_v38, %v1588_v49  ;;  %v1666_v50 = vcombine.high %v18255_v38, %v1588_v49  ;;  %v17322_v60 = vpop.eup %17321  ;;  %v7408_v20 = vmul.f32 %v17320_v32, %v19176_v54  ;;  %v17376_v49 = vld [vmem:[%s18109_s21 + $0x1a8] sm:$0xff] }
 0xa93   : > { %v7409_v14 = vmul.f32 %v17322_v60, %v19178_v6  ;;  %v17370_v6 = vld [vmem:[%s18109_s21 + $0x198] sm:$0xff]  ;;  %v8139_v60 = vld [vmem:[%s18142_s18 + $0xf0] sm:$0xff] }
 0xa94   : > { %v1673_v59 = vrot.slane %v1665_v3, %v18258_v45  ;;  %v1680_v63 = vrot.slane %v1666_v50, %v18258_v45 }
 0xa96   : > { %v1697_v52 = vcombine.low %v1673_v59, %v1689_v36  ;;  %v1698_v4 = vcombine.high %v1673_v59, %v1689_v36  ;;  %v1713_v39 = vcombine.low %v1680_v63, %v1696_v31  ;;  %v1714_v19 = vcombine.high %v1680_v63, %v1696_v31 }
 0xa98   : > { %v1705_v13 = vrot.slane %v1697_v52, %v18261_v51  ;;  %v1712_v2 = vrot.slane %v1698_v4, %v18261_v51  ;;  %v1721_v38 = vrot.slane %v1713_v39, %v18261_v51  ;;  %v1728_v53 = vrot.slane %v1714_v19, %v18261_v51  ;;  %v17378_v4 = vld [vmem:[%s18134_s28] sm:$0x7]  ;;  %v17379_v19 = vld [vmem:[%s18109_s21 + $0x1d8] sm:$0xff] }
 0xa99   : > { %v19265_v39 = vrot.slane %v17378_v4, %v18226_v22 }
 0xa9a   : > { %v7412_v33 = vcombine.low %v1705_v13, %v1712_v2  ;;  %v16077_v24 = vcombine.high %v1705_v13, %v1712_v2  ;;  %v7428_v28 = vcombine.low %v1721_v38, %v1728_v53  ;;  %v16078_v62 = vcombine.high %v1721_v38, %v1728_v53  ;;  %v17380_v38 = vld [vmem:[%s18109_s21 + $0x1f8] sm:$0xff]  ;;  %v17381_v53 = vld [vmem:[%s18109_s21 + $0x1d0] sm:$0xff] }
 0xa9b   : > { %v17324_v12 = vpop.eup %17323 }
 0xa9c   : > { %v7419_v9 = vrot.slane %v7412_v33, %v18258_v45  ;;  %v7427_v23 = vrot.slane %v16077_v24, %v18258_v45  ;;  %v7435_v55 = vrot.slane %v7428_v28, %v18258_v45  ;;  %v7443_v25 = vrot.slane %v16078_v62, %v18258_v45  ;;  %v17382_v28 = vld [vmem:[%s18140_s11] sm:$0x7] }
 0xa9d   : > { %v7410_v54 = vmul.f32 %v17324_v12, %v19184_v27  ;;  %v17371_v27 = vld [vmem:[%s18109_s21 + $0x190] sm:$0xff]  ;;  %v19278_v62 = vrot.slane %v17382_v28, %v18226_v22 }
 0xa9e   : > { %v7444_v5 = vcombine.low %v7419_v9, %v7427_v23  ;;  %v7460_v7 = vcombine.low %v7435_v55, %v7443_v25  ;;  %v7445_v56 = vcombine.high %v7419_v9, %v7427_v23  ;;  %v7461_v0 = vcombine.high %v7435_v55, %v7443_v25  ;;  %v17383_v9 = vld [vmem:[%s18109_s21 + $0x1f0] sm:$0xff]  ;;  %v17384_v23 = vld [vmem:[%s18109_s21 + $0x1c8] sm:$0xff] }
 0xa9f   : > { %v17385_v25 = vld [vmem:[%s18109_s21 + $0x1e8] sm:$0xff]  ;;  %v8131_v12 = vld [vmem:[%s18142_s18 + $0xb0] sm:$0xff] }
 0xaa0   : > { %v7452_v29 = vrot.slane %v7444_v5, %v18261_v51  ;;  %v7468_v47 = vrot.slane %v7460_v7, %v18261_v51  ;;  %v7459_v26 = vrot.slane %v7445_v56, %v18261_v51  ;;  %v7475_v40 = vrot.slane %v7461_v0, %v18261_v51  ;;  %v17386_v5 = vld [vmem:[%s18109_s21 + $0x1c0] sm:$0xff]  ;;  %v8140_v56 = vld [vmem:[%s18142_s18 + $0xf8] sm:$0xff] }
 0xaa1   : > { %v17387_v0 = vld [vmem:[%s18109_s21 + $0x1e0] sm:$0xff] }
 0xaa2   : > { %v7476_v34 = vcombine.low %v7452_v29, %v7468_v47  ;;  %v7477_v37 = vcombine.high %v7452_v29, %v7468_v47  ;;  %v7478_v15 = vcombine.low %v7459_v26, %v7475_v40  ;;  %v7479_v30 = vcombine.high %v7459_v26, %v7475_v40  ;;  %v8138_v47 = vld [vmem:[%s18142_s18 + $0xe8] sm:$0xff]  ;;  %v8137_v26 = vld [vmem:[%s18142_s18 + $0xe0] sm:$0xff]  ;;  %v8136_v40 = vld [vmem:[%s18142_s18 + $0xd8] sm:$0xff] }
 0xaa4   : > { %16764 = vmatpush3.msra.mxu0 %v7476_v34  ;;  %16769 = vmatpush3.msra.mxu1 %v7477_v37  ;;  %v8135_v34 = vld [vmem:[%s18142_s18 + $0xd0] sm:$0xff]  ;;  %v8134_v37 = vld [vmem:[%s18142_s18 + $0xc8] sm:$0xff] }
 0xaa5   : > { %16766 = vmatmul.mubr.msk.f32.vlgmr.msra.gmra.mxu0 %vm4201_vm2, %v7408_v20  ;;  %16771 = vmatmul.mubr.msk.f32.vlgmr.msra.gmra.mxu1 %vm4201_vm2, %v7409_v14  ;;  %v8133_v20 = vld [vmem:[%s18142_s18 + $0xc0] sm:$0xff]  ;;  %v8132_v14 = vld [vmem:[%s18142_s18 + $0xb8] sm:$0xff] }
 0xaa6   : > { %16773 = vmatprep.subr.mxu0 %v20714_v44  ;;  %16778 = vmatprep.subr.mxu1 %v20714_v44 }
 0xaa7   : > { %16774 = vmatpush3.msra.mxu0 %v7478_v15  ;;  %16779 = vmatpush3.msra.mxu1 %v7479_v30  ;;  %v8130_v15 = vld [vmem:[%s18142_s18 + $0xa8] sm:$0xff]  ;;  %v8129_v30 = vld [vmem:[%s18142_s18 + $0xa0] sm:$0xff] }
 0xaa8   : > { %16775 = vmatprep.mubr.msk.f32.mxu0 %vm17795_vm0, %v20714_v44  ;;  %16780 = vmatprep.mubr.msk.f32.mxu1 %vm17795_vm0, %v20714_v44 }
 0xaa9   : > { %16776 = vmatmul.mubr.msk.f32.vlgmr.msra.gmra.mxu0 %vm4201_vm2, %v7410_v54  ;;  %16783 = vmatprep.subr.mxu0 %v20714_v44  ;;  %v8128_v54 = vld [vmem:[%s18142_s18 + $0x98] sm:$0xff] }
 0xaaa   : > { %16784 = vmatpush3.msra.mxu0 %v17370_v6  ;;  %16794 = vmatprep.subr.mxu1 %v20714_v44  ;;  %v8127_v6 = vld [vmem:[%s18142_s18 + $0x90] sm:$0xff] }
 0xaab   : > { %16785 = vmatprep.subr.mxu0 %v20714_v44  ;;  %16791 = vmatprep.mubr.msk.f32.mxu0 %vm17795_vm0, %v20714_v44 }
 0xaac   : > { %16786 = vmatpush3.msra.mxu0 %v17371_v27  ;;  %v8126_v27 = vld [vmem:[%s18142_s18 + $0x88] sm:$0xff] }
 0xaad   : > { %16787 = vmatprep.subr.mxu0 %v20714_v44 }
 0xaae   : > { %16788 = vmatpush3.msra.mxu0 %v17372_v48  ;;  %v8125_v48 = vld [vmem:[%s18142_s18 + $0x80] sm:$0xff] }
 0xaaf   : > { %16789 = vmatprep.subr.mxu0 %v20714_v44 }
 0xab0   : > { %16790 = vmatpush3.msra.mxu0 %v17373_v8  ;;  %v19314_v8 = vld [vmem:[%s20720_s30] sm:$0xff] }
 0xab1   : > { %16805 = vmatprep.subr.mxu0 %v20714_v44 }
 0xab9   : > { %v7403_v41 = vpop.xlane.xlu1 %7402 }
 0xaba   : > { %17325 = vrcp.f32 %v7403_v41  ;;  %v19320_v41 = vld [vmem:[%s20720_s30 + $0x8] sm:$0xff] }
 0xac2   : > { %v8076_v1 = vpop.xlane.xlu0 %8075 }
 0xac3   : > { %v8079_v57 = vmul.f32 0.0078125, %v8076_v1 }
 0xac5   : > { %v8081_v61 = vsub.f32 %v19205_v21, %v8079_v57 }
 0xac7   : > { %v17326_v11 = vpop.eup %17325  ;;  %v8083_v46 = vmul.f32 %v8081_v61, %v8081_v61 }
 0xac8   : > { %v7411_v18 = vmul.f32 %v17326_v11, %v19195_v42  ;;  %v17377_v42 = vld [vmem:[%s18109_s21 + $0x1a0] sm:$0xff] }
 0xac9   : > { %8085 = vadd.xlane.f32.xlu1 %v8083_v46 }
 0xaca   : > { %16781 = vmatmul.mubr.msk.f32.vlgmr.msra.gmra.mxu1 %vm4201_vm2, %v7411_v18 }
 0xacb   : > { %16795 = vmatpush3.msra.mxu1 %v17374_v43  ;;  %16802 = vmatprep.mubr.msk.f32.mxu1 %vm17795_vm0, %v20714_v44 }
 0xacc   : > { %16796 = vmatprep.subr.mxu1 %v20714_v44 }
 0xacd   : > { %16797 = vmatpush3.msra.mxu1 %v17375_v17 }
 0xace   : > { %16798 = vmatprep.subr.mxu1 %v20714_v44 }
 0xacf   : > { %16799 = vmatpush3.msra.mxu1 %v17376_v49 }
 0xad0   : > { %16800 = vmatprep.subr.mxu1 %v20714_v44 }
 0xad1   : > { %16801 = vmatpush3.msra.mxu1 %v17377_v42 }
 0xad2   : > { %16816 = vmatprep.subr.mxu1 %v20714_v44 }
 0xb52   : > { %v8086_v3 = vpop.xlane.xlu1 %8085 }
 0xb53   : > { %v8089_v50 = vmul.f32 0.0078125, %v8086_v3 }
 0xb55   : > { %v8091_v36 = vadd.f32 1e-05, %v8089_v50 }
 0xb57   : > { %17327 = vrsqrt.f32 %v8091_v36  ;;  %v17388_v36 = vld [vmem:[#allocation16 + $0x8] sm:$0xff] }
 0xb64   : > { %v17328_v31 = vpop.eup %17327 }
 0xb65   : > { %v7549_v59 = vpop.f32.mrf.mxu0  ;;  %v7622_v63 = vpop.f32.mrf.mxu1  ;;  %v8095_v52 = vmul.f32 %v17328_v31, %v8081_v61 }
 0xb66   : > { %16792 = vmatmul.mubr.msk.f32.vlgmr.msra.gmra.mxu0 %vm3904_vm1, %v7549_v59  ;;  %16803 = vmatmul.mubr.msk.f32.vlgmr.msra.gmra.mxu1 %vm3904_vm1, %v7622_v63  ;;  %v19331_v59 = vld [vmem:[%s18144_s23] sm:$0xf] }
 0xb67   : > { %16806 = vmatpush3.msra.mxu0 %v17379_v19  ;;  %v16767_v13 = vpop.f32.mrf.mxu0  ;;  %v16772_v2 = vpop.f32.mrf.mxu1  ;;  %16813 = vmatprep.mubr.msk.f32.mxu0 %vm17795_vm0, %v20714_v44  ;;  %v8101_v24 = vmul.f32 %v19265_v39, %v8095_v52  ;;  %v8256_v63 = vrot.slane %v19331_v59, %v18226_v22 }
 0xb68   : > { %16807 = vmatprep.subr.mxu0 %v20714_v44  ;;  %16817 = vmatpush3.msra.mxu1 %v17380_v38  ;;  %v8123_v2 = vld [vmem:[%s18142_s18 + $0x70] sm:$0xff]  ;;  %v8122_v38 = vld [vmem:[%s18142_s18 + $0x68] sm:$0xff] }
 0xb69   : > { %16808 = vmatpush3.msra.mxu0 %v17381_v53  ;;  %v7695_v33 = vpop.f32.mrf.mxu0  ;;  %16818 = vmatprep.subr.mxu1 %v20714_v44  ;;  %v8107_v7 = vadd.f32 %v19278_v62, %v8101_v24  ;;  %v8121_v53 = vld [vmem:[%s18142_s18 + $0x60] sm:$0xff] }
 0xb6a   : > { %16809 = vmatprep.subr.mxu0 %v20714_v44  ;;  %16819 = vmatpush3.msra.mxu1 %v17383_v9 }
 0xb6b   : > { %16810 = vmatpush3.msra.mxu0 %v17384_v23  ;;  %v16777_v55 = vpop.f32.mrf.mxu0  ;;  %16820 = vmatprep.subr.mxu1 %v20714_v44  ;;  %v8120_v23 = vld [vmem:[%s18142_s18 + $0x58] sm:$0xff] }
 0xb6c   : > { %16811 = vmatprep.subr.mxu0 %v20714_v44  ;;  %16821 = vmatpush3.msra.mxu1 %v17385_v25  ;;  %v8119_v55 = vld [vmem:[%s18142_s18 + $0x50] sm:$0xff]  ;;  %v8118_v25 = vld [vmem:[%s18142_s18 + $0x48] sm:$0xff] }
 0xb6d   : > { %16812 = vmatpush3.msra.mxu0 %v17386_v5  ;;  %16822 = vmatprep.subr.mxu1 %v20714_v44  ;;  %v8117_v5 = vld [vmem:[%s18142_s18 + $0x40] sm:$0xff] }
 0xb6e   : > { %16814 = vmatmul.mubr.msk.f32.vlgmr.msra.gmra.mxu0 %vm3904_vm1, %v7695_v33  ;;  %16823 = vmatpush3.msra.mxu1 %v17387_v0  ;;  %v8114_v0 = vld [vmem:[%s18142_s18 + $0x28] sm:$0xff] }
 0xb6f   : > { %16859 = vmatprep.mubr.f32.mxu0 %v8107_v7  ;;  %16824 = vmatprep.mubr.msk.f32.mxu1 %vm17795_vm0, %v20714_v44  ;;  %v8116_v7 = vld [vmem:[%s18142_s18 + $0x38] sm:$0xff] }
 0xb70   : > { %16862 = vmatprep.subr.mxu1 %v8140_v56 }
 0xb8a   : > { %v7768_v32 = vpop.f32.mrf.mxu1 }
 0xb8b   : > { %16825 = vmatmul.mubr.msk.f32.vlgmr.msra.gmra.mxu1 %vm3904_vm1, %v7768_v32  ;;  %v8113_v32 = vld [vmem:[%s18142_s18 + $0x20] sm:$0xff] }
 0xb8c   : > { %v16782_v29 = vpop.f32.mrf.mxu1  ;;  %16863 = vmatpush3.msra.mxu1 %v8140_v56  ;;  %16894 = vmatprep.mubr.f32.mxu1 %v19314_v8  ;;  %v8115_v56 = vld [vmem:[%s18142_s18 + $0x30] sm:$0xff] }
 0xb8d   : > { %16864 = vmatprep.subr.mxu1 %v8139_v60  ;;  %v8111_v29 = vld [vmem:[%s18142_s18 + $0x10] sm:$0xff] }
 0xb8e   : > { %16865 = vmatpush3.msra.mxu1 %v8139_v60  ;;  %v8112_v60 = vld [vmem:[%s18142_s18 + $0x18] sm:$0xff] }
 0xb8f   : > { %16866 = vmatprep.subr.mxu1 %v8138_v47 }
 0xb90   : > { %16867 = vmatpush3.msra.mxu1 %v8138_v47  ;;  %v8110_v47 = vld [vmem:[%s18142_s18 + $0x8] sm:$0xff] }
 0xb91   : > { %16868 = vmatprep.subr.mxu1 %v8137_v26 }
 0xb92   : > { %16869 = vmatpush3.msra.mxu1 %v8137_v26  ;;  %v8109_v26 = vld [vmem:[%s18142_s18] sm:$0xff] }
 0xb93   : > { %16870 = vmatprep.subr.mxu1 %v8136_v40 }
 0xb94   : > { %16871 = vmatpush3.msra.mxu1 %v8136_v40 }
 0xb95   : > { %16872 = vmatprep.subr.mxu1 %v8135_v34 }
 0xb96   : > { %16873 = vmatpush3.msra.mxu1 %v8135_v34 }
 0xb97   : > { %16874 = vmatprep.subr.mxu1 %v8134_v37 }
 0xb98   : > { %16875 = vmatpush3.msra.mxu1 %v8134_v37 }
 0xb99   : > { %16876 = vmatprep.subr.mxu1 %v8133_v20 }
 0xb9a   : > { %16877 = vmatpush3.msra.mxu1 %v8133_v20 }
 0xb9b   : > { %16878 = vmatprep.subr.mxu1 %v8132_v14 }
 0xb9c   : > { %16879 = vmatpush3.msra.mxu1 %v8132_v14 }
 0xb9d   : > { %16880 = vmatprep.subr.mxu1 %v8131_v12 }
 0xb9e   : > { %16881 = vmatpush3.msra.mxu1 %v8131_v12 }
 0xb9f   : > { %16882 = vmatprep.subr.mxu1 %v8130_v15 }
 0xba0   : > { %16883 = vmatpush3.msra.mxu1 %v8130_v15 }
 0xba1   : > { %16884 = vmatprep.subr.mxu1 %v8129_v30 }
 0xba2   : > { %16885 = vmatpush3.msra.mxu1 %v8129_v30 }
 0xba3   : > { %16886 = vmatprep.subr.mxu1 %v8128_v54 }
 0xba4   : > { %16887 = vmatpush3.msra.mxu1 %v8128_v54 }
 0xba5   : > { %16888 = vmatprep.subr.mxu1 %v8127_v6 }
 0xba6   : > { %16889 = vmatpush3.msra.mxu1 %v8127_v6 }
 0xba7   : > { %16890 = vmatprep.subr.mxu1 %v8126_v27 }
 0xba8   : > { %16891 = vmatpush3.msra.mxu1 %v8126_v27 }
 0xba9   : > { %16892 = vmatprep.subr.mxu1 %v8125_v48 }
 0xbaa   : > { %16893 = vmatpush3.msra.mxu1 %v8125_v48 }
 0xbab   : > { %16895 = vmatmul.mubr.f32.vlgmr.msra.gmra.mxu1 %v19320_v41  ;;  %16932 = vmatprep.subr.mxu1 %v20714_v44 }
 0xbac   : > { %16940 = vmatprep.mubr.msk.f32.mxu1 %vm17795_vm0, %v20714_v44 }
 0xc26   : > { %v7841_v1 = vpop.f32.mrf.mxu0  ;;  %v7914_v57 = vpop.f32.mrf.mxu1 }
 0xc27   : > { %v8064_v43 = vadd.f32 %v7914_v57, %v7841_v1 }
 0xc28   : > { %v16793_v61 = vpop.f32.mrf.mxu0  ;;  %v16804_v11 = vpop.f32.mrf.mxu1 }
 0xc2e   : > { %v7987_v46 = vpop.f32.mrf.mxu0 }
 0xc2f   : > { %v8065_v17 = vadd.f32 %v8064_v43, %v7987_v46 }
 0xc30   : > { %v16815_v18 = vpop.f32.mrf.mxu0 }
 0xc4b   : > { %v8060_v49 = vpop.f32.mrf.mxu1 }
 0xc4c   : > { %v8066_v42 = vadd.f32 %v8065_v17, %v8060_v49 }
 0xc4d   : > { %v16826_v3 = vpop.f32.mrf.mxu1 }
 0xc4e   : > { %v8072_v50 = vadd.f32 %v19199_v10, %v8066_v42  ;;  %v8124_v10 = vld [vmem:[%s18142_s18 + $0x78] sm:$0xff] }
 0xc4f   : > { %16827 = vmatprep.subr.mxu0 %v8124_v10 }
 0xc50   : > { %v19327_v31 = vadd.f32 %v17388_v36, %v8072_v50  ;;  %16828 = vmatpush3.msra.mxu0 %v8124_v10 }
 0xc51   : > { %16829 = vmatprep.subr.mxu0 %v8123_v2 }
 0xc52   : > { %8077 = vadd.xlane.f32.xlu0 %v19327_v31  ;;  %16830 = vmatpush3.msra.mxu0 %v8123_v2 }
 0xc53   : > { %16831 = vmatprep.subr.mxu0 %v8122_v38 }
 0xc54   : > { %16832 = vmatpush3.msra.mxu0 %v8122_v38 }
 0xc55   : > { %16833 = vmatprep.subr.mxu0 %v8121_v53 }
 0xc56   : > { %16834 = vmatpush3.msra.mxu0 %v8121_v53 }
 0xc57   : > { %16835 = vmatprep.subr.mxu0 %v8120_v23 }
 0xc58   : > { %16836 = vmatpush3.msra.mxu0 %v8120_v23 }
 0xc59   : > { %16837 = vmatprep.subr.mxu0 %v8119_v55 }
 0xc5a   : > { %16838 = vmatpush3.msra.mxu0 %v8119_v55 }
 0xc5b   : > { %16839 = vmatprep.subr.mxu0 %v8118_v25 }
 0xc5c   : > { %16840 = vmatpush3.msra.mxu0 %v8118_v25 }
 0xc5d   : > { %16841 = vmatprep.subr.mxu0 %v8117_v5 }
 0xc5e   : > { %16842 = vmatpush3.msra.mxu0 %v8117_v5 }
 0xc5f   : > { %16843 = vmatprep.subr.mxu0 %v8116_v7 }
 0xc60   : > { %16844 = vmatpush3.msra.mxu0 %v8116_v7 }
 0xc61   : > { %16845 = vmatprep.subr.mxu0 %v8115_v56 }
 0xc62   : > { %16846 = vmatpush3.msra.mxu0 %v8115_v56 }
 0xc63   : > { %16847 = vmatprep.subr.mxu0 %v8114_v0 }
 0xc64   : > { %16848 = vmatpush3.msra.mxu0 %v8114_v0 }
 0xc65   : > { %16849 = vmatprep.subr.mxu0 %v8113_v32 }
 0xc66   : > { %16850 = vmatpush3.msra.mxu0 %v8113_v32 }
 0xc67   : > { %16851 = vmatprep.subr.mxu0 %v8112_v60 }
 0xc68   : > { %16852 = vmatpush3.msra.mxu0 %v8112_v60 }
 0xc69   : > { %16853 = vmatprep.subr.mxu0 %v8111_v29 }
 0xc6a   : > { %16854 = vmatpush3.msra.mxu0 %v8111_v29 }
 0xc6b   : > { %v16896_v52 = vpop.f32.mrf.mxu1  ;;  %16855 = vmatprep.subr.mxu0 %v8110_v47 }
 0xc6c   : > { %v19335_v4 = vadd.f32 %v16896_v52, %v8256_v63  ;;  %16856 = vmatpush3.msra.mxu0 %v8110_v47 }
 0xc6d   : > { %v8323_v19 = vpop.f32.mrf.mxu1  ;;  %16857 = vmatprep.subr.mxu0 %v8109_v26 }
 0xc6e   : > { %v19337_v13 = vadd.f32 %v8323_v19, %v8256_v63  ;;  %16858 = vmatpush3.msra.mxu0 %v8109_v26 }
 0xc70   : > { %8569 = vrot.lane.b32.xlu1 %v19337_v13, %s17790_s17 }
 0xc74   : > { %8581 = vrot.lane.b32.xlu1 %v19337_v13, %s17792_s6 }
 0xcdb   : > { %v8078_v33 = vpop.xlane.xlu0 %8077 }
 0xcdc   : > { %v8080_v24 = vmul.f32 0.0078125, %v8078_v33 }
 0xcde   : > { %v8082_v28 = vsub.f32 %v19327_v31, %v8080_v24 }
 0xce0   : > { %v8084_v9 = vmul.f32 %v8082_v28, %v8082_v28 }
 0xce2   : > { %8087 = vadd.xlane.f32.xlu0 %v8084_v9  ;;  %v8570_v40 = vpop.permute.xlu1 %8569 }
 0xce6   : > { %v8582_v34 = vpop.permute.xlu1 %8581 }
 0xce7   : > { %v8603_v14 = vcombine.low %v8570_v40, %v8582_v34  ;;  %v8604_v11 = vcombine.high %v8570_v40, %v8582_v34 }
 0xce9   : > { %v8611_v54 = vrot.slane %v8603_v14, %v18258_v45  ;;  %v8618_v43 = vrot.slane %v8604_v11, %v18258_v45 }
 0xcf8   : > { %8575 = vrot.lane.b32.xlu0 %v19337_v13, %s17789_s16 }
 0xd6b   : > { %v8088_v37 = vpop.xlane.xlu0 %8087 }
 0xd6c   : > { %v8090_v20 = vmul.f32 0.0078125, %v8088_v37 }
 0xd6e   : > { %v8092_v12 = vadd.f32 1e-05, %v8090_v20 }
 0xd6f   : > { %v8576_v15 = vpop.permute.xlu0 %8575 }
 0xd70   : > { %17329 = vrsqrt.f32 %v8092_v12  ;;  %v8587_v30 = vcombine.low %v19337_v13, %v8576_v15  ;;  %v8588_v61 = vcombine.high %v19337_v13, %v8576_v15 }
 0xd72   : > { %v8595_v6 = vrot.slane %v8587_v30, %v18258_v45  ;;  %v8602_v46 = vrot.slane %v8588_v61, %v18258_v45 }
 0xd74   : > { %v8619_v27 = vcombine.low %v8595_v6, %v8611_v54  ;;  %v8620_v48 = vcombine.high %v8595_v6, %v8611_v54  ;;  %v8635_v49 = vcombine.low %v8602_v46, %v8618_v43  ;;  %v8636_v63 = vcombine.high %v8602_v46, %v8618_v43 }
 0xd76   : > { %v8634_v1 = vrot.slane %v8620_v48, %v18261_v51  ;;  %v8627_v57 = vrot.slane %v8619_v27, %v18261_v51  ;;  %v8643_v50 = vrot.slane %v8635_v49, %v18261_v51  ;;  %v8650_v52 = vrot.slane %v8636_v63, %v18261_v51 }
 0xd78   : > { %9017 = vxpose.xlu0.b32.start.end [1/1] (short) (narrow) %v8634_v1, 32  ;;  %8953 = vxpose.xlu1.b32.start.end [1/1] (short) (narrow) %v8627_v57, 32  ;;  %v8652_v36 = vcombine.high %v8634_v1, %v20714_v44  ;;  %v8653_v19 = vcombine.high %v8643_v50, %v20714_v44 }
 0xd7d   : > { %v17330_v18 = vpop.eup %17329 }
 0xd7e   : > { %v8096_v17 = vmul.f32 %v17330_v18, %v8082_v28 }
 0xd80   : > { %v8102_v42 = vmul.f32 %v19265_v39, %v8096_v17  ;;  %v8654_v39 = vcombine.high %v8650_v52, %v20714_v44 }
 0xd82   : > { %v8108_v3 = vadd.f32 %v19278_v62, %v8102_v42  ;;  %v8651_v62 = vcombine.high %v8627_v57, %v20714_v44 }
 0xd84   : > { %16860 = vmatmul.mubr.f32.vlgmr.msra.gmra.mxu0 %v8108_v3 }
 0xd85   : > { %9081 = vxpose.xlu0.b32.start.end [1/1] (short) (narrow) %v8643_v50, 32  ;;  %9049 = vxpose.xlu1.b32.start.end [1/1] (short) (narrow) %v8652_v36, 32 }
 0xd86   : > { %16929 = vmatprep.mubr.f32.mxu0 %v19314_v8 }
 0xd92   : > { %9145 = vxpose.xlu0.b32.start.end [1/1] (short) (narrow) %v8650_v52, 32  ;;  %9113 = vxpose.xlu1.b32.start.end [1/1] (short) (narrow) %v8653_v19, 32 }
 0xd9f   : > { %9177 = vxpose.xlu1.b32.start.end [1/1] (short) (narrow) %v8654_v39, 32  ;;  %8985 = vxpose.xlu0.b32.start.end [1/1] (short) (narrow) %v8651_v62, 32 }
 0xdf4   : > { %v9033_v13 = vpop.trf.xlu0  ;;  %v8969_v10 = vpop.trf.xlu1 }
 0xdf5   : > { %v9209_v20 = vcombine.low %v8969_v10, %v9033_v13  ;;  %v9210_v14 = vcombine.high %v8969_v10, %v9033_v13 }
 0xdf7   : > { %v9217_v18 = vrot.slane %v9209_v20, %v18258_v45  ;;  %v19424_v43 = vrot.slane %v9210_v14, %v18258_v45 }
 0xdf8   : > { %v19379_v2 = vpop.trf.xlu0  ;;  %v19381_v38 = vpop.trf.xlu1 }
 0xdf9   : > { %v9345_v39 = vcombine.low %v19381_v38, %v19379_v2 }
 0xdfc   : > { %v19383_v8 = vpop.trf.xlu0  ;;  %v19385_v53 = vpop.trf.xlu1 }
 0xe00   : > { %v19387_v33 = vpop.trf.xlu0  ;;  %v19389_v24 = vpop.trf.xlu1 }
 0xe01   : > { %v9618_v20 = vcombine.high %v19389_v24, %v19387_v33 }
 0xe04   : > { %v9097_v28 = vpop.trf.xlu0  ;;  %v9065_v9 = vpop.trf.xlu1 }
 0xe08   : > { %v19391_v23 = vpop.trf.xlu0  ;;  %v19393_v55 = vpop.trf.xlu1 }
 0xe0c   : > { %v19395_v25 = vpop.trf.xlu0  ;;  %v19397_v5 = vpop.trf.xlu1 }
 0xe10   : > { %v19399_v7 = vpop.trf.xlu0  ;;  %v19401_v56 = vpop.trf.xlu1 }
 0xe14   : > { %v9161_v0 = vpop.trf.xlu0  ;;  %v9129_v32 = vpop.trf.xlu1 }
 0xe15   : > { %v9242_v37 = vcombine.high %v9097_v28, %v9161_v0  ;;  %v9241_v12 = vcombine.low %v9097_v28, %v9161_v0 }
 0xe17   : > { %v19412_v1 = vrot.slane %v9242_v37, %v18258_v45  ;;  %v9249_v17 = vrot.slane %v9241_v12, %v18258_v45 }
 0xe18   : > { %v9162_v60 = vpop.trf.xlu0  ;;  %v9130_v29 = vpop.trf.xlu1 }
 0xe19   : > { %v9377_v28 = vcombine.low %v19391_v23, %v9162_v60 }
 0xe1c   : > { %v19403_v47 = vpop.trf.xlu0  ;;  %v19405_v26 = vpop.trf.xlu1 }
 0xe20   : > { %v19407_v40 = vpop.trf.xlu0  ;;  %v19409_v34 = vpop.trf.xlu1 }
 0xe24   : > { %v9193_v15 = vpop.trf.xlu1  ;;  %v9001_v30 = vpop.trf.xlu0 }
 0xe25   : > { %v9257_v54 = vcombine.low %v9129_v32, %v9193_v15  ;;  %v9258_v6 = vcombine.high %v9129_v32, %v9193_v15  ;;  %v9225_v27 = vcombine.low %v9001_v30, %v9065_v9  ;;  %v9226_v48 = vcombine.high %v9001_v30, %v9065_v9 }
 0xe26   : > { %v9353_v32 = vrot.slane %v9345_v39, %v18258_v45 }
 0xe27   : > { %v9265_v57 = vrot.slane %v9257_v54, %v18258_v45  ;;  %v19416_v61 = vrot.slane %v9258_v6, %v18258_v45  ;;  %v9233_v11 = vrot.slane %v9225_v27, %v18258_v45  ;;  %v19420_v46 = vrot.slane %v9226_v48, %v18258_v45 }
 0xe28   : > { %v9002_v49 = vpop.trf.xlu0  ;;  %v9194_v63 = vpop.trf.xlu1  ;;  %v9378_v54 = vcombine.high %v19391_v23, %v9162_v60  ;;  %v9385_v6 = vrot.slane %v9377_v28, %v18258_v45  ;;  %v9346_v60 = vcombine.high %v19381_v38, %v19379_v2 }
 0xe29   : > { %v9322_v42 = vcombine.high %v19412_v1, %v19416_v61  ;;  %v9305_v3 = vcombine.low %v9249_v17, %v9265_v57  ;;  %v9273_v50 = vcombine.low %v9217_v18, %v9233_v11  ;;  %v9290_v36 = vcombine.high %v19424_v43, %v19420_v46 }
 0xe2a   : > { %v9361_v52 = vcombine.low %v9002_v49, %v19393_v55  ;;  %v9393_v62 = vcombine.low %v9130_v29, %v9194_v63  ;;  %v9274_v9 = vcombine.high %v9217_v18, %v9233_v11  ;;  %v9306_v14 = vcombine.high %v9249_v17, %v9265_v57 }
 0xe2b   : > { %v9281_v13 = vrot.slane %v9273_v50, %v18261_v51  ;;  %v9313_v10 = vrot.slane %v9305_v3, %v18261_v51  ;;  %v9394_v27 = vcombine.high %v9130_v29, %v9194_v63  ;;  %v9362_v48 = vcombine.high %v9002_v49, %v19393_v55 }
 0xe2c   : > { %v19432_v19 = vpop.trf.xlu0  ;;  %v9369_v0 = vrot.slane %v9361_v52, %v18258_v45  ;;  %v9401_v37 = vrot.slane %v9393_v62, %v18258_v45  ;;  %v9288_v18 = vrot.slane %v9274_v9, %v18261_v51  ;;  %v9321_v3 = vcombine.low %v19412_v1, %v19416_v61  ;;  %v9195_v62 = vpop.trf.xlu1 }
 0xe2d   : > { %v9338_v12 = vcombine.high %v9281_v13, %v9313_v10  ;;  %v9337_v15 = vcombine.low %v9281_v13, %v9313_v10  ;;  %v9289_v57 = vcombine.low %v19424_v43, %v19420_v46  ;;  %v19459_v55 = vrot.slane %v9618_v20, %v18258_v45 }
 0xe2e   : > { %v9409_v11 = vcombine.low %v9353_v32, %v9369_v0  ;;  %v9441_v17 = vcombine.low %v9385_v6, %v9401_v37  ;;  %v9320_v29 = vrot.slane %v9306_v14, %v18261_v51  ;;  %v9392_v49 = vrot.slane %v9378_v54, %v18258_v45 }
 0xe2f   : > { %9785 = vxpose.xlu0.b32.start.end [1/1] (short) (narrow) %v9338_v12, 8  ;;  %9753 = vxpose.xlu1.b32.start.end [1/1] (short) (narrow) %v9337_v15, 8  ;;  %v9408_v50 = vrot.slane %v9394_v27, %v18258_v45  ;;  %v9442_v63 = vcombine.high %v9385_v6, %v9401_v37  ;;  %v9376_v52 = vrot.slane %v9362_v48, %v18258_v45 }
 0xe30   : > { %v19444_v30 = vpop.trf.xlu0  ;;  %v9410_v39 = vcombine.high %v9353_v32, %v9369_v0  ;;  %v9340_v10 = vcombine.high %v9288_v18, %v9320_v29  ;;  %v9417_v2 = vrot.slane %v9409_v11, %v18261_v51  ;;  %v9339_v38 = vcombine.low %v9288_v18, %v9320_v29  ;;  %v9196_v46 = vpop.trf.xlu1 }
 0xe31   : > { %v9634_v23 = vcombine.high %v19444_v30, %v19401_v56  ;;  %v19470_v28 = vrot.slane %v9289_v57, %v18261_v51  ;;  %v19473_v9 = vrot.slane %v9321_v3, %v18261_v51  ;;  %v9449_v20 = vrot.slane %v9441_v17, %v18261_v51 }
 0xe32   : > { %v9360_v37 = vrot.slane %v9346_v60, %v18258_v45  ;;  %v9457_v14 = vcombine.low %v9392_v49, %v9408_v50  ;;  %v9529_v12 = vcombine.low %v19405_v26, %v9195_v62  ;;  %v9497_v15 = vcombine.low %v19432_v19, %v19397_v5 }
 0xe33   : > { %v19466_v13 = vrot.slane %v9634_v23, %v18258_v45  ;;  %9849 = vxpose.xlu0.b32.start.end [1/1] (short) (narrow) %v9340_v10, 8  ;;  %9817 = vxpose.xlu1.b32.start.end [1/1] (short) (narrow) %v9339_v38, 8  ;;  %v9474_v6 = vcombine.high %v9417_v2, %v9449_v20  ;;  %v9424_v27 = vrot.slane %v9410_v39, %v18261_v51 }
 0xe34   : > { %v9425_v54 = vcombine.low %v9360_v37, %v9376_v52  ;;  %v9456_v48 = vrot.slane %v9442_v63, %v18261_v51  ;;  %v9513_v11 = vcombine.low %v19395_v25, %v19403_v47  ;;  %v9341_v18 = vcombine.low %v19470_v28, %v19473_v9 }
 0xe35   : > { %v9698_v32 = vcombine.high %v19459_v55, %v19466_v13  ;;  %v9481_v3 = vcombine.low %v19385_v53, %v19383_v8  ;;  %v9458_v57 = vcombine.high %v9392_v49, %v9408_v50  ;;  %v9426_v17 = vcombine.high %v9360_v37, %v9376_v52 }
 0xe36   : > { %v9537_v23 = vrot.slane %v9529_v12, %v18258_v45  ;;  %v9505_v60 = vrot.slane %v9497_v15, %v18258_v45  ;;  %v9476_v29 = vcombine.high %v9424_v27, %v9456_v48  ;;  %v9433_v63 = vrot.slane %v9425_v54, %v18261_v51 }
 0xe37   : > { %10041 = vxpose.xlu0.b32.start.end [1/1] (short) (narrow) %v9474_v6, 8  ;;  %9881 = vxpose.xlu1.b32.start.end [1/1] (short) (narrow) %v9341_v18, 8  ;;  %v9465_v39 = vrot.slane %v9457_v14, %v18261_v51  ;;  %v9521_v10 = vrot.slane %v9513_v11, %v18258_v45  ;;  %v9473_v38 = vcombine.low %v9417_v2, %v9449_v20 }
 0xe38   : > { %v19499_v0 = vrot.slane %v19331_v59, %v18202_v58  ;;  %v9482_v49 = vcombine.high %v19385_v53, %v19383_v8  ;;  %v9489_v50 = vrot.slane %v9481_v3, %v18258_v45  ;;  %v9530_v52 = vcombine.high %v19405_v26, %v9195_v62 }
 0xe39   : > { %v9514_v37 = vcombine.high %v19395_v25, %v19403_v47  ;;  %v19511_v2 = vrot.slane %v9322_v42, %v18261_v51  ;;  %v9577_v20 = vcombine.low %v9521_v10, %v9537_v23  ;;  %v9498_v59 = vcombine.high %v19432_v19, %v19397_v5 }
 0xe3a   : > { %v9545_v8 = vcombine.low %v9489_v50, %v9505_v60  ;;  %v9478_v53 = vcombine.high %v9433_v63, %v9465_v39  ;;  %v9440_v14 = vrot.slane %v9426_v17, %v18261_v51  ;;  %v9472_v26 = vrot.slane %v9458_v57, %v18261_v51 }
 0xe3b   : > { %10105 = vxpose.xlu0.b32.start.end [1/1] (short) (narrow) %v9476_v29, 8  ;;  %10009 = vxpose.xlu1.b32.start.end [1/1] (short) (narrow) %v9473_v38, 8  ;;  %v9475_v12 = vcombine.low %v9424_v27, %v9456_v48  ;;  %v19524_v47 = vrot.slane %v9290_v36, %v18261_v51  ;;  %v9342_v5 = vcombine.high %v19470_v28, %v19473_v9 }
 0xe3c   : > { %v9544_v1 = vrot.slane %v9530_v52, %v18258_v45  ;;  %v9578_v61 = vcombine.high %v9521_v10, %v9537_v23  ;;  %v9512_v42 = vrot.slane %v9498_v59, %v18258_v45  ;;  %v9546_v54 = vcombine.high %v9489_v50, %v9505_v60 }
 0xe3d   : > { %v9343_v19 = vcombine.low %v19524_v47, %v19511_v2  ;;  %v9344_v15 = vcombine.high %v19524_v47, %v19511_v2  ;;  %v9480_v43 = vcombine.high %v9440_v14, %v9472_v26  ;;  %v9553_v36 = vrot.slane %v9545_v8, %v18261_v51 }
 0xe3e   : > { %v9585_v6 = vrot.slane %v9577_v20, %v18261_v51  ;;  %v9496_v27 = vrot.slane %v9482_v49, %v18258_v45  ;;  %v9528_v48 = vrot.slane %v9514_v37, %v18258_v45  ;;  %v9477_v11 = vcombine.low %v9433_v63, %v9465_v39 }
 0xe3f   : > { %10169 = vxpose.xlu0.b32.start.end [1/1] (short) (narrow) %v9478_v53, 8  ;;  %10073 = vxpose.xlu1.b32.start.end [1/1] (short) (narrow) %v9475_v12, 8  ;;  %v9665_v57 = vcombine.low %v19409_v34, %v9196_v46  ;;  %v9633_v17 = vcombine.low %v19444_v30, %v19401_v56  ;;  %v9560_v60 = vrot.slane %v9546_v54, %v18261_v51 }
 0xe40   : > { %v9593_v18 = vcombine.low %v9528_v48, %v9544_v1  ;;  %v9561_v3 = vcombine.low %v9496_v27, %v9512_v42  ;;  %v9610_v23 = vcombine.high %v9553_v36, %v9585_v6  ;;  %v9592_v29 = vrot.slane %v9578_v61, %v18261_v51 }
 0xe41   : > { %v9649_v10 = vcombine.low %v19399_v7, %v19407_v40  ;;  %v9479_v38 = vcombine.low %v9440_v14, %v9472_v26  ;;  %v9617_v63 = vcombine.low %v19389_v24, %v19387_v33  ;;  %v9594_v39 = vcombine.high %v9528_v48, %v9544_v1 }
 0xe42   : > { %v9562_v49 = vcombine.high %v9496_v27, %v9512_v42  ;;  %v9673_v50 = vrot.slane %v9665_v57, %v18258_v45  ;;  %v9641_v56 = vrot.slane %v9633_v17, %v18258_v45  ;;  %v9612_v30 = vcombine.high %v9560_v60, %v9592_v29 }
 0xe43   : > { %10233 = vxpose.xlu0.b32.start.end [1/1] (short) (narrow) %v9480_v43, 8  ;;  %10137 = vxpose.xlu1.b32.start.end [1/1] (short) (narrow) %v9477_v11, 8  ;;  %v9569_v52 = vrot.slane %v9561_v3, %v18261_v51  ;;  %v9601_v37 = vrot.slane %v9593_v18, %v18261_v51  ;;  %v9657_v20 = vrot.slane %v9649_v10, %v18258_v45 }
 0xe44   : > { %v16861_v62 = vpop.f32.mrf.mxu0  ;;  %v9609_v59 = vcombine.low %v9553_v36, %v9585_v6  ;;  %v9625_v8 = vrot.slane %v9617_v63, %v18258_v45  ;;  %v9576_v14 = vrot.slane %v9562_v49, %v18261_v51  ;;  %v9608_v26 = vrot.slane %v9594_v39, %v18261_v51 }
 0xe45   : > { %v19518_v25 = vadd.f32 %v16861_v62, %v19499_v0  ;;  %v9713_v33 = vcombine.low %v9657_v20, %v9673_v50  ;;  %v9614_v53 = vcombine.high %v9569_v52, %v9601_v37  ;;  %v9666_v62 = vcombine.high %v19409_v34, %v9196_v46 }
 0xe46   : > { %v9681_v24 = vcombine.low %v9625_v8, %v9641_v56  ;;  %v9611_v12 = vcombine.low %v9560_v60, %v9592_v29  ;;  %v9650_v1 = vcombine.high %v19399_v7, %v19407_v40  ;;  %v9714_v61 = vcombine.high %v9657_v20, %v9673_v50  ;;  %v8244_v50 = vpop.f32.mrf.mxu0 }
 0xe47   : > { %10297 = vxpose.xlu0.b32.start.end [1/1] (short) (narrow) %v9610_v23, 8  ;;  %10201 = vxpose.xlu1.b32.start.end [1/1] (short) (narrow) %v9479_v38, 8  ;;  %v9682_v42 = vcombine.high %v9625_v8, %v9641_v56  ;;  %v9616_v54 = vcombine.high %v9576_v14, %v9608_v26  ;;  %v9721_v36 = vrot.slane %v9713_v33, %v18261_v51 }
 0xe48   : > { %v9689_v43 = vrot.slane %v9681_v24, %v18261_v51  ;;  %v9680_v6 = vrot.slane %v9666_v62, %v18258_v45  ;;  %v9613_v27 = vcombine.low %v9569_v52, %v9601_v37  ;;  %v9664_v48 = vrot.slane %v9650_v1, %v18258_v45 }
 0xe49   : > { %v9696_v46 = vrot.slane %v9682_v42, %v18261_v51  ;;  %v9728_v7 = vrot.slane %v9714_v61, %v18261_v51  ;;  %v9615_v11 = vcombine.low %v9576_v14, %v9608_v26  ;;  %v9712_v17 = vrot.slane %v9698_v32, %v18261_v51 }
 0xe4a   : > { %v9745_v34 = vcombine.low %v9689_v43, %v9721_v36  ;;  %v9730_v40 = vcombine.high %v9664_v48, %v9680_v6  ;;  %v9729_v18 = vcombine.low %v9664_v48, %v9680_v6  ;;  %v9746_v57 = vcombine.high %v9689_v43, %v9721_v36 }
 0xe4b   : > { %10361 = vxpose.xlu0.b32.start.end [1/1] (short) (narrow) %v9612_v30, 8  ;;  %10265 = vxpose.xlu1.b32.start.end [1/1] (short) (narrow) %v9609_v59, 8  ;;  %v9747_v3 = vcombine.low %v9696_v46, %v9728_v7  ;;  %v9748_v60 = vcombine.high %v9696_v46, %v9728_v7  ;;  %v20721_v29 = vcombine.low %v19459_v55, %v19466_v13 }
 0xe4c   : > { %v9744_v23 = vrot.slane %v9730_v40, %v18261_v51  ;;  %v9737_v38 = vrot.slane %v9729_v18, %v18261_v51  ;;  %v19575_v56 = vadd.f32 %v8244_v50, %v19499_v0  ;;  %v8155_v50 = vld [vmem:[%s18142_s18 + $0x170] sm:$0xff] }
 0xe4d   : > { %v9705_v10 = vrot.slane %v20721_v29, %v18261_v51 }
 0xe4e   : > { %v9751_v63 = vcombine.low %v9712_v17, %v9744_v23  ;;  %v9752_v32 = vcombine.high %v9712_v17, %v9744_v23 }
 0xe4f   : > { %10425 = vxpose.xlu0.b32.start.end [1/1] (short) (narrow) %v9614_v53, 8  ;;  %10329 = vxpose.xlu1.b32.start.end [1/1] (short) (narrow) %v9611_v12, 8  ;;  %v9749_v39 = vcombine.low %v9705_v10, %v9737_v38  ;;  %v9750_v49 = vcombine.high %v9705_v10, %v9737_v38 }
 0xe53   : > { %10489 = vxpose.xlu0.b32.start.end [1/1] (short) (narrow) %v9616_v54, 8  ;;  %10393 = vxpose.xlu1.b32.start.end [1/1] (short) (narrow) %v9613_v27, 8 }
 0xe57   : > { %10521 = vxpose.xlu0.b32.start.end [1/1] (short) (narrow) %v9745_v34, 8  ;;  %10457 = vxpose.xlu1.b32.start.end [1/1] (short) (narrow) %v9615_v11, 8 }
 0xe5b   : > { %10585 = vxpose.xlu0.b32.start.end [1/1] (short) (narrow) %v9747_v3, 8  ;;  %10553 = vxpose.xlu1.b32.start.end [1/1] (short) (narrow) %v9746_v57, 8 }
 0xe5f   : > { %10617 = vxpose.xlu0.b32.start.end [1/1] (short) (narrow) %v9748_v60, 8  ;;  %10713 = vxpose.xlu1.b32.start.end [1/1] (short) (narrow) %v9751_v63, 8 }
 0xe63   : > { %10649 = vxpose.xlu0.b32.start.end [1/1] (short) (narrow) %v9749_v39, 8 }
 0xe67   : > { %10681 = vxpose.xlu0.b32.start.end [1/1] (short) (narrow) %v9750_v49, 8 }
 0xe6b   : > { %10745 = vxpose.xlu0.b32.start.end [1/1] (short) (narrow) %v9752_v32, 8  ;;  %v8156_v32 = vld [vmem:[%s18142_s18 + $0x178] sm:$0xff] }
 0xe6c   : > { %16897 = vmatprep.subr.mxu0 %v8156_v32 }
 0xe6d   : > { %16898 = vmatpush3.msra.mxu0 %v8156_v32  ;;  %v8145_v32 = vld [vmem:[%s18142_s18 + $0x120] sm:$0xff] }
 0xe6e   : > { %16899 = vmatprep.subr.mxu0 %v8155_v50 }
 0xe6f   : > { %16900 = vmatpush3.msra.mxu0 %v8155_v50 }
 0xe7d   : > { %8419 = vrot.lane.b32.xlu1 %v19575_v56, %s17789_s16 }
 0xe81   : > { %8425 = vrot.lane.b32.xlu1 %v19575_v56, %s17792_s6 }
 0xe94   : > { %8413 = vrot.lane.b32.xlu0 %v19575_v56, %s17790_s17 }
 0xeaa   : > { %9945 = vxpose.xlu1.b32.start.end [1/1] (short) (narrow) %v9343_v19, 8 }
 0xeab   : > { %v19583_v55 = vpop.trf.xlu0  ;;  %v19585_v13 = vpop.trf.xlu1 }
 0xeaf   : > { %v19590_v30 = vpop.trf.xlu0  ;;  %v19592_v0 = vpop.trf.xlu1 }
 0xeb2   : > { %9913 = vxpose.xlu0.b32.start.end [1/1] (short) (narrow) %v9342_v5, 8 }
 0xeb3   : > { %v10057_v52 = vpop.trf.xlu0  ;;  %v19597_v37 = vpop.trf.xlu1 }
 0xeb6   : > { %9977 = vxpose.xlu0.b32.start.end [1/1] (short) (narrow) %v9344_v15, 8 }
 0xeb7   : > { %v10121_v20 = vpop.trf.xlu0  ;;  %v10025_v59 = vpop.trf.xlu1 }
 0xeb8   : > { %v10853_v8 = vcombine.low %v10057_v52, %v10121_v20 }
 0xeba   : > { %v10860_v24 = vrot.slane %v10853_v8, %v18258_v45  ;;  %v8154_v8 = vld [vmem:[%s18142_s18 + $0x168] sm:$0xff] }
 0xebb   : > { %v10185_v33 = vpop.trf.xlu0  ;;  %v10089_v19 = vpop.trf.xlu1  ;;  %16901 = vmatprep.subr.mxu0 %v8154_v8 }
 0xebc   : > { %v10845_v53 = vcombine.low %v10025_v59, %v10089_v19  ;;  %16902 = vmatpush3.msra.mxu0 %v8154_v8  ;;  %v8144_v8 = vld [vmem:[%s18142_s18 + $0x118] sm:$0xff] }
 0xebe   : > { %v10852_v26 = vrot.slane %v10845_v53, %v18258_v45 }
 0xebf   : > { %v10249_v14 = vpop.trf.xlu0  ;;  %v10153_v28 = vpop.trf.xlu1 }
 0xec0   : > { %v10869_v9 = vcombine.low %v10185_v33, %v10249_v14  ;;  %v10878_v5 = vcombine.high %v10852_v26, %v10860_v24  ;;  %v10877_v2 = vcombine.low %v10852_v26, %v10860_v24  ;;  %v8153_v14 = vld [vmem:[%s18142_s18 + $0x160] sm:$0xff] }
 0xec1   : > { %16903 = vmatprep.subr.mxu0 %v8153_v14 }
 0xec2   : > { %v10876_v1 = vrot.slane %v10869_v9, %v18258_v45  ;;  %v19607_v54 = vrot.slane %v10877_v2, %v18261_v51  ;;  %v19610_v43 = vrot.slane %v10878_v5, %v18261_v51  ;;  %16904 = vmatpush3.msra.mxu0 %v8153_v14 }
 0xec3   : > { %v10313_v62 = vpop.trf.xlu0  ;;  %v10217_v12 = vpop.trf.xlu1 }
 0xec4   : > { %v10861_v47 = vcombine.low %v10153_v28, %v10217_v12 }
 0xec6   : > { %v10868_v61 = vrot.slane %v10861_v47, %v18258_v45 }
 0xec7   : > { %v10377_v15 = vpop.trf.xlu0  ;;  %v10281_v42 = vpop.trf.xlu1 }
 0xec8   : > { %v10893_v36 = vcombine.low %v10868_v61, %v10876_v1  ;;  %v10894_v6 = vcombine.high %v10868_v61, %v10876_v1  ;;  %v10921_v27 = vcombine.low %v10313_v62, %v10377_v15  ;;  %v8152_v1 = vld [vmem:[%s18142_s18 + $0x158] sm:$0xff] }
 0xec9   : > { %16905 = vmatprep.subr.mxu0 %v8152_v1 }
 0xeca   : > { %v19613_v34 = vrot.slane %v10893_v36, %v18261_v51  ;;  %v19616_v46 = vrot.slane %v10894_v6, %v18261_v51  ;;  %v10928_v57 = vrot.slane %v10921_v27, %v18258_v45  ;;  %v8151_v36 = vld [vmem:[%s18142_s18 + $0x150] sm:$0xff]  ;;  %16906 = vmatpush3.msra.mxu0 %v8152_v1 }
 0xecb   : > { %v10441_v48 = vpop.trf.xlu0  ;;  %v10345_v7 = vpop.trf.xlu1  ;;  %16907 = vmatprep.subr.mxu0 %v8151_v36 }
 0xecc   : > { %v10913_v40 = vcombine.low %v10281_v42, %v10345_v7  ;;  %v10910_v11 = vcombine.high %v19607_v54, %v19613_v34  ;;  %v10911_v18 = vcombine.low %v19610_v43, %v19616_v46  ;;  %v10912_v3 = vcombine.high %v19610_v43, %v19616_v46  ;;  %16908 = vmatpush3.msra.mxu0 %v8151_v36  ;;  %v8149_v7 = vld [vmem:[%s18142_s18 + $0x140] sm:$0xff] }
 0xecd   : > { %v8141_v36 = vld [vmem:[%s18142_s18 + $0x100] sm:$0xff] }
 0xece   : > { %v10920_v23 = vrot.slane %v10913_v40, %v18258_v45 }
 0xecf   : > { %v10505_v17 = vpop.trf.xlu0  ;;  %v10409_v60 = vpop.trf.xlu1 }
 0xed0   : > { %v10937_v29 = vcombine.low %v10441_v48, %v10505_v17  ;;  %v10946_v10 = vcombine.high %v10920_v23, %v10928_v57  ;;  %v10945_v52 = vcombine.low %v10920_v23, %v10928_v57  ;;  %v8150_v48 = vld [vmem:[%s18142_s18 + $0x148] sm:$0xff]  ;;  %v8148_v23 = vld [vmem:[%s18142_s18 + $0x138] sm:$0xff] }
 0xed1   : > { %16909 = vmatprep.subr.mxu0 %v8150_v48 }
 0xed2   : > { %v10944_v39 = vrot.slane %v10937_v29, %v18258_v45  ;;  %v19632_v33 = vrot.slane %v10946_v10, %v18261_v51  ;;  %v19636_v26 = vrot.slane %v10945_v52, %v18261_v51  ;;  %16910 = vmatpush3.msra.mxu0 %v8150_v48 }
 0xed3   : > { %v10537_v38 = vpop.trf.xlu0  ;;  %v10473_v63 = vpop.trf.xlu1  ;;  %16911 = vmatprep.subr.mxu0 %v8149_v7 }
 0xed4   : > { %v10929_v49 = vcombine.low %v10409_v60, %v10473_v63  ;;  %16912 = vmatpush3.msra.mxu0 %v8149_v7  ;;  %v8147_v60 = vld [vmem:[%s18142_s18 + $0x130] sm:$0xff] }
 0xed5   : > { %16913 = vmatprep.subr.mxu0 %v8148_v23 }
 0xed6   : > { %v10936_v59 = vrot.slane %v10929_v49, %v18258_v45  ;;  %16914 = vmatpush3.msra.mxu0 %v8148_v23 }
 0xed7   : > { %v10601_v20 = vpop.trf.xlu0  ;;  %v10569_v62 = vpop.trf.xlu1  ;;  %16915 = vmatprep.subr.mxu0 %v8147_v60 }
 0xed8   : > { %v10961_v19 = vcombine.low %v10936_v59, %v10944_v39  ;;  %v10962_v24 = vcombine.high %v10936_v59, %v10944_v39  ;;  %v10981_v53 = vcombine.low %v10537_v38, %v10601_v20  ;;  %v8146_v39 = vld [vmem:[%s18142_s18 + $0x128] sm:$0xff]  ;;  %16916 = vmatpush3.msra.mxu0 %v8147_v60 }
 0xed9   : > { %16917 = vmatprep.subr.mxu0 %v8146_v39 }
 0xeda   : > { %v19639_v9 = vrot.slane %v10961_v19, %v18261_v51  ;;  %v19642_v5 = vrot.slane %v10962_v24, %v18261_v51  ;;  %v10988_v61 = vrot.slane %v10981_v53, %v18258_v45  ;;  %16918 = vmatpush3.msra.mxu0 %v8146_v39  ;;  %v8143_v53 = vld [vmem:[%s18142_s18 + $0x110] sm:$0xff] }
 0xedb   : > { %v10633_v28 = vpop.trf.xlu0  ;;  %v10729_v57 = vpop.trf.xlu1  ;;  %16919 = vmatprep.subr.mxu0 %v8145_v32 }
 0xedc   : > { %v10989_v12 = vcombine.low %v10569_v62, %v10633_v28  ;;  %v10978_v2 = vcombine.high %v19636_v26, %v19639_v9  ;;  %v10979_v47 = vcombine.low %v19632_v33, %v19642_v5  ;;  %v10980_v15 = vcombine.high %v19632_v33, %v19642_v5  ;;  %16920 = vmatpush3.msra.mxu0 %v8145_v32  ;;  %v16087_v33 = vld [vmem:[#allocation8] ss:$0 sm:$0xff] }
 0xedd   : > { %v10977_v14 = vcombine.low %v19636_v26, %v19639_v9  ;;  %16921 = vmatprep.subr.mxu0 %v8144_v8 }
 0xede   : > { %v10996_v42 = vrot.slane %v10989_v12, %v18258_v45  ;;  %16922 = vmatpush3.msra.mxu0 %v8144_v8 }
 0xedf   : > { %v10665_v6 = vpop.trf.xlu0  ;;  %16923 = vmatprep.subr.mxu0 %v8143_v53 }
 0xee0   : > { %v11014_v27 = vcombine.high %v10988_v61, %v10996_v42  ;;  %v10997_v17 = vcombine.low %v10665_v6, %v10729_v57  ;;  %v11013_v10 = vcombine.low %v10988_v61, %v10996_v42  ;;  %v8142_v61 = vld [vmem:[%s18142_s18 + $0x108] sm:$0xff]  ;;  %v10909_v42 = vcombine.low %v19607_v54, %v19613_v34  ;;  %16924 = vmatpush3.msra.mxu0 %v8143_v53 }
 0xee1   : > { %16925 = vmatprep.subr.mxu0 %v8142_v61 }
 0xee2   : > { %v11004_v38 = vrot.slane %v10997_v17, %v18258_v45  ;;  %v19663_v50 = vrot.slane %v11013_v10, %v18261_v51  ;;  %v19666_v52 = vrot.slane %v11014_v27, %v18261_v51  ;;  %16926 = vmatpush3.msra.mxu0 %v8142_v61  ;;  %v10777_v61 = vcombine.low %v19585_v13, %v19592_v0 }
 0xee3   : > { %v10697_v40 = vpop.trf.xlu0  ;;  %16927 = vmatprep.subr.mxu0 %v8141_v36 }
 0xee4   : > { %16928 = vmatpush3.msra.mxu0 %v8141_v36 }
 0xee5   : > { %16930 = vmatmul.mubr.f32.vlgmr.msra.gmra.mxu0 %v19320_v41  ;;  %16976 = vmatprep.subr.mxu0 %v20714_v44 }
 0xee6   : > { %16978 = vmatprep.mubr.msk.f32.mxu0 %vm17795_vm0, %v20714_v44 }
 0xee7   : > { %v10761_v29 = vpop.trf.xlu0 }
 0xee8   : > { %v11005_v63 = vcombine.low %v10697_v40, %v10761_v29 }
 0xeea   : > { %v11012_v49 = vrot.slane %v11005_v63, %v18258_v45 }
 0xeec   : > { %v11029_v20 = vcombine.low %v11004_v38, %v11012_v49  ;;  %v11030_v59 = vcombine.high %v11004_v38, %v11012_v49 }
 0xeee   : > { %v19670_v19 = vrot.slane %v11029_v20, %v18261_v51  ;;  %v19673_v24 = vrot.slane %v11030_v59, %v18261_v51 }
 0xeef   : > { %v8420_v6 = vpop.permute.xlu1 %8419 }
 0xef0   : > { %v11045_v28 = vcombine.low %v19663_v50, %v19670_v19  ;;  %v11046_v62 = vcombine.high %v19663_v50, %v19670_v19  ;;  %v11047_v12 = vcombine.low %v19666_v52, %v19673_v24  ;;  %v11048_v1 = vcombine.high %v19666_v52, %v19673_v24 }
 0xef1   : > { %v8431_v57 = vcombine.low %v19575_v56, %v8420_v6  ;;  %v8432_v17 = vcombine.high %v19575_v56, %v8420_v6 }
 0xef2   : > { %16933 = vmatpush3.msra.mxu1 %v11045_v28  ;;  %v10785_v28 = vcombine.low %v19583_v55, %v19590_v30 }
 0xef3   : > { %16934 = vmatprep.subr.mxu1 %v20714_v44  ;;  %v8426_v48 = vpop.permute.xlu1 %8425  ;;  %v8439_v41 = vrot.slane %v8431_v57, %v18258_v45  ;;  %v8446_v29 = vrot.slane %v8432_v17, %v18258_v45  ;;  %v10784_v57 = vrot.slane %v10777_v61, %v18258_v45 }
 0xef4   : > { %16935 = vmatpush3.msra.mxu1 %v10977_v14 }
 0xef5   : > { %16936 = vmatprep.subr.mxu1 %v20714_v44 }
 0xef6   : > { %16937 = vmatpush3.msra.mxu1 %v10909_v42 }
 0xef7   : > { %16938 = vmatprep.subr.mxu1 %v20714_v44 }
 0xf06   : > { %v8414_v27 = vpop.permute.xlu0 %8413 }
 0xf07   : > { %v8447_v7 = vcombine.low %v8414_v27, %v8426_v48  ;;  %v8448_v40 = vcombine.high %v8414_v27, %v8426_v48 }
 0xf09   : > { %v8455_v23 = vrot.slane %v8447_v7, %v18258_v45  ;;  %v8462_v60 = vrot.slane %v8448_v40, %v18258_v45  ;;  %v10792_v40 = vrot.slane %v10785_v28, %v18258_v45 }
 0xf0b   : > { %v8463_v10 = vcombine.low %v8439_v41, %v8455_v23  ;;  %v8464_v38 = vcombine.high %v8439_v41, %v8455_v23  ;;  %v8479_v63 = vcombine.low %v8446_v29, %v8462_v60  ;;  %v8480_v39 = vcombine.high %v8446_v29, %v8462_v60 }
 0xf0c   : > { %v10809_v0 = vcombine.low %v10784_v57, %v10792_v40 }
 0xf0d   : > { %v8471_v49 = vrot.slane %v8463_v10, %v18261_v51  ;;  %v8478_v32 = vrot.slane %v8464_v38, %v18261_v51  ;;  %v8487_v20 = vrot.slane %v8479_v63, %v18261_v51  ;;  %v8494_v56 = vrot.slane %v8480_v39, %v18261_v51 }
 0xf0e   : > { %v10817_v63 = vrot.slane %v10809_v0, %v18261_v51 }
 0xf0f   : > { %v8885_v59 = vcombine.low %v8471_v49, %v8478_v32  ;;  %v16088_v8 = vcombine.high %v8471_v49, %v8478_v32  ;;  %v8901_v53 = vcombine.low %v8487_v20, %v8494_v56  ;;  %v16089_v14 = vcombine.high %v8487_v20, %v8494_v56 }
 0xf11   : > { %v8892_v6 = vrot.slane %v8885_v59, %v18258_v45  ;;  %v8900_v27 = vrot.slane %v16088_v8, %v18258_v45  ;;  %v8908_v48 = vrot.slane %v8901_v53, %v18258_v45  ;;  %v8916_v7 = vrot.slane %v16089_v14, %v18258_v45 }
 0xf13   : > { %v8917_v23 = vcombine.low %v8892_v6, %v8900_v27  ;;  %v8933_v13 = vcombine.low %v8908_v48, %v8916_v7  ;;  %v8918_v56 = vcombine.high %v8892_v6, %v8900_v27  ;;  %v8934_v50 = vcombine.high %v8908_v48, %v8916_v7  ;;  %v17389_v7 = vld [vmem:[%s18144_s23] sm:$0xf] }
 0xf15   : > { %v8925_v10 = vrot.slane %v8917_v23, %v18261_v51  ;;  %v8941_v38 = vrot.slane %v8933_v13, %v18261_v51  ;;  %v8932_v54 = vrot.slane %v8918_v56, %v18261_v51  ;;  %v8948_v34 = vrot.slane %v8934_v50, %v18261_v51 }
 0xf17   : > { %v8950_v19 = vcombine.high %v8925_v10, %v8941_v38 }
 0xf26   : > { %v9961_v42 = vpop.trf.xlu1 }
 0xf27   : > { %v10793_v17 = vcombine.low %v19597_v37, %v9961_v42  ;;  %v8949_v37 = vcombine.low %v8925_v10, %v8941_v38 }
 0xf29   : > { %v10800_v60 = vrot.slane %v10793_v17, %v18258_v45 }
 0xf2e   : > { %v9929_v36 = vpop.trf.xlu0 }
 0xf32   : > { %v9993_v55 = vpop.trf.xlu0 }
 0xf33   : > { %v10801_v30 = vcombine.low %v9929_v36, %v9993_v55 }
 0xf35   : > { %v10808_v41 = vrot.slane %v10801_v30, %v18258_v45 }
 0xf37   : > { %v10825_v29 = vcombine.low %v10800_v60, %v10808_v41  ;;  %v10826_v32 = vcombine.high %v10800_v60, %v10808_v41 }
 0xf39   : > { %v10833_v39 = vrot.slane %v10825_v29, %v18261_v51  ;;  %v10840_v26 = vrot.slane %v10826_v32, %v18261_v51 }
 0xf3b   : > { %v10841_v49 = vcombine.low %v10817_v63, %v10833_v39  ;;  %v10842_v20 = vcombine.high %v10817_v63, %v10833_v39 }
 0xf3d   : > { %16939 = vmatpush3.msra.mxu1 %v10841_v49 }
 0xf3e   : > { %16941 = vmatmul.mubr.msk.f32.vlgmr.msra.gmra.mxu1 %vm3904_vm1, %v8949_v37  ;;  %16943 = vmatprep.subr.mxu1 %v20714_v44 }
 0xf3f   : > { %16944 = vmatpush3.msra.mxu1 %v11046_v62  ;;  %16951 = vmatprep.mubr.msk.f32.mxu1 %vm17795_vm0, %v20714_v44  ;;  %v10810_v62 = vcombine.high %v10784_v57, %v10792_v40  ;;  %v8335_v40 = vrot.slane %v17389_v7, %v18249_v35 }
 0xf40   : > { %16945 = vmatprep.subr.mxu1 %v20714_v44 }
 0xf41   : > { %16946 = vmatpush3.msra.mxu1 %v10978_v2  ;;  %v8951_v2 = vcombine.low %v8932_v54, %v8948_v34 }
 0xf42   : > { %16947 = vmatprep.subr.mxu1 %v20714_v44 }
 0xf43   : > { %16948 = vmatpush3.msra.mxu1 %v10910_v11  ;;  %v10824_v11 = vrot.slane %v10810_v62, %v18261_v51 }
 0xf44   : > { %16949 = vmatprep.subr.mxu1 %v20714_v44 }
 0xf45   : > { %16950 = vmatpush3.msra.mxu1 %v10842_v20  ;;  %v10843_v9 = vcombine.low %v10824_v11, %v10840_v26 }
 0xf46   : > { %16952 = vmatmul.mubr.msk.f32.vlgmr.msra.gmra.mxu1 %vm3904_vm1, %v8950_v19  ;;  %16954 = vmatprep.subr.mxu1 %v20714_v44 }
 0xf47   : > { %16955 = vmatpush3.msra.mxu1 %v11047_v12  ;;  %16962 = vmatprep.mubr.msk.f32.mxu1 %vm17795_vm0, %v20714_v44 }
 0xf48   : > { %16956 = vmatprep.subr.mxu1 %v20714_v44 }
 0xf49   : > { %16957 = vmatpush3.msra.mxu1 %v10979_v47  ;;  %v8952_v47 = vcombine.high %v8932_v54, %v8948_v34 }
 0xf4a   : > { %16958 = vmatprep.subr.mxu1 %v20714_v44 }
 0xf4b   : > { %16959 = vmatpush3.msra.mxu1 %v10911_v18  ;;  %v10844_v18 = vcombine.high %v10824_v11, %v10840_v26 }
 0xf4c   : > { %16960 = vmatprep.subr.mxu1 %v20714_v44 }
 0xf4d   : > { %16961 = vmatpush3.msra.mxu1 %v10843_v9 }
 0xf4e   : > { %16963 = vmatmul.mubr.msk.f32.vlgmr.msra.gmra.mxu1 %vm3904_vm1, %v8951_v2  ;;  %16965 = vmatprep.subr.mxu1 %v20714_v44 }
 0xf4f   : > { %16966 = vmatpush3.msra.mxu1 %v11048_v1  ;;  %16973 = vmatprep.mubr.msk.f32.mxu1 %vm17795_vm0, %v20714_v44 }
 0xf50   : > { %16967 = vmatprep.subr.mxu1 %v20714_v44 }
 0xf51   : > { %16968 = vmatpush3.msra.mxu1 %v10980_v15 }
 0xf52   : > { %16969 = vmatprep.subr.mxu1 %v20714_v44 }
 0xf53   : > { %16970 = vmatpush3.msra.mxu1 %v10912_v3 }
 0xf54   : > { %16971 = vmatprep.subr.mxu1 %v20714_v44 }
 0xf55   : > { %16972 = vmatpush3.msra.mxu1 %v10844_v18 }
 0xf56   : > { %16974 = vmatmul.mubr.msk.f32.vlgmr.msra.gmra.mxu1 %vm3904_vm1, %v8952_v47  ;;  %16981 = vmatprep.subr.mxu1 %v20714_v44 }
 0xf57   : > { %16983 = vmatprep.mubr.msk.f32.mxu1 %vm17795_vm0, %v20714_v44 }
 0xfa5   : > { %v16931_v57 = vpop.f32.mrf.mxu0 }
 0xfa6   : > { %v19786_v17 = vadd.f32 %v16931_v57, %v8335_v40 }
 0xfa7   : > { %v8402_v63 = vpop.f32.mrf.mxu0 }
 0xfa8   : > { %v8403_v39 = vadd.f32 %v8402_v63, %v8335_v40 }
 0xffe   : > { %v11118_v5 = vpop.f32.mrf.mxu1 }
 0xfff   : > { %v11119_v15 = vadd.f32 %v16087_v33, %v11118_v5 }
0x1000   : > { %v16942_v52 = vpop.f32.mrf.mxu1 }
0x1001   : > { %v11341_v24 = vmul.f32 0.17677669, %v11119_v15 }
0x1003   : > { %v11345_v43 = vsel %vm4201_vm2, %v11341_v24, -inf }
0x1004   : > { %11346 = vmax.xlane.f32.xlu1 %v11345_v43 }
0x1006   : > { %v11191_v46 = vpop.f32.mrf.mxu1 }
0x1007   : > { %v11192_v3 = vadd.f32 %v16087_v33, %v11191_v46 }
0x1008   : > { %v16953_v12 = vpop.f32.mrf.mxu1 }
0x1009   : > { %v11342_v1 = vmul.f32 0.17677669, %v11192_v3 }
0x100b   : > { %v11348_v59 = vsel %vm4201_vm2, %v11342_v1, -inf }
0x100c   : > { %11349 = vmax.xlane.f32.xlu0 %v11348_v59 }
0x100e   : > { %v11264_v8 = vpop.f32.mrf.mxu1 }
0x100f   : > { %v11265_v53 = vadd.f32 %v16087_v33, %v11264_v8 }
0x1010   : > { %v16964_v14 = vpop.f32.mrf.mxu1 }
0x1011   : > { %v11343_v28 = vmul.f32 0.17677669, %v11265_v53 }
0x1013   : > { %v11351_v61 = vsel %vm4201_vm2, %v11343_v28, -inf }
0x1014   : > { %11352 = vmax.xlane.f32.xlu1 %v11351_v61 }
0x1016   : > { %v11337_v42 = vpop.f32.mrf.mxu1 }
0x1017   : > { %v11338_v36 = vadd.f32 %v16087_v33, %v11337_v42 }
0x1018   : > { %v16975_v6 = vpop.f32.mrf.mxu1 }
0x1019   : > { %v11344_v27 = vmul.f32 0.17677669, %v11338_v36 }
0x101b   : > { %v11354_v48 = vsel %vm4201_vm2, %v11344_v27, -inf }
0x101c   : > { %11355 = vmax.xlane.f32.xlu1 %v11354_v48 }
0x108d   : > { %v11347_v55 = vpop.xlane.xlu1 %11346 }
0x108e   : > { %v11357_v30 = vsub.f32 %v11341_v24, %v11347_v55 }
0x1090   : > { %v11361_v23 = vmul.f32 1.442695, %v11357_v30 }
0x1092   : > { %17331 = vpow2.f32 %v11361_v23 }
0x1095   : > { %v11350_v13 = vpop.xlane.xlu0 %11349 }
0x1096   : > { %v11358_v0 = vsub.f32 %v11342_v1, %v11350_v13 }
0x1098   : > { %v11363_v60 = vmul.f32 1.442695, %v11358_v0 }
0x109a   : > { %17333 = vpow2.f32 %v11363_v60 }
0x109d   : > { %v11353_v49 = vpop.xlane.xlu1 %11352 }
0x109e   : > { %v11359_v37 = vsub.f32 %v11343_v28, %v11353_v49 }
0x109f   : > { %v19788_v41 = vpop.eup %17331 }
0x10a0   : > { %v11369_v29 = vsel %vm4201_vm2, %v19788_v41, 0.0  ;;  %v11365_v32 = vmul.f32 1.442695, %v11359_v37 }
0x10a1   : > { %11370 = vadd.xlane.f32.xlu1 %v11369_v29 }
0x10a2   : > { %17335 = vpow2.f32 %v11365_v32 }
0x10a5   : > { %v11356_v20 = vpop.xlane.xlu1 %11355 }
0x10a6   : > { %v11360_v56 = vsub.f32 %v11344_v27, %v11356_v20 }
0x10a7   : > { %v19792_v10 = vpop.eup %17333 }
0x10a8   : > { %v11372_v38 = vsel %vm4201_vm2, %v19792_v10, 0.0  ;;  %v11367_v50 = vmul.f32 1.442695, %v11360_v56 }
0x10a9   : > { %11373 = vadd.xlane.f32.xlu0 %v11372_v38 }
0x10aa   : > { %17337 = vpow2.f32 %v11367_v50 }
0x10af   : > { %v19798_v19 = vpop.eup %17335 }
0x10b0   : > { %v11375_v62 = vsel %vm4201_vm2, %v19798_v19, 0.0 }
0x10b2   : > { %8731 = vrot.lane.b32.xlu1 %v8403_v39, %s17789_s16 }
0x10b7   : > { %v19802_v26 = vpop.eup %17337 }
0x10b8   : > { %v11378_v54 = vsel %vm4201_vm2, %v19802_v26, 0.0 }
0x10bf   : > { %8725 = vrot.lane.b32.xlu0 %v8403_v39, %s17790_s17 }
0x10d6   : > { %11376 = vadd.xlane.f32.xlu1 %v11375_v62 }
0x10de   : > { %11379 = vadd.xlane.f32.xlu0 %v11378_v54 }
0x10e7   : > { %8737 = vrot.lane.b32.xlu1 %v8403_v39, %s17792_s6 }
0x10eb   : > { %8571 = vrot.lane.b32.xlu1 %v19335_v4, %s17790_s17 }
0x10ef   : > { %8577 = vrot.lane.b32.xlu1 %v19335_v4, %s17789_s16 }
0x10f3   : > { %8583 = vrot.lane.b32.xlu1 %v19335_v4, %s17792_s6 }
0x10f4   : > { %8415 = vrot.lane.b32.xlu0 %v19518_v25, %s17790_s17 }
0x10f7   : > { %8421 = vrot.lane.b32.xlu1 %v19518_v25, %s17789_s16 }
0x10fb   : > { %8427 = vrot.lane.b32.xlu1 %v19518_v25, %s17792_s6 }
0x112a   : > { %v11371_v34 = vpop.xlane.xlu1 %11370 }
0x112b   : > { %17339 = vrcp.f32 %v11371_v34 }
0x112e   : > { %v8732_v11 = vpop.permute.xlu1 %8731 }
0x112f   : > { %v8743_v18 = vcombine.low %v8403_v39, %v8732_v11  ;;  %v8744_v47 = vcombine.high %v8403_v39, %v8732_v11 }
0x1131   : > { %v8751_v24 = vrot.slane %v8743_v18, %v18258_v45  ;;  %v8758_v43 = vrot.slane %v8744_v47, %v18258_v45 }
0x1132   : > { %v11374_v9 = vpop.xlane.xlu0 %11373 }
0x1133   : > { %17341 = vrcp.f32 %v11374_v9 }
0x1136   : > { %v8726_v33 = vpop.permute.xlu0 %8725 }
0x1138   : > { %v17340_v49 = vpop.eup %17339 }
0x1139   : > { %v11385_v18 = vmul.f32 %v17340_v49, %v19788_v41 }
0x1140   : > { %v17342_v50 = vpop.eup %17341 }
0x1141   : > { %v11386_v47 = vmul.f32 %v17342_v50, %v19792_v10 }
0x115f   : > { %v11377_v2 = vpop.xlane.xlu1 %11376 }
0x1160   : > { %17343 = vrcp.f32 %v11377_v2 }
0x1163   : > { %v8738_v5 = vpop.permute.xlu1 %8737 }
0x1164   : > { %v8759_v15 = vcombine.low %v8726_v33, %v8738_v5  ;;  %v8760_v52 = vcombine.high %v8726_v33, %v8738_v5 }
0x1166   : > { %v8767_v46 = vrot.slane %v8759_v15, %v18258_v45  ;;  %v8774_v3 = vrot.slane %v8760_v52, %v18258_v45 }
0x1167   : > { %v19823_v12 = vpop.permute.xlu1 %8571  ;;  %v11380_v14 = vpop.xlane.xlu0 %11379 }
0x1168   : > { %v8775_v1 = vcombine.low %v8751_v24, %v8767_v46  ;;  %v8776_v59 = vcombine.high %v8751_v24, %v8767_v46  ;;  %v8791_v8 = vcombine.low %v8758_v43, %v8774_v3  ;;  %v8792_v53 = vcombine.high %v8758_v43, %v8774_v3 }
0x1169   : > { %17345 = vrcp.f32 %v11380_v14 }
0x116a   : > { %v8783_v28 = vrot.slane %v8775_v1, %v18261_v51  ;;  %v8790_v61 = vrot.slane %v8776_v59, %v18261_v51  ;;  %v8799_v42 = vrot.slane %v8791_v8, %v18261_v51  ;;  %v8806_v36 = vrot.slane %v8792_v53, %v18261_v51 }
0x116b   : > { %v8578_v6 = vpop.permute.xlu1 %8577 }
0x116c   : > { %v11389_v27 = vcombine.low %v8783_v28, %v8790_v61  ;;  %v16094_v48 = vcombine.high %v8783_v28, %v8790_v61  ;;  %v11405_v7 = vcombine.low %v8799_v42, %v8806_v36  ;;  %v16095_v40 = vcombine.high %v8799_v42, %v8806_v36  ;;  %v8160_v61 = vld [vmem:[%s18142_s18 + $0x198] sm:$0xff]  ;;  %v8159_v36 = vld [vmem:[%s18142_s18 + $0x190] sm:$0xff] }
0x116d   : > { %v8655_v57 = vcombine.low %v19335_v4, %v8578_v6  ;;  %v17344_v2 = vpop.eup %17343  ;;  %v8656_v46 = vcombine.high %v19335_v4, %v8578_v6  ;;  %v8164_v42 = vld [vmem:[%s18142_s18 + $0x1b8] sm:$0xff]  ;;  %v8163_v6 = vld [vmem:[%s18142_s18 + $0x1b0] sm:$0xff] }
0x116e   : > { %v11396_v55 = vrot.slane %v11389_v27, %v18258_v45  ;;  %v11404_v30 = vrot.slane %v16094_v48, %v18258_v45  ;;  %v11412_v23 = vrot.slane %v11405_v7, %v18258_v45  ;;  %v11420_v13 = vrot.slane %v16095_v40, %v18258_v45  ;;  %v8158_v27 = vld [vmem:[%s18142_s18 + $0x188] sm:$0xff]  ;;  %v8157_v7 = vld [vmem:[%s18142_s18 + $0x180] sm:$0xff] }
0x116f   : > { %v8584_v0 = vpop.permute.xlu1 %8583  ;;  %v8663_v37 = vrot.slane %v8655_v57, %v18258_v45  ;;  %v11387_v41 = vmul.f32 %v17344_v2, %v19798_v19  ;;  %v8162_v48 = vld [vmem:[%s18142_s18 + $0x1a8] sm:$0xff]  ;;  %v8161_v40 = vld [vmem:[%s18142_s18 + $0x1a0] sm:$0xff] }
0x1170   : > { %v8671_v60 = vcombine.low %v19823_v12, %v8584_v0  ;;  %v11421_v29 = vcombine.low %v11396_v55, %v11404_v30  ;;  %v11437_v38 = vcombine.low %v11412_v23, %v11420_v13  ;;  %v11422_v63 = vcombine.high %v11396_v55, %v11404_v30  ;;  %v19893_v30 = vpop.permute.xlu0 %8415 }
0x1171   : > { %v11438_v39 = vcombine.high %v11412_v23, %v11420_v13  ;;  %v8672_v10 = vcombine.high %v19823_v12, %v8584_v0 }
0x1172   : > { %v8679_v32 = vrot.slane %v8671_v60, %v18258_v45  ;;  %v11429_v20 = vrot.slane %v11421_v29, %v18261_v51  ;;  %v11445_v56 = vrot.slane %v11437_v38, %v18261_v51  ;;  %v11436_v54 = vrot.slane %v11422_v63, %v18261_v51 }
0x1173   : > { %v11452_v34 = vrot.slane %v11438_v39, %v18261_v51  ;;  %v8686_v19 = vrot.slane %v8672_v10, %v18258_v45  ;;  %v19889_v57 = vpop.permute.xlu1 %8421 }
0x1174   : > { %v8687_v62 = vcombine.low %v8663_v37, %v8679_v32  ;;  %v11453_v11 = vcombine.low %v11429_v20, %v11445_v56  ;;  %v11454_v9 = vcombine.high %v11429_v20, %v11445_v56  ;;  %v8688_v3 = vcombine.high %v8663_v37, %v8679_v32 }
0x1175   : > { %v11455_v15 = vcombine.low %v11436_v54, %v11452_v34  ;;  %v11456_v52 = vcombine.high %v11436_v54, %v11452_v34 }
0x1176   : > { %v8695_v33 = vrot.slane %v8687_v62, %v18261_v51  ;;  %16977 = vmatpush3.msra.mxu0 %v11453_v11  ;;  %16982 = vmatpush3.msra.mxu1 %v11454_v9  ;;  %v17346_v5 = vpop.eup %17345  ;;  %v8702_v12 = vrot.slane %v8688_v3, %v18261_v51 }
0x1177   : > { %16979 = vmatmul.mubr.msk.f32.vlgmr.msra.gmra.mxu0 %vm4201_vm2, %v11385_v18  ;;  %16984 = vmatmul.mubr.msk.f32.vlgmr.msra.gmra.mxu1 %vm4201_vm2, %v11386_v47  ;;  %v11388_v43 = vmul.f32 %v17346_v5, %v19802_v26  ;;  %v8670_v26 = vrot.slane %v8656_v46, %v18258_v45  ;;  %v19891_v55 = vpop.permute.xlu1 %8427 }
0x1178   : > { %16986 = vmatprep.subr.mxu0 %v20714_v44  ;;  %16991 = vmatprep.subr.mxu1 %v20714_v44  ;;  %v8719_v24 = vcombine.high %v8695_v33, %v20714_v44  ;;  %v8720_v8 = vcombine.high %v8702_v12, %v20714_v44 }
0x1179   : > { %16987 = vmatpush3.msra.mxu0 %v11455_v15  ;;  %16992 = vmatpush3.msra.mxu1 %v11456_v52  ;;  %v8703_v4 = vcombine.low %v8670_v26, %v8686_v19  ;;  %v8704_v59 = vcombine.high %v8670_v26, %v8686_v19 }
0x117a   : > { %12118 = vxpose.xlu1.b32.start.end [1/1] (short) (narrow) %v8695_v33, 32  ;;  %16988 = vmatprep.mubr.msk.f32.mxu0 %vm17795_vm0, %v20714_v44 }
0x117b   : > { %16993 = vmatprep.mubr.msk.f32.mxu1 %vm17795_vm0, %v20714_v44  ;;  %12150 = vxpose.xlu0.b32.start.end [1/1] (short) (narrow) %v8719_v24, 32  ;;  %v8711_v1 = vrot.slane %v8703_v4, %v18261_v51  ;;  %v8718_v53 = vrot.slane %v8704_v59, %v18261_v51 }
0x117c   : > { %16989 = vmatmul.mubr.msk.f32.vlgmr.msra.gmra.mxu0 %vm4201_vm2, %v11387_v41  ;;  %16994 = vmatmul.mubr.msk.f32.vlgmr.msra.gmra.mxu1 %vm4201_vm2, %v11388_v43 }
0x117d   : > { %16996 = vmatprep.subr.mxu0 %v20714_v44  ;;  %17007 = vmatprep.subr.mxu1 %v20714_v44  ;;  %v8721_v14 = vcombine.high %v8711_v1, %v20714_v44  ;;  %v8722_v28 = vcombine.high %v8718_v53, %v20714_v44 }
0x117e   : > { %17004 = vmatprep.mubr.msk.f32.mxu0 %vm17795_vm0, %v20714_v44  ;;  %17015 = vmatprep.mubr.msk.f32.mxu1 %vm17795_vm0, %v20714_v44 }
0x117f   : > { %16997 = vmatpush3.msra.mxu0 %v8160_v61  ;;  %17008 = vmatpush3.msra.mxu1 %v8164_v42  ;;  %v8169_v42 = vld [vmem:[%s18142_s18 + $0x1e0] sm:$0xff] }
0x1180   : > { %16998 = vmatprep.subr.mxu0 %v20714_v44  ;;  %17009 = vmatprep.subr.mxu1 %v20714_v44 }
0x1181   : > { %16999 = vmatpush3.msra.mxu0 %v8159_v36  ;;  %17010 = vmatpush3.msra.mxu1 %v8163_v6 }
0x1182   : > { %17000 = vmatprep.subr.mxu0 %v20714_v44  ;;  %17011 = vmatprep.subr.mxu1 %v20714_v44 }
0x1183   : > { %17001 = vmatpush3.msra.mxu0 %v8158_v27  ;;  %17012 = vmatpush3.msra.mxu1 %v8162_v48 }
0x1184   : > { %17002 = vmatprep.subr.mxu0 %v20714_v44  ;;  %17013 = vmatprep.subr.mxu1 %v20714_v44 }
0x1185   : > { %17003 = vmatpush3.msra.mxu0 %v8157_v7  ;;  %17014 = vmatpush3.msra.mxu1 %v8161_v40 }
0x1186   : > { %17018 = vmatprep.subr.mxu0 %v20714_v44  ;;  %17029 = vmatprep.subr.mxu1 %v20714_v44 }
0x1187   : > { %12182 = vxpose.xlu1.b32.start.end [1/1] (short) (narrow) %v8702_v12, 32 }
0x1188   : > { %12246 = vxpose.xlu0.b32.start.end [1/1] (short) (narrow) %v8711_v1, 32 }
0x1194   : > { %12214 = vxpose.xlu1.b32.start.end [1/1] (short) (narrow) %v8720_v8, 32 }
0x1195   : > { %12310 = vxpose.xlu0.b32.start.end [1/1] (short) (narrow) %v8718_v53, 32 }
0x11a1   : > { %12278 = vxpose.xlu1.b32.start.end [1/1] (short) (narrow) %v8721_v14, 32 }
0x11ae   : > { %12342 = vxpose.xlu1.b32.start.end [1/1] (short) (narrow) %v8722_v28, 32 }
0x11f6   : > { %v12134_v23 = vpop.trf.xlu1 }
0x11f7   : > { %v12166_v13 = vpop.trf.xlu0 }
0x11fa   : > { %v12135_v0 = vpop.trf.xlu1 }
0x11fb   : > { %v12167_v60 = vpop.trf.xlu0 }
0x11fe   : > { %v19895_v29 = vpop.trf.xlu1 }
0x11ff   : > { %v19897_v38 = vpop.trf.xlu0 }
0x1202   : > { %v19899_v63 = vpop.trf.xlu1 }
0x1203   : > { %v19901_v39 = vpop.trf.xlu0 }
0x1206   : > { %v12198_v49 = vpop.trf.xlu1 }
0x1207   : > { %v12374_v37 = vcombine.low %v12134_v23, %v12198_v49  ;;  %v12375_v32 = vcombine.high %v12134_v23, %v12198_v49  ;;  %v12262_v20 = vpop.trf.xlu0 }
0x1209   : > { %v19918_v52 = vrot.slane %v12374_v37, %v18258_v45  ;;  %v19921_v41 = vrot.slane %v12375_v32, %v18258_v45  ;;  %v8168_v32 = vld [vmem:[%s18142_s18 + $0x1d8] sm:$0xff] }
0x120a   : > { %v12199_v56 = vpop.trf.xlu1 }
0x120b   : > { %v12510_v50 = vcombine.low %v12135_v0, %v12199_v56  ;;  %v12511_v62 = vcombine.high %v12135_v0, %v12199_v56  ;;  %v19903_v54 = vpop.trf.xlu0  ;;  %v8172_v56 = vld [vmem:[%s18142_s18 + $0x1f8] sm:$0xff] }
0x120d   : > { %v19938_v8 = vrot.slane %v12510_v50, %v18258_v45  ;;  %v19941_v53 = vrot.slane %v12511_v62, %v18258_v45 }
0x120e   : > { %v19905_v34 = vpop.trf.xlu1 }
0x120f   : > { %v12646_v11 = vcombine.low %v19895_v29, %v19905_v34  ;;  %v19911_v2 = vpop.trf.xlu0 }
0x1212   : > { %v19913_v18 = vpop.trf.xlu1 }
0x1213   : > { %v19915_v47 = vpop.trf.xlu0 }
0x1216   : > { %v12230_v33 = vpop.trf.xlu1 }
0x1217   : > { %v12390_v5 = vcombine.low %v12166_v13, %v12230_v33  ;;  %v12391_v15 = vcombine.high %v12166_v13, %v12230_v33  ;;  %v12326_v24 = vpop.trf.xlu0 }
0x1218   : > { %v12407_v46 = vcombine.high %v12262_v20, %v12326_v24 }
0x1219   : > { %v19924_v10 = vrot.slane %v12390_v5, %v18258_v45  ;;  %v19927_v43 = vrot.slane %v12391_v15, %v18258_v45 }
0x121a   : > { %v12231_v19 = vpop.trf.xlu1 }
0x121b   : > { %v12438_v26 = vcombine.low %v19918_v52, %v19924_v10  ;;  %v12439_v3 = vcombine.high %v19918_v52, %v19924_v10  ;;  %v12454_v4 = vcombine.low %v19921_v41, %v19927_v43  ;;  %v12455_v12 = vcombine.high %v19921_v41, %v19927_v43  ;;  %v19965_v13 = vpop.trf.xlu0 }
0x121c   : > { %v12526_v1 = vcombine.low %v12167_v60, %v12231_v19  ;;  %v12527_v59 = vcombine.high %v12167_v60, %v12231_v19  ;;  %v12406_v60 = vcombine.low %v12262_v20, %v12326_v24  ;;  %v8167_v19 = vld [vmem:[%s18142_s18 + $0x1d0] sm:$0xff]  ;;  %v19978_v20 = vrot.slane %v12407_v46, %v18258_v45  ;;  %v8166_v46 = vld [vmem:[%s18142_s18 + $0x1c8] sm:$0xff] }
0x121e   : > { %v19944_v14 = vrot.slane %v12526_v1, %v18258_v45  ;;  %v19947_v28 = vrot.slane %v12527_v59, %v18258_v45  ;;  %v19949_v61 = vpop.trf.xlu1  ;;  %v12414_v15 = vrot.slane %v12406_v60, %v18258_v45  ;;  %v8171_v60 = vld [vmem:[%s18142_s18 + $0x1f0] sm:$0xff] }
0x121f   : > { %v19969_v49 = vpop.trf.xlu0 }
0x1222   : > { %v19959_v48 = vpop.trf.xlu1 }
0x1226   : > { %v12294_v7 = vpop.trf.xlu1 }
0x122a   : > { %v19961_v40 = vpop.trf.xlu1 }
0x122e   : > { %v19963_v23 = vpop.trf.xlu1 }
0x1232   : > { %v19967_v0 = vpop.trf.xlu1 }
0x1236   : > { %v12358_v37 = vpop.trf.xlu1 }
0x1237   : > { %v12422_v50 = vcombine.low %v12294_v7, %v12358_v37  ;;  %v12423_v62 = vcombine.high %v12294_v7, %v12358_v37  ;;  %v11526_v33 = vpop.f32.mrf.mxu0  ;;  %v11599_v5 = vpop.f32.mrf.mxu1 }
0x1238   : > { %17005 = vmatmul.mubr.msk.f32.vlgmr.msra.gmra.mxu0 %vm3904_vm1, %v11526_v33  ;;  %17016 = vmatmul.mubr.msk.f32.vlgmr.msra.gmra.mxu1 %vm3904_vm1, %v11599_v5 }
0x1239   : > { %v12430_v24 = vrot.slane %v12422_v50, %v18258_v45  ;;  %v19982_v1 = vrot.slane %v12423_v62, %v18258_v45  ;;  %17019 = vmatpush3.msra.mxu0 %v8168_v32  ;;  %17030 = vmatpush3.msra.mxu1 %v8172_v56  ;;  %v16980_v59 = vpop.f32.mrf.mxu0  ;;  %v16985_v7 = vpop.f32.mrf.mxu1  ;;  %v8170_v56 = vld [vmem:[%s18142_s18 + $0x1e8] sm:$0xff] }
0x123a   : > { %v19985_v37 = vpop.trf.xlu1  ;;  %17020 = vmatprep.subr.mxu0 %v20714_v44  ;;  %17031 = vmatprep.subr.mxu1 %v20714_v44  ;;  %v8165_v59 = vld [vmem:[%s18142_s18 + $0x1c0] sm:$0xff]  ;;  %v12329_v7 = vpop.trf.xlu0 }
0x123b   : > { %v12470_v33 = vcombine.low %v12414_v15, %v12430_v24  ;;  %v12471_v5 = vcombine.high %v12414_v15, %v12430_v24  ;;  %v12486_v50 = vcombine.low %v19978_v20, %v19982_v1  ;;  %v12487_v32 = vcombine.high %v19978_v20, %v19982_v1  ;;  %17021 = vmatpush3.msra.mxu0 %v8167_v19 }
0x123c   : > { %17032 = vmatpush3.msra.mxu1 %v8171_v60  ;;  %v11672_v62 = vpop.f32.mrf.mxu0  ;;  %17022 = vmatprep.subr.mxu0 %v20714_v44  ;;  %v11745_v27 = vpop.f32.mrf.mxu1  ;;  %v19999_v15 = vrot.slane %v12438_v26, %v18261_v51  ;;  %v12798_v60 = vcombine.low %v19901_v39, %v19959_v48 }
0x123d   : > { %17033 = vmatprep.subr.mxu1 %v20714_v44  ;;  %17023 = vmatpush3.msra.mxu0 %v8166_v46  ;;  %v20002_v24 = vrot.slane %v12470_v33, %v18261_v51  ;;  %v20005_v19 = vrot.slane %v12471_v5, %v18261_v51  ;;  %v20020_v33 = vrot.slane %v12439_v3, %v18261_v51 }
0x123e   : > { %v20009_v6 = vpop.trf.xlu1  ;;  %17034 = vmatpush3.msra.mxu1 %v8170_v56  ;;  %v16990_v36 = vpop.f32.mrf.mxu0  ;;  %17024 = vmatprep.subr.mxu0 %v20714_v44  ;;  %v12782_v5 = vcombine.low %v19899_v63, %v19913_v18  ;;  %v12814_v56 = vcombine.low %v19915_v47, %v12329_v7  ;;  %v12806_v10 = vrot.slane %v12798_v60, %v18258_v45 }
0x123f   : > { %v16995_v46 = vpop.f32.mrf.mxu1  ;;  %17035 = vmatprep.subr.mxu1 %v20714_v44  ;;  %17025 = vmatpush3.msra.mxu0 %v8165_v59  ;;  %v12799_v36 = vcombine.high %v19901_v39, %v19959_v48  ;;  %v12815_v3 = vcombine.high %v19915_v47, %v12329_v7  ;;  %v12783_v39 = vcombine.high %v19899_v63, %v19913_v18 }
0x1240   : > { %17026 = vmatprep.mubr.msk.f32.mxu0 %vm17795_vm0, %v20714_v44  ;;  %17036 = vmatpush3.msra.mxu1 %v8169_v42  ;;  %v12790_v42 = vrot.slane %v12782_v5, %v18258_v45  ;;  %v12694_v5 = vcombine.low %v19963_v23, %v20009_v6  ;;  %v12502_v26 = vcombine.low %v19999_v15, %v20002_v24 }
0x1241   : > { %17037 = vmatprep.mubr.msk.f32.mxu1 %vm17795_vm0, %v20714_v44  ;;  %17027 = vmatmul.mubr.msk.f32.vlgmr.msra.gmra.mxu0 %vm3904_vm1, %v11672_v62  ;;  %v12813_v47 = vrot.slane %v12799_v36, %v18258_v45  ;;  %v12822_v62 = vrot.slane %v12814_v56, %v18258_v45  ;;  %v12829_v63 = vrot.slane %v12815_v3, %v18258_v45 }
0x1242   : > { %17038 = vmatmul.mubr.msk.f32.vlgmr.msra.gmra.mxu1 %vm3904_vm1, %v11745_v27  ;;  %v12361_v59 = vpop.trf.xlu1  ;;  %17040 = vmatprep.subr.mxu0 %v20714_v44  ;;  %v12846_v27 = vcombine.low %v12790_v42, %v12806_v10  ;;  %v12797_v60 = vrot.slane %v12783_v39, %v18258_v45  ;;  %v20076_v39 = vrot.slane %v12455_v12, %v18261_v51 }
0x1243   : > { %v12830_v48 = vcombine.low %v19967_v0, %v12361_v59  ;;  %v12831_v46 = vcombine.high %v19967_v0, %v12361_v59  ;;  %17051 = vmatprep.subr.mxu1 %v20714_v44  ;;  %17048 = vmatprep.mubr.msk.f32.mxu0 %vm17795_vm0, %v20714_v44  ;;  %v20057_v0 = vrot.slane %v12646_v11, %v18258_v45 }
0x1244   : > { %17059 = vmatprep.mubr.msk.f32.mxu1 %vm17795_vm0, %v20714_v44  ;;  %v20066_v59 = vrot.slane %v12454_v4, %v18261_v51  ;;  %v12678_v11 = vcombine.low %v19911_v2, %v19969_v49  ;;  %v20084_v4 = vrot.slane %v12486_v50, %v18261_v51  ;;  %v20093_v41 = vrot.slane %v12487_v32, %v18261_v51 }
0x1245   : > { %v12838_v18 = vrot.slane %v12830_v48, %v18258_v45  ;;  %v12845_v7 = vrot.slane %v12831_v46, %v18258_v45  ;;  %v12662_v48 = vcombine.low %v19897_v38, %v19949_v61  ;;  %v12847_v46 = vcombine.high %v12790_v42, %v12806_v10 }
0x1246   : > { %v12702_v10 = vrot.slane %v12694_v5, %v18258_v45  ;;  %v12863_v9 = vcombine.high %v12797_v60, %v12813_v47  ;;  %v12695_v5 = vcombine.high %v19963_v23, %v20009_v6  ;;  %v12507_v1 = vcombine.high %v20066_v59, %v20084_v4 }
0x1247   : > { %v12878_v36 = vcombine.low %v12822_v62, %v12838_v18  ;;  %v12879_v56 = vcombine.high %v12822_v62, %v12838_v18  ;;  %v12894_v3 = vcombine.low %v12829_v63, %v12845_v7  ;;  %v12862_v62 = vcombine.low %v12797_v60, %v12813_v47 }
0x1248   : > { %v12854_v18 = vrot.slane %v12846_v27, %v18261_v51  ;;  %v12895_v42 = vcombine.high %v12829_v63, %v12845_v7  ;;  %v12670_v50 = vrot.slane %v12662_v48, %v18258_v45  ;;  %v12686_v63 = vrot.slane %v12678_v11, %v18258_v45 }
0x1249   : > { %v12886_v52 = vrot.slane %v12878_v36, %v18261_v51  ;;  %v12893_v27 = vrot.slane %v12879_v56, %v18261_v51  ;;  %v12902_v36 = vrot.slane %v12894_v3, %v18261_v51  ;;  %v12861_v7 = vrot.slane %v12847_v46, %v18261_v51 }
0x124a   : > { %v12870_v20 = vrot.slane %v12862_v62, %v18261_v51  ;;  %v12504_v32 = vcombine.low %v20020_v33, %v20005_v19  ;;  %v12742_v6 = vcombine.low %v12686_v63, %v12702_v10  ;;  %v12909_v3 = vrot.slane %v12895_v42, %v18261_v51 }
0x124b   : > { %v12911_v43 = vcombine.high %v12854_v18, %v12886_v52  ;;  %v12910_v12 = vcombine.low %v12854_v18, %v12886_v52  ;;  %v12509_v52 = vcombine.high %v20076_v39, %v20093_v41  ;;  %v12912_v23 = vcombine.low %v12861_v7, %v12893_v27 }
0x124c   : > { %v12915_v56 = vcombine.high %v12870_v20, %v12902_v36  ;;  %v12663_v48 = vcombine.high %v19897_v38, %v19949_v61  ;;  %v12710_v46 = vcombine.low %v20057_v0, %v12670_v50  ;;  %v12679_v11 = vcombine.high %v19911_v2, %v19969_v49 }
0x124d   : > { %13718 = vxpose.xlu0.b32.start.end [1/1] (short) (narrow) %v12911_v43, 8  ;;  %13686 = vxpose.xlu1.b32.start.end [1/1] (short) (narrow) %v12910_v12, 8  ;;  %v12877_v62 = vrot.slane %v12863_v9, %v18261_v51  ;;  %v12709_v18 = vrot.slane %v12695_v5, %v18258_v45  ;;  %v12743_v43 = vcombine.high %v12686_v63, %v12702_v10 }
0x124e   : > { %v12913_v12 = vcombine.high %v12861_v7, %v12893_v27  ;;  %v12750_v47 = vrot.slane %v12742_v6, %v18261_v51  ;;  %v12677_v42 = vrot.slane %v12663_v48, %v18258_v45  ;;  %v12711_v38 = vcombine.high %v20057_v0, %v12670_v50 }
0x124f   : > { %v12917_v60 = vcombine.high %v12877_v62, %v12909_v3  ;;  %v12693_v61 = vrot.slane %v12679_v11, %v18258_v45  ;;  %v12718_v2 = vrot.slane %v12710_v46, %v18261_v51  ;;  %v20722_v9 = vcombine.high %v19895_v29, %v19905_v34 }
0x1250   : > { %v12558_v10 = vcombine.low %v19961_v40, %v19985_v37  ;;  %v12914_v63 = vcombine.low %v12870_v20, %v12902_v36  ;;  %v12757_v5 = vrot.slane %v12743_v43, %v18261_v51  ;;  %v12542_v50 = vcombine.low %v19903_v54, %v19965_v13 }
0x1251   : > { %13750 = vxpose.xlu0.b32.start.end [1/1] (short) (narrow) %v12912_v23, 8  ;;  %13846 = vxpose.xlu1.b32.start.end [1/1] (short) (narrow) %v12915_v56, 8  ;;  %v12661_v49 = vrot.slane %v20722_v9, %v18258_v45  ;;  %v12758_v27 = vcombine.low %v12693_v61, %v12709_v18  ;;  %v12775_v7 = vcombine.high %v12718_v2, %v12750_v47 }
0x1252   : > { %v12566_v6 = vrot.slane %v12558_v10, %v18258_v45  ;;  %v12759_v29 = vcombine.high %v12693_v61, %v12709_v18  ;;  %v12916_v34 = vcombine.low %v12877_v62, %v12909_v3  ;;  %v12550_v36 = vrot.slane %v12542_v50, %v18258_v45 }
0x1253   : > { %v12726_v0 = vcombine.low %v12661_v49, %v12677_v42  ;;  %v12766_v56 = vrot.slane %v12758_v27, %v18261_v51  ;;  %v12727_v48 = vcombine.high %v12661_v49, %v12677_v42  ;;  %v12559_v46 = vcombine.high %v19961_v40, %v19985_v37 }
0x1254   : > { %v12606_v11 = vcombine.low %v12550_v36, %v12566_v6  ;;  %v12774_v43 = vcombine.low %v12718_v2, %v12750_v47  ;;  %v12543_v3 = vcombine.high %v19903_v54, %v19965_v13  ;;  %v12607_v42 = vcombine.high %v12550_v36, %v12566_v6 }
0x1255   : > { %13782 = vxpose.xlu0.b32.start.end [1/1] (short) (narrow) %v12913_v12, 8  ;;  %13910 = vxpose.xlu1.b32.start.end [1/1] (short) (narrow) %v12917_v60, 8  ;;  %v12725_v60 = vrot.slane %v12711_v38, %v18261_v51  ;;  %v12734_v20 = vrot.slane %v12726_v0, %v18261_v51  ;;  %v12773_v38 = vrot.slane %v12759_v29, %v18261_v51 }
0x1256   : > { %v12741_v62 = vrot.slane %v12727_v48, %v18261_v51  ;;  %v12573_v18 = vrot.slane %v12559_v46, %v18258_v45  ;;  %v12614_v49 = vrot.slane %v12606_v11, %v18261_v51  ;;  %v12557_v40 = vrot.slane %v12543_v3, %v18258_v45 }
0x1257   : > { %v12777_v23 = vcombine.high %v12725_v60, %v12757_v5  ;;  %v12779_v12 = vcombine.high %v12734_v20, %v12766_v56  ;;  %v12776_v61 = vcombine.low %v12725_v60, %v12757_v5  ;;  %v20723_v37 = vcombine.low %v19938_v8, %v19944_v14 }
0x1258   : > { %v12781_v9 = vcombine.high %v12741_v62, %v12773_v38  ;;  %v12622_v13 = vcombine.low %v12557_v40, %v12573_v18  ;;  %v12778_v47 = vcombine.low %v12734_v20, %v12766_v56  ;;  %v12621_v10 = vrot.slane %v12607_v42, %v18261_v51 }
0x1259   : > { %13814 = vxpose.xlu0.b32.start.end [1/1] (short) (narrow) %v12914_v63, 8  ;;  %13462 = vxpose.xlu1.b32.start.end [1/1] (short) (narrow) %v12775_v7, 8  ;;  %v12582_v54 = vrot.slane %v20723_v37, %v18261_v51  ;;  %v20724_v27 = vcombine.high %v19938_v8, %v19944_v14  ;;  %v12623_v7 = vcombine.high %v12557_v40, %v12573_v18 }
0x125a   : > { %v12780_v5 = vcombine.low %v12741_v62, %v12773_v38  ;;  %v12630_v50 = vrot.slane %v12622_v13, %v18261_v51  ;;  %v20725_v60 = vcombine.low %v19941_v53, %v19947_v28  ;;  %v20726_v8 = vcombine.high %v19941_v53, %v19947_v28 }
0x125b   : > { %v12639_v2 = vcombine.high %v12582_v54, %v12614_v49  ;;  %v12589_v63 = vrot.slane %v20724_v27, %v18261_v51  ;;  %v12638_v29 = vcombine.low %v12582_v54, %v12614_v49  ;;  %v20727_v20 = vcombine.high %v19999_v15, %v20002_v24 }
0x125c   : > { %v12598_v6 = vrot.slane %v20725_v60, %v18261_v51  ;;  %v12605_v14 = vrot.slane %v20726_v8, %v18261_v51  ;;  %v20728_v11 = vcombine.high %v20020_v33, %v20005_v19  ;;  %v20729_v53 = vcombine.low %v20066_v59, %v20084_v4 }
0x125d   : > { %13878 = vxpose.xlu0.b32.start.end [1/1] (short) (narrow) %v12916_v34, 8  ;;  %13526 = vxpose.xlu1.b32.start.end [1/1] (short) (narrow) %v12777_v23, 8  ;;  %v12641_v0 = vcombine.high %v12589_v63, %v12621_v10  ;;  %v12637_v23 = vrot.slane %v12623_v7, %v18261_v51  ;;  %v12640_v56 = vcombine.low %v12589_v63, %v12621_v10 }
0x125e   : > { %v12643_v34 = vcombine.high %v12598_v6, %v12630_v50  ;;  %v12642_v36 = vcombine.low %v12598_v6, %v12630_v50  ;;  %v20730_v28 = vcombine.low %v20076_v39, %v20093_v41 }
0x125f   : > { %v12645_v48 = vcombine.high %v12605_v14, %v12637_v23  ;;  %v12644_v46 = vcombine.low %v12605_v14, %v12637_v23 }
0x1261   : > { %13430 = vxpose.xlu0.b32.start.end [1/1] (short) (narrow) %v12774_v43, 8  ;;  %13590 = vxpose.xlu1.b32.start.end [1/1] (short) (narrow) %v12779_v12, 8 }
0x1265   : > { %13494 = vxpose.xlu0.b32.start.end [1/1] (short) (narrow) %v12776_v61, 8  ;;  %13654 = vxpose.xlu1.b32.start.end [1/1] (short) (narrow) %v12781_v9, 8 }
0x1269   : > { %13558 = vxpose.xlu0.b32.start.end [1/1] (short) (narrow) %v12778_v47, 8  ;;  %13206 = vxpose.xlu1.b32.start.end [1/1] (short) (narrow) %v12639_v2, 8 }
0x126d   : > { %13622 = vxpose.xlu0.b32.start.end [1/1] (short) (narrow) %v12780_v5, 8  ;;  %13270 = vxpose.xlu1.b32.start.end [1/1] (short) (narrow) %v12641_v0, 8 }
0x1271   : > { %13174 = vxpose.xlu0.b32.start.end [1/1] (short) (narrow) %v12638_v29, 8  ;;  %13334 = vxpose.xlu1.b32.start.end [1/1] (short) (narrow) %v12643_v34, 8 }
0x1275   : > { %13238 = vxpose.xlu0.b32.start.end [1/1] (short) (narrow) %v12640_v56, 8  ;;  %13398 = vxpose.xlu1.b32.start.end [1/1] (short) (narrow) %v12645_v48, 8 }
0x1279   : > { %13302 = vxpose.xlu0.b32.start.end [1/1] (short) (narrow) %v12642_v36, 8  ;;  %12950 = vxpose.xlu1.b32.start.end [1/1] (short) (narrow) %v20727_v20, 8 }
0x127d   : > { %13366 = vxpose.xlu0.b32.start.end [1/1] (short) (narrow) %v12644_v46, 8  ;;  %13014 = vxpose.xlu1.b32.start.end [1/1] (short) (narrow) %v20728_v11, 8 }
0x1281   : > { %12918 = vxpose.xlu0.b32.start.end [1/1] (short) (narrow) %v12502_v26, 8  ;;  %13078 = vxpose.xlu1.b32.start.end [1/1] (short) (narrow) %v12507_v1, 8 }
0x1285   : > { %12982 = vxpose.xlu0.b32.start.end [1/1] (short) (narrow) %v12504_v32, 8  ;;  %13142 = vxpose.xlu1.b32.start.end [1/1] (short) (narrow) %v12509_v52, 8 }
0x1289   : > { %13046 = vxpose.xlu0.b32.start.end [1/1] (short) (narrow) %v20729_v53, 8 }
0x128d   : > { %13110 = vxpose.xlu0.b32.start.end [1/1] (short) (narrow) %v20730_v28, 8 }
0x12c9   : > { %v13734_v15 = vpop.trf.xlu0  ;;  %v13702_v24 = vpop.trf.xlu1 }
0x12cd   : > { %v13766_v26 = vpop.trf.xlu0  ;;  %v13862_v1 = vpop.trf.xlu1 }
0x12ce   : > { %v14146_v38 = vcombine.low %v13702_v24, %v13766_v26  ;;  %v8516_v24 = vcombine.high %v19893_v30, %v19891_v55 }
0x12d0   : > { %v20196_v62 = vrot.slane %v14146_v38, %v18258_v45 }
0x12d1   : > { %v13798_v43 = vpop.trf.xlu0  ;;  %v13926_v12 = vpop.trf.xlu1 }
0x12d2   : > { %v14154_v19 = vcombine.low %v13734_v15, %v13798_v43  ;;  %v14170_v3 = vcombine.low %v13862_v1, %v13926_v12  ;;  %v8515_v15 = vcombine.low %v19893_v30, %v19891_v55  ;;  %v8499_v1 = vcombine.low %v19518_v25, %v19889_v57 }
0x12d3   : > { %v8500_v43 = vcombine.high %v19518_v25, %v19889_v57  ;;  %v8530_v55 = vrot.slane %v8516_v24, %v18258_v45 }
0x12d4   : > { %v20193_v52 = vrot.slane %v14154_v19, %v18258_v45  ;;  %v20201_v18 = vrot.slane %v14170_v3, %v18258_v45  ;;  %v8507_v25 = vrot.slane %v8499_v1, %v18258_v45 }
0x12d5   : > { %v13830_v33 = vpop.trf.xlu0  ;;  %v13478_v32 = vpop.trf.xlu1  ;;  %v8514_v57 = vrot.slane %v8500_v43, %v18258_v45 }
0x12d6   : > { %v14178_v41 = vcombine.low %v20196_v62, %v20193_v52 }
0x12d8   : > { %v14186_v40 = vrot.slane %v14178_v41, %v18261_v51 }
0x12d9   : > { %v13894_v59 = vpop.trf.xlu0  ;;  %v13542_v4 = vpop.trf.xlu1 }
0x12da   : > { %v14162_v39 = vcombine.low %v13830_v33, %v13894_v59  ;;  %v14086_v7 = vcombine.low %v13478_v32, %v13542_v4  ;;  %v8523_v32 = vrot.slane %v8515_v15, %v18258_v45 }
0x12dc   : > { %v20204_v42 = vrot.slane %v14162_v39, %v18258_v45  ;;  %v20216_v6 = vrot.slane %v14086_v7, %v18258_v45 }
0x12dd   : > { %v13446_v61 = vpop.trf.xlu0  ;;  %v13606_v9 = vpop.trf.xlu1 }
0x12de   : > { %v14194_v49 = vcombine.low %v20204_v42, %v20201_v18 }
0x12e0   : > { %v14202_v37 = vrot.slane %v14194_v49, %v18261_v51 }
0x12e1   : > { %v13510_v54 = vpop.trf.xlu0  ;;  %v13670_v13 = vpop.trf.xlu1 }
0x12e2   : > { %v14210_v47 = vcombine.low %v14186_v40, %v14202_v37  ;;  %v14211_v2 = vcombine.high %v14186_v40, %v14202_v37  ;;  %v14078_v10 = vcombine.low %v13446_v61, %v13510_v54  ;;  %v14102_v0 = vcombine.low %v13606_v9, %v13670_v13 }
0x12e3   : > { %v8531_v37 = vcombine.low %v8507_v25, %v8523_v32  ;;  %v8532_v54 = vcombine.high %v8507_v25, %v8523_v32  ;;  %v8547_v13 = vcombine.low %v8514_v57, %v8530_v55 }
0x12e4   : > { %17041 = vmatpush3.msra.mxu0 %v14210_v47  ;;  %17052 = vmatpush3.msra.mxu1 %v14211_v2  ;;  %v20213_v5 = vrot.slane %v14078_v10, %v18258_v45  ;;  %v20221_v23 = vrot.slane %v14102_v0, %v18258_v45  ;;  %v8548_v47 = vcombine.high %v8514_v57, %v8530_v55 }
0x12e5   : > { %v13574_v27 = vpop.trf.xlu0  ;;  %v13222_v63 = vpop.trf.xlu1  ;;  %17042 = vmatprep.subr.mxu0 %v20714_v44  ;;  %17053 = vmatprep.subr.mxu1 %v20714_v44  ;;  %v8539_v0 = vrot.slane %v8531_v37, %v18261_v51 }
0x12e6   : > { %v14110_v34 = vcombine.low %v20213_v5, %v20216_v6 }
0x12e8   : > { %v14118_v36 = vrot.slane %v14110_v34, %v18261_v51 }
0x12e9   : > { %v13638_v50 = vpop.trf.xlu0  ;;  %v13286_v60 = vpop.trf.xlu1 }
0x12ea   : > { %v14094_v29 = vcombine.low %v13574_v27, %v13638_v50  ;;  %v14018_v33 = vcombine.low %v13222_v63, %v13286_v60  ;;  %v8546_v50 = vrot.slane %v8532_v54, %v18261_v51  ;;  %v8555_v60 = vrot.slane %v8547_v13, %v18261_v51 }
0x12ec   : > { %v20224_v8 = vrot.slane %v14094_v29, %v18258_v45  ;;  %v20250_v61 = vrot.slane %v14018_v33, %v18258_v45  ;;  %v8562_v29 = vrot.slane %v8548_v47, %v18261_v51  ;;  %v16105_v15 = vcombine.high %v8539_v0, %v8546_v50 }
0x12ed   : > { %v13190_v14 = vpop.trf.xlu0  ;;  %v13350_v56 = vpop.trf.xlu1 }
0x12ee   : > { %v14126_v48 = vcombine.low %v20224_v8, %v20221_v23  ;;  %v12066_v24 = vcombine.low %v8555_v60, %v8562_v29 }
0x12f0   : > { %v14134_v20 = vrot.slane %v14126_v48, %v18261_v51 }
0x12f1   : > { %v13254_v46 = vpop.trf.xlu0  ;;  %v13414_v11 = vpop.trf.xlu1 }
0x12f2   : > { %v14142_v53 = vcombine.low %v14118_v36, %v14134_v20  ;;  %v14143_v28 = vcombine.high %v14118_v36, %v14134_v20  ;;  %v14010_v26 = vcombine.low %v13190_v14, %v13254_v46  ;;  %v14034_v59 = vcombine.low %v13350_v56, %v13414_v11 }
0x12f4   : > { %17043 = vmatpush3.msra.mxu0 %v14142_v53  ;;  %17054 = vmatpush3.msra.mxu1 %v14143_v28  ;;  %v20245_v3 = vrot.slane %v14010_v26, %v18258_v45  ;;  %v20255_v10 = vrot.slane %v14034_v59, %v18258_v45  ;;  %v12050_v28 = vcombine.low %v8539_v0, %v8546_v50 }
0x12f5   : > { %v13318_v12 = vpop.trf.xlu0  ;;  %v20238_v19 = vpop.trf.xlu1  ;;  %17044 = vmatprep.subr.mxu0 %v20714_v44  ;;  %17055 = vmatprep.subr.mxu1 %v20714_v44  ;;  %v16106_v26 = vcombine.high %v8555_v60, %v8562_v29  ;;  %v12065_v59 = vrot.slane %v16105_v15, %v18258_v45 }
0x12f6   : > { %v14042_v2 = vcombine.low %v20245_v3, %v20250_v61 }
0x12f7   : > { %v12081_v25 = vrot.slane %v16106_v26, %v18258_v45 }
0x12f8   : > { %v11818_v30 = vpop.f32.mrf.mxu0  ;;  %v11891_v38 = vpop.f32.mrf.mxu1  ;;  %v14050_v14 = vrot.slane %v14042_v2, %v18261_v51  ;;  %v14179_v2 = vcombine.high %v20196_v62, %v20193_v52 }
0x12f9   : > { %v12041_v4 = vadd.f32 %v11891_v38, %v11818_v30  ;;  %v13382_v39 = vpop.trf.xlu0  ;;  %v13030_v40 = vpop.trf.xlu1  ;;  %v12057_v38 = vrot.slane %v12050_v28, %v18258_v45 }
0x12fa   : > { %v17006_v41 = vpop.f32.mrf.mxu0  ;;  %v14026_v9 = vcombine.low %v13318_v12, %v13382_v39  ;;  %v17017_v49 = vpop.f32.mrf.mxu1  ;;  %v13950_v30 = vcombine.low %v20238_v19, %v13030_v40  ;;  %v14195_v19 = vcombine.high %v20204_v42, %v20201_v18  ;;  %v14111_v18 = vcombine.high %v20213_v5, %v20216_v6 }
0x12fb   : > { %v12082_v37 = vcombine.low %v12057_v38, %v12065_v59  ;;  %v14193_v62 = vrot.slane %v14179_v2, %v18261_v51 }
0x12fc   : > { %v20258_v27 = vrot.slane %v14026_v9, %v18258_v45  ;;  %v13957_v9 = vrot.slane %v13950_v30, %v18258_v45  ;;  %v14209_v60 = vrot.slane %v14195_v19, %v18261_v51 }
0x12fd   : > { %v12934_v63 = vpop.trf.xlu0  ;;  %v13094_v34 = vpop.trf.xlu1  ;;  %v12090_v0 = vrot.slane %v12082_v37, %v18261_v51 }
0x12fe   : > { %v14058_v7 = vcombine.low %v20258_v27, %v20255_v10  ;;  %v14059_v52 = vcombine.high %v20258_v27, %v20255_v10 }
0x1300   : > { %v14066_v56 = vrot.slane %v14058_v7, %v18261_v51  ;;  %v14073_v10 = vrot.slane %v14059_v52, %v18261_v51 }
0x1301   : > { %v11964_v48 = vpop.f32.mrf.mxu0  ;;  %v12998_v36 = vpop.trf.xlu0 }
0x1302   : > { %v12042_v20 = vadd.f32 %v12041_v4, %v11964_v48  ;;  %v12037_v46 = vpop.f32.mrf.mxu1  ;;  %v14074_v11 = vcombine.low %v14050_v14, %v14066_v56  ;;  %v14075_v53 = vcombine.high %v14050_v14, %v14066_v56  ;;  %v13942_v43 = vcombine.low %v12934_v63, %v12998_v36  ;;  %v13158_v55 = vpop.trf.xlu1 }
0x1303   : > { %v17028_v1 = vpop.f32.mrf.mxu0  ;;  %v12073_v4 = vrot.slane %v12066_v24, %v18258_v45  ;;  %v13966_v39 = vcombine.low %v13094_v34, %v13158_v55  ;;  %v14127_v63 = vcombine.high %v20224_v8, %v20221_v23  ;;  %v12083_v34 = vcombine.high %v12057_v38, %v12065_v59  ;;  %v16104_v38 = vld [vmem:[#allocation8 + $0x1] ss:$0 sm:$0xff] }
0x1304   : > { %v20268_v12 = vadd.f32 %v12042_v20, %v12037_v46  ;;  %v17039_v33 = vpop.f32.mrf.mxu1  ;;  %17045 = vmatpush3.msra.mxu0 %v14074_v11  ;;  %17056 = vmatpush3.msra.mxu1 %v14075_v53  ;;  %v13949_v57 = vrot.slane %v13942_v43, %v18258_v45  ;;  %v14043_v56 = vcombine.high %v20245_v3, %v20250_v61 }
0x1305   : > { %v13062_v32 = vpop.trf.xlu0  ;;  %17046 = vmatprep.subr.mxu0 %v20714_v44  ;;  %17057 = vmatprep.subr.mxu1 %v20714_v44  ;;  %v12098_v54 = vcombine.low %v12073_v4, %v12081_v25  ;;  %v13973_v13 = vrot.slane %v13966_v39, %v18258_v45  ;;  %v14141_v23 = vrot.slane %v14127_v63, %v18261_v51 }
0x1306   : > { %v13974_v40 = vcombine.low %v13949_v57, %v13957_v9  ;;  %v12099_v6 = vcombine.high %v12073_v4, %v12081_v25  ;;  %v14125_v20 = vrot.slane %v14111_v18, %v18261_v51  ;;  %v14212_v46 = vcombine.low %v14193_v62, %v14209_v60 }
0x1307   : > { %v12106_v50 = vrot.slane %v12098_v54, %v18261_v51  ;;  %v13975_v27 = vcombine.high %v13949_v57, %v13957_v9  ;;  %v14213_v11 = vcombine.high %v14193_v62, %v14209_v60  ;;  %v14057_v61 = vrot.slane %v14043_v56, %v18261_v51 }
0x1308   : > { %v13982_v42 = vrot.slane %v13974_v40, %v18261_v51  ;;  %v14144_v3 = vcombine.low %v14125_v20, %v14141_v23  ;;  %v14145_v28 = vcombine.high %v14125_v20, %v14141_v23  ;;  %v12097_v15 = vrot.slane %v12083_v34, %v18261_v51 }
0x1309   : > { %v13126_v41 = vpop.trf.xlu0  ;;  %v12114_v36 = vcombine.low %v12090_v0, %v12106_v50  ;;  %v12115_v5 = vcombine.high %v12090_v0, %v12106_v50  ;;  %v12113_v24 = vrot.slane %v12099_v6, %v18261_v51  ;;  %v13989_v26 = vrot.slane %v13975_v27, %v18261_v51 }
0x130a   : > { %v13958_v49 = vcombine.low %v13062_v32, %v13126_v41  ;;  %v14076_v1 = vcombine.low %v14057_v61, %v14073_v10  ;;  %v14077_v43 = vcombine.high %v14057_v61, %v14073_v10 }
0x130b   : > { %v12116_v55 = vcombine.low %v12097_v15, %v12113_v24  ;;  %v12117_v30 = vcombine.high %v12097_v15, %v12113_v24 }
0x130c   : > { %v13965_v47 = vrot.slane %v13958_v49, %v18258_v45 }
0x130e   : > { %v13990_v7 = vcombine.low %v13965_v47, %v13973_v13  ;;  %v13991_v48 = vcombine.high %v13965_v47, %v13973_v13 }
0x1310   : > { %v13998_v29 = vrot.slane %v13990_v7, %v18261_v51  ;;  %v14005_v53 = vrot.slane %v13991_v48, %v18261_v51 }
0x1312   : > { %v14006_v8 = vcombine.low %v13982_v42, %v13998_v29  ;;  %v14007_v14 = vcombine.high %v13982_v42, %v13998_v29  ;;  %v14008_v33 = vcombine.low %v13989_v26, %v14005_v53  ;;  %v14009_v32 = vcombine.high %v13989_v26, %v14005_v53 }
0x1314   : > { %17047 = vmatpush3.msra.mxu0 %v14006_v8  ;;  %17058 = vmatpush3.msra.mxu1 %v14007_v14 }
0x1315   : > { %17049 = vmatmul.mubr.msk.f32.vlgmr.msra.gmra.mxu0 %vm3904_vm1, %v12114_v36  ;;  %17060 = vmatmul.mubr.msk.f32.vlgmr.msra.gmra.mxu1 %vm3904_vm1, %v12115_v5 }
0x1316   : > { %17062 = vmatprep.subr.mxu0 %v20714_v44  ;;  %17073 = vmatprep.subr.mxu1 %v20714_v44 }
0x1317   : > { %17063 = vmatpush3.msra.mxu0 %v14212_v46  ;;  %17074 = vmatpush3.msra.mxu1 %v14213_v11 }
0x1318   : > { %17064 = vmatprep.subr.mxu0 %v20714_v44  ;;  %17075 = vmatprep.subr.mxu1 %v20714_v44 }
0x1319   : > { %17065 = vmatpush3.msra.mxu0 %v14144_v3  ;;  %17076 = vmatpush3.msra.mxu1 %v14145_v28  ;;  %v17390_v3 = vld [vmem:[%s18144_s23] sm:$0xf] }
0x131a   : > { %17066 = vmatprep.subr.mxu0 %v20714_v44  ;;  %17077 = vmatprep.subr.mxu1 %v20714_v44  ;;  %v20355_v61 = vrot.slane %v17390_v3, %v19193_v16 }
0x131b   : > { %17067 = vmatpush3.msra.mxu0 %v14076_v1  ;;  %17078 = vmatpush3.msra.mxu1 %v14077_v43 }
0x131c   : > { %17068 = vmatprep.subr.mxu0 %v20714_v44  ;;  %17079 = vmatprep.subr.mxu1 %v20714_v44  ;;  %v15213_v28 = vadd.f32 %v20355_v61, %v20268_v12 }
0x131d   : > { %17069 = vmatpush3.msra.mxu0 %v14008_v33  ;;  %17070 = vmatprep.mubr.msk.f32.mxu0 %vm17795_vm0, %v20714_v44 }
0x131e   : > { %17080 = vmatpush3.msra.mxu1 %v14009_v32  ;;  %17081 = vmatprep.mubr.msk.f32.mxu1 %vm17795_vm0, %v20714_v44  ;;  %v20362_v15 = vadd.f32 %v15213_v28, %v19205_v21 }
0x131f   : > { %17071 = vmatmul.mubr.msk.f32.vlgmr.msra.gmra.mxu0 %vm3904_vm1, %v12116_v55  ;;  %17082 = vmatmul.mubr.msk.f32.vlgmr.msra.gmra.mxu1 %vm3904_vm1, %v12117_v30 }
0x1320   : > { %17084 = vmatprep.subr.mxu0 %v20714_v44  ;;  %17089 = vmatprep.subr.mxu1 %v20714_v44 }
0x1321   : > { %17086 = vmatprep.mubr.msk.f32.mxu0 %vm17795_vm0, %v20714_v44  ;;  %17091 = vmatprep.mubr.msk.f32.mxu1 %vm17795_vm0, %v20714_v44 }
0x13d5   : > { %v14283_v59 = vpop.f32.mrf.mxu0  ;;  %v14356_v4 = vpop.f32.mrf.mxu1 }
0x13d6   : > { %v14284_v25 = vadd.f32 %v16104_v38, %v14283_v59  ;;  %v14357_v57 = vadd.f32 %v16104_v38, %v14356_v4 }
0x13d7   : > { %v17050_v39 = vpop.f32.mrf.mxu0  ;;  %v17061_v41 = vpop.f32.mrf.mxu1 }
0x13d8   : > { %v14506_v9 = vmul.f32 0.17677669, %v14284_v25  ;;  %v14507_v49 = vmul.f32 0.17677669, %v14357_v57 }
0x13da   : > { %v14510_v37 = vsel %vm4201_vm2, %v14506_v9, -inf  ;;  %v14513_v54 = vsel %vm4201_vm2, %v14507_v49, -inf }
0x13db   : > { %14511 = vmax.xlane.f32.xlu0 %v14510_v37  ;;  %14514 = vmax.xlane.f32.xlu1 %v14513_v54 }
0x13df   : > { %v14429_v19 = vpop.f32.mrf.mxu0  ;;  %v14502_v40 = vpop.f32.mrf.mxu1 }
0x13e0   : > { %v14430_v13 = vadd.f32 %v16104_v38, %v14429_v19  ;;  %v14503_v47 = vadd.f32 %v16104_v38, %v14502_v40 }
0x13e1   : > { %v17072_v2 = vpop.f32.mrf.mxu0  ;;  %v17083_v63 = vpop.f32.mrf.mxu1 }
0x13e2   : > { %v14508_v7 = vmul.f32 0.17677669, %v14430_v13  ;;  %v14509_v0 = vmul.f32 0.17677669, %v14503_v47 }
0x13e4   : > { %v14516_v50 = vsel %vm4201_vm2, %v14508_v7, -inf  ;;  %v14519_v60 = vsel %vm4201_vm2, %v14509_v0, -inf }
0x13e5   : > { %14517 = vmax.xlane.f32.xlu1 %v14516_v50 }
0x13e9   : > { %14520 = vmax.xlane.f32.xlu1 %v14519_v60 }
0x13fa   : > { %8727 = vrot.lane.b32.xlu1 %v19786_v17, %s17790_s17 }
0x1464   : > { %v14512_v18 = vpop.xlane.xlu0 %14511  ;;  %v14515_v42 = vpop.xlane.xlu1 %14514 }
0x1465   : > { %v14522_v29 = vsub.f32 %v14506_v9, %v14512_v18  ;;  %v14523_v34 = vsub.f32 %v14507_v49, %v14515_v42 }
0x1467   : > { %v14526_v52 = vmul.f32 1.442695, %v14522_v29  ;;  %v14528_v62 = vmul.f32 1.442695, %v14523_v34 }
0x1469   : > { %17347 = vpow2.f32 %v14526_v52 }
0x146a   : > { %17349 = vpow2.f32 %v14528_v62 }
0x146e   : > { %v14518_v23 = vpop.xlane.xlu1 %14517 }
0x146f   : > { %v14524_v8 = vsub.f32 %v14508_v7, %v14518_v23 }
0x1471   : > { %v14530_v14 = vmul.f32 1.442695, %v14524_v8 }
0x1472   : > { %v14521_v46 = vpop.xlane.xlu1 %14520 }
0x1473   : > { %17351 = vpow2.f32 %v14530_v14  ;;  %v14525_v10 = vsub.f32 %v14509_v0, %v14521_v46 }
0x1475   : > { %v14532_v27 = vmul.f32 1.442695, %v14525_v10 }
0x1476   : > { %v20335_v56 = vpop.eup %17347  ;;  %v8728_v24 = vpop.permute.xlu1 %8727 }
0x1477   : > { %v20337_v48 = vpop.eup %17349  ;;  %v14534_v36 = vsel %vm4201_vm2, %v20335_v56, 0.0  ;;  %17353 = vpow2.f32 %v14532_v27  ;;  %v17394_v27 = vld [vmem:[%s18142_s18 + $0x180] sm:$0xff] }
0x1478   : > { %14535 = vadd.xlane.f32.xlu0 %v14534_v36  ;;  %v14537_v5 = vsel %vm4201_vm2, %v20337_v48, 0.0 }
0x1479   : > { %14538 = vadd.xlane.f32.xlu1 %v14537_v5 }
0x1480   : > { %v20343_v6 = vpop.eup %17351 }
0x1481   : > { %v14540_v20 = vsel %vm4201_vm2, %v20343_v6, 0.0 }
0x1482   : > { %14541 = vadd.xlane.f32.xlu0 %v14540_v20 }
0x1484   : > { %v20351_v11 = vpop.eup %17353 }
0x1485   : > { %v14543_v53 = vsel %vm4201_vm2, %v20351_v11, 0.0 }
0x148a   : > { %8739 = vrot.lane.b32.xlu1 %v19786_v17, %s17792_s6 }
0x1498   : > { %8733 = vrot.lane.b32.xlu0 %v19786_v17, %s17789_s16 }
0x14ae   : > { %14544 = vadd.xlane.f32.xlu1 %v14543_v53 }
0x14b7   : > { %15217 = vadd.xlane.f32.xlu0 %v20362_v15 }
0x1501   : > { %v14536_v1 = vpop.xlane.xlu0 %14535 }
0x1502   : > { %v14539_v26 = vpop.xlane.xlu1 %14538  ;;  %17355 = vrcp.f32 %v14536_v1 }
0x1503   : > { %17357 = vrcp.f32 %v14539_v26 }
0x1506   : > { %v8740_v43 = vpop.permute.xlu1 %8739 }
0x1507   : > { %v8827_v32 = vcombine.low %v8728_v24, %v8740_v43  ;;  %v8828_v55 = vcombine.high %v8728_v24, %v8740_v43 }
0x1509   : > { %v8835_v12 = vrot.slane %v8827_v32, %v18258_v45  ;;  %v8842_v21 = vrot.slane %v8828_v55, %v18258_v45  ;;  %v17396_v32 = vld [vmem:[%s18142_s18 + $0x1b0] sm:$0xff]  ;;  %v17397_v55 = vld [vmem:[%s18142_s18 + $0x1a8] sm:$0xff] }
0x150b   : > { %v14542_v33 = vpop.xlane.xlu0 %14541 }
0x150c   : > { %17359 = vrcp.f32 %v14542_v33  ;;  %v17395_v33 = vld [vmem:[%s18142_s18 + $0x1b8] sm:$0xff] }
0x150f   : > { %v8734_v30 = vpop.permute.xlu0 %8733  ;;  %v17356_v29 = vpop.eup %17355 }
0x1510   : > { %v8811_v38 = vcombine.low %v19786_v17, %v8734_v30  ;;  %v8812_v59 = vcombine.high %v19786_v17, %v8734_v30  ;;  %v17358_v34 = vpop.eup %17357  ;;  %v14550_v5 = vmul.f32 %v17356_v29, %v20335_v56  ;;  %v17391_v56 = vld [vmem:[%s18142_s18 + $0x198] sm:$0xff]  ;;  %v15295_v29 = vld [vmem:[%s18146_s22 + $0x160] sm:$0xff] }
0x1512   : > { %v8819_v4 = vrot.slane %v8811_v38, %v18258_v45  ;;  %v8826_v25 = vrot.slane %v8812_v59, %v18258_v45  ;;  %v17399_v59 = vld [vmem:[%s18142_s18 + $0x1d8] sm:$0xff] }
0x1514   : > { %v8843_v57 = vcombine.low %v8819_v4, %v8835_v12  ;;  %v8844_v39 = vcombine.high %v8819_v4, %v8835_v12  ;;  %v8859_v41 = vcombine.low %v8826_v25, %v8842_v21  ;;  %v8860_v9 = vcombine.high %v8826_v25, %v8842_v21  ;;  %v17400_v4 = vld [vmem:[%s18142_s18 + $0x1f8] sm:$0xff] }
0x1516   : > { %v8851_v49 = vrot.slane %v8843_v57, %v18261_v51  ;;  %v8858_v37 = vrot.slane %v8844_v39, %v18261_v51  ;;  %v8867_v17 = vrot.slane %v8859_v41, %v18261_v51  ;;  %v8874_v54 = vrot.slane %v8860_v9, %v18261_v51  ;;  %v17401_v57 = vld [vmem:[%s18142_s18 + $0x1d0] sm:$0xff]  ;;  %v17403_v9 = vld [vmem:[%s18142_s18 + $0x1c8] sm:$0xff] }
0x1517   : > { %v17402_v41 = vld [vmem:[%s18142_s18 + $0x1f0] sm:$0xff] }
0x1518   : > { %v14554_v19 = vcombine.low %v8851_v49, %v8858_v37  ;;  %v16111_v40 = vcombine.high %v8851_v49, %v8858_v37  ;;  %v14570_v13 = vcombine.low %v8867_v17, %v8874_v54  ;;  %v16112_v47 = vcombine.high %v8867_v17, %v8874_v54  ;;  %v15312_v37 = vld [vmem:[%s18146_s22 + $0x1e8] sm:$0xff]  ;;  %v15311_v54 = vld [vmem:[%s18146_s22 + $0x1e0] sm:$0xff] }
0x1519   : > { %v17360_v20 = vpop.eup %17359 }
0x151a   : > { %v14561_v2 = vrot.slane %v14554_v19, %v18258_v45  ;;  %v14569_v63 = vrot.slane %v16111_v40, %v18258_v45  ;;  %v14577_v7 = vrot.slane %v14570_v13, %v18258_v45  ;;  %v14585_v0 = vrot.slane %v16112_v47, %v18258_v45  ;;  %v17404_v19 = vld [vmem:[%s18142_s18 + $0x1e8] sm:$0xff]  ;;  %v17405_v40 = vld [vmem:[%s18142_s18 + $0x1c0] sm:$0xff]  ;;  %v15308_v13 = vld [vmem:[%s18146_s22 + $0x1c8] sm:$0xff] }
0x151b   : > { %v14551_v45 = vmul.f32 %v17358_v34, %v20337_v48  ;;  %v17392_v48 = vld [vmem:[%s18142_s18 + $0x190] sm:$0xff]  ;;  %v15307_v47 = vld [vmem:[%s18146_s22 + $0x1c0] sm:$0xff] }
0x151c   : > { %v14586_v50 = vcombine.low %v14561_v2, %v14569_v63  ;;  %v14602_v60 = vcombine.low %v14577_v7, %v14585_v0  ;;  %v14587_v18 = vcombine.high %v14561_v2, %v14569_v63  ;;  %v14603_v42 = vcombine.high %v14577_v7, %v14585_v0  ;;  %v15314_v2 = vld [vmem:[%s18146_s22 + $0x1f8] sm:$0xff]  ;;  %v15304_v63 = vld [vmem:[%s18146_s22 + $0x1a8] sm:$0xff] }
0x151d   : > { %v17406_v7 = vld [vmem:[%s18142_s18 + $0x1e0] sm:$0xff]  ;;  %v15292_v34 = vld [vmem:[%s18146_s22 + $0x148] sm:$0xff] }
0x151e   : > { %v14594_v52 = vrot.slane %v14586_v50, %v18261_v51  ;;  %v14610_v62 = vrot.slane %v14602_v60, %v18261_v51  ;;  %v14601_v23 = vrot.slane %v14587_v18, %v18261_v51  ;;  %v14617_v8 = vrot.slane %v14603_v42, %v18261_v51  ;;  %v15303_v50 = vld [vmem:[%s18146_s22 + $0x1a0] sm:$0xff]  ;;  %v15300_v60 = vld [vmem:[%s18146_s22 + $0x188] sm:$0xff] }
0x151f   : > { %v14552_v51 = vmul.f32 %v17360_v20, %v20343_v6  ;;  %v17393_v6 = vld [vmem:[%s18142_s18 + $0x188] sm:$0xff]  ;;  %v15296_v42 = vld [vmem:[%s18146_s22 + $0x168] sm:$0xff] }
0x1520   : > { %v14618_v14 = vcombine.low %v14594_v52, %v14610_v62  ;;  %v14619_v36 = vcombine.high %v14594_v52, %v14610_v62  ;;  %v14620_v46 = vcombine.low %v14601_v23, %v14617_v8  ;;  %v14621_v10 = vcombine.high %v14601_v23, %v14617_v8  ;;  %v15299_v18 = vld [vmem:[%s18146_s22 + $0x180] sm:$0xff]  ;;  %v15288_v62 = vld [vmem:[%s18146_s22 + $0x128] sm:$0xff] }
0x1521   : > { %v15291_v52 = vld [vmem:[%s18146_s22 + $0x140] sm:$0xff]  ;;  %v15284_v8 = vld [vmem:[%s18146_s22 + $0x108] sm:$0xff] }
0x1522   : > { %17085 = vmatpush3.msra.mxu0 %v14618_v14  ;;  %17090 = vmatpush3.msra.mxu1 %v14619_v36  ;;  %v15287_v23 = vld [vmem:[%s18146_s22 + $0x120] sm:$0xff]  ;;  %v15280_v36 = vld [vmem:[%s18146_s22 + $0xe8] sm:$0xff] }
0x1523   : > { %17087 = vmatmul.mubr.msk.f32.vlgmr.msra.gmra.mxu0 %vm4201_vm2, %v14550_v5  ;;  %17092 = vmatmul.mubr.msk.f32.vlgmr.msra.gmra.mxu1 %vm4201_vm2, %v14551_v45  ;;  %v15283_v14 = vld [vmem:[%s18146_s22 + $0x100] sm:$0xff]  ;;  %v15276_v45 = vld [vmem:[%s18146_s22 + $0xc8] sm:$0xff] }
0x1524   : > { %17094 = vmatprep.subr.mxu0 %v20714_v44  ;;  %17099 = vmatprep.subr.mxu1 %v20714_v44  ;;  %v15279_v5 = vld [vmem:[%s18146_s22 + $0xe0] sm:$0xff] }
0x1525   : > { %17095 = vmatpush3.msra.mxu0 %v14620_v46  ;;  %17100 = vmatpush3.msra.mxu1 %v14621_v10  ;;  %v15275_v20 = vld [vmem:[%s18146_s22 + $0xc0] sm:$0xff]  ;;  %v15272_v46 = vld [vmem:[%s18146_s22 + $0xa8] sm:$0xff] }
0x1526   : > { %17096 = vmatprep.mubr.msk.f32.mxu0 %vm17795_vm0, %v20714_v44  ;;  %17101 = vmatprep.mubr.msk.f32.mxu1 %vm17795_vm0, %v20714_v44  ;;  %v15271_v10 = vld [vmem:[%s18146_s22 + $0xa0] sm:$0xff] }
0x1527   : > { %17097 = vmatmul.mubr.msk.f32.vlgmr.msra.gmra.mxu0 %vm4201_vm2, %v14552_v51  ;;  %17104 = vmatprep.subr.mxu0 %v20714_v44 }
0x1528   : > { %17105 = vmatpush3.msra.mxu0 %v17391_v56  ;;  %17115 = vmatprep.subr.mxu1 %v20714_v44  ;;  %v15268_v56 = vld [vmem:[%s18146_s22 + $0x88] sm:$0xff] }
0x1529   : > { %17106 = vmatprep.subr.mxu0 %v20714_v44  ;;  %17112 = vmatprep.mubr.msk.f32.mxu0 %vm17795_vm0, %v20714_v44 }
0x152a   : > { %17107 = vmatpush3.msra.mxu0 %v17392_v48  ;;  %v15267_v48 = vld [vmem:[%s18146_s22 + $0x80] sm:$0xff] }
0x152b   : > { %17108 = vmatprep.subr.mxu0 %v20714_v44 }
0x152c   : > { %17109 = vmatpush3.msra.mxu0 %v17393_v6  ;;  %v15264_v6 = vld [vmem:[%s18146_s22 + $0x68] sm:$0xff] }
0x152d   : > { %17110 = vmatprep.subr.mxu0 %v20714_v44 }
0x152e   : > { %17111 = vmatpush3.msra.mxu0 %v17394_v27  ;;  %v15263_v27 = vld [vmem:[%s18146_s22 + $0x60] sm:$0xff] }
0x152f   : > { %17126 = vmatprep.subr.mxu0 %v20714_v44 }
0x1537   : > { %v14545_v3 = vpop.xlane.xlu1 %14544 }
0x1538   : > { %17361 = vrcp.f32 %v14545_v3 }
0x1540   : > { %v15218_v53 = vpop.xlane.xlu0 %15217 }
0x1541   : > { %v15221_v28 = vmul.f32 0.0078125, %v15218_v53  ;;  %v17407_v53 = vld [vmem:[%s18134_s28] sm:$0x7] }
0x1543   : > { %v20408_v24 = vsub.f32 %v20362_v15, %v15221_v28  ;;  %v20476_v28 = vrot.slane %v17407_v53, %v18249_v35 }
0x1545   : > { %v17362_v26 = vpop.eup %17361  ;;  %v15225_v1 = vmul.f32 %v20408_v24, %v20408_v24 }
0x1546   : > { %v14553_v43 = vmul.f32 %v17362_v26, %v20351_v11  ;;  %v17398_v11 = vld [vmem:[%s18142_s18 + $0x1a0] sm:$0xff]  ;;  %v15260_v26 = vld [vmem:[%s18146_s22 + $0x48] sm:$0xff] }
0x1547   : > { %15227 = vadd.xlane.f32.xlu1 %v15225_v1  ;;  %v15259_v1 = vld [vmem:[%s18146_s22 + $0x40] sm:$0xff] }
0x1548   : > { %17102 = vmatmul.mubr.msk.f32.vlgmr.msra.gmra.mxu1 %vm4201_vm2, %v14553_v43  ;;  %v15256_v43 = vld [vmem:[%s18146_s22 + $0x28] sm:$0xff] }
0x1549   : > { %17116 = vmatpush3.msra.mxu1 %v17395_v33  ;;  %17123 = vmatprep.mubr.msk.f32.mxu1 %vm17795_vm0, %v20714_v44  ;;  %v15255_v33 = vld [vmem:[%s18146_s22 + $0x20] sm:$0xff] }
0x154a   : > { %17117 = vmatprep.subr.mxu1 %v20714_v44 }
0x154b   : > { %17118 = vmatpush3.msra.mxu1 %v17396_v32 }
0x154c   : > { %17119 = vmatprep.subr.mxu1 %v20714_v44 }
0x154d   : > { %17120 = vmatpush3.msra.mxu1 %v17397_v55  ;;  %v17408_v55 = vld [vmem:[%s18140_s11] sm:$0x7] }
0x154e   : > { %17121 = vmatprep.subr.mxu1 %v20714_v44 }
0x154f   : > { %17122 = vmatpush3.msra.mxu1 %v17398_v11  ;;  %v15252_v11 = vld [vmem:[%s18146_s22 + $0x8] sm:$0xff] }
0x1550   : > { %17137 = vmatprep.subr.mxu1 %v20714_v44 }
0x15d0   : > { %v15228_v25 = vpop.xlane.xlu1 %15227 }
0x15d1   : > { %v15231_v17 = vmul.f32 0.0078125, %v15228_v25 }
0x15d3   : > { %v15233_v0 = vadd.f32 1e-05, %v15231_v17  ;;  %v15294_v17 = vld [vmem:[%s18146_s22 + $0x158] sm:$0xff] }
0x15d5   : > { %17363 = vrsqrt.f32 %v15233_v0  ;;  %v15277_v0 = vld [vmem:[%s18146_s22 + $0xd0] sm:$0xff] }
0x15e2   : > { %v17364_v51 = vpop.eup %17363 }
0x15e3   : > { %v14691_v30 = vpop.f32.mrf.mxu0  ;;  %v14764_v38 = vpop.f32.mrf.mxu1  ;;  %v15237_v3 = vmul.f32 %v17364_v51, %v20408_v24  ;;  %v20485_v24 = vrot.slane %v17408_v55, %v18249_v35  ;;  %v15561_v55 = vld [vmem:[%s18148_s26 + $0x1f0] sm:$0xff] }
0x15e4   : > { %17113 = vmatmul.mubr.msk.f32.vlgmr.msra.gmra.mxu0 %vm3904_vm1, %v14691_v30  ;;  %17124 = vmatmul.mubr.msk.f32.vlgmr.msra.gmra.mxu1 %vm3904_vm1, %v14764_v38  ;;  %v15313_v30 = vld [vmem:[%s18146_s22 + $0x1f0] sm:$0xff] }
0x15e5   : > { %17127 = vmatpush3.msra.mxu0 %v17399_v59  ;;  %v17088_v12 = vpop.f32.mrf.mxu0  ;;  %v17093_v21 = vpop.f32.mrf.mxu1  ;;  %17134 = vmatprep.mubr.msk.f32.mxu0 %vm17795_vm0, %v20714_v44  ;;  %v15243_v32 = vmul.f32 %v20476_v28, %v15237_v3  ;;  %v15251_v59 = vld [vmem:[%s18146_s22] sm:$0xff] }
0x15e6   : > { %17128 = vmatprep.subr.mxu0 %v20714_v44  ;;  %17138 = vmatpush3.msra.mxu1 %v17400_v4  ;;  %v15310_v12 = vld [vmem:[%s18146_s22 + $0x1d8] sm:$0xff]  ;;  %v15309_v21 = vld [vmem:[%s18146_s22 + $0x1d0] sm:$0xff] }
0x15e7   : > { %17129 = vmatpush3.msra.mxu0 %v17401_v57  ;;  %v14837_v39 = vpop.f32.mrf.mxu0  ;;  %17139 = vmatprep.subr.mxu1 %v20714_v44  ;;  %v15249_v25 = vadd.f32 %v20485_v24, %v15243_v32  ;;  %v15306_v57 = vld [vmem:[%s18146_s22 + $0x1b8] sm:$0xff]  ;;  %v15529_v32 = vld [vmem:[%s18148_s26 + $0xf0] sm:$0xff] }
0x15e8   : > { %17130 = vmatprep.subr.mxu0 %v20714_v44  ;;  %17140 = vmatpush3.msra.mxu1 %v17402_v41  ;;  %v15302_v41 = vld [vmem:[%s18146_s22 + $0x198] sm:$0xff] }
0x15e9   : > { %17131 = vmatpush3.msra.mxu0 %v17403_v9  ;;  %v17098_v49 = vpop.f32.mrf.mxu0  ;;  %17141 = vmatprep.subr.mxu1 %v20714_v44  ;;  %v15301_v9 = vld [vmem:[%s18146_s22 + $0x190] sm:$0xff] }
0x15ea   : > { %17132 = vmatprep.subr.mxu0 %v20714_v44  ;;  %17142 = vmatpush3.msra.mxu1 %v17404_v19  ;;  %v15298_v49 = vld [vmem:[%s18146_s22 + $0x178] sm:$0xff] }
0x15eb   : > { %17133 = vmatpush3.msra.mxu0 %v17405_v40  ;;  %17143 = vmatprep.subr.mxu1 %v20714_v44  ;;  %v15290_v19 = vld [vmem:[%s18146_s22 + $0x138] sm:$0xff]  ;;  %v15289_v40 = vld [vmem:[%s18146_s22 + $0x130] sm:$0xff] }
0x15ec   : > { %17135 = vmatmul.mubr.msk.f32.vlgmr.msra.gmra.mxu0 %vm3904_vm1, %v14837_v39  ;;  %15337 = vmatprep.subr.mxu0 %v15312_v37  ;;  %v15305_v39 = vld [vmem:[%s18146_s22 + $0x1b0] sm:$0xff] }
0x15ed   : > { %15338 = vmatpush1.msra.mxu0 %v15311_v54  ;;  %17144 = vmatpush3.msra.mxu1 %v17406_v7  ;;  %v15297_v37 = vld [vmem:[%s18146_s22 + $0x170] sm:$0xff]  ;;  %v15278_v7 = vld [vmem:[%s18146_s22 + $0xd8] sm:$0xff] }
0x15ee   : > { %15339 = vmatprep.subr.mxu0 %v15308_v13  ;;  %17145 = vmatprep.mubr.msk.f32.mxu1 %vm17795_vm0, %v20714_v44  ;;  %v15293_v54 = vld [vmem:[%s18146_s22 + $0x150] sm:$0xff]  ;;  %v15286_v13 = vld [vmem:[%s18146_s22 + $0x118] sm:$0xff] }
0x15ef   : > { %15340 = vmatpush1.msra.mxu0 %v15307_v47  ;;  %15414 = vmatprep.subr.mxu1 %v15314_v2  ;;  %v15285_v47 = vld [vmem:[%s18146_s22 + $0x110] sm:$0xff]  ;;  %v15282_v2 = vld [vmem:[%s18146_s22 + $0xf8] sm:$0xff] }
0x15f0   : > { %15341 = vmatprep.subr.mxu0 %v15304_v63  ;;  %15401 = vmatprep.mubr.f32.mxu0 %v20714_v44  ;;  %v15281_v63 = vld [vmem:[%s18146_s22 + $0xf0] sm:$0xff] }
0x15f1   : > { %15342 = vmatpush1.msra.mxu0 %v15303_v50  ;;  %v15274_v50 = vld [vmem:[%s18146_s22 + $0xb8] sm:$0xff] }
0x15f2   : > { %15343 = vmatprep.subr.mxu0 %v15300_v60  ;;  %v15273_v60 = vld [vmem:[%s18146_s22 + $0xb0] sm:$0xff] }
0x15f3   : > { %15344 = vmatpush1.msra.mxu0 %v15299_v18  ;;  %v15270_v18 = vld [vmem:[%s18146_s22 + $0x98] sm:$0xff] }
0x15f4   : > { %15345 = vmatprep.subr.mxu0 %v15296_v42  ;;  %v15269_v42 = vld [vmem:[%s18146_s22 + $0x90] sm:$0xff] }
0x15f5   : > { %15346 = vmatpush1.msra.mxu0 %v15295_v29  ;;  %v15266_v29 = vld [vmem:[%s18146_s22 + $0x78] sm:$0xff] }
0x15f6   : > { %15347 = vmatprep.subr.mxu0 %v15292_v34  ;;  %v15265_v34 = vld [vmem:[%s18146_s22 + $0x70] sm:$0xff] }
0x15f7   : > { %15348 = vmatpush1.msra.mxu0 %v15291_v52  ;;  %v15262_v52 = vld [vmem:[%s18146_s22 + $0x58] sm:$0xff] }
0x15f8   : > { %15349 = vmatprep.subr.mxu0 %v15288_v62  ;;  %v15261_v62 = vld [vmem:[%s18146_s22 + $0x50] sm:$0xff] }
0x15f9   : > { %15350 = vmatpush1.msra.mxu0 %v15287_v23  ;;  %v15258_v23 = vld [vmem:[%s18146_s22 + $0x38] sm:$0xff] }
0x15fa   : > { %15351 = vmatprep.subr.mxu0 %v15284_v8  ;;  %v15257_v8 = vld [vmem:[%s18146_s22 + $0x30] sm:$0xff] }
0x15fb   : > { %15352 = vmatpush1.msra.mxu0 %v15283_v14  ;;  %v15254_v14 = vld [vmem:[%s18146_s22 + $0x18] sm:$0xff] }
0x15fc   : > { %15353 = vmatprep.subr.mxu0 %v15280_v36  ;;  %v15253_v36 = vld [vmem:[%s18146_s22 + $0x10] sm:$0xff] }
0x15fd   : > { %15354 = vmatpush1.msra.mxu0 %v15279_v5 }
0x15fe   : > { %15355 = vmatprep.subr.mxu0 %v15276_v45 }
0x15ff   : > { %15356 = vmatpush1.msra.mxu0 %v15275_v20 }
0x1600   : > { %15357 = vmatprep.subr.mxu0 %v15272_v46 }
0x1601   : > { %15358 = vmatpush1.msra.mxu0 %v15271_v10 }
0x1602   : > { %15359 = vmatprep.subr.mxu0 %v15268_v56 }
0x1603   : > { %15360 = vmatpush1.msra.mxu0 %v15267_v48 }
0x1604   : > { %15361 = vmatprep.subr.mxu0 %v15264_v6 }
0x1605   : > { %15362 = vmatpush1.msra.mxu0 %v15263_v27 }
0x1606   : > { %15363 = vmatprep.subr.mxu0 %v15260_v26  ;;  %v15530_v26 = vld [vmem:[%s18148_s26 + $0xf8] sm:$0xff] }
0x1607   : > { %15364 = vmatpush1.msra.mxu0 %v15259_v1  ;;  %v15562_v1 = vld [vmem:[%s18148_s26 + $0x1f8] sm:$0xff] }
0x1608   : > { %15365 = vmatprep.subr.mxu0 %v15256_v43  ;;  %v14910_v38 = vpop.f32.mrf.mxu1  ;;  %v15514_v43 = vld [vmem:[%s18148_s26 + $0x78] sm:$0xff] }
0x1609   : > { %15366 = vmatpush1.msra.mxu0 %v15255_v33  ;;  %17146 = vmatmul.mubr.msk.f32.vlgmr.msra.gmra.mxu1 %vm3904_vm1, %v14910_v38  ;;  %v15546_v33 = vld [vmem:[%s18148_s26 + $0x178] sm:$0xff] }
0x160a   : > { %15367 = vmatprep.subr.mxu0 %v15252_v11  ;;  %15415 = vmatpush1.msra.mxu1 %v15313_v30  ;;  %v17103_v4 = vpop.f32.mrf.mxu1  ;;  %v15513_v11 = vld [vmem:[%s18148_s26 + $0x70] sm:$0xff] }
0x160b   : > { %15368 = vmatpush1.msra.mxu0 %v15251_v59  ;;  %15416 = vmatprep.subr.mxu1 %v15310_v12  ;;  %v15528_v12 = vld [vmem:[%s18148_s26 + $0xe8] sm:$0xff] }
0x160c   : > { %15402 = vmatmul.mubr.f32.vlgmr.msra.gmra.mxu0 %v15249_v25  ;;  %15417 = vmatpush1.msra.mxu1 %v15309_v21  ;;  %v15560_v21 = vld [vmem:[%s18148_s26 + $0x1e8] sm:$0xff] }
0x160d   : > { %15418 = vmatprep.subr.mxu1 %v15306_v57  ;;  %15478 = vmatprep.mubr.f32.mxu1 %v20714_v44  ;;  %v15512_v4 = vld [vmem:[%s18148_s26 + $0x68] sm:$0xff]  ;;  %v15527_v57 = vld [vmem:[%s18148_s26 + $0xe0] sm:$0xff] }
0x160e   : > { %15419 = vmatpush1.msra.mxu1 %v15305_v39  ;;  %15407 = vmatprep.mubr.f32.mxu0 %v20714_v44  ;;  %v15559_v39 = vld [vmem:[%s18148_s26 + $0x1e0] sm:$0xff] }
0x160f   : > { %15420 = vmatprep.subr.mxu1 %v15302_v41  ;;  %16430 = vmatprep.subr.mxu0 %v15530_v26  ;;  %v15511_v41 = vld [vmem:[%s18148_s26 + $0x60] sm:$0xff]  ;;  %v15517_v26 = vld [vmem:[%s18148_s26 + $0x90] sm:$0xff] }
0x1610   : > { %15421 = vmatpush1.msra.mxu1 %v15301_v9  ;;  %16431 = vmatpush3.msra.mxu0 %v15514_v43  ;;  %v15543_v9 = vld [vmem:[%s18148_s26 + $0x160] sm:$0xff]  ;;  %v15501_v43 = vld [vmem:[%s18148_s26 + $0x10] sm:$0xff] }
0x1611   : > { %15422 = vmatprep.subr.mxu1 %v15298_v49  ;;  %16432 = vmatprep.subr.mxu0 %v15529_v32  ;;  %v15526_v49 = vld [vmem:[%s18148_s26 + $0xd8] sm:$0xff]  ;;  %v15516_v32 = vld [vmem:[%s18148_s26 + $0x88] sm:$0xff] }
0x1612   : > { %15423 = vmatpush1.msra.mxu1 %v15297_v37  ;;  %16433 = vmatpush3.msra.mxu0 %v15513_v11  ;;  %v15558_v37 = vld [vmem:[%s18148_s26 + $0x1d8] sm:$0xff]  ;;  %v15500_v11 = vld [vmem:[%s18148_s26 + $0x8] sm:$0xff] }
0x1613   : > { %15424 = vmatprep.subr.mxu1 %v15294_v17  ;;  %16434 = vmatprep.subr.mxu0 %v15528_v12  ;;  %v15510_v17 = vld [vmem:[%s18148_s26 + $0x58] sm:$0xff]  ;;  %v15531_v12 = vld [vmem:[%s18148_s26 + $0x100] sm:$0xff] }
0x1614   : > { %15425 = vmatpush1.msra.mxu1 %v15293_v54  ;;  %16435 = vmatpush3.msra.mxu0 %v15512_v4  ;;  %v15542_v54 = vld [vmem:[%s18148_s26 + $0x158] sm:$0xff] }
0x1615   : > { %15426 = vmatprep.subr.mxu1 %v15290_v19  ;;  %16436 = vmatprep.subr.mxu0 %v15527_v57  ;;  %v15525_v19 = vld [vmem:[%s18148_s26 + $0xd0] sm:$0xff] }
0x1616   : > { %15427 = vmatpush1.msra.mxu1 %v15289_v40  ;;  %16437 = vmatpush3.msra.mxu0 %v15511_v41  ;;  %v15557_v40 = vld [vmem:[%s18148_s26 + $0x1d0] sm:$0xff]  ;;  %v15315_v41 = vld [vmem:[%s894_s29] sm:$0xf]  ;;  %s15733_s29 = sshll.u32 %s17796_s15, 4  ;;  %s15734_s29 = int_to_ptr.vmem [resolvable:$true] %s15733_s29 }
0x1617   : > { %15428 = vmatprep.subr.mxu1 %v15286_v13  ;;  %16438 = vmatprep.subr.mxu0 %v15526_v49  ;;  %v15509_v13 = vld [vmem:[%s18148_s26 + $0x50] sm:$0xff]  ;;  %v15332_v49 = vrot.slane %v15315_v41, %v19193_v16  ;;  %s17681_s23 = scalar_lea.vmem %s15734_s29, 256  ;;  %p17688_p12 = scmp.lt.s32.totalorder %s15734_s29, %s15734_s29 }
0x1618   : > { %15429 = vmatpush1.msra.mxu1 %v15285_v47  ;;  %v15541_v47 = vld [vmem:[%s18148_s26 + $0x150] sm:$0xff]  ;;  %16439 = vmatpush3.msra.mxu0 %v15510_v17  ;;  %p17682_p0 = scmp.ne.s32.totalorder %s15734_s29, %s17681_s23  ;;  %p17689_p13 = scmp.lt.s32.totalorder %s17681_s23, %s17681_s23 }
0x1619   : > { %15430 = vmatprep.subr.mxu1 %v15282_v2  ;;  %v15524_v2 = vld [vmem:[%s18148_s26 + $0xc8] sm:$0xff]  ;;  %16440 = vmatprep.subr.mxu0 %v15525_v19  ;;  %v15320_v19 = vrot.slane %v15315_v41, %v18202_v58 }
0x161a   : > { %15431 = vmatpush1.msra.mxu1 %v15281_v63  ;;  %v15556_v63 = vld [vmem:[%s18148_s26 + $0x1c8] sm:$0xff]  ;;  %16441 = vmatpush3.msra.mxu0 %v15509_v13  ;;  %p17683_p1 = pnand %p17682_p0, %p17221_p8  ;;  %p17690_p2 = por %p17689_p13, %p17688_p12 }
0x161b   : > { %15432 = vmatprep.subr.mxu1 %v15278_v7  ;;  %v15508_v7 = vld [vmem:[%s18148_s26 + $0x48] sm:$0xff]  ;;  %16442 = vmatprep.subr.mxu0 %v15524_v2 }
0x161c   : > { %15433 = vmatpush1.msra.mxu1 %v15277_v0  ;;  %v15540_v0 = vld [vmem:[%s18148_s26 + $0x148] sm:$0xff]  ;;  %16443 = vmatpush3.msra.mxu0 %v15508_v7  ;;  %p17684_p10 = pneg %p17683_p1 }
0x161d   : > { %15434 = vmatprep.subr.mxu1 %v15274_v50  ;;  %v15523_v50 = vld [vmem:[%s18148_s26 + $0xc0] sm:$0xff] }
0x161e   : > { %15435 = vmatpush1.msra.mxu1 %v15273_v60  ;;  %v15555_v60 = vld [vmem:[%s18148_s26 + $0x1c0] sm:$0xff]  ;;  %16444 = vmatprep.subr.mxu0 %v15523_v50  ;;  %p17691_p5 = pnand %p17690_p2, %p17684_p10 }
0x161f   : > { %15436 = vmatprep.subr.mxu1 %v15270_v18  ;;  %v15507_v18 = vld [vmem:[%s18148_s26 + $0x40] sm:$0xff] }
0x1620   : > { %15437 = vmatpush1.msra.mxu1 %v15269_v42  ;;  %v15539_v42 = vld [vmem:[%s18148_s26 + $0x140] sm:$0xff]  ;;  %16445 = vmatpush3.msra.mxu0 %v15507_v18 }
0x1621   : > { %15438 = vmatprep.subr.mxu1 %v15266_v29  ;;  %v15522_v29 = vld [vmem:[%s18148_s26 + $0xb8] sm:$0xff] }
0x1622   : > { %15439 = vmatpush1.msra.mxu1 %v15265_v34  ;;  %v15554_v34 = vld [vmem:[%s18148_s26 + $0x1b8] sm:$0xff]  ;;  %16446 = vmatprep.subr.mxu0 %v15522_v29 }
0x1623   : > { %15440 = vmatprep.subr.mxu1 %v15262_v52  ;;  %v15506_v52 = vld [vmem:[%s18148_s26 + $0x38] sm:$0xff] }
0x1624   : > { %15441 = vmatpush1.msra.mxu1 %v15261_v62  ;;  %v15538_v62 = vld [vmem:[%s18148_s26 + $0x138] sm:$0xff]  ;;  %16447 = vmatpush3.msra.mxu0 %v15506_v52 }
0x1625   : > { %15442 = vmatprep.subr.mxu1 %v15258_v23  ;;  %v15521_v23 = vld [vmem:[%s18148_s26 + $0xb0] sm:$0xff] }
0x1626   : > { %15443 = vmatpush1.msra.mxu1 %v15257_v8  ;;  %v15553_v8 = vld [vmem:[%s18148_s26 + $0x1b0] sm:$0xff]  ;;  %16448 = vmatprep.subr.mxu0 %v15521_v23 }
0x1627   : > { %15444 = vmatprep.subr.mxu1 %v15254_v14  ;;  %v15505_v14 = vld [vmem:[%s18148_s26 + $0x30] sm:$0xff] }
0x1628   : > { %15445 = vmatpush1.msra.mxu1 %v15253_v36  ;;  %v15537_v36 = vld [vmem:[%s18148_s26 + $0x130] sm:$0xff]  ;;  %16449 = vmatpush3.msra.mxu0 %v15505_v14 }
0x1629   : > { %15479 = vmatmul.mubr.f32.vlgmr.msra.gmra.mxu1 %v15249_v25  ;;  %16468 = vmatprep.subr.mxu1 %v15562_v1  ;;  %v15544_v25 = vld [vmem:[%s18148_s26 + $0x168] sm:$0xff]  ;;  %v15549_v1 = vld [vmem:[%s18148_s26 + $0x190] sm:$0xff] }
0x162a   : > { %15484 = vmatprep.mubr.f32.mxu1 %v20714_v44  ;;  %16469 = vmatpush3.msra.mxu1 %v15546_v33  ;;  %v15533_v33 = vld [vmem:[%s18148_s26 + $0x110] sm:$0xff] }
0x162b   : > { %16470 = vmatprep.subr.mxu1 %v15561_v55  ;;  %v15548_v55 = vld [vmem:[%s18148_s26 + $0x188] sm:$0xff] }
0x16a4   : > { %v14983_v5 = vpop.f32.mrf.mxu0  ;;  %v15056_v45 = vpop.f32.mrf.mxu1 }
0x16a5   : > { %v15206_v56 = vadd.f32 %v15056_v45, %v14983_v5  ;;  %v15520_v5 = vld [vmem:[%s18148_s26 + $0xa8] sm:$0xff] }
0x16a6   : > { %v17114_v20 = vpop.f32.mrf.mxu0  ;;  %v17125_v46 = vpop.f32.mrf.mxu1  ;;  %v15552_v45 = vld [vmem:[%s18148_s26 + $0x1a8] sm:$0xff]  ;;  %16450 = vmatprep.subr.mxu0 %v15520_v5  ;;  %v16121_v5 = vld [vmem:[%s779_s24] ss:$0 sm:$0xff] }
0x16a7   : > { %v15504_v20 = vld [vmem:[%s18148_s26 + $0x28] sm:$0xff] }
0x16a8   : > { %v15536_v46 = vld [vmem:[%s18148_s26 + $0x128] sm:$0xff]  ;;  %16451 = vmatpush3.msra.mxu0 %v15504_v20 }
0x16ac   : > { %v15129_v10 = vpop.f32.mrf.mxu0 }
0x16ad   : > { %v15207_v48 = vadd.f32 %v15206_v56, %v15129_v10  ;;  %v15519_v10 = vld [vmem:[%s18148_s26 + $0xa0] sm:$0xff] }
0x16ae   : > { %v17136_v51 = vpop.f32.mrf.mxu0  ;;  %v15503_v56 = vld [vmem:[%s18148_s26 + $0x20] sm:$0xff]  ;;  %16452 = vmatprep.subr.mxu0 %v15519_v10 }
0x16af   : > { %v15551_v51 = vld [vmem:[%s18148_s26 + $0x1a0] sm:$0xff]  ;;  %16453 = vmatpush3.msra.mxu0 %v15503_v56 }
0x16c9   : > { %v15202_v6 = vpop.f32.mrf.mxu1 }
0x16ca   : > { %v15208_v27 = vadd.f32 %v15207_v48, %v15202_v6  ;;  %v15535_v48 = vld [vmem:[%s18148_s26 + $0x120] sm:$0xff]  ;;  %v15518_v6 = vld [vmem:[%s18148_s26 + $0x98] sm:$0xff] }
0x16cb   : > { %v17147_v3 = vpop.f32.mrf.mxu1  ;;  %16454 = vmatprep.subr.mxu0 %v15518_v6 }
0x16cc   : > { %v15214_v44 = vadd.f32 %v20355_v61, %v15208_v27  ;;  %v15545_v61 = vld [vmem:[%s18148_s26 + $0x170] sm:$0xff]  ;;  %v15550_v27 = vld [vmem:[%s18148_s26 + $0x198] sm:$0xff]  ;;  %v15403_v57 = vpop.f32.mrf.mxu0 }
0x16cd   : > { %16471 = vmatpush3.msra.mxu1 %v15545_v61  ;;  %v15502_v3 = vld [vmem:[%s18148_s26 + $0x18] sm:$0xff]  ;;  %v15532_v61 = vld [vmem:[%s18148_s26 + $0x108] sm:$0xff]  ;;  %v15404_v7 = vadd.f32 %v15403_v57, %v15320_v19 }
0x16ce   : > { %v20527_v53 = vadd.f32 %v15214_v44, %v19327_v31  ;;  %16472 = vmatprep.subr.mxu1 %v15560_v21  ;;  %v15534_v44 = vld [vmem:[%s18148_s26 + $0x118] sm:$0xff]  ;;  %16455 = vmatpush3.msra.mxu0 %v15502_v3 }
0x16cf   : > { %16473 = vmatpush3.msra.mxu1 %v15544_v25  ;;  %16456 = vmatprep.subr.mxu0 %v15517_v26  ;;  %v15491_v16 = vmax.f32 %v15404_v7, 0.0 }
0x16d0   : > { %15219 = vadd.xlane.f32.xlu0 %v20527_v53  ;;  %16474 = vmatprep.subr.mxu1 %v15559_v39 }
0x16d1   : > { %16475 = vmatpush3.msra.mxu1 %v15543_v9  ;;  %16457 = vmatpush3.msra.mxu0 %v15501_v43  ;;  %v15324_v9 = vrot.slane %v15315_v41, %v18226_v22 }
0x16d2   : > { %16476 = vmatprep.subr.mxu1 %v15558_v37  ;;  %16458 = vmatprep.subr.mxu0 %v15516_v32  ;;  %v15405_v37 = vpop.f32.mrf.mxu0 }
0x16d3   : > { %16477 = vmatpush3.msra.mxu1 %v15542_v54  ;;  %16459 = vmatpush3.msra.mxu0 %v15500_v11 }
0x16d4   : > { %16478 = vmatprep.subr.mxu1 %v15557_v40  ;;  %v15328_v40 = vrot.slane %v15315_v41, %v18249_v35 }
0x16d5   : > { %16479 = vmatpush3.msra.mxu1 %v15541_v47  ;;  %v15406_v47 = vadd.f32 %v15405_v37, %v15324_v9 }
0x16d6   : > { %16480 = vmatprep.subr.mxu1 %v15556_v63 }
0x16d7   : > { %16481 = vmatpush3.msra.mxu1 %v15540_v0  ;;  %v15492_v22 = vmax.f32 %v15406_v47, 0.0 }
0x16d8   : > { %16482 = vmatprep.subr.mxu1 %v15555_v60 }
0x16d9   : > { %16483 = vmatpush3.msra.mxu1 %v15539_v42 }
0x16da   : > { %16484 = vmatprep.subr.mxu1 %v15554_v34 }
0x16db   : > { %16485 = vmatpush3.msra.mxu1 %v15538_v62 }
0x16dc   : > { %16486 = vmatprep.subr.mxu1 %v15553_v8 }
0x16dd   : > { %16487 = vmatpush3.msra.mxu1 %v15537_v36 }
0x16de   : > { %16488 = vmatprep.subr.mxu1 %v15552_v45 }
0x16df   : > { %16489 = vmatpush3.msra.mxu1 %v15536_v46 }
0x16e0   : > { %16490 = vmatprep.subr.mxu1 %v15551_v51 }
0x16e1   : > { %16491 = vmatpush3.msra.mxu1 %v15535_v48 }
0x16e2   : > { %16492 = vmatprep.subr.mxu1 %v15550_v27 }
0x16e3   : > { %16493 = vmatpush3.msra.mxu1 %v15534_v44 }
0x16e4   : > { %16494 = vmatprep.subr.mxu1 %v15549_v1 }
0x16e5   : > { %16495 = vmatpush3.msra.mxu1 %v15533_v33 }
0x16e6   : > { %16496 = vmatprep.subr.mxu1 %v15548_v55 }
0x16e7   : > { %16497 = vmatpush3.msra.mxu1 %v15532_v61 }
0x16e9   : > { %v15480_v39 = vpop.f32.mrf.mxu1 }
0x16ea   : > { %v15481_v0 = vadd.f32 %v15480_v39, %v15328_v40 }
0x16eb   : > { %v15482_v17 = vpop.f32.mrf.mxu1 }
0x16ec   : > { %v15483_v2 = vadd.f32 %v15482_v17, %v15332_v49  ;;  %v15493_v58 = vmax.f32 %v15481_v0, 0.0 }
0x16ee   : > { %v15494_v60 = vmax.f32 %v15483_v2, 0.0 }
0x1759   : > { %v15220_v31 = vpop.xlane.xlu0 %15219 }
0x175a   : > { %v15222_v30 = vmul.f32 0.0078125, %v15220_v31  ;;  %v15515_v31 = vld [vmem:[%s18148_s26 + $0x80] sm:$0xff] }
0x175b   : > { %16460 = vmatprep.subr.mxu0 %v15515_v31 }
0x175c   : > { %v20539_v38 = vsub.f32 %v20527_v53, %v15222_v30  ;;  %v15547_v30 = vld [vmem:[%s18148_s26 + $0x180] sm:$0xff] }
0x175d   : > { %16498 = vmatprep.subr.mxu1 %v15547_v30 }
0x175e   : > { %v15226_v59 = vmul.f32 %v20539_v38, %v20539_v38  ;;  %16499 = vmatpush3.msra.mxu1 %v15531_v12 }
0x1760   : > { %15229 = vadd.xlane.f32.xlu0 %v15226_v59  ;;  %v15499_v59 = vld [vmem:[%s18148_s26] sm:$0xff] }
0x1761   : > { %16461 = vmatpush3.msra.mxu0 %v15499_v59 }
0x17e9   : > { %v15230_v21 = vpop.xlane.xlu0 %15229 }
0x17ea   : > { %v15232_v4 = vmul.f32 0.0078125, %v15230_v21 }
0x17ec   : > { %v15234_v25 = vadd.f32 1e-05, %v15232_v4 }
0x17ee   : > { %17365 = vrsqrt.f32 %v15234_v25 }
0x17fb   : > { %v17366_v54 = vpop.eup %17365 }
0x17fc   : > { %v15238_v13 = vmul.f32 %v17366_v54, %v20539_v38 }
0x17fe   : > { %v15244_v63 = vmul.f32 %v20476_v28, %v15238_v13 }
0x1800   : > { %v15250_v50 = vadd.f32 %v20485_v24, %v15244_v63 }
0x1802   : > { %15408 = vmatmul.mubr.f32.gmra.mxu0 %v15250_v50  ;;  %15485 = vmatmul.mubr.f32.gmra.mxu1 %v15250_v50 }
0x1803   : > { %15634 = vmatprep.mubr.f32.mxu0 %v15492_v22  ;;  %15709 = vmatprep.mubr.f32.mxu1 %v15494_v60 }
0x1806   : > { %15635 = vmatmul.mubr.f32.vlgmr.msra.gmra.mxu0 %v15491_v16  ;;  %15710 = vmatmul.mubr.f32.vlgmr.msra.gmra.mxu1 %v15493_v58 }
0x18c2   : > { %v15409_v35 = vpop.f32.mrf.mxu0  ;;  %v15486_v38 = vpop.f32.mrf.mxu1 }
0x18c3   : > { %v15410_v18 = vadd.f32 %v15409_v35, %v15320_v19  ;;  %v15487_v42 = vadd.f32 %v15486_v38, %v15328_v40 }
0x18c4   : > { %v15411_v28 = vpop.f32.mrf.mxu0  ;;  %v15488_v29 = vpop.f32.mrf.mxu1 }
0x18c5   : > { %v15412_v34 = vadd.f32 %v15411_v28, %v15324_v9  ;;  %v15489_v52 = vadd.f32 %v15488_v29, %v15332_v49  ;;  %v15495_v14 = vmax.f32 %v15410_v18, 0.0  ;;  %v15497_v36 = vmax.f32 %v15487_v42, 0.0 }
0x18c6   : > { %v16462_v24 = vpop.f32.mrf.mxu0  ;;  %v16500_v62 = vpop.f32.mrf.mxu1 }
0x18c7   : > { %v15496_v23 = vmax.f32 %v15412_v34, 0.0  ;;  %v15498_v8 = vmax.f32 %v15489_v52, 0.0 }
0x18c8   : > { %v16463_v45 = vpop.f32.mrf.mxu0  ;;  %v16501_v20 = vpop.f32.mrf.mxu1 }
0x18c9   : > { %v16464_v46 = vadd.f32 %v16463_v45, %v16462_v24  ;;  %15639 = vmatprep.mubr.f32.mxu0 %v15496_v23  ;;  %15714 = vmatprep.mubr.f32.mxu1 %v15498_v8  ;;  %v16502_v51 = vadd.f32 %v16501_v20, %v16500_v62 }
0x18ca   : > { %15640 = vmatmul.mubr.f32.gmra.mxu0 %v15495_v14  ;;  %15715 = vmatmul.mubr.f32.gmra.mxu1 %v15497_v36 }
0x18cb   : > { %v15637_v10 = vadd.f32 %v16464_v46, %v16121_v5 }
0x18cd   : > { %v15712_v56 = vadd.f32 %v16502_v51, %v15637_v10 }
0x18cf   : > { %v15720_v48 = vadd.f32 %v15712_v56, %v20362_v15 }
0x18d1   : > { %15722 = vst [vmem:[#allocation16] sm:$0xff] %v15720_v48 }
0x198a   : > { %v16465_v6 = vpop.f32.mrf.mxu0  ;;  %v16503_v27 = vpop.f32.mrf.mxu1 }
0x198c   : > { %v16466_v3 = vpop.f32.mrf.mxu0  ;;  %v16504_v44 = vpop.f32.mrf.mxu1 }
0x198d   : > { %v16467_v26 = vadd.f32 %v16466_v3, %v16465_v6  ;;  %v16505_v43 = vadd.f32 %v16504_v44, %v16503_v27 }
0x198f   : > { %v15642_v1 = vadd.f32 %v16467_v26, %v16121_v5 }
0x1991   : > { %v15717_v33 = vadd.f32 %v16505_v43, %v15642_v1 }
0x1993   : > { %v15721_v32 = vadd.f32 %v15717_v33, %v20527_v53 }
0x1995   : > { %15723 = vst [vmem:[#allocation16 + $0x8] sm:$0xff] %v15721_v32 }
0x1996   : > { %17694 = shalt.err (!%p17691_p5)
}
0x1997   : > { %s17797_s22 = smov 128   ;;  %s17798_s26 = smov 8  }
0x1998   : > { %s20733_s14 = sld [smem:[#allocation39_spill]] }
0x199e   : > { %17177 = dma.vmem_to_hbm [thread:$0]  (%p17221_p8), %s15734_s29, 256, %s20733_s14, [#allocation4], %s17797_s22, %s17797_s22, %s17798_s26  }
0x199f   : > { %17746 = dma.done.wait (%p17221_p8), [#allocation4], 256  }
0x19a0   : > { %17748 = vsyncadd (%p17221_p8), [#allocation4], 4294967040 }
0x19a1 PF: > { %s20734_s19 = sld [smem:[#allocation25_spill]]  ;;  %s20739_s24 = smov %s17767_s25 }
0x19a2   : > { %s20735_s21 = sld [smem:[#allocation22_spill]] }
0x19a3   : > { %s20736_s22 = sld [smem:[#allocation23_spill]] }
0x19a4   : > { %s20737_s23 = sld [smem:[#allocation29_spill]] }
0x19a5   : > { %s20738_s3 = sld [smem:[#allocation28_spill]] }
0x19a7   : > { %s30_s26 = sadd.s32 1, %s20734_s19  }
0x19a8   : > { %p27_p4 = scmp.ge.s32.totalorder %s30_s26, 4  }
0x19aa   :  { %29 = sbr.rel (!%p27_p4) target bundleno = 17 (0x11), region = 216 }
0x19ab   : > { %s20740_s25 = smov %s20738_s3 }
0x19af   :  { %15749 = vsyncpa [#allocation3], 1 }
0x19b0   :  { %15751 = vsyncpa [#allocation3 + $0x1], 1 }
0x19b1   :  { %15752 = vsyncpa [#allocation6], 1 }
0x19b2   :  { %15753 = vsyncpa [#allocation9], 1 }
0x19b3   :  { %15754 = vsyncpa [#allocation4], 1 }
0x19b4   :  { %15756 = vsyncpa [#allocation4 + $0x1], 1 }

</bundles_post_ra>
